<compile_context>
chip_gen: v7x
topology: tpu7x:2x2x1
jax: 0.10.0
libtpu: 0.0.40
codegen_flags: <defaults>
</compile_context>

<pallas_src>
import functools

import jax
import jax.numpy as jnp
from jax.experimental import pallas as pl
from jax.experimental.pallas import tpu as pltpu

AMINO_ACID_VOCAB_SIZE = 25
EMBEDDING_DIM = 32
MAX_LEN = 16
NUM_CLASSES = 8
HIDDEN = 64
CONV1_OUT, CONV1_K = 128, 3
CONV2_OUT, CONV2_K = 64, 5
CONV3_OUT, CONV3_K = 64, 11

BC = 8          # batch rows per grid chunk (= one f32 sublane tile)
NC_PAD = 128    # lane-dense classifier output width (classes live in cols [0, 8))


# ----------------------------------------------------------------------------
# Fused kernel: conv1/2/3 + ReLU -> BiLSTM -> classifier (one batch chunk)
# ----------------------------------------------------------------------------
def _fused_kernel(x_ref, cw1_ref, cb1_ref, cw2_ref, cb2_ref, cw3_ref, cb3_ref,
                  wih_ref, whhf_ref, whhb_ref, blstm_ref, wcls_ref, bcls_ref,
                  out_ref,
                  pad1_ref, pad2_ref, pad3_ref, pre_ref,
                  *, seq):
    H = HIDDEN
    Rc = seq * BC                     # rows in this chunk, time-major: row = t*BC + b
    P1, P2, P3 = CONV1_K // 2, CONV2_K // 2, CONV3_K // 2

    # ---------------- conv stack (channels-last, batch folded into rows) ------
    # 'same' padding realised as zero halo rows; only the halos are cleared,
    # the interior is fully overwritten right after.
    def zero_halo(pad_ref, p, cols):
        z = jnp.zeros((p * BC, cols), jnp.float32)
        pad_ref[0:p * BC, :] = z
        pad_ref[(p + seq) * BC:(2 * p + seq) * BC, :] = z

    zero_halo(pad1_ref, P1, EMBEDDING_DIM)
    zero_halo(pad2_ref, P2, CONV1_OUT)
    zero_halo(pad3_ref, P3, CONV2_OUT)
    pad1_ref[P1 * BC:P1 * BC + Rc, :] = x_ref[...]

    def conv_relu(pad_ref, w_ref, b_ref):
        ktaps, cout = w_ref.shape[0], w_ref.shape[2]
        acc = jnp.zeros((Rc, cout), jnp.float32)
        for k in range(ktaps):        # static tap loop; slice starts are multiples of 8
            tap = pad_ref[k * BC:k * BC + Rc, :].astype(jnp.bfloat16)
            acc = acc + jnp.dot(tap, w_ref[k], preferred_element_type=jnp.float32)
        return jnp.maximum(acc + b_ref[...], 0.0)

    h1 = conv_relu(pad1_ref, cw1_ref, cb1_ref)        # (Rc, 128) f32
    pad2_ref[P2 * BC:P2 * BC + Rc, :] = h1
    h2 = conv_relu(pad2_ref, cw2_ref, cb2_ref)        # (Rc, 64)
    pad3_ref[P3 * BC:P3 * BC + Rc, :] = h2
    xl = conv_relu(pad3_ref, cw3_ref, cb3_ref)        # (Rc, 64)
    # TODO(synk): dropout1/2/3 are identity in eval mode (no RNG masking applied).

    # ---------------- BiLSTM: hoisted input projection + fwd/bwd recurrence ----
    # pre[t*BC+b] = [x@Wih_f + b_f | x@Wih_b + b_b], gate order (i, f, o, g)
    pre_ref[...] = (jnp.dot(xl.astype(jnp.bfloat16), wih_ref[...],
                            preferred_element_type=jnp.float32)
                    + blstm_ref[...])                 # (Rc, 8H) f32

    def sig(v):                                       # sigmoid as a single EUP tanh
        return 0.5 * jnp.tanh(0.5 * v) + 0.5

    h_f = jnp.zeros((BC, H), jnp.bfloat16)
    h_b = jnp.zeros((BC, H), jnp.bfloat16)
    c_f = jnp.zeros((BC, H), jnp.float32)
    c_b = jnp.zeros((BC, H), jnp.float32)
    hf_steps = [None] * seq
    hb_steps = [None] * seq

    for s in range(seq):                              # static, fully unrolled
        # two independent 64-deep recurrent dots (no block-diag zeros, no concat)
        ph_f = jnp.dot(h_f, whhf_ref[...], preferred_element_type=jnp.float32)
        ph_b = jnp.dot(h_b, whhb_ref[...], preferred_element_type=jnp.float32)
        gf = pre_ref[s * BC:s * BC + BC, 0:4 * H] + ph_f
        gb = pre_ref[(seq - 1 - s) * BC:(seq - 1 - s) * BC + BC, 4 * H:8 * H] + ph_b
        sf = sig(gf[:, 0:3 * H])                      # [i | f | o]
        sb = sig(gb[:, 0:3 * H])
        tf = jnp.tanh(gf[:, 3 * H:4 * H])             # g
        tb = jnp.tanh(gb[:, 3 * H:4 * H])
        c_f = sf[:, H:2 * H] * c_f + sf[:, 0:H] * tf
        c_b = sb[:, H:2 * H] * c_b + sb[:, 0:H] * tb
        h_f = (sf[:, 2 * H:3 * H] * jnp.tanh(c_f)).astype(jnp.bfloat16)
        h_b = (sb[:, 2 * H:3 * H] * jnp.tanh(c_b)).astype(jnp.bfloat16)
        hf_steps[s] = h_f
        hb_steps[seq - 1 - s] = h_b

    # per-step hidden states stayed in registers; assemble once for the classifier
    ht = jnp.concatenate(
        [jnp.concatenate([hf_steps[t], hb_steps[t]], axis=1) for t in range(seq)],
        axis=0)                                       # (Rc, 2H) bf16

    # ---------------- classifier (lane-dense 128-wide output) ------------------
    out_ref[...] = (jnp.dot(ht, wcls_ref[...], preferred_element_type=jnp.float32)
                    + bcls_ref[...])


def _full_spec(shape):
    zeros = (0,) * len(shape)
    return pl.BlockSpec(shape, lambda c, _z=zeros: _z)


def fused_forward(x_tm, kp, nchunks, seq):
    Rc = seq * BC
    args = (x_tm, kp["cw1"], kp["cb1"], kp["cw2"], kp["cb2"], kp["cw3"], kp["cb3"],
            kp["wih"], kp["whhf"], kp["whhb"], kp["blstm"], kp["wcls"], kp["bcls"])
    in_specs = [pl.BlockSpec((Rc, EMBEDDING_DIM), lambda c: (c, 0))]
    in_specs += [_full_spec(a.shape) for a in args[1:]]
    kernel = functools.partial(_fused_kernel, seq=seq)
    return pl.pallas_call(
        kernel,
        out_shape=jax.ShapeDtypeStruct((nchunks * Rc, NC_PAD), jnp.float32),
        grid=(nchunks,),
        in_specs=in_specs,
        out_specs=pl.BlockSpec((Rc, NC_PAD), lambda c: (c, 0)),
        scratch_shapes=[
            pltpu.VMEM(((seq + 2 * (CONV1_K // 2)) * BC, EMBEDDING_DIM), jnp.float32),
            pltpu.VMEM(((seq + 2 * (CONV2_K // 2)) * BC, CONV1_OUT), jnp.float32),
            pltpu.VMEM(((seq + 2 * (CONV3_K // 2)) * BC, CONV2_OUT), jnp.float32),
            pltpu.VMEM((Rc, 8 * HIDDEN), jnp.float32),   # hoisted gate pre-activations
        ],
        compiler_params=pltpu.CompilerParams(dimension_semantics=("parallel",)),
    )(*args)


# ----------------------------------------------------------------------------
# Parameter init: PyTorch-shaped params, plus kernel-layout conversion
# ----------------------------------------------------------------------------
def init_params(key):
    ks = jax.random.split(key, 18)
    scale = 0.1
    H = HIDDEN

    def rnd(k, shape):
        return (scale * jax.random.normal(k, shape)).astype(jnp.float32)

    pt = {
        "emb": rnd(ks[0], (AMINO_ACID_VOCAB_SIZE, EMBEDDING_DIM)).at[0].set(0.0),
        "pos": rnd(ks[1], (MAX_LEN, EMBEDDING_DIM)),
        "w1": rnd(ks[2], (CONV1_OUT, EMBEDDING_DIM, CONV1_K)),
        "b1": rnd(ks[3], (CONV1_OUT,)),
        "w2": rnd(ks[4], (CONV2_OUT, CONV1_OUT, CONV2_K)),
        "b2": rnd(ks[5], (CONV2_OUT,)),
        "w3": rnd(ks[6], (CONV3_OUT, CONV2_OUT, CONV3_K)),
        "b3": rnd(ks[7], (CONV3_OUT,)),
        "wih_f": rnd(ks[8], (4 * H, CONV3_OUT)),
        "whh_f": rnd(ks[9], (4 * H, H)),
        "bih_f": rnd(ks[10], (4 * H,)),
        "bhh_f": rnd(ks[11], (4 * H,)),
        "wih_b": rnd(ks[12], (4 * H, CONV3_OUT)),
        "whh_b": rnd(ks[13], (4 * H, H)),
        "bih_b": rnd(ks[14], (4 * H,)),
        "bhh_b": rnd(ks[15], (4 * H,)),
        "wcls": rnd(ks[16], (NUM_CLASSES, 2 * H)),
        "bcls": rnd(ks[17], (NUM_CLASSES,)),
    }

    def permute_gates(w):      # last dim 4H ordered (i,f,g,o) -> (i,f,o,g)
        return jnp.concatenate([w[..., :2 * H], w[..., 3 * H:], w[..., 2 * H:3 * H]],
                               axis=-1)

    wih_f = permute_gates(pt["wih_f"].T)              # (64, 256)
    whh_f = permute_gates(pt["whh_f"].T)              # (64, 256)
    b_f = permute_gates((pt["bih_f"] + pt["bhh_f"])[None, :])
    wih_b = permute_gates(pt["wih_b"].T)
    whh_b = permute_gates(pt["whh_b"].T)
    b_b = permute_gates((pt["bih_b"] + pt["bhh_b"])[None, :])

    wcls_pad = jnp.zeros((2 * H, NC_PAD), jnp.float32).at[:, :NUM_CLASSES].set(pt["wcls"].T)
    bcls_pad = jnp.zeros((1, NC_PAD), jnp.float32).at[:, :NUM_CLASSES].set(pt["bcls"][None, :])

    bf = jnp.bfloat16
    kp = {
        "emb": pt["emb"],
        "pos": pt["pos"],
        "cw1": jnp.transpose(pt["w1"], (2, 1, 0)).astype(bf),   # (K, Cin, Cout)
        "cb1": pt["b1"][None, :],
        "cw2": jnp.transpose(pt["w2"], (2, 1, 0)).astype(bf),
        "cb2": pt["b2"][None, :],
        "cw3": jnp.transpose(pt["w3"], (2, 1, 0)).astype(bf),
        "cb3": pt["b3"][None, :],
        "wih": jnp.concatenate([wih_f, wih_b], axis=1).astype(bf),   # (64, 512)
        "whhf": whh_f.astype(bf),                                    # (64, 256)
        "whhb": whh_b.astype(bf),                                    # (64, 256)
        "blstm": jnp.concatenate([b_f, b_b], axis=1),                # (1, 512) f32
        "wcls": wcls_pad.astype(bf),                                 # (128, 128) lane-dense
        "bcls": bcls_pad,                                            # (1, 128) f32
    }
    return pt, kp


# ----------------------------------------------------------------------------
# Full forward (embedding gather + layout plumbing in plain JAX)
# ----------------------------------------------------------------------------
@jax.jit
def forward(tokens, kp):
    bsz, seq = tokens.shape
    tok = jnp.take(kp["emb"], tokens, axis=0)                    # (B, L, E)
    pos = kp["pos"][:seq][None, :, :]
    h = (tok + pos).astype(jnp.float32)
    nchunks = (bsz + BC - 1) // BC
    bpad = nchunks * BC
    h = jnp.pad(h, ((0, bpad - bsz), (0, 0), (0, 0)))
    # batch chunked into BC=8 sublane rows; time-major within a chunk (row = t*BC + b)
    x_tm = (h.reshape(nchunks, BC, seq, EMBEDDING_DIM)
             .transpose(0, 2, 1, 3)
             .reshape(nchunks * seq * BC, EMBEDDING_DIM))
    logits_tm = fused_forward(x_tm, kp, nchunks, seq)            # (nchunks*L*BC, 128)
    logits = (logits_tm.reshape(nchunks, seq, BC, NC_PAD)
               .transpose(0, 2, 1, 3)
               .reshape(bpad, seq, NC_PAD))
    return logits[:bsz, :, :NUM_CLASSES]


# ----------------------------------------------------------------------------
# Pure-JAX f32 reference (PyTorch-layout params) for a numerics check
# ----------------------------------------------------------------------------
def reference_forward(tokens, pt):
    H = HIDDEN
    bsz, seq = tokens.shape
    hi = jax.lax.Precision.HIGHEST
    x = pt["emb"][tokens] + pt["pos"][:seq][None, :, :]          # (B, L, E)

    def conv1d_same_relu(x, w, b):                               # w (Cout, Cin, K)
        k_taps = w.shape[2]
        p = k_taps // 2
        xp = jnp.pad(x, ((0, 0), (p, p), (0, 0)))
        out = jnp.zeros(x.shape[:2] + (w.shape[0],), jnp.float32)
        for k in range(k_taps):
            out = out + jnp.einsum("blc,oc->blo", xp[:, k:k + x.shape[1], :],
                                   w[:, :, k], precision=hi)
        return jnp.maximum(out + b[None, None, :], 0.0)

    h = conv1d_same_relu(x, pt["w1"], pt["b1"])
    h = conv1d_same_relu(h, pt["w2"], pt["b2"])
    h = conv1d_same_relu(h, pt["w3"], pt["b3"])

    def lstm_dir(xs, wih, whh, bih, bhh, reverse):
        def cell(carry, x_t):
            hh, cc = carry
            pre = (jnp.dot(x_t, wih.T, precision=hi)
                   + jnp.dot(hh, whh.T, precision=hi) + bih + bhh)
            i = jax.nn.sigmoid(pre[:, 0:H])
            f = jax.nn.sigmoid(pre[:, H:2 * H])
            g = jnp.tanh(pre[:, 2 * H:3 * H])
            o = jax.nn.sigmoid(pre[:, 3 * H:4 * H])
            cc = f * cc + i * g
            hh = o * jnp.tanh(cc)
            return (hh, cc), hh

        xs_t = jnp.swapaxes(xs, 0, 1)                            # (L, B, D)
        if reverse:
            xs_t = xs_t[::-1]
        init = (jnp.zeros((bsz, H), jnp.float32), jnp.zeros((bsz, H), jnp.float32))
        _, hs = jax.lax.scan(cell, init, xs_t)
        if reverse:
            hs = hs[::-1]
        return jnp.swapaxes(hs, 0, 1)                            # (B, L, H)

    hf = lstm_dir(h, pt["wih_f"], pt["whh_f"], pt["bih_f"], pt["bhh_f"], False)
    hb = lstm_dir(h, pt["wih_b"], pt["whh_b"], pt["bih_b"], pt["bhh_b"], True)
    comb = jnp.concatenate([hf, hb], axis=-1)                    # (B, L, 2H)
    return jnp.dot(comb, pt["wcls"].T, precision=hi) + pt["bcls"][None, None, :]


if __name__ == "__main__":
    key = jax.random.PRNGKey(0)
    key_params, key_tok = jax.random.split(key)
    pt_params, kn_params = init_params(key_params)

    B, L = 2, MAX_LEN
    tokens = jax.random.randint(key_tok, (B, L), 0, AMINO_ACID_VOCAB_SIZE,
                                dtype=jnp.int32)

    logits = forward(tokens, kn_params)
    logits = jax.block_until_ready(logits)

    assert logits.shape == (B, L, NUM_CLASSES), logits.shape
    assert bool(jnp.all(jnp.isfinite(logits)))

    # validate gate permutation / split W_hh / batch-padded time-major plumbing.
    # kernel uses bf16 matmul operands with f32 accumulation, so tolerance is
    # loosened slightly vs the pure-f32 reference.
    ref = reference_forward(tokens, pt_params)
    max_diff = float(jnp.max(jnp.abs(logits - ref)))
    assert max_diff < 5e-2, f"kernel vs reference mismatch: max|diff|={max_diff}"

    print("KERNEL_OK")
</pallas_src>

<mosaic_0001>
module attributes {stable_mosaic.version = 11 : i64} {
  func.func @_fused_kernel(%arg0: i32, %arg1: memref<128x32xf32, #tpu.memory_space<vmem>>, %arg2: memref<3x32x128xbf16, #tpu.memory_space<vmem>>, %arg3: memref<1x128xf32, #tpu.memory_space<vmem>>, %arg4: memref<5x128x64xbf16, #tpu.memory_space<vmem>>, %arg5: memref<1x64xf32, #tpu.memory_space<vmem>>, %arg6: memref<11x64x64xbf16, #tpu.memory_space<vmem>>, %arg7: memref<1x64xf32, #tpu.memory_space<vmem>>, %arg8: memref<64x512xbf16, #tpu.memory_space<vmem>>, %arg9: memref<64x256xbf16, #tpu.memory_space<vmem>>, %arg10: memref<64x256xbf16, #tpu.memory_space<vmem>>, %arg11: memref<1x512xf32, #tpu.memory_space<vmem>>, %arg12: memref<128x128xbf16, #tpu.memory_space<vmem>>, %arg13: memref<1x128xf32, #tpu.memory_space<vmem>>, %arg14: memref<128x128xf32, #tpu.memory_space<vmem>>, %arg15: memref<144x32xf32, #tpu.memory_space<vmem>>, %arg16: memref<160x128xf32, #tpu.memory_space<vmem>>, %arg17: memref<208x64xf32, #tpu.memory_space<vmem>>, %arg18: memref<128x512xf32, #tpu.memory_space<vmem>>) attributes {dimension_semantics = [#tpu.dimension_semantics<parallel>], iteration_bounds = array<i64: 1>, scalar_prefetch = 0 : i64, scratch_operands = 4 : i64, tpu.core_type = #tpu.core_type<tc>, window_params = [{transform_indices = @transform_0, window_bounds = array<i64: 128, 32>}, {pipeline_mode = #tpu.pipeline_mode<synchronous>, transform_indices = @transform_1, window_bounds = array<i64: 3, 32, 128>}, {pipeline_mode = #tpu.pipeline_mode<synchronous>, transform_indices = @transform_2, window_bounds = array<i64: 1, 128>}, {pipeline_mode = #tpu.pipeline_mode<synchronous>, transform_indices = @transform_3, window_bounds = array<i64: 5, 128, 64>}, {pipeline_mode = #tpu.pipeline_mode<synchronous>, transform_indices = @transform_4, window_bounds = array<i64: 1, 64>}, {pipeline_mode = #tpu.pipeline_mode<synchronous>, transform_indices = @transform_5, window_bounds = array<i64: 11, 64, 64>}, {pipeline_mode = #tpu.pipeline_mode<synchronous>, transform_indices = @transform_6, window_bounds = array<i64: 1, 64>}, {pipeline_mode = #tpu.pipeline_mode<synchronous>, transform_indices = @transform_7, window_bounds = array<i64: 64, 512>}, {pipeline_mode = #tpu.pipeline_mode<synchronous>, transform_indices = @transform_8, window_bounds = array<i64: 64, 256>}, {pipeline_mode = #tpu.pipeline_mode<synchronous>, transform_indices = @transform_9, window_bounds = array<i64: 64, 256>}, {pipeline_mode = #tpu.pipeline_mode<synchronous>, transform_indices = @transform_10, window_bounds = array<i64: 1, 512>}, {pipeline_mode = #tpu.pipeline_mode<synchronous>, transform_indices = @transform_11, window_bounds = array<i64: 128, 128>}, {pipeline_mode = #tpu.pipeline_mode<synchronous>, transform_indices = @transform_12, window_bounds = array<i64: 1, 128>}, {transform_indices = @transform_13, window_bounds = array<i64: 128, 128>}]} {
    %cst = arith.constant 0.000000e+00 : f32
    %0 = vector.broadcast %cst : f32 to vector<8x32xf32>
    %c0 = arith.constant 0 : index
    %c0_0 = arith.constant 0 : index
    %1 = vector.load %arg15[%c0, %c0_0] : memref<144x32xf32, #tpu.memory_space<vmem>>, vector<8x32xf32>
    tpu.vector_store %arg15[%c0, %c0_0], %0 {strides = array<i32>} : memref<144x32xf32, #tpu.memory_space<vmem>>, vector<8x32xf32>,
    %c136 = arith.constant 136 : index
    %c0_1 = arith.constant 0 : index
    %2 = vector.load %arg15[%c136, %c0_1] : memref<144x32xf32, #tpu.memory_space<vmem>>, vector<8x32xf32>
    tpu.vector_store %arg15[%c136, %c0_1], %0 {strides = array<i32>} : memref<144x32xf32, #tpu.memory_space<vmem>>, vector<8x32xf32>,
    %cst_2 = arith.constant 0.000000e+00 : f32
    %3 = vector.broadcast %cst_2 : f32 to vector<16x128xf32>
    %c0_3 = arith.constant 0 : index
    %c0_4 = arith.constant 0 : index
    %4 = vector.load %arg16[%c0_3, %c0_4] : memref<160x128xf32, #tpu.memory_space<vmem>>, vector<16x128xf32>
    tpu.vector_store %arg16[%c0_3, %c0_4], %3 {strides = array<i32>} : memref<160x128xf32, #tpu.memory_space<vmem>>, vector<16x128xf32>,
    %c144 = arith.constant 144 : index
    %c0_5 = arith.constant 0 : index
    %5 = vector.load %arg16[%c144, %c0_5] : memref<160x128xf32, #tpu.memory_space<vmem>>, vector<16x128xf32>
    tpu.vector_store %arg16[%c144, %c0_5], %3 {strides = array<i32>} : memref<160x128xf32, #tpu.memory_space<vmem>>, vector<16x128xf32>,
    %cst_6 = arith.constant 0.000000e+00 : f32
    %6 = vector.broadcast %cst_6 : f32 to vector<40x64xf32>
    %c0_7 = arith.constant 0 : index
    %c0_8 = arith.constant 0 : index
    %7 = vector.load %arg17[%c0_7, %c0_8] : memref<208x64xf32, #tpu.memory_space<vmem>>, vector<40x64xf32>
    tpu.vector_store %arg17[%c0_7, %c0_8], %6 {strides = array<i32>} : memref<208x64xf32, #tpu.memory_space<vmem>>, vector<40x64xf32>,
    %c168 = arith.constant 168 : index
    %c0_9 = arith.constant 0 : index
    %8 = vector.load %arg17[%c168, %c0_9] : memref<208x64xf32, #tpu.memory_space<vmem>>, vector<40x64xf32>
    tpu.vector_store %arg17[%c168, %c0_9], %6 {strides = array<i32>} : memref<208x64xf32, #tpu.memory_space<vmem>>, vector<40x64xf32>,
    %c0_10 = arith.constant 0 : index
    %c0_11 = arith.constant 0 : index
    %9 = vector.load %arg1[%c0_10, %c0_11] : memref<128x32xf32, #tpu.memory_space<vmem>>, vector<128x32xf32>
    %c8 = arith.constant 8 : index
    %c0_12 = arith.constant 0 : index
    %10 = vector.load %arg15[%c8, %c0_12] : memref<144x32xf32, #tpu.memory_space<vmem>>, vector<128x32xf32>
    tpu.vector_store %arg15[%c8, %c0_12], %9 {strides = array<i32>} : memref<144x32xf32, #tpu.memory_space<vmem>>, vector<128x32xf32>,
    %cst_13 = arith.constant 0.000000e+00 : f32
    %11 = vector.broadcast %cst_13 : f32 to vector<128x128xf32>
    %c0_14 = arith.constant 0 : index
    %c0_15 = arith.constant 0 : index
    %12 = vector.load %arg15[%c0_14, %c0_15] : memref<144x32xf32, #tpu.memory_space<vmem>>, vector<128x32xf32>
    %13 = arith.truncf %12 : vector<128x32xf32> to vector<128x32xbf16>
    %c0_16 = arith.constant 0 : index
    %c0_17 = arith.constant 0 : index
    %c0_18 = arith.constant 0 : index
    %14 = vector.load %arg2[%c0_16, %c0_17, %c0_18] : memref<3x32x128xbf16, #tpu.memory_space<vmem>>, vector<1x32x128xbf16>
    %15 = vector.shape_cast %14 : vector<1x32x128xbf16> to vector<32x128xbf16>
    %cst_19 = arith.constant dense<0.000000e+00> : vector<128x128xf32>
    %16 = tpu.matmul %13, %15, %cst_19 {dimension_numbers = #tpu.dot_dimension_numbers<[1], [0], [0], [1], [0, 0, 1, 1], [], []>} : vector<128x32xbf16>, vector<32x128xbf16>, vector<128x128xf32> -> vector<128x128xf32>
    %17 = arith.addf %11, %16 : vector<128x128xf32>
    %c8_20 = arith.constant 8 : index
    %c0_21 = arith.constant 0 : index
    %18 = vector.load %arg15[%c8_20, %c0_21] : memref<144x32xf32, #tpu.memory_space<vmem>>, vector<128x32xf32>
    %19 = arith.truncf %18 : vector<128x32xf32> to vector<128x32xbf16>
    %c1 = arith.constant 1 : index
    %c0_22 = arith.constant 0 : index
    %c0_23 = arith.constant 0 : index
    %20 = vector.load %arg2[%c1, %c0_22, %c0_23] : memref<3x32x128xbf16, #tpu.memory_space<vmem>>, vector<1x32x128xbf16>
    %21 = vector.shape_cast %20 : vector<1x32x128xbf16> to vector<32x128xbf16>
    %cst_24 = arith.constant dense<0.000000e+00> : vector<128x128xf32>
    %22 = tpu.matmul %19, %21, %cst_24 {dimension_numbers = #tpu.dot_dimension_numbers<[1], [0], [0], [1], [0, 0, 1, 1], [], []>} : vector<128x32xbf16>, vector<32x128xbf16>, vector<128x128xf32> -> vector<128x128xf32>
    %23 = arith.addf %17, %22 : vector<128x128xf32>
    %c16 = arith.constant 16 : index
    %c0_25 = arith.constant 0 : index
    %24 = vector.load %arg15[%c16, %c0_25] : memref<144x32xf32, #tpu.memory_space<vmem>>, vector<128x32xf32>
    %25 = arith.truncf %24 : vector<128x32xf32> to vector<128x32xbf16>
    %c2 = arith.constant 2 : index
    %c0_26 = arith.constant 0 : index
    %c0_27 = arith.constant 0 : index
    %26 = vector.load %arg2[%c2, %c0_26, %c0_27] : memref<3x32x128xbf16, #tpu.memory_space<vmem>>, vector<1x32x128xbf16>
    %27 = vector.shape_cast %26 : vector<1x32x128xbf16> to vector<32x128xbf16>
    %cst_28 = arith.constant dense<0.000000e+00> : vector<128x128xf32>
    %28 = tpu.matmul %25, %27, %cst_28 {dimension_numbers = #tpu.dot_dimension_numbers<[1], [0], [0], [1], [0, 0, 1, 1], [], []>} : vector<128x32xbf16>, vector<32x128xbf16>, vector<128x128xf32> -> vector<128x128xf32>
    %29 = arith.addf %23, %28 : vector<128x128xf32>
    %c0_29 = arith.constant 0 : index
    %c0_30 = arith.constant 0 : index
    %30 = vector.load %arg3[%c0_29, %c0_30] : memref<1x128xf32, #tpu.memory_space<vmem>>, vector<1x128xf32>
    %31 = vector.broadcast %30 : vector<1x128xf32> to vector<128x128xf32>
    %32 = arith.addf %29, %31 : vector<128x128xf32>
    %cst_31 = arith.constant 0.000000e+00 : f32
    %33 = vector.broadcast %cst_31 : f32 to vector<128x128xf32>
    %34 = arith.maximumf %32, %33 : vector<128x128xf32>
    %c16_32 = arith.constant 16 : index
    %c0_33 = arith.constant 0 : index
    %35 = vector.load %arg16[%c16_32, %c0_33] : memref<160x128xf32, #tpu.memory_space<vmem>>, vector<128x128xf32>
    tpu.vector_store %arg16[%c16_32, %c0_33], %34 {strides = array<i32>} : memref<160x128xf32, #tpu.memory_space<vmem>>, vector<128x128xf32>,
    %cst_34 = arith.constant 0.000000e+00 : f32
    %36 = vector.broadcast %cst_34 : f32 to vector<128x64xf32>
    %c0_35 = arith.constant 0 : index
    %c0_36 = arith.constant 0 : index
    %37 = vector.load %arg16[%c0_35, %c0_36] : memref<160x128xf32, #tpu.memory_space<vmem>>, vector<128x128xf32>
    %38 = arith.truncf %37 : vector<128x128xf32> to vector<128x128xbf16>
    %c0_37 = arith.constant 0 : index
    %c0_38 = arith.constant 0 : index
    %c0_39 = arith.constant 0 : index
    %39 = vector.load %arg4[%c0_37, %c0_38, %c0_39] : memref<5x128x64xbf16, #tpu.memory_space<vmem>>, vector<1x128x64xbf16>
    %40 = vector.shape_cast %39 : vector<1x128x64xbf16> to vector<128x64xbf16>
    %cst_40 = arith.constant dense<0.000000e+00> : vector<128x64xf32>
    %41 = tpu.matmul %38, %40, %cst_40 {dimension_numbers = #tpu.dot_dimension_numbers<[1], [0], [0], [1], [0, 0, 1, 1], [], []>} : vector<128x128xbf16>, vector<128x64xbf16>, vector<128x64xf32> -> vector<128x64xf32>
    %42 = arith.addf %36, %41 : vector<128x64xf32>
    %c8_41 = arith.constant 8 : index
    %c0_42 = arith.constant 0 : index
    %43 = vector.load %arg16[%c8_41, %c0_42] : memref<160x128xf32, #tpu.memory_space<vmem>>, vector<128x128xf32>
    %44 = arith.truncf %43 : vector<128x128xf32> to vector<128x128xbf16>
    %c1_43 = arith.constant 1 : index
    %c0_44 = arith.constant 0 : index
    %c0_45 = arith.constant 0 : index
    %45 = vector.load %arg4[%c1_43, %c0_44, %c0_45] : memref<5x128x64xbf16, #tpu.memory_space<vmem>>, vector<1x128x64xbf16>
    %46 = vector.shape_cast %45 : vector<1x128x64xbf16> to vector<128x64xbf16>
    %cst_46 = arith.constant dense<0.000000e+00> : vector<128x64xf32>
    %47 = tpu.matmul %44, %46, %cst_46 {dimension_numbers = #tpu.dot_dimension_numbers<[1], [0], [0], [1], [0, 0, 1, 1], [], []>} : vector<128x128xbf16>, vector<128x64xbf16>, vector<128x64xf32> -> vector<128x64xf32>
    %48 = arith.addf %42, %47 : vector<128x64xf32>
    %c16_47 = arith.constant 16 : index
    %c0_48 = arith.constant 0 : index
    %49 = vector.load %arg16[%c16_47, %c0_48] : memref<160x128xf32, #tpu.memory_space<vmem>>, vector<128x128xf32>
    %50 = arith.truncf %49 : vector<128x128xf32> to vector<128x128xbf16>
    %c2_49 = arith.constant 2 : index
    %c0_50 = arith.constant 0 : index
    %c0_51 = arith.constant 0 : index
    %51 = vector.load %arg4[%c2_49, %c0_50, %c0_51] : memref<5x128x64xbf16, #tpu.memory_space<vmem>>, vector<1x128x64xbf16>
    %52 = vector.shape_cast %51 : vector<1x128x64xbf16> to vector<128x64xbf16>
    %cst_52 = arith.constant dense<0.000000e+00> : vector<128x64xf32>
    %53 = tpu.matmul %50, %52, %cst_52 {dimension_numbers = #tpu.dot_dimension_numbers<[1], [0], [0], [1], [0, 0, 1, 1], [], []>} : vector<128x128xbf16>, vector<128x64xbf16>, vector<128x64xf32> -> vector<128x64xf32>
    %54 = arith.addf %48, %53 : vector<128x64xf32>
    %c24 = arith.constant 24 : index
    %c0_53 = arith.constant 0 : index
    %55 = vector.load %arg16[%c24, %c0_53] : memref<160x128xf32, #tpu.memory_space<vmem>>, vector<128x128xf32>
    %56 = arith.truncf %55 : vector<128x128xf32> to vector<128x128xbf16>
    %c3 = arith.constant 3 : index
    %c0_54 = arith.constant 0 : index
    %c0_55 = arith.constant 0 : index
    %57 = vector.load %arg4[%c3, %c0_54, %c0_55] : memref<5x128x64xbf16, #tpu.memory_space<vmem>>, vector<1x128x64xbf16>
    %58 = vector.shape_cast %57 : vector<1x128x64xbf16> to vector<128x64xbf16>
    %cst_56 = arith.constant dense<0.000000e+00> : vector<128x64xf32>
    %59 = tpu.matmul %56, %58, %cst_56 {dimension_numbers = #tpu.dot_dimension_numbers<[1], [0], [0], [1], [0, 0, 1, 1], [], []>} : vector<128x128xbf16>, vector<128x64xbf16>, vector<128x64xf32> -> vector<128x64xf32>
    %60 = arith.addf %54, %59 : vector<128x64xf32>
    %c32 = arith.constant 32 : index
    %c0_57 = arith.constant 0 : index
    %61 = vector.load %arg16[%c32, %c0_57] : memref<160x128xf32, #tpu.memory_space<vmem>>, vector<128x128xf32>
    %62 = arith.truncf %61 : vector<128x128xf32> to vector<128x128xbf16>
    %c4 = arith.constant 4 : index
    %c0_58 = arith.constant 0 : index
    %c0_59 = arith.constant 0 : index
    %63 = vector.load %arg4[%c4, %c0_58, %c0_59] : memref<5x128x64xbf16, #tpu.memory_space<vmem>>, vector<1x128x64xbf16>
    %64 = vector.shape_cast %63 : vector<1x128x64xbf16> to vector<128x64xbf16>
    %cst_60 = arith.constant dense<0.000000e+00> : vector<128x64xf32>
    %65 = tpu.matmul %62, %64, %cst_60 {dimension_numbers = #tpu.dot_dimension_numbers<[1], [0], [0], [1], [0, 0, 1, 1], [], []>} : vector<128x128xbf16>, vector<128x64xbf16>, vector<128x64xf32> -> vector<128x64xf32>
    %66 = arith.addf %60, %65 : vector<128x64xf32>
    %c0_61 = arith.constant 0 : index
    %c0_62 = arith.constant 0 : index
    %67 = vector.load %arg5[%c0_61, %c0_62] : memref<1x64xf32, #tpu.memory_space<vmem>>, vector<1x64xf32>
    %68 = vector.broadcast %67 : vector<1x64xf32> to vector<128x64xf32>
    %69 = arith.addf %66, %68 : vector<128x64xf32>
    %cst_63 = arith.constant 0.000000e+00 : f32
    %70 = vector.broadcast %cst_63 : f32 to vector<128x64xf32>
    %71 = arith.maximumf %69, %70 : vector<128x64xf32>
    %c40 = arith.constant 40 : index
    %c0_64 = arith.constant 0 : index
    %72 = vector.load %arg17[%c40, %c0_64] : memref<208x64xf32, #tpu.memory_space<vmem>>, vector<128x64xf32>
    tpu.vector_store %arg17[%c40, %c0_64], %71 {strides = array<i32>} : memref<208x64xf32, #tpu.memory_space<vmem>>, vector<128x64xf32>,
    %cst_65 = arith.constant 0.000000e+00 : f32
    %73 = vector.broadcast %cst_65 : f32 to vector<128x64xf32>
    %c0_66 = arith.constant 0 : index
    %c0_67 = arith.constant 0 : index
    %74 = vector.load %arg17[%c0_66, %c0_67] : memref<208x64xf32, #tpu.memory_space<vmem>>, vector<128x64xf32>
    %75 = arith.truncf %74 : vector<128x64xf32> to vector<128x64xbf16>
    %c0_68 = arith.constant 0 : index
    %c0_69 = arith.constant 0 : index
    %c0_70 = arith.constant 0 : index
    %76 = vector.load %arg6[%c0_68, %c0_69, %c0_70] : memref<11x64x64xbf16, #tpu.memory_space<vmem>>, vector<1x64x64xbf16>
    %77 = vector.shape_cast %76 : vector<1x64x64xbf16> to vector<64x64xbf16>
    %cst_71 = arith.constant dense<0.000000e+00> : vector<128x64xf32>
    %78 = tpu.matmul %75, %77, %cst_71 {dimension_numbers = #tpu.dot_dimension_numbers<[1], [0], [0], [1], [0, 0, 1, 1], [], []>} : vector<128x64xbf16>, vector<64x64xbf16>, vector<128x64xf32> -> vector<128x64xf32>
    %79 = arith.addf %73, %78 : vector<128x64xf32>
    %c8_72 = arith.constant 8 : index
    %c0_73 = arith.constant 0 : index
    %80 = vector.load %arg17[%c8_72, %c0_73] : memref<208x64xf32, #tpu.memory_space<vmem>>, vector<128x64xf32>
    %81 = arith.truncf %80 : vector<128x64xf32> to vector<128x64xbf16>
    %c1_74 = arith.constant 1 : index
    %c0_75 = arith.constant 0 : index
    %c0_76 = arith.constant 0 : index
    %82 = vector.load %arg6[%c1_74, %c0_75, %c0_76] : memref<11x64x64xbf16, #tpu.memory_space<vmem>>, vector<1x64x64xbf16>
    %83 = vector.shape_cast %82 : vector<1x64x64xbf16> to vector<64x64xbf16>
    %cst_77 = arith.constant dense<0.000000e+00> : vector<128x64xf32>
    %84 = tpu.matmul %81, %83, %cst_77 {dimension_numbers = #tpu.dot_dimension_numbers<[1], [0], [0], [1], [0, 0, 1, 1], [], []>} : vector<128x64xbf16>, vector<64x64xbf16>, vector<128x64xf32> -> vector<128x64xf32>
    %85 = arith.addf %79, %84 : vector<128x64xf32>
    %c16_78 = arith.constant 16 : index
    %c0_79 = arith.constant 0 : index
    %86 = vector.load %arg17[%c16_78, %c0_79] : memref<208x64xf32, #tpu.memory_space<vmem>>, vector<128x64xf32>
    %87 = arith.truncf %86 : vector<128x64xf32> to vector<128x64xbf16>
    %c2_80 = arith.constant 2 : index
    %c0_81 = arith.constant 0 : index
    %c0_82 = arith.constant 0 : index
    %88 = vector.load %arg6[%c2_80, %c0_81, %c0_82] : memref<11x64x64xbf16, #tpu.memory_space<vmem>>, vector<1x64x64xbf16>
    %89 = vector.shape_cast %88 : vector<1x64x64xbf16> to vector<64x64xbf16>
    %cst_83 = arith.constant dense<0.000000e+00> : vector<128x64xf32>
    %90 = tpu.matmul %87, %89, %cst_83 {dimension_numbers = #tpu.dot_dimension_numbers<[1], [0], [0], [1], [0, 0, 1, 1], [], []>} : vector<128x64xbf16>, vector<64x64xbf16>, vector<128x64xf32> -> vector<128x64xf32>
    %91 = arith.addf %85, %90 : vector<128x64xf32>
    %c24_84 = arith.constant 24 : index
    %c0_85 = arith.constant 0 : index
    %92 = vector.load %arg17[%c24_84, %c0_85] : memref<208x64xf32, #tpu.memory_space<vmem>>, vector<128x64xf32>
    %93 = arith.truncf %92 : vector<128x64xf32> to vector<128x64xbf16>
    %c3_86 = arith.constant 3 : index
    %c0_87 = arith.constant 0 : index
    %c0_88 = arith.constant 0 : index
    %94 = vector.load %arg6[%c3_86, %c0_87, %c0_88] : memref<11x64x64xbf16, #tpu.memory_space<vmem>>, vector<1x64x64xbf16>
    %95 = vector.shape_cast %94 : vector<1x64x64xbf16> to vector<64x64xbf16>
    %cst_89 = arith.constant dense<0.000000e+00> : vector<128x64xf32>
    %96 = tpu.matmul %93, %95, %cst_89 {dimension_numbers = #tpu.dot_dimension_numbers<[1], [0], [0], [1], [0, 0, 1, 1], [], []>} : vector<128x64xbf16>, vector<64x64xbf16>, vector<128x64xf32> -> vector<128x64xf32>
    %97 = arith.addf %91, %96 : vector<128x64xf32>
    %c32_90 = arith.constant 32 : index
    %c0_91 = arith.constant 0 : index
    %98 = vector.load %arg17[%c32_90, %c0_91] : memref<208x64xf32, #tpu.memory_space<vmem>>, vector<128x64xf32>
    %99 = arith.truncf %98 : vector<128x64xf32> to vector<128x64xbf16>
    %c4_92 = arith.constant 4 : index
    %c0_93 = arith.constant 0 : index
    %c0_94 = arith.constant 0 : index
    %100 = vector.load %arg6[%c4_92, %c0_93, %c0_94] : memref<11x64x64xbf16, #tpu.memory_space<vmem>>, vector<1x64x64xbf16>
    %101 = vector.shape_cast %100 : vector<1x64x64xbf16> to vector<64x64xbf16>
    %cst_95 = arith.constant dense<0.000000e+00> : vector<128x64xf32>
    %102 = tpu.matmul %99, %101, %cst_95 {dimension_numbers = #tpu.dot_dimension_numbers<[1], [0], [0], [1], [0, 0, 1, 1], [], []>} : vector<128x64xbf16>, vector<64x64xbf16>, vector<128x64xf32> -> vector<128x64xf32>
    %103 = arith.addf %97, %102 : vector<128x64xf32>
    %c40_96 = arith.constant 40 : index
    %c0_97 = arith.constant 0 : index
    %104 = vector.load %arg17[%c40_96, %c0_97] : memref<208x64xf32, #tpu.memory_space<vmem>>, vector<128x64xf32>
    %105 = arith.truncf %104 : vector<128x64xf32> to vector<128x64xbf16>
    %c5 = arith.constant 5 : index
    %c0_98 = arith.constant 0 : index
    %c0_99 = arith.constant 0 : index
    %106 = vector.load %arg6[%c5, %c0_98, %c0_99] : memref<11x64x64xbf16, #tpu.memory_space<vmem>>, vector<1x64x64xbf16>
    %107 = vector.shape_cast %106 : vector<1x64x64xbf16> to vector<64x64xbf16>
    %cst_100 = arith.constant dense<0.000000e+00> : vector<128x64xf32>
    %108 = tpu.matmul %105, %107, %cst_100 {dimension_numbers = #tpu.dot_dimension_numbers<[1], [0], [0], [1], [0, 0, 1, 1], [], []>} : vector<128x64xbf16>, vector<64x64xbf16>, vector<128x64xf32> -> vector<128x64xf32>
    %109 = arith.addf %103, %108 : vector<128x64xf32>
    %c48 = arith.constant 48 : index
    %c0_101 = arith.constant 0 : index
    %110 = vector.load %arg17[%c48, %c0_101] : memref<208x64xf32, #tpu.memory_space<vmem>>, vector<128x64xf32>
    %111 = arith.truncf %110 : vector<128x64xf32> to vector<128x64xbf16>
    %c6 = arith.constant 6 : index
    %c0_102 = arith.constant 0 : index
    %c0_103 = arith.constant 0 : index
    %112 = vector.load %arg6[%c6, %c0_102, %c0_103] : memref<11x64x64xbf16, #tpu.memory_space<vmem>>, vector<1x64x64xbf16>
    %113 = vector.shape_cast %112 : vector<1x64x64xbf16> to vector<64x64xbf16>
    %cst_104 = arith.constant dense<0.000000e+00> : vector<128x64xf32>
    %114 = tpu.matmul %111, %113, %cst_104 {dimension_numbers = #tpu.dot_dimension_numbers<[1], [0], [0], [1], [0, 0, 1, 1], [], []>} : vector<128x64xbf16>, vector<64x64xbf16>, vector<128x64xf32> -> vector<128x64xf32>
    %115 = arith.addf %109, %114 : vector<128x64xf32>
    %c56 = arith.constant 56 : index
    %c0_105 = arith.constant 0 : index
    %116 = vector.load %arg17[%c56, %c0_105] : memref<208x64xf32, #tpu.memory_space<vmem>>, vector<128x64xf32>
    %117 = arith.truncf %116 : vector<128x64xf32> to vector<128x64xbf16>
    %c7 = arith.constant 7 : index
    %c0_106 = arith.constant 0 : index
    %c0_107 = arith.constant 0 : index
    %118 = vector.load %arg6[%c7, %c0_106, %c0_107] : memref<11x64x64xbf16, #tpu.memory_space<vmem>>, vector<1x64x64xbf16>
    %119 = vector.shape_cast %118 : vector<1x64x64xbf16> to vector<64x64xbf16>
    %cst_108 = arith.constant dense<0.000000e+00> : vector<128x64xf32>
    %120 = tpu.matmul %117, %119, %cst_108 {dimension_numbers = #tpu.dot_dimension_numbers<[1], [0], [0], [1], [0, 0, 1, 1], [], []>} : vector<128x64xbf16>, vector<64x64xbf16>, vector<128x64xf32> -> vector<128x64xf32>
    %121 = arith.addf %115, %120 : vector<128x64xf32>
    %c64 = arith.constant 64 : index
    %c0_109 = arith.constant 0 : index
    %122 = vector.load %arg17[%c64, %c0_109] : memref<208x64xf32, #tpu.memory_space<vmem>>, vector<128x64xf32>
    %123 = arith.truncf %122 : vector<128x64xf32> to vector<128x64xbf16>
    %c8_110 = arith.constant 8 : index
    %c0_111 = arith.constant 0 : index
    %c0_112 = arith.constant 0 : index
    %124 = vector.load %arg6[%c8_110, %c0_111, %c0_112] : memref<11x64x64xbf16, #tpu.memory_space<vmem>>, vector<1x64x64xbf16>
    %125 = vector.shape_cast %124 : vector<1x64x64xbf16> to vector<64x64xbf16>
    %cst_113 = arith.constant dense<0.000000e+00> : vector<128x64xf32>
    %126 = tpu.matmul %123, %125, %cst_113 {dimension_numbers = #tpu.dot_dimension_numbers<[1], [0], [0], [1], [0, 0, 1, 1], [], []>} : vector<128x64xbf16>, vector<64x64xbf16>, vector<128x64xf32> -> vector<128x64xf32>
    %127 = arith.addf %121, %126 : vector<128x64xf32>
    %c72 = arith.constant 72 : index
    %c0_114 = arith.constant 0 : index
    %128 = vector.load %arg17[%c72, %c0_114] : memref<208x64xf32, #tpu.memory_space<vmem>>, vector<128x64xf32>
    %129 = arith.truncf %128 : vector<128x64xf32> to vector<128x64xbf16>
    %c9 = arith.constant 9 : index
    %c0_115 = arith.constant 0 : index
    %c0_116 = arith.constant 0 : index
    %130 = vector.load %arg6[%c9, %c0_115, %c0_116] : memref<11x64x64xbf16, #tpu.memory_space<vmem>>, vector<1x64x64xbf16>
    %131 = vector.shape_cast %130 : vector<1x64x64xbf16> to vector<64x64xbf16>
    %cst_117 = arith.constant dense<0.000000e+00> : vector<128x64xf32>
    %132 = tpu.matmul %129, %131, %cst_117 {dimension_numbers = #tpu.dot_dimension_numbers<[1], [0], [0], [1], [0, 0, 1, 1], [], []>} : vector<128x64xbf16>, vector<64x64xbf16>, vector<128x64xf32> -> vector<128x64xf32>
    %133 = arith.addf %127, %132 : vector<128x64xf32>
    %c80 = arith.constant 80 : index
    %c0_118 = arith.constant 0 : index
    %134 = vector.load %arg17[%c80, %c0_118] : memref<208x64xf32, #tpu.memory_space<vmem>>, vector<128x64xf32>
    %135 = arith.truncf %134 : vector<128x64xf32> to vector<128x64xbf16>
    %c10 = arith.constant 10 : index
    %c0_119 = arith.constant 0 : index
    %c0_120 = arith.constant 0 : index
    %136 = vector.load %arg6[%c10, %c0_119, %c0_120] : memref<11x64x64xbf16, #tpu.memory_space<vmem>>, vector<1x64x64xbf16>
    %137 = vector.shape_cast %136 : vector<1x64x64xbf16> to vector<64x64xbf16>
    %cst_121 = arith.constant dense<0.000000e+00> : vector<128x64xf32>
    %138 = tpu.matmul %135, %137, %cst_121 {dimension_numbers = #tpu.dot_dimension_numbers<[1], [0], [0], [1], [0, 0, 1, 1], [], []>} : vector<128x64xbf16>, vector<64x64xbf16>, vector<128x64xf32> -> vector<128x64xf32>
    %139 = arith.addf %133, %138 : vector<128x64xf32>
    %c0_122 = arith.constant 0 : index
    %c0_123 = arith.constant 0 : index
    %140 = vector.load %arg7[%c0_122, %c0_123] : memref<1x64xf32, #tpu.memory_space<vmem>>, vector<1x64xf32>
    %141 = vector.broadcast %140 : vector<1x64xf32> to vector<128x64xf32>
    %142 = arith.addf %139, %141 : vector<128x64xf32>
    %cst_124 = arith.constant 0.000000e+00 : f32
    %143 = vector.broadcast %cst_124 : f32 to vector<128x64xf32>
    %144 = arith.maximumf %142, %143 : vector<128x64xf32>
    %145 = arith.truncf %144 : vector<128x64xf32> to vector<128x64xbf16>
    %c0_125 = arith.constant 0 : index
    %c0_126 = arith.constant 0 : index
    %146 = vector.load %arg8[%c0_125, %c0_126] : memref<64x512xbf16, #tpu.memory_space<vmem>>, vector<64x512xbf16>
    %cst_127 = arith.constant dense<0.000000e+00> : vector<128x512xf32>
    %147 = tpu.matmul %145, %146, %cst_127 {dimension_numbers = #tpu.dot_dimension_numbers<[1], [0], [0], [1], [0, 0, 1, 1], [], []>} : vector<128x64xbf16>, vector<64x512xbf16>, vector<128x512xf32> -> vector<128x512xf32>
    %c0_128 = arith.constant 0 : index
    %c0_129 = arith.constant 0 : index
    %148 = vector.load %arg11[%c0_128, %c0_129] : memref<1x512xf32, #tpu.memory_space<vmem>>, vector<1x512xf32>
    %149 = vector.broadcast %148 : vector<1x512xf32> to vector<128x512xf32>
    %150 = arith.addf %147, %149 : vector<128x512xf32>
    %c0_130 = arith.constant 0 : index
    %c0_131 = arith.constant 0 : index
    %151 = vector.load %arg18[%c0_130, %c0_131] : memref<128x512xf32, #tpu.memory_space<vmem>>, vector<128x512xf32>
    tpu.vector_store %arg18[%c0_130, %c0_131], %150 {strides = array<i32>} : memref<128x512xf32, #tpu.memory_space<vmem>>, vector<128x512xf32>,
    %cst_132 = arith.constant 0.000000e+00 : bf16
    %152 = vector.broadcast %cst_132 : bf16 to vector<8x64xbf16>
    %cst_133 = arith.constant 0.000000e+00 : bf16
    %153 = vector.broadcast %cst_133 : bf16 to vector<8x64xbf16>
    %cst_134 = arith.constant 0.000000e+00 : f32
    %154 = vector.broadcast %cst_134 : f32 to vector<8x64xf32>
    %cst_135 = arith.constant 0.000000e+00 : f32
    %155 = vector.broadcast %cst_135 : f32 to vector<8x64xf32>
    %c0_136 = arith.constant 0 : index
    %c0_137 = arith.constant 0 : index
    %156 = vector.load %arg9[%c0_136, %c0_137] : memref<64x256xbf16, #tpu.memory_space<vmem>>, vector<64x256xbf16>
    %cst_138 = arith.constant dense<0.000000e+00> : vector<8x256xf32>
    %157 = tpu.matmul %152, %156, %cst_138 {dimension_numbers = #tpu.dot_dimension_numbers<[1], [0], [0], [1], [0, 0, 1, 1], [], []>} : vector<8x64xbf16>, vector<64x256xbf16>, vector<8x256xf32> -> vector<8x256xf32>
    %c0_139 = arith.constant 0 : index
    %c0_140 = arith.constant 0 : index
    %158 = vector.load %arg10[%c0_139, %c0_140] : memref<64x256xbf16, #tpu.memory_space<vmem>>, vector<64x256xbf16>
    %cst_141 = arith.constant dense<0.000000e+00> : vector<8x256xf32>
    %159 = tpu.matmul %153, %158, %cst_141 {dimension_numbers = #tpu.dot_dimension_numbers<[1], [0], [0], [1], [0, 0, 1, 1], [], []>} : vector<8x64xbf16>, vector<64x256xbf16>, vector<8x256xf32> -> vector<8x256xf32>
    %c0_142 = arith.constant 0 : index
    %c0_143 = arith.constant 0 : index
    %160 = vector.load %arg18[%c0_142, %c0_143] : memref<128x512xf32, #tpu.memory_space<vmem>>, vector<8x256xf32>
    %161 = arith.addf %160, %157 : vector<8x256xf32>
    %c120 = arith.constant 120 : index
    %c256 = arith.constant 256 : index
    %162 = vector.load %arg18[%c120, %c256] : memref<128x512xf32, #tpu.memory_space<vmem>>, vector<8x256xf32>
    %163 = arith.addf %162, %159 : vector<8x256xf32>
    %164 = vector.extract_strided_slice %161 {offsets = [0, 0], sizes = [8, 192], strides = [1, 1]} : vector<8x256xf32> to vector<8x192xf32>
    %cst_144 = arith.constant 5.000000e-01 : f32
    %165 = vector.broadcast %cst_144 : f32 to vector<8x192xf32>
    %166 = arith.mulf %165, %164 : vector<8x192xf32>
    %167 = math.tanh %166 : vector<8x192xf32>
    %cst_145 = arith.constant 5.000000e-01 : f32
    %168 = vector.broadcast %cst_145 : f32 to vector<8x192xf32>
    %169 = arith.mulf %168, %167 : vector<8x192xf32>
    %cst_146 = arith.constant 5.000000e-01 : f32
    %170 = vector.broadcast %cst_146 : f32 to vector<8x192xf32>
    %171 = arith.addf %169, %170 : vector<8x192xf32>
    %172 = vector.extract_strided_slice %163 {offsets = [0, 0], sizes = [8, 192], strides = [1, 1]} : vector<8x256xf32> to vector<8x192xf32>
    %cst_147 = arith.constant 5.000000e-01 : f32
    %173 = vector.broadcast %cst_147 : f32 to vector<8x192xf32>
    %174 = arith.mulf %173, %172 : vector<8x192xf32>
    %175 = math.tanh %174 : vector<8x192xf32>
    %cst_148 = arith.constant 5.000000e-01 : f32
    %176 = vector.broadcast %cst_148 : f32 to vector<8x192xf32>
    %177 = arith.mulf %176, %175 : vector<8x192xf32>
    %cst_149 = arith.constant 5.000000e-01 : f32
    %178 = vector.broadcast %cst_149 : f32 to vector<8x192xf32>
    %179 = arith.addf %177, %178 : vector<8x192xf32>
    %180 = vector.extract_strided_slice %161 {offsets = [0, 192], sizes = [8, 64], strides = [1, 1]} : vector<8x256xf32> to vector<8x64xf32>
    %181 = math.tanh %180 : vector<8x64xf32>
    %182 = vector.extract_strided_slice %163 {offsets = [0, 192], sizes = [8, 64], strides = [1, 1]} : vector<8x256xf32> to vector<8x64xf32>
    %183 = math.tanh %182 : vector<8x64xf32>
    %184 = vector.extract_strided_slice %171 {offsets = [0, 64], sizes = [8, 64], strides = [1, 1]} : vector<8x192xf32> to vector<8x64xf32>
    %185 = arith.mulf %184, %154 : vector<8x64xf32>
    %186 = vector.extract_strided_slice %171 {offsets = [0, 0], sizes = [8, 64], strides = [1, 1]} : vector<8x192xf32> to vector<8x64xf32>
    %187 = arith.mulf %186, %181 : vector<8x64xf32>
    %188 = arith.addf %185, %187 : vector<8x64xf32>
    %189 = vector.extract_strided_slice %179 {offsets = [0, 64], sizes = [8, 64], strides = [1, 1]} : vector<8x192xf32> to vector<8x64xf32>
    %190 = arith.mulf %189, %155 : vector<8x64xf32>
    %191 = vector.extract_strided_slice %179 {offsets = [0, 0], sizes = [8, 64], strides = [1, 1]} : vector<8x192xf32> to vector<8x64xf32>
    %192 = arith.mulf %191, %183 : vector<8x64xf32>
    %193 = arith.addf %190, %192 : vector<8x64xf32>
    %194 = vector.extract_strided_slice %171 {offsets = [0, 128], sizes = [8, 64], strides = [1, 1]} : vector<8x192xf32> to vector<8x64xf32>
    %195 = math.tanh %188 : vector<8x64xf32>
    %196 = arith.mulf %194, %195 : vector<8x64xf32>
    %197 = arith.truncf %196 : vector<8x64xf32> to vector<8x64xbf16>
    %198 = vector.extract_strided_slice %179 {offsets = [0, 128], sizes = [8, 64], strides = [1, 1]} : vector<8x192xf32> to vector<8x64xf32>
    %199 = math.tanh %193 : vector<8x64xf32>
    %200 = arith.mulf %198, %199 : vector<8x64xf32>
    %201 = arith.truncf %200 : vector<8x64xf32> to vector<8x64xbf16>
    %c0_150 = arith.constant 0 : index
    %c0_151 = arith.constant 0 : index
    %202 = vector.load %arg9[%c0_150, %c0_151] : memref<64x256xbf16, #tpu.memory_space<vmem>>, vector<64x256xbf16>
    %cst_152 = arith.constant dense<0.000000e+00> : vector<8x256xf32>
    %203 = tpu.matmul %197, %202, %cst_152 {dimension_numbers = #tpu.dot_dimension_numbers<[1], [0], [0], [1], [0, 0, 1, 1], [], []>} : vector<8x64xbf16>, vector<64x256xbf16>, vector<8x256xf32> -> vector<8x256xf32>
    %c0_153 = arith.constant 0 : index
    %c0_154 = arith.constant 0 : index
    %204 = vector.load %arg10[%c0_153, %c0_154] : memref<64x256xbf16, #tpu.memory_space<vmem>>, vector<64x256xbf16>
    %cst_155 = arith.constant dense<0.000000e+00> : vector<8x256xf32>
    %205 = tpu.matmul %201, %204, %cst_155 {dimension_numbers = #tpu.dot_dimension_numbers<[1], [0], [0], [1], [0, 0, 1, 1], [], []>} : vector<8x64xbf16>, vector<64x256xbf16>, vector<8x256xf32> -> vector<8x256xf32>
    %c8_156 = arith.constant 8 : index
    %c0_157 = arith.constant 0 : index
    %206 = vector.load %arg18[%c8_156, %c0_157] : memref<128x512xf32, #tpu.memory_space<vmem>>, vector<8x256xf32>
    %207 = arith.addf %206, %203 : vector<8x256xf32>
    %c112 = arith.constant 112 : index
    %c256_158 = arith.constant 256 : index
    %208 = vector.load %arg18[%c112, %c256_158] : memref<128x512xf32, #tpu.memory_space<vmem>>, vector<8x256xf32>
    %209 = arith.addf %208, %205 : vector<8x256xf32>
    %210 = vector.extract_strided_slice %207 {offsets = [0, 0], sizes = [8, 192], strides = [1, 1]} : vector<8x256xf32> to vector<8x192xf32>
    %cst_159 = arith.constant 5.000000e-01 : f32
    %211 = vector.broadcast %cst_159 : f32 to vector<8x192xf32>
    %212 = arith.mulf %211, %210 : vector<8x192xf32>
    %213 = math.tanh %212 : vector<8x192xf32>
    %cst_160 = arith.constant 5.000000e-01 : f32
    %214 = vector.broadcast %cst_160 : f32 to vector<8x192xf32>
    %215 = arith.mulf %214, %213 : vector<8x192xf32>
    %cst_161 = arith.constant 5.000000e-01 : f32
    %216 = vector.broadcast %cst_161 : f32 to vector<8x192xf32>
    %217 = arith.addf %215, %216 : vector<8x192xf32>
    %218 = vector.extract_strided_slice %209 {offsets = [0, 0], sizes = [8, 192], strides = [1, 1]} : vector<8x256xf32> to vector<8x192xf32>
    %cst_162 = arith.constant 5.000000e-01 : f32
    %219 = vector.broadcast %cst_162 : f32 to vector<8x192xf32>
    %220 = arith.mulf %219, %218 : vector<8x192xf32>
    %221 = math.tanh %220 : vector<8x192xf32>
    %cst_163 = arith.constant 5.000000e-01 : f32
    %222 = vector.broadcast %cst_163 : f32 to vector<8x192xf32>
    %223 = arith.mulf %222, %221 : vector<8x192xf32>
    %cst_164 = arith.constant 5.000000e-01 : f32
    %224 = vector.broadcast %cst_164 : f32 to vector<8x192xf32>
    %225 = arith.addf %223, %224 : vector<8x192xf32>
    %226 = vector.extract_strided_slice %207 {offsets = [0, 192], sizes = [8, 64], strides = [1, 1]} : vector<8x256xf32> to vector<8x64xf32>
    %227 = math.tanh %226 : vector<8x64xf32>
    %228 = vector.extract_strided_slice %209 {offsets = [0, 192], sizes = [8, 64], strides = [1, 1]} : vector<8x256xf32> to vector<8x64xf32>
    %229 = math.tanh %228 : vector<8x64xf32>
    %230 = vector.extract_strided_slice %217 {offsets = [0, 64], sizes = [8, 64], strides = [1, 1]} : vector<8x192xf32> to vector<8x64xf32>
    %231 = arith.mulf %230, %188 : vector<8x64xf32>
    %232 = vector.extract_strided_slice %217 {offsets = [0, 0], sizes = [8, 64], strides = [1, 1]} : vector<8x192xf32> to vector<8x64xf32>
    %233 = arith.mulf %232, %227 : vector<8x64xf32>
    %234 = arith.addf %231, %233 : vector<8x64xf32>
    %235 = vector.extract_strided_slice %225 {offsets = [0, 64], sizes = [8, 64], strides = [1, 1]} : vector<8x192xf32> to vector<8x64xf32>
    %236 = arith.mulf %235, %193 : vector<8x64xf32>
    %237 = vector.extract_strided_slice %225 {offsets = [0, 0], sizes = [8, 64], strides = [1, 1]} : vector<8x192xf32> to vector<8x64xf32>
    %238 = arith.mulf %237, %229 : vector<8x64xf32>
    %239 = arith.addf %236, %238 : vector<8x64xf32>
    %240 = vector.extract_strided_slice %217 {offsets = [0, 128], sizes = [8, 64], strides = [1, 1]} : vector<8x192xf32> to vector<8x64xf32>
    %241 = math.tanh %234 : vector<8x64xf32>
    %242 = arith.mulf %240, %241 : vector<8x64xf32>
    %243 = arith.truncf %242 : vector<8x64xf32> to vector<8x64xbf16>
    %244 = vector.extract_strided_slice %225 {offsets = [0, 128], sizes = [8, 64], strides = [1, 1]} : vector<8x192xf32> to vector<8x64xf32>
    %245 = math.tanh %239 : vector<8x64xf32>
    %246 = arith.mulf %244, %245 : vector<8x64xf32>
    %247 = arith.truncf %246 : vector<8x64xf32> to vector<8x64xbf16>
    %c0_165 = arith.constant 0 : index
    %c0_166 = arith.constant 0 : index
    %248 = vector.load %arg9[%c0_165, %c0_166] : memref<64x256xbf16, #tpu.memory_space<vmem>>, vector<64x256xbf16>
    %cst_167 = arith.constant dense<0.000000e+00> : vector<8x256xf32>
    %249 = tpu.matmul %243, %248, %cst_167 {dimension_numbers = #tpu.dot_dimension_numbers<[1], [0], [0], [1], [0, 0, 1, 1], [], []>} : vector<8x64xbf16>, vector<64x256xbf16>, vector<8x256xf32> -> vector<8x256xf32>
    %c0_168 = arith.constant 0 : index
    %c0_169 = arith.constant 0 : index
    %250 = vector.load %arg10[%c0_168, %c0_169] : memref<64x256xbf16, #tpu.memory_space<vmem>>, vector<64x256xbf16>
    %cst_170 = arith.constant dense<0.000000e+00> : vector<8x256xf32>
    %251 = tpu.matmul %247, %250, %cst_170 {dimension_numbers = #tpu.dot_dimension_numbers<[1], [0], [0], [1], [0, 0, 1, 1], [], []>} : vector<8x64xbf16>, vector<64x256xbf16>, vector<8x256xf32> -> vector<8x256xf32>
    %c16_171 = arith.constant 16 : index
    %c0_172 = arith.constant 0 : index
    %252 = vector.load %arg18[%c16_171, %c0_172] : memref<128x512xf32, #tpu.memory_space<vmem>>, vector<8x256xf32>
    %253 = arith.addf %252, %249 : vector<8x256xf32>
    %c104 = arith.constant 104 : index
    %c256_173 = arith.constant 256 : index
    %254 = vector.load %arg18[%c104, %c256_173] : memref<128x512xf32, #tpu.memory_space<vmem>>, vector<8x256xf32>
    %255 = arith.addf %254, %251 : vector<8x256xf32>
    %256 = vector.extract_strided_slice %253 {offsets = [0, 0], sizes = [8, 192], strides = [1, 1]} : vector<8x256xf32> to vector<8x192xf32>
    %cst_174 = arith.constant 5.000000e-01 : f32
    %257 = vector.broadcast %cst_174 : f32 to vector<8x192xf32>
    %258 = arith.mulf %257, %256 : vector<8x192xf32>
    %259 = math.tanh %258 : vector<8x192xf32>
    %cst_175 = arith.constant 5.000000e-01 : f32
    %260 = vector.broadcast %cst_175 : f32 to vector<8x192xf32>
    %261 = arith.mulf %260, %259 : vector<8x192xf32>
    %cst_176 = arith.constant 5.000000e-01 : f32
    %262 = vector.broadcast %cst_176 : f32 to vector<8x192xf32>
    %263 = arith.addf %261, %262 : vector<8x192xf32>
    %264 = vector.extract_strided_slice %255 {offsets = [0, 0], sizes = [8, 192], strides = [1, 1]} : vector<8x256xf32> to vector<8x192xf32>
    %cst_177 = arith.constant 5.000000e-01 : f32
    %265 = vector.broadcast %cst_177 : f32 to vector<8x192xf32>
    %266 = arith.mulf %265, %264 : vector<8x192xf32>
    %267 = math.tanh %266 : vector<8x192xf32>
    %cst_178 = arith.constant 5.000000e-01 : f32
    %268 = vector.broadcast %cst_178 : f32 to vector<8x192xf32>
    %269 = arith.mulf %268, %267 : vector<8x192xf32>
    %cst_179 = arith.constant 5.000000e-01 : f32
    %270 = vector.broadcast %cst_179 : f32 to vector<8x192xf32>
    %271 = arith.addf %269, %270 : vector<8x192xf32>
    %272 = vector.extract_strided_slice %253 {offsets = [0, 192], sizes = [8, 64], strides = [1, 1]} : vector<8x256xf32> to vector<8x64xf32>
    %273 = math.tanh %272 : vector<8x64xf32>
    %274 = vector.extract_strided_slice %255 {offsets = [0, 192], sizes = [8, 64], strides = [1, 1]} : vector<8x256xf32> to vector<8x64xf32>
    %275 = math.tanh %274 : vector<8x64xf32>
    %276 = vector.extract_strided_slice %263 {offsets = [0, 64], sizes = [8, 64], strides = [1, 1]} : vector<8x192xf32> to vector<8x64xf32>
    %277 = arith.mulf %276, %234 : vector<8x64xf32>
    %278 = vector.extract_strided_slice %263 {offsets = [0, 0], sizes = [8, 64], strides = [1, 1]} : vector<8x192xf32> to vector<8x64xf32>
    %279 = arith.mulf %278, %273 : vector<8x64xf32>
    %280 = arith.addf %277, %279 : vector<8x64xf32>
    %281 = vector.extract_strided_slice %271 {offsets = [0, 64], sizes = [8, 64], strides = [1, 1]} : vector<8x192xf32> to vector<8x64xf32>
    %282 = arith.mulf %281, %239 : vector<8x64xf32>
    %283 = vector.extract_strided_slice %271 {offsets = [0, 0], sizes = [8, 64], strides = [1, 1]} : vector<8x192xf32> to vector<8x64xf32>
    %284 = arith.mulf %283, %275 : vector<8x64xf32>
    %285 = arith.addf %282, %284 : vector<8x64xf32>
    %286 = vector.extract_strided_slice %263 {offsets = [0, 128], sizes = [8, 64], strides = [1, 1]} : vector<8x192xf32> to vector<8x64xf32>
    %287 = math.tanh %280 : vector<8x64xf32>
    %288 = arith.mulf %286, %287 : vector<8x64xf32>
    %289 = arith.truncf %288 : vector<8x64xf32> to vector<8x64xbf16>
    %290 = vector.extract_strided_slice %271 {offsets = [0, 128], sizes = [8, 64], strides = [1, 1]} : vector<8x192xf32> to vector<8x64xf32>
    %291 = math.tanh %285 : vector<8x64xf32>
    %292 = arith.mulf %290, %291 : vector<8x64xf32>
    %293 = arith.truncf %292 : vector<8x64xf32> to vector<8x64xbf16>
    %c0_180 = arith.constant 0 : index
    %c0_181 = arith.constant 0 : index
    %294 = vector.load %arg9[%c0_180, %c0_181] : memref<64x256xbf16, #tpu.memory_space<vmem>>, vector<64x256xbf16>
    %cst_182 = arith.constant dense<0.000000e+00> : vector<8x256xf32>
    %295 = tpu.matmul %289, %294, %cst_182 {dimension_numbers = #tpu.dot_dimension_numbers<[1], [0], [0], [1], [0, 0, 1, 1], [], []>} : vector<8x64xbf16>, vector<64x256xbf16>, vector<8x256xf32> -> vector<8x256xf32>
    %c0_183 = arith.constant 0 : index
    %c0_184 = arith.constant 0 : index
    %296 = vector.load %arg10[%c0_183, %c0_184] : memref<64x256xbf16, #tpu.memory_space<vmem>>, vector<64x256xbf16>
    %cst_185 = arith.constant dense<0.000000e+00> : vector<8x256xf32>
    %297 = tpu.matmul %293, %296, %cst_185 {dimension_numbers = #tpu.dot_dimension_numbers<[1], [0], [0], [1], [0, 0, 1, 1], [], []>} : vector<8x64xbf16>, vector<64x256xbf16>, vector<8x256xf32> -> vector<8x256xf32>
    %c24_186 = arith.constant 24 : index
    %c0_187 = arith.constant 0 : index
    %298 = vector.load %arg18[%c24_186, %c0_187] : memref<128x512xf32, #tpu.memory_space<vmem>>, vector<8x256xf32>
    %299 = arith.addf %298, %295 : vector<8x256xf32>
    %c96 = arith.constant 96 : index
    %c256_188 = arith.constant 256 : index
    %300 = vector.load %arg18[%c96, %c256_188] : memref<128x512xf32, #tpu.memory_space<vmem>>, vector<8x256xf32>
    %301 = arith.addf %300, %297 : vector<8x256xf32>
    %302 = vector.extract_strided_slice %299 {offsets = [0, 0], sizes = [8, 192], strides = [1, 1]} : vector<8x256xf32> to vector<8x192xf32>
    %cst_189 = arith.constant 5.000000e-01 : f32
    %303 = vector.broadcast %cst_189 : f32 to vector<8x192xf32>
    %304 = arith.mulf %303, %302 : vector<8x192xf32>
    %305 = math.tanh %304 : vector<8x192xf32>
    %cst_190 = arith.constant 5.000000e-01 : f32
    %306 = vector.broadcast %cst_190 : f32 to vector<8x192xf32>
    %307 = arith.mulf %306, %305 : vector<8x192xf32>
    %cst_191 = arith.constant 5.000000e-01 : f32
    %308 = vector.broadcast %cst_191 : f32 to vector<8x192xf32>
    %309 = arith.addf %307, %308 : vector<8x192xf32>
    %310 = vector.extract_strided_slice %301 {offsets = [0, 0], sizes = [8, 192], strides = [1, 1]} : vector<8x256xf32> to vector<8x192xf32>
    %cst_192 = arith.constant 5.000000e-01 : f32
    %311 = vector.broadcast %cst_192 : f32 to vector<8x192xf32>
    %312 = arith.mulf %311, %310 : vector<8x192xf32>
    %313 = math.tanh %312 : vector<8x192xf32>
    %cst_193 = arith.constant 5.000000e-01 : f32
    %314 = vector.broadcast %cst_193 : f32 to vector<8x192xf32>
    %315 = arith.mulf %314, %313 : vector<8x192xf32>
    %cst_194 = arith.constant 5.000000e-01 : f32
    %316 = vector.broadcast %cst_194 : f32 to vector<8x192xf32>
    %317 = arith.addf %315, %316 : vector<8x192xf32>
    %318 = vector.extract_strided_slice %299 {offsets = [0, 192], sizes = [8, 64], strides = [1, 1]} : vector<8x256xf32> to vector<8x64xf32>
    %319 = math.tanh %318 : vector<8x64xf32>
    %320 = vector.extract_strided_slice %301 {offsets = [0, 192], sizes = [8, 64], strides = [1, 1]} : vector<8x256xf32> to vector<8x64xf32>
    %321 = math.tanh %320 : vector<8x64xf32>
    %322 = vector.extract_strided_slice %309 {offsets = [0, 64], sizes = [8, 64], strides = [1, 1]} : vector<8x192xf32> to vector<8x64xf32>
    %323 = arith.mulf %322, %280 : vector<8x64xf32>
    %324 = vector.extract_strided_slice %309 {offsets = [0, 0], sizes = [8, 64], strides = [1, 1]} : vector<8x192xf32> to vector<8x64xf32>
    %325 = arith.mulf %324, %319 : vector<8x64xf32>
    %326 = arith.addf %323, %325 : vector<8x64xf32>
    %327 = vector.extract_strided_slice %317 {offsets = [0, 64], sizes = [8, 64], strides = [1, 1]} : vector<8x192xf32> to vector<8x64xf32>
    %328 = arith.mulf %327, %285 : vector<8x64xf32>
    %329 = vector.extract_strided_slice %317 {offsets = [0, 0], sizes = [8, 64], strides = [1, 1]} : vector<8x192xf32> to vector<8x64xf32>
    %330 = arith.mulf %329, %321 : vector<8x64xf32>
    %331 = arith.addf %328, %330 : vector<8x64xf32>
    %332 = vector.extract_strided_slice %309 {offsets = [0, 128], sizes = [8, 64], strides = [1, 1]} : vector<8x192xf32> to vector<8x64xf32>
    %333 = math.tanh %326 : vector<8x64xf32>
    %334 = arith.mulf %332, %333 : vector<8x64xf32>
    %335 = arith.truncf %334 : vector<8x64xf32> to vector<8x64xbf16>
    %336 = vector.extract_strided_slice %317 {offsets = [0, 128], sizes = [8, 64], strides = [1, 1]} : vector<8x192xf32> to vector<8x64xf32>
    %337 = math.tanh %331 : vector<8x64xf32>
    %338 = arith.mulf %336, %337 : vector<8x64xf32>
    %339 = arith.truncf %338 : vector<8x64xf32> to vector<8x64xbf16>
    %c0_195 = arith.constant 0 : index
    %c0_196 = arith.constant 0 : index
    %340 = vector.load %arg9[%c0_195, %c0_196] : memref<64x256xbf16, #tpu.memory_space<vmem>>, vector<64x256xbf16>
    %cst_197 = arith.constant dense<0.000000e+00> : vector<8x256xf32>
    %341 = tpu.matmul %335, %340, %cst_197 {dimension_numbers = #tpu.dot_dimension_numbers<[1], [0], [0], [1], [0, 0, 1, 1], [], []>} : vector<8x64xbf16>, vector<64x256xbf16>, vector<8x256xf32> -> vector<8x256xf32>
    %c0_198 = arith.constant 0 : index
    %c0_199 = arith.constant 0 : index
    %342 = vector.load %arg10[%c0_198, %c0_199] : memref<64x256xbf16, #tpu.memory_space<vmem>>, vector<64x256xbf16>
    %cst_200 = arith.constant dense<0.000000e+00> : vector<8x256xf32>
    %343 = tpu.matmul %339, %342, %cst_200 {dimension_numbers = #tpu.dot_dimension_numbers<[1], [0], [0], [1], [0, 0, 1, 1], [], []>} : vector<8x64xbf16>, vector<64x256xbf16>, vector<8x256xf32> -> vector<8x256xf32>
    %c32_201 = arith.constant 32 : index
    %c0_202 = arith.constant 0 : index
    %344 = vector.load %arg18[%c32_201, %c0_202] : memref<128x512xf32, #tpu.memory_space<vmem>>, vector<8x256xf32>
    %345 = arith.addf %344, %341 : vector<8x256xf32>
    %c88 = arith.constant 88 : index
    %c256_203 = arith.constant 256 : index
    %346 = vector.load %arg18[%c88, %c256_203] : memref<128x512xf32, #tpu.memory_space<vmem>>, vector<8x256xf32>
    %347 = arith.addf %346, %343 : vector<8x256xf32>
    %348 = vector.extract_strided_slice %345 {offsets = [0, 0], sizes = [8, 192], strides = [1, 1]} : vector<8x256xf32> to vector<8x192xf32>
    %cst_204 = arith.constant 5.000000e-01 : f32
    %349 = vector.broadcast %cst_204 : f32 to vector<8x192xf32>
    %350 = arith.mulf %349, %348 : vector<8x192xf32>
    %351 = math.tanh %350 : vector<8x192xf32>
    %cst_205 = arith.constant 5.000000e-01 : f32
    %352 = vector.broadcast %cst_205 : f32 to vector<8x192xf32>
    %353 = arith.mulf %352, %351 : vector<8x192xf32>
    %cst_206 = arith.constant 5.000000e-01 : f32
    %354 = vector.broadcast %cst_206 : f32 to vector<8x192xf32>
    %355 = arith.addf %353, %354 : vector<8x192xf32>
    %356 = vector.extract_strided_slice %347 {offsets = [0, 0], sizes = [8, 192], strides = [1, 1]} : vector<8x256xf32> to vector<8x192xf32>
    %cst_207 = arith.constant 5.000000e-01 : f32
    %357 = vector.broadcast %cst_207 : f32 to vector<8x192xf32>
    %358 = arith.mulf %357, %356 : vector<8x192xf32>
    %359 = math.tanh %358 : vector<8x192xf32>
    %cst_208 = arith.constant 5.000000e-01 : f32
    %360 = vector.broadcast %cst_208 : f32 to vector<8x192xf32>
    %361 = arith.mulf %360, %359 : vector<8x192xf32>
    %cst_209 = arith.constant 5.000000e-01 : f32
    %362 = vector.broadcast %cst_209 : f32 to vector<8x192xf32>
    %363 = arith.addf %361, %362 : vector<8x192xf32>
    %364 = vector.extract_strided_slice %345 {offsets = [0, 192], sizes = [8, 64], strides = [1, 1]} : vector<8x256xf32> to vector<8x64xf32>
    %365 = math.tanh %364 : vector<8x64xf32>
    %366 = vector.extract_strided_slice %347 {offsets = [0, 192], sizes = [8, 64], strides = [1, 1]} : vector<8x256xf32> to vector<8x64xf32>
    %367 = math.tanh %366 : vector<8x64xf32>
    %368 = vector.extract_strided_slice %355 {offsets = [0, 64], sizes = [8, 64], strides = [1, 1]} : vector<8x192xf32> to vector<8x64xf32>
    %369 = arith.mulf %368, %326 : vector<8x64xf32>
    %370 = vector.extract_strided_slice %355 {offsets = [0, 0], sizes = [8, 64], strides = [1, 1]} : vector<8x192xf32> to vector<8x64xf32>
    %371 = arith.mulf %370, %365 : vector<8x64xf32>
    %372 = arith.addf %369, %371 : vector<8x64xf32>
    %373 = vector.extract_strided_slice %363 {offsets = [0, 64], sizes = [8, 64], strides = [1, 1]} : vector<8x192xf32> to vector<8x64xf32>
    %374 = arith.mulf %373, %331 : vector<8x64xf32>
    %375 = vector.extract_strided_slice %363 {offsets = [0, 0], sizes = [8, 64], strides = [1, 1]} : vector<8x192xf32> to vector<8x64xf32>
    %376 = arith.mulf %375, %367 : vector<8x64xf32>
    %377 = arith.addf %374, %376 : vector<8x64xf32>
    %378 = vector.extract_strided_slice %355 {offsets = [0, 128], sizes = [8, 64], strides = [1, 1]} : vector<8x192xf32> to vector<8x64xf32>
    %379 = math.tanh %372 : vector<8x64xf32>
    %380 = arith.mulf %378, %379 : vector<8x64xf32>
    %381 = arith.truncf %380 : vector<8x64xf32> to vector<8x64xbf16>
    %382 = vector.extract_strided_slice %363 {offsets = [0, 128], sizes = [8, 64], strides = [1, 1]} : vector<8x192xf32> to vector<8x64xf32>
    %383 = math.tanh %377 : vector<8x64xf32>
    %384 = arith.mulf %382, %383 : vector<8x64xf32>
    %385 = arith.truncf %384 : vector<8x64xf32> to vector<8x64xbf16>
    %c0_210 = arith.constant 0 : index
    %c0_211 = arith.constant 0 : index
    %386 = vector.load %arg9[%c0_210, %c0_211] : memref<64x256xbf16, #tpu.memory_space<vmem>>, vector<64x256xbf16>
    %cst_212 = arith.constant dense<0.000000e+00> : vector<8x256xf32>
    %387 = tpu.matmul %381, %386, %cst_212 {dimension_numbers = #tpu.dot_dimension_numbers<[1], [0], [0], [1], [0, 0, 1, 1], [], []>} : vector<8x64xbf16>, vector<64x256xbf16>, vector<8x256xf32> -> vector<8x256xf32>
    %c0_213 = arith.constant 0 : index
    %c0_214 = arith.constant 0 : index
    %388 = vector.load %arg10[%c0_213, %c0_214] : memref<64x256xbf16, #tpu.memory_space<vmem>>, vector<64x256xbf16>
    %cst_215 = arith.constant dense<0.000000e+00> : vector<8x256xf32>
    %389 = tpu.matmul %385, %388, %cst_215 {dimension_numbers = #tpu.dot_dimension_numbers<[1], [0], [0], [1], [0, 0, 1, 1], [], []>} : vector<8x64xbf16>, vector<64x256xbf16>, vector<8x256xf32> -> vector<8x256xf32>
    %c40_216 = arith.constant 40 : index
    %c0_217 = arith.constant 0 : index
    %390 = vector.load %arg18[%c40_216, %c0_217] : memref<128x512xf32, #tpu.memory_space<vmem>>, vector<8x256xf32>
    %391 = arith.addf %390, %387 : vector<8x256xf32>
    %c80_218 = arith.constant 80 : index
    %c256_219 = arith.constant 256 : index
    %392 = vector.load %arg18[%c80_218, %c256_219] : memref<128x512xf32, #tpu.memory_space<vmem>>, vector<8x256xf32>
    %393 = arith.addf %392, %389 : vector<8x256xf32>
    %394 = vector.extract_strided_slice %391 {offsets = [0, 0], sizes = [8, 192], strides = [1, 1]} : vector<8x256xf32> to vector<8x192xf32>
    %cst_220 = arith.constant 5.000000e-01 : f32
    %395 = vector.broadcast %cst_220 : f32 to vector<8x192xf32>
    %396 = arith.mulf %395, %394 : vector<8x192xf32>
    %397 = math.tanh %396 : vector<8x192xf32>
    %cst_221 = arith.constant 5.000000e-01 : f32
    %398 = vector.broadcast %cst_221 : f32 to vector<8x192xf32>
    %399 = arith.mulf %398, %397 : vector<8x192xf32>
    %cst_222 = arith.constant 5.000000e-01 : f32
    %400 = vector.broadcast %cst_222 : f32 to vector<8x192xf32>
    %401 = arith.addf %399, %400 : vector<8x192xf32>
    %402 = vector.extract_strided_slice %393 {offsets = [0, 0], sizes = [8, 192], strides = [1, 1]} : vector<8x256xf32> to vector<8x192xf32>
    %cst_223 = arith.constant 5.000000e-01 : f32
    %403 = vector.broadcast %cst_223 : f32 to vector<8x192xf32>
    %404 = arith.mulf %403, %402 : vector<8x192xf32>
    %405 = math.tanh %404 : vector<8x192xf32>
    %cst_224 = arith.constant 5.000000e-01 : f32
    %406 = vector.broadcast %cst_224 : f32 to vector<8x192xf32>
    %407 = arith.mulf %406, %405 : vector<8x192xf32>
    %cst_225 = arith.constant 5.000000e-01 : f32
    %408 = vector.broadcast %cst_225 : f32 to vector<8x192xf32>
    %409 = arith.addf %407, %408 : vector<8x192xf32>
    %410 = vector.extract_strided_slice %391 {offsets = [0, 192], sizes = [8, 64], strides = [1, 1]} : vector<8x256xf32> to vector<8x64xf32>
    %411 = math.tanh %410 : vector<8x64xf32>
    %412 = vector.extract_strided_slice %393 {offsets = [0, 192], sizes = [8, 64], strides = [1, 1]} : vector<8x256xf32> to vector<8x64xf32>
    %413 = math.tanh %412 : vector<8x64xf32>
    %414 = vector.extract_strided_slice %401 {offsets = [0, 64], sizes = [8, 64], strides = [1, 1]} : vector<8x192xf32> to vector<8x64xf32>
    %415 = arith.mulf %414, %372 : vector<8x64xf32>
    %416 = vector.extract_strided_slice %401 {offsets = [0, 0], sizes = [8, 64], strides = [1, 1]} : vector<8x192xf32> to vector<8x64xf32>
    %417 = arith.mulf %416, %411 : vector<8x64xf32>
    %418 = arith.addf %415, %417 : vector<8x64xf32>
    %419 = vector.extract_strided_slice %409 {offsets = [0, 64], sizes = [8, 64], strides = [1, 1]} : vector<8x192xf32> to vector<8x64xf32>
    %420 = arith.mulf %419, %377 : vector<8x64xf32>
    %421 = vector.extract_strided_slice %409 {offsets = [0, 0], sizes = [8, 64], strides = [1, 1]} : vector<8x192xf32> to vector<8x64xf32>
    %422 = arith.mulf %421, %413 : vector<8x64xf32>
    %423 = arith.addf %420, %422 : vector<8x64xf32>
    %424 = vector.extract_strided_slice %401 {offsets = [0, 128], sizes = [8, 64], strides = [1, 1]} : vector<8x192xf32> to vector<8x64xf32>
    %425 = math.tanh %418 : vector<8x64xf32>
    %426 = arith.mulf %424, %425 : vector<8x64xf32>
    %427 = arith.truncf %426 : vector<8x64xf32> to vector<8x64xbf16>
    %428 = vector.extract_strided_slice %409 {offsets = [0, 128], sizes = [8, 64], strides = [1, 1]} : vector<8x192xf32> to vector<8x64xf32>
    %429 = math.tanh %423 : vector<8x64xf32>
    %430 = arith.mulf %428, %429 : vector<8x64xf32>
    %431 = arith.truncf %430 : vector<8x64xf32> to vector<8x64xbf16>
    %c0_226 = arith.constant 0 : index
    %c0_227 = arith.constant 0 : index
    %432 = vector.load %arg9[%c0_226, %c0_227] : memref<64x256xbf16, #tpu.memory_space<vmem>>, vector<64x256xbf16>
    %cst_228 = arith.constant dense<0.000000e+00> : vector<8x256xf32>
    %433 = tpu.matmul %427, %432, %cst_228 {dimension_numbers = #tpu.dot_dimension_numbers<[1], [0], [0], [1], [0, 0, 1, 1], [], []>} : vector<8x64xbf16>, vector<64x256xbf16>, vector<8x256xf32> -> vector<8x256xf32>
    %c0_229 = arith.constant 0 : index
    %c0_230 = arith.constant 0 : index
    %434 = vector.load %arg10[%c0_229, %c0_230] : memref<64x256xbf16, #tpu.memory_space<vmem>>, vector<64x256xbf16>
    %cst_231 = arith.constant dense<0.000000e+00> : vector<8x256xf32>
    %435 = tpu.matmul %431, %434, %cst_231 {dimension_numbers = #tpu.dot_dimension_numbers<[1], [0], [0], [1], [0, 0, 1, 1], [], []>} : vector<8x64xbf16>, vector<64x256xbf16>, vector<8x256xf32> -> vector<8x256xf32>
    %c48_232 = arith.constant 48 : index
    %c0_233 = arith.constant 0 : index
    %436 = vector.load %arg18[%c48_232, %c0_233] : memref<128x512xf32, #tpu.memory_space<vmem>>, vector<8x256xf32>
    %437 = arith.addf %436, %433 : vector<8x256xf32>
    %c72_234 = arith.constant 72 : index
    %c256_235 = arith.constant 256 : index
    %438 = vector.load %arg18[%c72_234, %c256_235] : memref<128x512xf32, #tpu.memory_space<vmem>>, vector<8x256xf32>
    %439 = arith.addf %438, %435 : vector<8x256xf32>
    %440 = vector.extract_strided_slice %437 {offsets = [0, 0], sizes = [8, 192], strides = [1, 1]} : vector<8x256xf32> to vector<8x192xf32>
    %cst_236 = arith.constant 5.000000e-01 : f32
    %441 = vector.broadcast %cst_236 : f32 to vector<8x192xf32>
    %442 = arith.mulf %441, %440 : vector<8x192xf32>
    %443 = math.tanh %442 : vector<8x192xf32>
    %cst_237 = arith.constant 5.000000e-01 : f32
    %444 = vector.broadcast %cst_237 : f32 to vector<8x192xf32>
    %445 = arith.mulf %444, %443 : vector<8x192xf32>
    %cst_238 = arith.constant 5.000000e-01 : f32
    %446 = vector.broadcast %cst_238 : f32 to vector<8x192xf32>
    %447 = arith.addf %445, %446 : vector<8x192xf32>
    %448 = vector.extract_strided_slice %439 {offsets = [0, 0], sizes = [8, 192], strides = [1, 1]} : vector<8x256xf32> to vector<8x192xf32>
    %cst_239 = arith.constant 5.000000e-01 : f32
    %449 = vector.broadcast %cst_239 : f32 to vector<8x192xf32>
    %450 = arith.mulf %449, %448 : vector<8x192xf32>
    %451 = math.tanh %450 : vector<8x192xf32>
    %cst_240 = arith.constant 5.000000e-01 : f32
    %452 = vector.broadcast %cst_240 : f32 to vector<8x192xf32>
    %453 = arith.mulf %452, %451 : vector<8x192xf32>
    %cst_241 = arith.constant 5.000000e-01 : f32
    %454 = vector.broadcast %cst_241 : f32 to vector<8x192xf32>
    %455 = arith.addf %453, %454 : vector<8x192xf32>
    %456 = vector.extract_strided_slice %437 {offsets = [0, 192], sizes = [8, 64], strides = [1, 1]} : vector<8x256xf32> to vector<8x64xf32>
    %457 = math.tanh %456 : vector<8x64xf32>
    %458 = vector.extract_strided_slice %439 {offsets = [0, 192], sizes = [8, 64], strides = [1, 1]} : vector<8x256xf32> to vector<8x64xf32>
    %459 = math.tanh %458 : vector<8x64xf32>
    %460 = vector.extract_strided_slice %447 {offsets = [0, 64], sizes = [8, 64], strides = [1, 1]} : vector<8x192xf32> to vector<8x64xf32>
    %461 = arith.mulf %460, %418 : vector<8x64xf32>
    %462 = vector.extract_strided_slice %447 {offsets = [0, 0], sizes = [8, 64], strides = [1, 1]} : vector<8x192xf32> to vector<8x64xf32>
    %463 = arith.mulf %462, %457 : vector<8x64xf32>
    %464 = arith.addf %461, %463 : vector<8x64xf32>
    %465 = vector.extract_strided_slice %455 {offsets = [0, 64], sizes = [8, 64], strides = [1, 1]} : vector<8x192xf32> to vector<8x64xf32>
    %466 = arith.mulf %465, %423 : vector<8x64xf32>
    %467 = vector.extract_strided_slice %455 {offsets = [0, 0], sizes = [8, 64], strides = [1, 1]} : vector<8x192xf32> to vector<8x64xf32>
    %468 = arith.mulf %467, %459 : vector<8x64xf32>
    %469 = arith.addf %466, %468 : vector<8x64xf32>
    %470 = vector.extract_strided_slice %447 {offsets = [0, 128], sizes = [8, 64], strides = [1, 1]} : vector<8x192xf32> to vector<8x64xf32>
    %471 = math.tanh %464 : vector<8x64xf32>
    %472 = arith.mulf %470, %471 : vector<8x64xf32>
    %473 = arith.truncf %472 : vector<8x64xf32> to vector<8x64xbf16>
    %474 = vector.extract_strided_slice %455 {offsets = [0, 128], sizes = [8, 64], strides = [1, 1]} : vector<8x192xf32> to vector<8x64xf32>
    %475 = math.tanh %469 : vector<8x64xf32>
    %476 = arith.mulf %474, %475 : vector<8x64xf32>
    %477 = arith.truncf %476 : vector<8x64xf32> to vector<8x64xbf16>
    %c0_242 = arith.constant 0 : index
    %c0_243 = arith.constant 0 : index
    %478 = vector.load %arg9[%c0_242, %c0_243] : memref<64x256xbf16, #tpu.memory_space<vmem>>, vector<64x256xbf16>
    %cst_244 = arith.constant dense<0.000000e+00> : vector<8x256xf32>
    %479 = tpu.matmul %473, %478, %cst_244 {dimension_numbers = #tpu.dot_dimension_numbers<[1], [0], [0], [1], [0, 0, 1, 1], [], []>} : vector<8x64xbf16>, vector<64x256xbf16>, vector<8x256xf32> -> vector<8x256xf32>
    %c0_245 = arith.constant 0 : index
    %c0_246 = arith.constant 0 : index
    %480 = vector.load %arg10[%c0_245, %c0_246] : memref<64x256xbf16, #tpu.memory_space<vmem>>, vector<64x256xbf16>
    %cst_247 = arith.constant dense<0.000000e+00> : vector<8x256xf32>
    %481 = tpu.matmul %477, %480, %cst_247 {dimension_numbers = #tpu.dot_dimension_numbers<[1], [0], [0], [1], [0, 0, 1, 1], [], []>} : vector<8x64xbf16>, vector<64x256xbf16>, vector<8x256xf32> -> vector<8x256xf32>
    %c56_248 = arith.constant 56 : index
    %c0_249 = arith.constant 0 : index
    %482 = vector.load %arg18[%c56_248, %c0_249] : memref<128x512xf32, #tpu.memory_space<vmem>>, vector<8x256xf32>
    %483 = arith.addf %482, %479 : vector<8x256xf32>
    %c64_250 = arith.constant 64 : index
    %c256_251 = arith.constant 256 : index
    %484 = vector.load %arg18[%c64_250, %c256_251] : memref<128x512xf32, #tpu.memory_space<vmem>>, vector<8x256xf32>
    %485 = arith.addf %484, %481 : vector<8x256xf32>
    %486 = vector.extract_strided_slice %483 {offsets = [0, 0], sizes = [8, 192], strides = [1, 1]} : vector<8x256xf32> to vector<8x192xf32>
    %cst_252 = arith.constant 5.000000e-01 : f32
    %487 = vector.broadcast %cst_252 : f32 to vector<8x192xf32>
    %488 = arith.mulf %487, %486 : vector<8x192xf32>
    %489 = math.tanh %488 : vector<8x192xf32>
    %cst_253 = arith.constant 5.000000e-01 : f32
    %490 = vector.broadcast %cst_253 : f32 to vector<8x192xf32>
    %491 = arith.mulf %490, %489 : vector<8x192xf32>
    %cst_254 = arith.constant 5.000000e-01 : f32
    %492 = vector.broadcast %cst_254 : f32 to vector<8x192xf32>
    %493 = arith.addf %491, %492 : vector<8x192xf32>
    %494 = vector.extract_strided_slice %485 {offsets = [0, 0], sizes = [8, 192], strides = [1, 1]} : vector<8x256xf32> to vector<8x192xf32>
    %cst_255 = arith.constant 5.000000e-01 : f32
    %495 = vector.broadcast %cst_255 : f32 to vector<8x192xf32>
    %496 = arith.mulf %495, %494 : vector<8x192xf32>
    %497 = math.tanh %496 : vector<8x192xf32>
    %cst_256 = arith.constant 5.000000e-01 : f32
    %498 = vector.broadcast %cst_256 : f32 to vector<8x192xf32>
    %499 = arith.mulf %498, %497 : vector<8x192xf32>
    %cst_257 = arith.constant 5.000000e-01 : f32
    %500 = vector.broadcast %cst_257 : f32 to vector<8x192xf32>
    %501 = arith.addf %499, %500 : vector<8x192xf32>
    %502 = vector.extract_strided_slice %483 {offsets = [0, 192], sizes = [8, 64], strides = [1, 1]} : vector<8x256xf32> to vector<8x64xf32>
    %503 = math.tanh %502 : vector<8x64xf32>
    %504 = vector.extract_strided_slice %485 {offsets = [0, 192], sizes = [8, 64], strides = [1, 1]} : vector<8x256xf32> to vector<8x64xf32>
    %505 = math.tanh %504 : vector<8x64xf32>
    %506 = vector.extract_strided_slice %493 {offsets = [0, 64], sizes = [8, 64], strides = [1, 1]} : vector<8x192xf32> to vector<8x64xf32>
    %507 = arith.mulf %506, %464 : vector<8x64xf32>
    %508 = vector.extract_strided_slice %493 {offsets = [0, 0], sizes = [8, 64], strides = [1, 1]} : vector<8x192xf32> to vector<8x64xf32>
    %509 = arith.mulf %508, %503 : vector<8x64xf32>
    %510 = arith.addf %507, %509 : vector<8x64xf32>
    %511 = vector.extract_strided_slice %501 {offsets = [0, 64], sizes = [8, 64], strides = [1, 1]} : vector<8x192xf32> to vector<8x64xf32>
    %512 = arith.mulf %511, %469 : vector<8x64xf32>
    %513 = vector.extract_strided_slice %501 {offsets = [0, 0], sizes = [8, 64], strides = [1, 1]} : vector<8x192xf32> to vector<8x64xf32>
    %514 = arith.mulf %513, %505 : vector<8x64xf32>
    %515 = arith.addf %512, %514 : vector<8x64xf32>
    %516 = vector.extract_strided_slice %493 {offsets = [0, 128], sizes = [8, 64], strides = [1, 1]} : vector<8x192xf32> to vector<8x64xf32>
    %517 = math.tanh %510 : vector<8x64xf32>
    %518 = arith.mulf %516, %517 : vector<8x64xf32>
    %519 = arith.truncf %518 : vector<8x64xf32> to vector<8x64xbf16>
    %520 = vector.extract_strided_slice %501 {offsets = [0, 128], sizes = [8, 64], strides = [1, 1]} : vector<8x192xf32> to vector<8x64xf32>
    %521 = math.tanh %515 : vector<8x64xf32>
    %522 = arith.mulf %520, %521 : vector<8x64xf32>
    %523 = arith.truncf %522 : vector<8x64xf32> to vector<8x64xbf16>
    %c0_258 = arith.constant 0 : index
    %c0_259 = arith.constant 0 : index
    %524 = vector.load %arg9[%c0_258, %c0_259] : memref<64x256xbf16, #tpu.memory_space<vmem>>, vector<64x256xbf16>
    %cst_260 = arith.constant dense<0.000000e+00> : vector<8x256xf32>
    %525 = tpu.matmul %519, %524, %cst_260 {dimension_numbers = #tpu.dot_dimension_numbers<[1], [0], [0], [1], [0, 0, 1, 1], [], []>} : vector<8x64xbf16>, vector<64x256xbf16>, vector<8x256xf32> -> vector<8x256xf32>
    %c0_261 = arith.constant 0 : index
    %c0_262 = arith.constant 0 : index
    %526 = vector.load %arg10[%c0_261, %c0_262] : memref<64x256xbf16, #tpu.memory_space<vmem>>, vector<64x256xbf16>
    %cst_263 = arith.constant dense<0.000000e+00> : vector<8x256xf32>
    %527 = tpu.matmul %523, %526, %cst_263 {dimension_numbers = #tpu.dot_dimension_numbers<[1], [0], [0], [1], [0, 0, 1, 1], [], []>} : vector<8x64xbf16>, vector<64x256xbf16>, vector<8x256xf32> -> vector<8x256xf32>
    %c64_264 = arith.constant 64 : index
    %c0_265 = arith.constant 0 : index
    %528 = vector.load %arg18[%c64_264, %c0_265] : memref<128x512xf32, #tpu.memory_space<vmem>>, vector<8x256xf32>
    %529 = arith.addf %528, %525 : vector<8x256xf32>
    %c56_266 = arith.constant 56 : index
    %c256_267 = arith.constant 256 : index
    %530 = vector.load %arg18[%c56_266, %c256_267] : memref<128x512xf32, #tpu.memory_space<vmem>>, vector<8x256xf32>
    %531 = arith.addf %530, %527 : vector<8x256xf32>
    %532 = vector.extract_strided_slice %529 {offsets = [0, 0], sizes = [8, 192], strides = [1, 1]} : vector<8x256xf32> to vector<8x192xf32>
    %cst_268 = arith.constant 5.000000e-01 : f32
    %533 = vector.broadcast %cst_268 : f32 to vector<8x192xf32>
    %534 = arith.mulf %533, %532 : vector<8x192xf32>
    %535 = math.tanh %534 : vector<8x192xf32>
    %cst_269 = arith.constant 5.000000e-01 : f32
    %536 = vector.broadcast %cst_269 : f32 to vector<8x192xf32>
    %537 = arith.mulf %536, %535 : vector<8x192xf32>
    %cst_270 = arith.constant 5.000000e-01 : f32
    %538 = vector.broadcast %cst_270 : f32 to vector<8x192xf32>
    %539 = arith.addf %537, %538 : vector<8x192xf32>
    %540 = vector.extract_strided_slice %531 {offsets = [0, 0], sizes = [8, 192], strides = [1, 1]} : vector<8x256xf32> to vector<8x192xf32>
    %cst_271 = arith.constant 5.000000e-01 : f32
    %541 = vector.broadcast %cst_271 : f32 to vector<8x192xf32>
    %542 = arith.mulf %541, %540 : vector<8x192xf32>
    %543 = math.tanh %542 : vector<8x192xf32>
    %cst_272 = arith.constant 5.000000e-01 : f32
    %544 = vector.broadcast %cst_272 : f32 to vector<8x192xf32>
    %545 = arith.mulf %544, %543 : vector<8x192xf32>
    %cst_273 = arith.constant 5.000000e-01 : f32
    %546 = vector.broadcast %cst_273 : f32 to vector<8x192xf32>
    %547 = arith.addf %545, %546 : vector<8x192xf32>
    %548 = vector.extract_strided_slice %529 {offsets = [0, 192], sizes = [8, 64], strides = [1, 1]} : vector<8x256xf32> to vector<8x64xf32>
    %549 = math.tanh %548 : vector<8x64xf32>
    %550 = vector.extract_strided_slice %531 {offsets = [0, 192], sizes = [8, 64], strides = [1, 1]} : vector<8x256xf32> to vector<8x64xf32>
    %551 = math.tanh %550 : vector<8x64xf32>
    %552 = vector.extract_strided_slice %539 {offsets = [0, 64], sizes = [8, 64], strides = [1, 1]} : vector<8x192xf32> to vector<8x64xf32>
    %553 = arith.mulf %552, %510 : vector<8x64xf32>
    %554 = vector.extract_strided_slice %539 {offsets = [0, 0], sizes = [8, 64], strides = [1, 1]} : vector<8x192xf32> to vector<8x64xf32>
    %555 = arith.mulf %554, %549 : vector<8x64xf32>
    %556 = arith.addf %553, %555 : vector<8x64xf32>
    %557 = vector.extract_strided_slice %547 {offsets = [0, 64], sizes = [8, 64], strides = [1, 1]} : vector<8x192xf32> to vector<8x64xf32>
    %558 = arith.mulf %557, %515 : vector<8x64xf32>
    %559 = vector.extract_strided_slice %547 {offsets = [0, 0], sizes = [8, 64], strides = [1, 1]} : vector<8x192xf32> to vector<8x64xf32>
    %560 = arith.mulf %559, %551 : vector<8x64xf32>
    %561 = arith.addf %558, %560 : vector<8x64xf32>
    %562 = vector.extract_strided_slice %539 {offsets = [0, 128], sizes = [8, 64], strides = [1, 1]} : vector<8x192xf32> to vector<8x64xf32>
    %563 = math.tanh %556 : vector<8x64xf32>
    %564 = arith.mulf %562, %563 : vector<8x64xf32>
    %565 = arith.truncf %564 : vector<8x64xf32> to vector<8x64xbf16>
    %566 = vector.extract_strided_slice %547 {offsets = [0, 128], sizes = [8, 64], strides = [1, 1]} : vector<8x192xf32> to vector<8x64xf32>
    %567 = math.tanh %561 : vector<8x64xf32>
    %568 = arith.mulf %566, %567 : vector<8x64xf32>
    %569 = arith.truncf %568 : vector<8x64xf32> to vector<8x64xbf16>
    %c0_274 = arith.constant 0 : index
    %c0_275 = arith.constant 0 : index
    %570 = vector.load %arg9[%c0_274, %c0_275] : memref<64x256xbf16, #tpu.memory_space<vmem>>, vector<64x256xbf16>
    %cst_276 = arith.constant dense<0.000000e+00> : vector<8x256xf32>
    %571 = tpu.matmul %565, %570, %cst_276 {dimension_numbers = #tpu.dot_dimension_numbers<[1], [0], [0], [1], [0, 0, 1, 1], [], []>} : vector<8x64xbf16>, vector<64x256xbf16>, vector<8x256xf32> -> vector<8x256xf32>
    %c0_277 = arith.constant 0 : index
    %c0_278 = arith.constant 0 : index
    %572 = vector.load %arg10[%c0_277, %c0_278] : memref<64x256xbf16, #tpu.memory_space<vmem>>, vector<64x256xbf16>
    %cst_279 = arith.constant dense<0.000000e+00> : vector<8x256xf32>
    %573 = tpu.matmul %569, %572, %cst_279 {dimension_numbers = #tpu.dot_dimension_numbers<[1], [0], [0], [1], [0, 0, 1, 1], [], []>} : vector<8x64xbf16>, vector<64x256xbf16>, vector<8x256xf32> -> vector<8x256xf32>
    %c72_280 = arith.constant 72 : index
    %c0_281 = arith.constant 0 : index
    %574 = vector.load %arg18[%c72_280, %c0_281] : memref<128x512xf32, #tpu.memory_space<vmem>>, vector<8x256xf32>
    %575 = arith.addf %574, %571 : vector<8x256xf32>
    %c48_282 = arith.constant 48 : index
    %c256_283 = arith.constant 256 : index
    %576 = vector.load %arg18[%c48_282, %c256_283] : memref<128x512xf32, #tpu.memory_space<vmem>>, vector<8x256xf32>
    %577 = arith.addf %576, %573 : vector<8x256xf32>
    %578 = vector.extract_strided_slice %575 {offsets = [0, 0], sizes = [8, 192], strides = [1, 1]} : vector<8x256xf32> to vector<8x192xf32>
    %cst_284 = arith.constant 5.000000e-01 : f32
    %579 = vector.broadcast %cst_284 : f32 to vector<8x192xf32>
    %580 = arith.mulf %579, %578 : vector<8x192xf32>
    %581 = math.tanh %580 : vector<8x192xf32>
    %cst_285 = arith.constant 5.000000e-01 : f32
    %582 = vector.broadcast %cst_285 : f32 to vector<8x192xf32>
    %583 = arith.mulf %582, %581 : vector<8x192xf32>
    %cst_286 = arith.constant 5.000000e-01 : f32
    %584 = vector.broadcast %cst_286 : f32 to vector<8x192xf32>
    %585 = arith.addf %583, %584 : vector<8x192xf32>
    %586 = vector.extract_strided_slice %577 {offsets = [0, 0], sizes = [8, 192], strides = [1, 1]} : vector<8x256xf32> to vector<8x192xf32>
    %cst_287 = arith.constant 5.000000e-01 : f32
    %587 = vector.broadcast %cst_287 : f32 to vector<8x192xf32>
    %588 = arith.mulf %587, %586 : vector<8x192xf32>
    %589 = math.tanh %588 : vector<8x192xf32>
    %cst_288 = arith.constant 5.000000e-01 : f32
    %590 = vector.broadcast %cst_288 : f32 to vector<8x192xf32>
    %591 = arith.mulf %590, %589 : vector<8x192xf32>
    %cst_289 = arith.constant 5.000000e-01 : f32
    %592 = vector.broadcast %cst_289 : f32 to vector<8x192xf32>
    %593 = arith.addf %591, %592 : vector<8x192xf32>
    %594 = vector.extract_strided_slice %575 {offsets = [0, 192], sizes = [8, 64], strides = [1, 1]} : vector<8x256xf32> to vector<8x64xf32>
    %595 = math.tanh %594 : vector<8x64xf32>
    %596 = vector.extract_strided_slice %577 {offsets = [0, 192], sizes = [8, 64], strides = [1, 1]} : vector<8x256xf32> to vector<8x64xf32>
    %597 = math.tanh %596 : vector<8x64xf32>
    %598 = vector.extract_strided_slice %585 {offsets = [0, 64], sizes = [8, 64], strides = [1, 1]} : vector<8x192xf32> to vector<8x64xf32>
    %599 = arith.mulf %598, %556 : vector<8x64xf32>
    %600 = vector.extract_strided_slice %585 {offsets = [0, 0], sizes = [8, 64], strides = [1, 1]} : vector<8x192xf32> to vector<8x64xf32>
    %601 = arith.mulf %600, %595 : vector<8x64xf32>
    %602 = arith.addf %599, %601 : vector<8x64xf32>
    %603 = vector.extract_strided_slice %593 {offsets = [0, 64], sizes = [8, 64], strides = [1, 1]} : vector<8x192xf32> to vector<8x64xf32>
    %604 = arith.mulf %603, %561 : vector<8x64xf32>
    %605 = vector.extract_strided_slice %593 {offsets = [0, 0], sizes = [8, 64], strides = [1, 1]} : vector<8x192xf32> to vector<8x64xf32>
    %606 = arith.mulf %605, %597 : vector<8x64xf32>
    %607 = arith.addf %604, %606 : vector<8x64xf32>
    %608 = vector.extract_strided_slice %585 {offsets = [0, 128], sizes = [8, 64], strides = [1, 1]} : vector<8x192xf32> to vector<8x64xf32>
    %609 = math.tanh %602 : vector<8x64xf32>
    %610 = arith.mulf %608, %609 : vector<8x64xf32>
    %611 = arith.truncf %610 : vector<8x64xf32> to vector<8x64xbf16>
    %612 = vector.extract_strided_slice %593 {offsets = [0, 128], sizes = [8, 64], strides = [1, 1]} : vector<8x192xf32> to vector<8x64xf32>
    %613 = math.tanh %607 : vector<8x64xf32>
    %614 = arith.mulf %612, %613 : vector<8x64xf32>
    %615 = arith.truncf %614 : vector<8x64xf32> to vector<8x64xbf16>
    %c0_290 = arith.constant 0 : index
    %c0_291 = arith.constant 0 : index
    %616 = vector.load %arg9[%c0_290, %c0_291] : memref<64x256xbf16, #tpu.memory_space<vmem>>, vector<64x256xbf16>
    %cst_292 = arith.constant dense<0.000000e+00> : vector<8x256xf32>
    %617 = tpu.matmul %611, %616, %cst_292 {dimension_numbers = #tpu.dot_dimension_numbers<[1], [0], [0], [1], [0, 0, 1, 1], [], []>} : vector<8x64xbf16>, vector<64x256xbf16>, vector<8x256xf32> -> vector<8x256xf32>
    %c0_293 = arith.constant 0 : index
    %c0_294 = arith.constant 0 : index
    %618 = vector.load %arg10[%c0_293, %c0_294] : memref<64x256xbf16, #tpu.memory_space<vmem>>, vector<64x256xbf16>
    %cst_295 = arith.constant dense<0.000000e+00> : vector<8x256xf32>
    %619 = tpu.matmul %615, %618, %cst_295 {dimension_numbers = #tpu.dot_dimension_numbers<[1], [0], [0], [1], [0, 0, 1, 1], [], []>} : vector<8x64xbf16>, vector<64x256xbf16>, vector<8x256xf32> -> vector<8x256xf32>
    %c80_296 = arith.constant 80 : index
    %c0_297 = arith.constant 0 : index
    %620 = vector.load %arg18[%c80_296, %c0_297] : memref<128x512xf32, #tpu.memory_space<vmem>>, vector<8x256xf32>
    %621 = arith.addf %620, %617 : vector<8x256xf32>
    %c40_298 = arith.constant 40 : index
    %c256_299 = arith.constant 256 : index
    %622 = vector.load %arg18[%c40_298, %c256_299] : memref<128x512xf32, #tpu.memory_space<vmem>>, vector<8x256xf32>
    %623 = arith.addf %622, %619 : vector<8x256xf32>
    %624 = vector.extract_strided_slice %621 {offsets = [0, 0], sizes = [8, 192], strides = [1, 1]} : vector<8x256xf32> to vector<8x192xf32>
    %cst_300 = arith.constant 5.000000e-01 : f32
    %625 = vector.broadcast %cst_300 : f32 to vector<8x192xf32>
    %626 = arith.mulf %625, %624 : vector<8x192xf32>
    %627 = math.tanh %626 : vector<8x192xf32>
    %cst_301 = arith.constant 5.000000e-01 : f32
    %628 = vector.broadcast %cst_301 : f32 to vector<8x192xf32>
    %629 = arith.mulf %628, %627 : vector<8x192xf32>
    %cst_302 = arith.constant 5.000000e-01 : f32
    %630 = vector.broadcast %cst_302 : f32 to vector<8x192xf32>
    %631 = arith.addf %629, %630 : vector<8x192xf32>
    %632 = vector.extract_strided_slice %623 {offsets = [0, 0], sizes = [8, 192], strides = [1, 1]} : vector<8x256xf32> to vector<8x192xf32>
    %cst_303 = arith.constant 5.000000e-01 : f32
    %633 = vector.broadcast %cst_303 : f32 to vector<8x192xf32>
    %634 = arith.mulf %633, %632 : vector<8x192xf32>
    %635 = math.tanh %634 : vector<8x192xf32>
    %cst_304 = arith.constant 5.000000e-01 : f32
    %636 = vector.broadcast %cst_304 : f32 to vector<8x192xf32>
    %637 = arith.mulf %636, %635 : vector<8x192xf32>
    %cst_305 = arith.constant 5.000000e-01 : f32
    %638 = vector.broadcast %cst_305 : f32 to vector<8x192xf32>
    %639 = arith.addf %637, %638 : vector<8x192xf32>
    %640 = vector.extract_strided_slice %621 {offsets = [0, 192], sizes = [8, 64], strides = [1, 1]} : vector<8x256xf32> to vector<8x64xf32>
    %641 = math.tanh %640 : vector<8x64xf32>
    %642 = vector.extract_strided_slice %623 {offsets = [0, 192], sizes = [8, 64], strides = [1, 1]} : vector<8x256xf32> to vector<8x64xf32>
    %643 = math.tanh %642 : vector<8x64xf32>
    %644 = vector.extract_strided_slice %631 {offsets = [0, 64], sizes = [8, 64], strides = [1, 1]} : vector<8x192xf32> to vector<8x64xf32>
    %645 = arith.mulf %644, %602 : vector<8x64xf32>
    %646 = vector.extract_strided_slice %631 {offsets = [0, 0], sizes = [8, 64], strides = [1, 1]} : vector<8x192xf32> to vector<8x64xf32>
    %647 = arith.mulf %646, %641 : vector<8x64xf32>
    %648 = arith.addf %645, %647 : vector<8x64xf32>
    %649 = vector.extract_strided_slice %639 {offsets = [0, 64], sizes = [8, 64], strides = [1, 1]} : vector<8x192xf32> to vector<8x64xf32>
    %650 = arith.mulf %649, %607 : vector<8x64xf32>
    %651 = vector.extract_strided_slice %639 {offsets = [0, 0], sizes = [8, 64], strides = [1, 1]} : vector<8x192xf32> to vector<8x64xf32>
    %652 = arith.mulf %651, %643 : vector<8x64xf32>
    %653 = arith.addf %650, %652 : vector<8x64xf32>
    %654 = vector.extract_strided_slice %631 {offsets = [0, 128], sizes = [8, 64], strides = [1, 1]} : vector<8x192xf32> to vector<8x64xf32>
    %655 = math.tanh %648 : vector<8x64xf32>
    %656 = arith.mulf %654, %655 : vector<8x64xf32>
    %657 = arith.truncf %656 : vector<8x64xf32> to vector<8x64xbf16>
    %658 = vector.extract_strided_slice %639 {offsets = [0, 128], sizes = [8, 64], strides = [1, 1]} : vector<8x192xf32> to vector<8x64xf32>
    %659 = math.tanh %653 : vector<8x64xf32>
    %660 = arith.mulf %658, %659 : vector<8x64xf32>
    %661 = arith.truncf %660 : vector<8x64xf32> to vector<8x64xbf16>
    %c0_306 = arith.constant 0 : index
    %c0_307 = arith.constant 0 : index
    %662 = vector.load %arg9[%c0_306, %c0_307] : memref<64x256xbf16, #tpu.memory_space<vmem>>, vector<64x256xbf16>
    %cst_308 = arith.constant dense<0.000000e+00> : vector<8x256xf32>
    %663 = tpu.matmul %657, %662, %cst_308 {dimension_numbers = #tpu.dot_dimension_numbers<[1], [0], [0], [1], [0, 0, 1, 1], [], []>} : vector<8x64xbf16>, vector<64x256xbf16>, vector<8x256xf32> -> vector<8x256xf32>
    %c0_309 = arith.constant 0 : index
    %c0_310 = arith.constant 0 : index
    %664 = vector.load %arg10[%c0_309, %c0_310] : memref<64x256xbf16, #tpu.memory_space<vmem>>, vector<64x256xbf16>
    %cst_311 = arith.constant dense<0.000000e+00> : vector<8x256xf32>
    %665 = tpu.matmul %661, %664, %cst_311 {dimension_numbers = #tpu.dot_dimension_numbers<[1], [0], [0], [1], [0, 0, 1, 1], [], []>} : vector<8x64xbf16>, vector<64x256xbf16>, vector<8x256xf32> -> vector<8x256xf32>
    %c88_312 = arith.constant 88 : index
    %c0_313 = arith.constant 0 : index
    %666 = vector.load %arg18[%c88_312, %c0_313] : memref<128x512xf32, #tpu.memory_space<vmem>>, vector<8x256xf32>
    %667 = arith.addf %666, %663 : vector<8x256xf32>
    %c32_314 = arith.constant 32 : index
    %c256_315 = arith.constant 256 : index
    %668 = vector.load %arg18[%c32_314, %c256_315] : memref<128x512xf32, #tpu.memory_space<vmem>>, vector<8x256xf32>
    %669 = arith.addf %668, %665 : vector<8x256xf32>
    %670 = vector.extract_strided_slice %667 {offsets = [0, 0], sizes = [8, 192], strides = [1, 1]} : vector<8x256xf32> to vector<8x192xf32>
    %cst_316 = arith.constant 5.000000e-01 : f32
    %671 = vector.broadcast %cst_316 : f32 to vector<8x192xf32>
    %672 = arith.mulf %671, %670 : vector<8x192xf32>
    %673 = math.tanh %672 : vector<8x192xf32>
    %cst_317 = arith.constant 5.000000e-01 : f32
    %674 = vector.broadcast %cst_317 : f32 to vector<8x192xf32>
    %675 = arith.mulf %674, %673 : vector<8x192xf32>
    %cst_318 = arith.constant 5.000000e-01 : f32
    %676 = vector.broadcast %cst_318 : f32 to vector<8x192xf32>
    %677 = arith.addf %675, %676 : vector<8x192xf32>
    %678 = vector.extract_strided_slice %669 {offsets = [0, 0], sizes = [8, 192], strides = [1, 1]} : vector<8x256xf32> to vector<8x192xf32>
    %cst_319 = arith.constant 5.000000e-01 : f32
    %679 = vector.broadcast %cst_319 : f32 to vector<8x192xf32>
    %680 = arith.mulf %679, %678 : vector<8x192xf32>
    %681 = math.tanh %680 : vector<8x192xf32>
    %cst_320 = arith.constant 5.000000e-01 : f32
    %682 = vector.broadcast %cst_320 : f32 to vector<8x192xf32>
    %683 = arith.mulf %682, %681 : vector<8x192xf32>
    %cst_321 = arith.constant 5.000000e-01 : f32
    %684 = vector.broadcast %cst_321 : f32 to vector<8x192xf32>
    %685 = arith.addf %683, %684 : vector<8x192xf32>
    %686 = vector.extract_strided_slice %667 {offsets = [0, 192], sizes = [8, 64], strides = [1, 1]} : vector<8x256xf32> to vector<8x64xf32>
    %687 = math.tanh %686 : vector<8x64xf32>
    %688 = vector.extract_strided_slice %669 {offsets = [0, 192], sizes = [8, 64], strides = [1, 1]} : vector<8x256xf32> to vector<8x64xf32>
    %689 = math.tanh %688 : vector<8x64xf32>
    %690 = vector.extract_strided_slice %677 {offsets = [0, 64], sizes = [8, 64], strides = [1, 1]} : vector<8x192xf32> to vector<8x64xf32>
    %691 = arith.mulf %690, %648 : vector<8x64xf32>
    %692 = vector.extract_strided_slice %677 {offsets = [0, 0], sizes = [8, 64], strides = [1, 1]} : vector<8x192xf32> to vector<8x64xf32>
    %693 = arith.mulf %692, %687 : vector<8x64xf32>
    %694 = arith.addf %691, %693 : vector<8x64xf32>
    %695 = vector.extract_strided_slice %685 {offsets = [0, 64], sizes = [8, 64], strides = [1, 1]} : vector<8x192xf32> to vector<8x64xf32>
    %696 = arith.mulf %695, %653 : vector<8x64xf32>
    %697 = vector.extract_strided_slice %685 {offsets = [0, 0], sizes = [8, 64], strides = [1, 1]} : vector<8x192xf32> to vector<8x64xf32>
    %698 = arith.mulf %697, %689 : vector<8x64xf32>
    %699 = arith.addf %696, %698 : vector<8x64xf32>
    %700 = vector.extract_strided_slice %677 {offsets = [0, 128], sizes = [8, 64], strides = [1, 1]} : vector<8x192xf32> to vector<8x64xf32>
    %701 = math.tanh %694 : vector<8x64xf32>
    %702 = arith.mulf %700, %701 : vector<8x64xf32>
    %703 = arith.truncf %702 : vector<8x64xf32> to vector<8x64xbf16>
    %704 = vector.extract_strided_slice %685 {offsets = [0, 128], sizes = [8, 64], strides = [1, 1]} : vector<8x192xf32> to vector<8x64xf32>
    %705 = math.tanh %699 : vector<8x64xf32>
    %706 = arith.mulf %704, %705 : vector<8x64xf32>
    %707 = arith.truncf %706 : vector<8x64xf32> to vector<8x64xbf16>
    %c0_322 = arith.constant 0 : index
    %c0_323 = arith.constant 0 : index
    %708 = vector.load %arg9[%c0_322, %c0_323] : memref<64x256xbf16, #tpu.memory_space<vmem>>, vector<64x256xbf16>
    %cst_324 = arith.constant dense<0.000000e+00> : vector<8x256xf32>
    %709 = tpu.matmul %703, %708, %cst_324 {dimension_numbers = #tpu.dot_dimension_numbers<[1], [0], [0], [1], [0, 0, 1, 1], [], []>} : vector<8x64xbf16>, vector<64x256xbf16>, vector<8x256xf32> -> vector<8x256xf32>
    %c0_325 = arith.constant 0 : index
    %c0_326 = arith.constant 0 : index
    %710 = vector.load %arg10[%c0_325, %c0_326] : memref<64x256xbf16, #tpu.memory_space<vmem>>, vector<64x256xbf16>
    %cst_327 = arith.constant dense<0.000000e+00> : vector<8x256xf32>
    %711 = tpu.matmul %707, %710, %cst_327 {dimension_numbers = #tpu.dot_dimension_numbers<[1], [0], [0], [1], [0, 0, 1, 1], [], []>} : vector<8x64xbf16>, vector<64x256xbf16>, vector<8x256xf32> -> vector<8x256xf32>
    %c96_328 = arith.constant 96 : index
    %c0_329 = arith.constant 0 : index
    %712 = vector.load %arg18[%c96_328, %c0_329] : memref<128x512xf32, #tpu.memory_space<vmem>>, vector<8x256xf32>
    %713 = arith.addf %712, %709 : vector<8x256xf32>
    %c24_330 = arith.constant 24 : index
    %c256_331 = arith.constant 256 : index
    %714 = vector.load %arg18[%c24_330, %c256_331] : memref<128x512xf32, #tpu.memory_space<vmem>>, vector<8x256xf32>
    %715 = arith.addf %714, %711 : vector<8x256xf32>
    %716 = vector.extract_strided_slice %713 {offsets = [0, 0], sizes = [8, 192], strides = [1, 1]} : vector<8x256xf32> to vector<8x192xf32>
    %cst_332 = arith.constant 5.000000e-01 : f32
    %717 = vector.broadcast %cst_332 : f32 to vector<8x192xf32>
    %718 = arith.mulf %717, %716 : vector<8x192xf32>
    %719 = math.tanh %718 : vector<8x192xf32>
    %cst_333 = arith.constant 5.000000e-01 : f32
    %720 = vector.broadcast %cst_333 : f32 to vector<8x192xf32>
    %721 = arith.mulf %720, %719 : vector<8x192xf32>
    %cst_334 = arith.constant 5.000000e-01 : f32
    %722 = vector.broadcast %cst_334 : f32 to vector<8x192xf32>
    %723 = arith.addf %721, %722 : vector<8x192xf32>
    %724 = vector.extract_strided_slice %715 {offsets = [0, 0], sizes = [8, 192], strides = [1, 1]} : vector<8x256xf32> to vector<8x192xf32>
    %cst_335 = arith.constant 5.000000e-01 : f32
    %725 = vector.broadcast %cst_335 : f32 to vector<8x192xf32>
    %726 = arith.mulf %725, %724 : vector<8x192xf32>
    %727 = math.tanh %726 : vector<8x192xf32>
    %cst_336 = arith.constant 5.000000e-01 : f32
    %728 = vector.broadcast %cst_336 : f32 to vector<8x192xf32>
    %729 = arith.mulf %728, %727 : vector<8x192xf32>
    %cst_337 = arith.constant 5.000000e-01 : f32
    %730 = vector.broadcast %cst_337 : f32 to vector<8x192xf32>
    %731 = arith.addf %729, %730 : vector<8x192xf32>
    %732 = vector.extract_strided_slice %713 {offsets = [0, 192], sizes = [8, 64], strides = [1, 1]} : vector<8x256xf32> to vector<8x64xf32>
    %733 = math.tanh %732 : vector<8x64xf32>
    %734 = vector.extract_strided_slice %715 {offsets = [0, 192], sizes = [8, 64], strides = [1, 1]} : vector<8x256xf32> to vector<8x64xf32>
    %735 = math.tanh %734 : vector<8x64xf32>
    %736 = vector.extract_strided_slice %723 {offsets = [0, 64], sizes = [8, 64], strides = [1, 1]} : vector<8x192xf32> to vector<8x64xf32>
    %737 = arith.mulf %736, %694 : vector<8x64xf32>
    %738 = vector.extract_strided_slice %723 {offsets = [0, 0], sizes = [8, 64], strides = [1, 1]} : vector<8x192xf32> to vector<8x64xf32>
    %739 = arith.mulf %738, %733 : vector<8x64xf32>
    %740 = arith.addf %737, %739 : vector<8x64xf32>
    %741 = vector.extract_strided_slice %731 {offsets = [0, 64], sizes = [8, 64], strides = [1, 1]} : vector<8x192xf32> to vector<8x64xf32>
    %742 = arith.mulf %741, %699 : vector<8x64xf32>
    %743 = vector.extract_strided_slice %731 {offsets = [0, 0], sizes = [8, 64], strides = [1, 1]} : vector<8x192xf32> to vector<8x64xf32>
    %744 = arith.mulf %743, %735 : vector<8x64xf32>
    %745 = arith.addf %742, %744 : vector<8x64xf32>
    %746 = vector.extract_strided_slice %723 {offsets = [0, 128], sizes = [8, 64], strides = [1, 1]} : vector<8x192xf32> to vector<8x64xf32>
    %747 = math.tanh %740 : vector<8x64xf32>
    %748 = arith.mulf %746, %747 : vector<8x64xf32>
    %749 = arith.truncf %748 : vector<8x64xf32> to vector<8x64xbf16>
    %750 = vector.extract_strided_slice %731 {offsets = [0, 128], sizes = [8, 64], strides = [1, 1]} : vector<8x192xf32> to vector<8x64xf32>
    %751 = math.tanh %745 : vector<8x64xf32>
    %752 = arith.mulf %750, %751 : vector<8x64xf32>
    %753 = arith.truncf %752 : vector<8x64xf32> to vector<8x64xbf16>
    %c0_338 = arith.constant 0 : index
    %c0_339 = arith.constant 0 : index
    %754 = vector.load %arg9[%c0_338, %c0_339] : memref<64x256xbf16, #tpu.memory_space<vmem>>, vector<64x256xbf16>
    %cst_340 = arith.constant dense<0.000000e+00> : vector<8x256xf32>
    %755 = tpu.matmul %749, %754, %cst_340 {dimension_numbers = #tpu.dot_dimension_numbers<[1], [0], [0], [1], [0, 0, 1, 1], [], []>} : vector<8x64xbf16>, vector<64x256xbf16>, vector<8x256xf32> -> vector<8x256xf32>
    %c0_341 = arith.constant 0 : index
    %c0_342 = arith.constant 0 : index
    %756 = vector.load %arg10[%c0_341, %c0_342] : memref<64x256xbf16, #tpu.memory_space<vmem>>, vector<64x256xbf16>
    %cst_343 = arith.constant dense<0.000000e+00> : vector<8x256xf32>
    %757 = tpu.matmul %753, %756, %cst_343 {dimension_numbers = #tpu.dot_dimension_numbers<[1], [0], [0], [1], [0, 0, 1, 1], [], []>} : vector<8x64xbf16>, vector<64x256xbf16>, vector<8x256xf32> -> vector<8x256xf32>
    %c104_344 = arith.constant 104 : index
    %c0_345 = arith.constant 0 : index
    %758 = vector.load %arg18[%c104_344, %c0_345] : memref<128x512xf32, #tpu.memory_space<vmem>>, vector<8x256xf32>
    %759 = arith.addf %758, %755 : vector<8x256xf32>
    %c16_346 = arith.constant 16 : index
    %c256_347 = arith.constant 256 : index
    %760 = vector.load %arg18[%c16_346, %c256_347] : memref<128x512xf32, #tpu.memory_space<vmem>>, vector<8x256xf32>
    %761 = arith.addf %760, %757 : vector<8x256xf32>
    %762 = vector.extract_strided_slice %759 {offsets = [0, 0], sizes = [8, 192], strides = [1, 1]} : vector<8x256xf32> to vector<8x192xf32>
    %cst_348 = arith.constant 5.000000e-01 : f32
    %763 = vector.broadcast %cst_348 : f32 to vector<8x192xf32>
    %764 = arith.mulf %763, %762 : vector<8x192xf32>
    %765 = math.tanh %764 : vector<8x192xf32>
    %cst_349 = arith.constant 5.000000e-01 : f32
    %766 = vector.broadcast %cst_349 : f32 to vector<8x192xf32>
    %767 = arith.mulf %766, %765 : vector<8x192xf32>
    %cst_350 = arith.constant 5.000000e-01 : f32
    %768 = vector.broadcast %cst_350 : f32 to vector<8x192xf32>
    %769 = arith.addf %767, %768 : vector<8x192xf32>
    %770 = vector.extract_strided_slice %761 {offsets = [0, 0], sizes = [8, 192], strides = [1, 1]} : vector<8x256xf32> to vector<8x192xf32>
    %cst_351 = arith.constant 5.000000e-01 : f32
    %771 = vector.broadcast %cst_351 : f32 to vector<8x192xf32>
    %772 = arith.mulf %771, %770 : vector<8x192xf32>
    %773 = math.tanh %772 : vector<8x192xf32>
    %cst_352 = arith.constant 5.000000e-01 : f32
    %774 = vector.broadcast %cst_352 : f32 to vector<8x192xf32>
    %775 = arith.mulf %774, %773 : vector<8x192xf32>
    %cst_353 = arith.constant 5.000000e-01 : f32
    %776 = vector.broadcast %cst_353 : f32 to vector<8x192xf32>
    %777 = arith.addf %775, %776 : vector<8x192xf32>
    %778 = vector.extract_strided_slice %759 {offsets = [0, 192], sizes = [8, 64], strides = [1, 1]} : vector<8x256xf32> to vector<8x64xf32>
    %779 = math.tanh %778 : vector<8x64xf32>
    %780 = vector.extract_strided_slice %761 {offsets = [0, 192], sizes = [8, 64], strides = [1, 1]} : vector<8x256xf32> to vector<8x64xf32>
    %781 = math.tanh %780 : vector<8x64xf32>
    %782 = vector.extract_strided_slice %769 {offsets = [0, 64], sizes = [8, 64], strides = [1, 1]} : vector<8x192xf32> to vector<8x64xf32>
    %783 = arith.mulf %782, %740 : vector<8x64xf32>
    %784 = vector.extract_strided_slice %769 {offsets = [0, 0], sizes = [8, 64], strides = [1, 1]} : vector<8x192xf32> to vector<8x64xf32>
    %785 = arith.mulf %784, %779 : vector<8x64xf32>
    %786 = arith.addf %783, %785 : vector<8x64xf32>
    %787 = vector.extract_strided_slice %777 {offsets = [0, 64], sizes = [8, 64], strides = [1, 1]} : vector<8x192xf32> to vector<8x64xf32>
    %788 = arith.mulf %787, %745 : vector<8x64xf32>
    %789 = vector.extract_strided_slice %777 {offsets = [0, 0], sizes = [8, 64], strides = [1, 1]} : vector<8x192xf32> to vector<8x64xf32>
    %790 = arith.mulf %789, %781 : vector<8x64xf32>
    %791 = arith.addf %788, %790 : vector<8x64xf32>
    %792 = vector.extract_strided_slice %769 {offsets = [0, 128], sizes = [8, 64], strides = [1, 1]} : vector<8x192xf32> to vector<8x64xf32>
    %793 = math.tanh %786 : vector<8x64xf32>
    %794 = arith.mulf %792, %793 : vector<8x64xf32>
    %795 = arith.truncf %794 : vector<8x64xf32> to vector<8x64xbf16>
    %796 = vector.extract_strided_slice %777 {offsets = [0, 128], sizes = [8, 64], strides = [1, 1]} : vector<8x192xf32> to vector<8x64xf32>
    %797 = math.tanh %791 : vector<8x64xf32>
    %798 = arith.mulf %796, %797 : vector<8x64xf32>
    %799 = arith.truncf %798 : vector<8x64xf32> to vector<8x64xbf16>
    %c0_354 = arith.constant 0 : index
    %c0_355 = arith.constant 0 : index
    %800 = vector.load %arg9[%c0_354, %c0_355] : memref<64x256xbf16, #tpu.memory_space<vmem>>, vector<64x256xbf16>
    %cst_356 = arith.constant dense<0.000000e+00> : vector<8x256xf32>
    %801 = tpu.matmul %795, %800, %cst_356 {dimension_numbers = #tpu.dot_dimension_numbers<[1], [0], [0], [1], [0, 0, 1, 1], [], []>} : vector<8x64xbf16>, vector<64x256xbf16>, vector<8x256xf32> -> vector<8x256xf32>
    %c0_357 = arith.constant 0 : index
    %c0_358 = arith.constant 0 : index
    %802 = vector.load %arg10[%c0_357, %c0_358] : memref<64x256xbf16, #tpu.memory_space<vmem>>, vector<64x256xbf16>
    %cst_359 = arith.constant dense<0.000000e+00> : vector<8x256xf32>
    %803 = tpu.matmul %799, %802, %cst_359 {dimension_numbers = #tpu.dot_dimension_numbers<[1], [0], [0], [1], [0, 0, 1, 1], [], []>} : vector<8x64xbf16>, vector<64x256xbf16>, vector<8x256xf32> -> vector<8x256xf32>
    %c112_360 = arith.constant 112 : index
    %c0_361 = arith.constant 0 : index
    %804 = vector.load %arg18[%c112_360, %c0_361] : memref<128x512xf32, #tpu.memory_space<vmem>>, vector<8x256xf32>
    %805 = arith.addf %804, %801 : vector<8x256xf32>
    %c8_362 = arith.constant 8 : index
    %c256_363 = arith.constant 256 : index
    %806 = vector.load %arg18[%c8_362, %c256_363] : memref<128x512xf32, #tpu.memory_space<vmem>>, vector<8x256xf32>
    %807 = arith.addf %806, %803 : vector<8x256xf32>
    %808 = vector.extract_strided_slice %805 {offsets = [0, 0], sizes = [8, 192], strides = [1, 1]} : vector<8x256xf32> to vector<8x192xf32>
    %cst_364 = arith.constant 5.000000e-01 : f32
    %809 = vector.broadcast %cst_364 : f32 to vector<8x192xf32>
    %810 = arith.mulf %809, %808 : vector<8x192xf32>
    %811 = math.tanh %810 : vector<8x192xf32>
    %cst_365 = arith.constant 5.000000e-01 : f32
    %812 = vector.broadcast %cst_365 : f32 to vector<8x192xf32>
    %813 = arith.mulf %812, %811 : vector<8x192xf32>
    %cst_366 = arith.constant 5.000000e-01 : f32
    %814 = vector.broadcast %cst_366 : f32 to vector<8x192xf32>
    %815 = arith.addf %813, %814 : vector<8x192xf32>
    %816 = vector.extract_strided_slice %807 {offsets = [0, 0], sizes = [8, 192], strides = [1, 1]} : vector<8x256xf32> to vector<8x192xf32>
    %cst_367 = arith.constant 5.000000e-01 : f32
    %817 = vector.broadcast %cst_367 : f32 to vector<8x192xf32>
    %818 = arith.mulf %817, %816 : vector<8x192xf32>
    %819 = math.tanh %818 : vector<8x192xf32>
    %cst_368 = arith.constant 5.000000e-01 : f32
    %820 = vector.broadcast %cst_368 : f32 to vector<8x192xf32>
    %821 = arith.mulf %820, %819 : vector<8x192xf32>
    %cst_369 = arith.constant 5.000000e-01 : f32
    %822 = vector.broadcast %cst_369 : f32 to vector<8x192xf32>
    %823 = arith.addf %821, %822 : vector<8x192xf32>
    %824 = vector.extract_strided_slice %805 {offsets = [0, 192], sizes = [8, 64], strides = [1, 1]} : vector<8x256xf32> to vector<8x64xf32>
    %825 = math.tanh %824 : vector<8x64xf32>
    %826 = vector.extract_strided_slice %807 {offsets = [0, 192], sizes = [8, 64], strides = [1, 1]} : vector<8x256xf32> to vector<8x64xf32>
    %827 = math.tanh %826 : vector<8x64xf32>
    %828 = vector.extract_strided_slice %815 {offsets = [0, 64], sizes = [8, 64], strides = [1, 1]} : vector<8x192xf32> to vector<8x64xf32>
    %829 = arith.mulf %828, %786 : vector<8x64xf32>
    %830 = vector.extract_strided_slice %815 {offsets = [0, 0], sizes = [8, 64], strides = [1, 1]} : vector<8x192xf32> to vector<8x64xf32>
    %831 = arith.mulf %830, %825 : vector<8x64xf32>
    %832 = arith.addf %829, %831 : vector<8x64xf32>
    %833 = vector.extract_strided_slice %823 {offsets = [0, 64], sizes = [8, 64], strides = [1, 1]} : vector<8x192xf32> to vector<8x64xf32>
    %834 = arith.mulf %833, %791 : vector<8x64xf32>
    %835 = vector.extract_strided_slice %823 {offsets = [0, 0], sizes = [8, 64], strides = [1, 1]} : vector<8x192xf32> to vector<8x64xf32>
    %836 = arith.mulf %835, %827 : vector<8x64xf32>
    %837 = arith.addf %834, %836 : vector<8x64xf32>
    %838 = vector.extract_strided_slice %815 {offsets = [0, 128], sizes = [8, 64], strides = [1, 1]} : vector<8x192xf32> to vector<8x64xf32>
    %839 = math.tanh %832 : vector<8x64xf32>
    %840 = arith.mulf %838, %839 : vector<8x64xf32>
    %841 = arith.truncf %840 : vector<8x64xf32> to vector<8x64xbf16>
    %842 = vector.extract_strided_slice %823 {offsets = [0, 128], sizes = [8, 64], strides = [1, 1]} : vector<8x192xf32> to vector<8x64xf32>
    %843 = math.tanh %837 : vector<8x64xf32>
    %844 = arith.mulf %842, %843 : vector<8x64xf32>
    %845 = arith.truncf %844 : vector<8x64xf32> to vector<8x64xbf16>
    %c0_370 = arith.constant 0 : index
    %c0_371 = arith.constant 0 : index
    %846 = vector.load %arg9[%c0_370, %c0_371] : memref<64x256xbf16, #tpu.memory_space<vmem>>, vector<64x256xbf16>
    %cst_372 = arith.constant dense<0.000000e+00> : vector<8x256xf32>
    %847 = tpu.matmul %841, %846, %cst_372 {dimension_numbers = #tpu.dot_dimension_numbers<[1], [0], [0], [1], [0, 0, 1, 1], [], []>} : vector<8x64xbf16>, vector<64x256xbf16>, vector<8x256xf32> -> vector<8x256xf32>
    %c0_373 = arith.constant 0 : index
    %c0_374 = arith.constant 0 : index
    %848 = vector.load %arg10[%c0_373, %c0_374] : memref<64x256xbf16, #tpu.memory_space<vmem>>, vector<64x256xbf16>
    %cst_375 = arith.constant dense<0.000000e+00> : vector<8x256xf32>
    %849 = tpu.matmul %845, %848, %cst_375 {dimension_numbers = #tpu.dot_dimension_numbers<[1], [0], [0], [1], [0, 0, 1, 1], [], []>} : vector<8x64xbf16>, vector<64x256xbf16>, vector<8x256xf32> -> vector<8x256xf32>
    %c120_376 = arith.constant 120 : index
    %c0_377 = arith.constant 0 : index
    %850 = vector.load %arg18[%c120_376, %c0_377] : memref<128x512xf32, #tpu.memory_space<vmem>>, vector<8x256xf32>
    %851 = arith.addf %850, %847 : vector<8x256xf32>
    %c0_378 = arith.constant 0 : index
    %c256_379 = arith.constant 256 : index
    %852 = vector.load %arg18[%c0_378, %c256_379] : memref<128x512xf32, #tpu.memory_space<vmem>>, vector<8x256xf32>
    %853 = arith.addf %852, %849 : vector<8x256xf32>
    %854 = vector.extract_strided_slice %851 {offsets = [0, 0], sizes = [8, 192], strides = [1, 1]} : vector<8x256xf32> to vector<8x192xf32>
    %cst_380 = arith.constant 5.000000e-01 : f32
    %855 = vector.broadcast %cst_380 : f32 to vector<8x192xf32>
    %856 = arith.mulf %855, %854 : vector<8x192xf32>
    %857 = math.tanh %856 : vector<8x192xf32>
    %cst_381 = arith.constant 5.000000e-01 : f32
    %858 = vector.broadcast %cst_381 : f32 to vector<8x192xf32>
    %859 = arith.mulf %858, %857 : vector<8x192xf32>
    %cst_382 = arith.constant 5.000000e-01 : f32
    %860 = vector.broadcast %cst_382 : f32 to vector<8x192xf32>
    %861 = arith.addf %859, %860 : vector<8x192xf32>
    %862 = vector.extract_strided_slice %853 {offsets = [0, 0], sizes = [8, 192], strides = [1, 1]} : vector<8x256xf32> to vector<8x192xf32>
    %cst_383 = arith.constant 5.000000e-01 : f32
    %863 = vector.broadcast %cst_383 : f32 to vector<8x192xf32>
    %864 = arith.mulf %863, %862 : vector<8x192xf32>
    %865 = math.tanh %864 : vector<8x192xf32>
    %cst_384 = arith.constant 5.000000e-01 : f32
    %866 = vector.broadcast %cst_384 : f32 to vector<8x192xf32>
    %867 = arith.mulf %866, %865 : vector<8x192xf32>
    %cst_385 = arith.constant 5.000000e-01 : f32
    %868 = vector.broadcast %cst_385 : f32 to vector<8x192xf32>
    %869 = arith.addf %867, %868 : vector<8x192xf32>
    %870 = vector.extract_strided_slice %851 {offsets = [0, 192], sizes = [8, 64], strides = [1, 1]} : vector<8x256xf32> to vector<8x64xf32>
    %871 = math.tanh %870 : vector<8x64xf32>
    %872 = vector.extract_strided_slice %853 {offsets = [0, 192], sizes = [8, 64], strides = [1, 1]} : vector<8x256xf32> to vector<8x64xf32>
    %873 = math.tanh %872 : vector<8x64xf32>
    %874 = vector.extract_strided_slice %861 {offsets = [0, 64], sizes = [8, 64], strides = [1, 1]} : vector<8x192xf32> to vector<8x64xf32>
    %875 = arith.mulf %874, %832 : vector<8x64xf32>
    %876 = vector.extract_strided_slice %861 {offsets = [0, 0], sizes = [8, 64], strides = [1, 1]} : vector<8x192xf32> to vector<8x64xf32>
    %877 = arith.mulf %876, %871 : vector<8x64xf32>
    %878 = arith.addf %875, %877 : vector<8x64xf32>
    %879 = vector.extract_strided_slice %869 {offsets = [0, 64], sizes = [8, 64], strides = [1, 1]} : vector<8x192xf32> to vector<8x64xf32>
    %880 = arith.mulf %879, %837 : vector<8x64xf32>
    %881 = vector.extract_strided_slice %869 {offsets = [0, 0], sizes = [8, 64], strides = [1, 1]} : vector<8x192xf32> to vector<8x64xf32>
    %882 = arith.mulf %881, %873 : vector<8x64xf32>
    %883 = arith.addf %880, %882 : vector<8x64xf32>
    %884 = vector.extract_strided_slice %861 {offsets = [0, 128], sizes = [8, 64], strides = [1, 1]} : vector<8x192xf32> to vector<8x64xf32>
    %885 = math.tanh %878 : vector<8x64xf32>
    %886 = arith.mulf %884, %885 : vector<8x64xf32>
    %887 = arith.truncf %886 : vector<8x64xf32> to vector<8x64xbf16>
    %888 = vector.extract_strided_slice %869 {offsets = [0, 128], sizes = [8, 64], strides = [1, 1]} : vector<8x192xf32> to vector<8x64xf32>
    %889 = math.tanh %883 : vector<8x64xf32>
    %890 = arith.mulf %888, %889 : vector<8x64xf32>
    %891 = arith.truncf %890 : vector<8x64xf32> to vector<8x64xbf16>
    %892 = tpu.concatenate %197, %891 in 1 : vector<8x64xbf16>, vector<8x64xbf16> -> vector<8x128xbf16>
    %893 = tpu.concatenate %243, %845 in 1 : vector<8x64xbf16>, vector<8x64xbf16> -> vector<8x128xbf16>
    %894 = tpu.concatenate %289, %799 in 1 : vector<8x64xbf16>, vector<8x64xbf16> -> vector<8x128xbf16>
    %895 = tpu.concatenate %335, %753 in 1 : vector<8x64xbf16>, vector<8x64xbf16> -> vector<8x128xbf16>
    %896 = tpu.concatenate %381, %707 in 1 : vector<8x64xbf16>, vector<8x64xbf16> -> vector<8x128xbf16>
    %897 = tpu.concatenate %427, %661 in 1 : vector<8x64xbf16>, vector<8x64xbf16> -> vector<8x128xbf16>
    %898 = tpu.concatenate %473, %615 in 1 : vector<8x64xbf16>, vector<8x64xbf16> -> vector<8x128xbf16>
    %899 = tpu.concatenate %519, %569 in 1 : vector<8x64xbf16>, vector<8x64xbf16> -> vector<8x128xbf16>
    %900 = tpu.concatenate %565, %523 in 1 : vector<8x64xbf16>, vector<8x64xbf16> -> vector<8x128xbf16>
    %901 = tpu.concatenate %611, %477 in 1 : vector<8x64xbf16>, vector<8x64xbf16> -> vector<8x128xbf16>
    %902 = tpu.concatenate %657, %431 in 1 : vector<8x64xbf16>, vector<8x64xbf16> -> vector<8x128xbf16>
    %903 = tpu.concatenate %703, %385 in 1 : vector<8x64xbf16>, vector<8x64xbf16> -> vector<8x128xbf16>
    %904 = tpu.concatenate %749, %339 in 1 : vector<8x64xbf16>, vector<8x64xbf16> -> vector<8x128xbf16>
    %905 = tpu.concatenate %795, %293 in 1 : vector<8x64xbf16>, vector<8x64xbf16> -> vector<8x128xbf16>
    %906 = tpu.concatenate %841, %247 in 1 : vector<8x64xbf16>, vector<8x64xbf16> -> vector<8x128xbf16>
    %907 = tpu.concatenate %887, %201 in 1 : vector<8x64xbf16>, vector<8x64xbf16> -> vector<8x128xbf16>
    %908 = tpu.concatenate %892, %893, %894, %895, %896, %897, %898, %899, %900, %901, %902, %903, %904, %905, %906, %907 in 0 : vector<8x128xbf16>, vector<8x128xbf16>, vector<8x128xbf16>, vector<8x128xbf16>, vector<8x128xbf16>, vector<8x128xbf16>, vector<8x128xbf16>, vector<8x128xbf16>, vector<8x128xbf16>, vector<8x128xbf16>, vector<8x128xbf16>, vector<8x128xbf16>, vector<8x128xbf16>, vector<8x128xbf16>, vector<8x128xbf16>, vector<8x128xbf16> -> vector<128x128xbf16>
    %c0_386 = arith.constant 0 : index
    %c0_387 = arith.constant 0 : index
    %909 = vector.load %arg12[%c0_386, %c0_387] : memref<128x128xbf16, #tpu.memory_space<vmem>>, vector<128x128xbf16>
    %cst_388 = arith.constant dense<0.000000e+00> : vector<128x128xf32>
    %910 = tpu.matmul %908, %909, %cst_388 {dimension_numbers = #tpu.dot_dimension_numbers<[1], [0], [0], [1], [0, 0, 1, 1], [], []>} : vector<128x128xbf16>, vector<128x128xbf16>, vector<128x128xf32> -> vector<128x128xf32>
    %c0_389 = arith.constant 0 : index
    %c0_390 = arith.constant 0 : index
    %911 = vector.load %arg13[%c0_389, %c0_390] : memref<1x128xf32, #tpu.memory_space<vmem>>, vector<1x128xf32>
    %912 = vector.broadcast %911 : vector<1x128xf32> to vector<128x128xf32>
    %913 = arith.addf %910, %912 : vector<128x128xf32>
    %c0_391 = arith.constant 0 : index
    %c0_392 = arith.constant 0 : index
    %914 = vector.load %arg14[%c0_391, %c0_392] : memref<128x128xf32, #tpu.memory_space<vmem>>, vector<128x128xf32>
    tpu.vector_store %arg14[%c0_391, %c0_392], %913 {strides = array<i32>} : memref<128x128xf32, #tpu.memory_space<vmem>>, vector<128x128xf32>,
    return
  }
  func.func @transform_0(%arg0: i32) -> (i32, i32) {
    %c0_i32 = arith.constant 0 : i32
    %c0_i32_0 = arith.constant 0 : i32
    return %arg0, %c0_i32 : i32, i32
  }
  func.func @transform_1(%arg0: i32) -> (i32, i32, i32) {
    %c0_i32 = arith.constant 0 : i32
    %c0_i32_0 = arith.constant 0 : i32
    %c0_i32_1 = arith.constant 0 : i32
    %c0_i32_2 = arith.constant 0 : i32
    return %c0_i32, %c0_i32_0, %c0_i32_1 : i32, i32, i32
  }
  func.func @transform_2(%arg0: i32) -> (i32, i32) {
    %c0_i32 = arith.constant 0 : i32
    %c0_i32_0 = arith.constant 0 : i32
    %c0_i32_1 = arith.constant 0 : i32
    return %c0_i32, %c0_i32_0 : i32, i32
  }
  func.func @transform_3(%arg0: i32) -> (i32, i32, i32) {
    %c0_i32 = arith.constant 0 : i32
    %c0_i32_0 = arith.constant 0 : i32
    %c0_i32_1 = arith.constant 0 : i32
    %c0_i32_2 = arith.constant 0 : i32
    return %c0_i32, %c0_i32_0, %c0_i32_1 : i32, i32, i32
  }
  func.func @transform_4(%arg0: i32) -> (i32, i32) {
    %c0_i32 = arith.constant 0 : i32
    %c0_i32_0 = arith.constant 0 : i32
    %c0_i32_1 = arith.constant 0 : i32
    return %c0_i32, %c0_i32_0 : i32, i32
  }
  func.func @transform_5(%arg0: i32) -> (i32, i32, i32) {
    %c0_i32 = arith.constant 0 : i32
    %c0_i32_0 = arith.constant 0 : i32
    %c0_i32_1 = arith.constant 0 : i32
    %c0_i32_2 = arith.constant 0 : i32
    return %c0_i32, %c0_i32_0, %c0_i32_1 : i32, i32, i32
  }
  func.func @transform_6(%arg0: i32) -> (i32, i32) {
    %c0_i32 = arith.constant 0 : i32
    %c0_i32_0 = arith.constant 0 : i32
    %c0_i32_1 = arith.constant 0 : i32
    return %c0_i32, %c0_i32_0 : i32, i32
  }
  func.func @transform_7(%arg0: i32) -> (i32, i32) {
    %c0_i32 = arith.constant 0 : i32
    %c0_i32_0 = arith.constant 0 : i32
    %c0_i32_1 = arith.constant 0 : i32
    return %c0_i32, %c0_i32_0 : i32, i32
  }
  func.func @transform_8(%arg0: i32) -> (i32, i32) {
    %c0_i32 = arith.constant 0 : i32
    %c0_i32_0 = arith.constant 0 : i32
    %c0_i32_1 = arith.constant 0 : i32
    return %c0_i32, %c0_i32_0 : i32, i32
  }
  func.func @transform_9(%arg0: i32) -> (i32, i32) {
    %c0_i32 = arith.constant 0 : i32
    %c0_i32_0 = arith.constant 0 : i32
    %c0_i32_1 = arith.constant 0 : i32
    return %c0_i32, %c0_i32_0 : i32, i32
  }
  func.func @transform_10(%arg0: i32) -> (i32, i32) {
    %c0_i32 = arith.constant 0 : i32
    %c0_i32_0 = arith.constant 0 : i32
    %c0_i32_1 = arith.constant 0 : i32
    return %c0_i32, %c0_i32_0 : i32, i32
  }
  func.func @transform_11(%arg0: i32) -> (i32, i32) {
    %c0_i32 = arith.constant 0 : i32
    %c0_i32_0 = arith.constant 0 : i32
    %c0_i32_1 = arith.constant 0 : i32
    return %c0_i32, %c0_i32_0 : i32, i32
  }
  func.func @transform_12(%arg0: i32) -> (i32, i32) {
    %c0_i32 = arith.constant 0 : i32
    %c0_i32_0 = arith.constant 0 : i32
    %c0_i32_1 = arith.constant 0 : i32
    return %c0_i32, %c0_i32_0 : i32, i32
  }
  func.func @transform_13(%arg0: i32) -> (i32, i32) {
    %c0_i32 = arith.constant 0 : i32
    %c0_i32_0 = arith.constant 0 : i32
    return %arg0, %c0_i32 : i32, i32
  }
}

</mosaic_0001>

<bundles_post_ra>
// kernel: forward.1
= control target key start
LH: loop header
LB: loop body
LE: loop exit
PB: predicated region body
PF: predicated region fallthrough
CT: control target
= control target key end

     0   :  { %vm45_vm0 = vcmask 261120   ;;  %v8941_v1 = vmov 0.0   ;;  %vm52_vm1 = vcmask 523264   ;;  %vm6808_vm2 = vcmask 1043456   ;;  %s11179_s1 = inlined_call_operand.vmem [shape: bf16[3,32,128], index: 1, kind: input, shape index: {}]   ;;  %s11180_s0 = inlined_call_operand.vmem [shape: f32[128,32], index: 0, kind: input, shape index: {}]   ;;  %s11181_s3 = inlined_call_operand.vmem [shape: bf16[5,128,64], index: 3, kind: input, shape index: {}]   ;;  %s11182_s2 = inlined_call_operand.vmem [shape: f32[1,128], index: 2, kind: input, shape index: {}]   ;;  %s11183_s5 = inlined_call_operand.vmem [shape: bf16[11,64,64], index: 5, kind: input, shape index: {}]   ;;  %s11184_s4 = inlined_call_operand.vmem [shape: f32[1,64], index: 4, kind: input, shape index: {}]   ;;  %s11185_s7 = inlined_call_operand.vmem [shape: bf16[64,512], index: 7, kind: input, shape index: {}]   ;;  %s11186_s8 = inlined_call_operand.vmem [shape: bf16[64,256], index: 8, kind: input, shape index: {}]   ;;  %s11187_s9 = inlined_call_operand.vmem [shape: bf16[64,256], index: 9, kind: input, shape index: {}]   ;;  %s11188_s6 = inlined_call_operand.vmem [shape: f32[1,64], index: 6, kind: input, shape index: {}]   ;;  %s11189_s10 = inlined_call_operand.vmem [shape: f32[1,512], index: 10, kind: input, shape index: {}]   ;;  %s11190_s11 = inlined_call_operand.vmem [shape: bf16[128,128], index: 11, kind: input, shape index: {}]   ;;  %s11191_s12 = inlined_call_operand.vmem [shape: f32[1,128], index: 12, kind: input, shape index: {}]   ;;  %s11192_s13 = inlined_call_operand.vmem [shape: f32[128,128], index: 13, kind: output, shape index: {}]  }
   0x1   :  { %v8507_v0 = vld [vmem:[%s11179_s1 + $0x10] sm:$0xff]   ;;  %46 = vst.msk [vmem:[#allocation2] sm:$0xff] %vm45_vm0, %v8941_v1  ;;  %47 = vst.msk [vmem:[#allocation2 + $0x88] sm:$0xff] %vm45_vm0, %v8941_v1  ;;  %v8508_v2 = vld [vmem:[%s11179_s1 + $0x18] sm:$0xff]  }
   0x2   :  { %7723 = vmatprep.subr.bf16.mxu0 %v8507_v0  ;;  %v63_v3 = vld [vmem:[%s11180_s0] sm:$0xff]  ;;  %v64_v4 = vld [vmem:[%s11180_s0 + $0x8] sm:$0xff]  ;;  %v65_v5 = vld [vmem:[%s11180_s0 + $0x10] sm:$0xff]  ;;  %53 = vst.msk [vmem:[#allocation4] sm:$0xff] %vm52_vm1, %v8941_v1 }
   0x3   :  { %7724 = vmatpush3.bf16.msra.mxu0 %v8507_v0  ;;  %v66_v6 = vld [vmem:[%s11180_s0 + $0x18] sm:$0xff]  ;;  %79 = vst.msk [vmem:[#allocation2 + $0x8] sm:$0xff] %vm45_vm0, %v63_v3  ;;  %80 = vst.msk [vmem:[#allocation2 + $0x10] sm:$0xff] %vm45_vm0, %v64_v4  ;;  %v8509_v7 = vld [vmem:[%s11179_s1] sm:$0xff]  }
   0x4   :  { %81 = vst.msk [vmem:[#allocation2 + $0x18] sm:$0xff] %vm45_vm0, %v65_v5  ;;  %7725 = vmatprep.subr.bf16.mxu0 %v8508_v2  ;;  %82 = vst.msk [vmem:[#allocation2 + $0x20] sm:$0xff] %vm45_vm0, %v66_v6  ;;  %v67_v8 = vld [vmem:[%s11180_s0 + $0x20] sm:$0xff]  ;;  %v68_v9 = vld [vmem:[%s11180_s0 + $0x28] sm:$0xff] }
   0x5   :  { %83 = vst.msk [vmem:[#allocation2 + $0x28] sm:$0xff] %vm45_vm0, %v67_v8  ;;  %84 = vst.msk [vmem:[#allocation2 + $0x30] sm:$0xff] %vm45_vm0, %v68_v9  ;;  %v69_v10 = vld [vmem:[%s11180_s0 + $0x30] sm:$0xff]  ;;  %v70_v11 = vld [vmem:[%s11180_s0 + $0x38] sm:$0xff] }
   0x6   :  { %v71_v12 = vld [vmem:[%s11180_s0 + $0x40] sm:$0xff]  ;;  %85 = vst.msk [vmem:[#allocation2 + $0x38] sm:$0xff] %vm45_vm0, %v69_v10  ;;  %86 = vst.msk [vmem:[#allocation2 + $0x40] sm:$0xff] %vm45_vm0, %v70_v11  ;;  %v72_v13 = vld [vmem:[%s11180_s0 + $0x48] sm:$0xff] }
   0x7   :  { %87 = vst.msk [vmem:[#allocation2 + $0x48] sm:$0xff] %vm45_vm0, %v71_v12  ;;  %7726 = vmatpush3.bf16.msra.mxu0 %v8508_v2  ;;  %88 = vst.msk [vmem:[#allocation2 + $0x50] sm:$0xff] %vm45_vm0, %v72_v13  ;;  %v73_v14 = vld [vmem:[%s11180_s0 + $0x50] sm:$0xff]  ;;  %v74_v15 = vld [vmem:[%s11180_s0 + $0x58] sm:$0xff] }
   0x8   :  { %7743 = vmatprep.subr.bf16.mxu0 %v8509_v7  ;;  %89 = vst.msk [vmem:[#allocation2 + $0x58] sm:$0xff] %vm45_vm0, %v73_v14  ;;  %v75_v16 = vld [vmem:[%s11180_s0 + $0x60] sm:$0xff]  ;;  %v76_v17 = vld [vmem:[%s11180_s0 + $0x68] sm:$0xff]  ;;  %90 = vst.msk [vmem:[#allocation2 + $0x60] sm:$0xff] %vm45_vm0, %v74_v15 }
   0x9   :  { %91 = vst.msk [vmem:[#allocation2 + $0x68] sm:$0xff] %vm45_vm0, %v75_v16  ;;  %92 = vst.msk [vmem:[#allocation2 + $0x70] sm:$0xff] %vm45_vm0, %v76_v17  ;;  %v77_v18 = vld [vmem:[%s11180_s0 + $0x70] sm:$0xff]  ;;  %v78_v19 = vld [vmem:[%s11180_s0 + $0x78] sm:$0xff] }
   0xa   :  { %v96_v20 = vld [vmem:[#allocation2 + $0x8] sm:$0xff]  ;;  %v97_v21 = vld [vmem:[#allocation2 + $0x10] sm:$0xff]  ;;  %93 = vst.msk [vmem:[#allocation2 + $0x78] sm:$0xff] %vm45_vm0, %v77_v18  ;;  %94 = vst.msk [vmem:[#allocation2 + $0x80] sm:$0xff] %vm45_vm0, %v78_v19 }
   0xb   :  { %v98_v22 = vld [vmem:[#allocation2 + $0x18] sm:$0xff]  ;;  %v99_v23 = vld [vmem:[#allocation2 + $0x20] sm:$0xff]  ;;  %v124_v24 = vpack.c.bf16 %v97_v21, %v96_v20  ;;  %v8510_v25 = vld [vmem:[%s11179_s1 + $0x8] sm:$0xff]   ;;  %54 = vst.msk [vmem:[#allocation4 + $0x8] sm:$0xff] %vm52_vm1, %v8941_v1 }
   0xc   :  { %v125_v26 = vpack.c.bf16 %v99_v23, %v98_v22  ;;  %v100_v27 = vld [vmem:[#allocation2 + $0x28] sm:$0xff]  ;;  %v101_v28 = vld [vmem:[#allocation2 + $0x30] sm:$0xff]  ;;  %v8511_v34 = vld [vmem:[%s11179_s1 + $0x20] sm:$0xff]   ;;  %v112_v54 = vpack.c.bf16 %v98_v22, %v97_v21  ;;  %55 = vst.msk [vmem:[#allocation4 + $0x10] sm:$0xff] %vm52_vm1, %v8941_v1 }
   0xd   :  { %7727 = vmatprep.mubr.msk.bf16.mxu0 %vm45_vm0, %v124_v24  ;;  %v126_v29 = vpack.c.bf16 %v101_v28, %v100_v27  ;;  %v102_v30 = vld [vmem:[#allocation2 + $0x38] sm:$0xff]  ;;  %v103_v31 = vld [vmem:[#allocation2 + $0x40] sm:$0xff]  ;;  %v8514_v38 = vld [vmem:[%s11181_s3 + $0x48] sm:$0xff]   ;;  %v113_v56 = vpack.c.bf16 %v100_v27, %v99_v23  ;;  %56 = vst.msk [vmem:[#allocation4 + $0x18] sm:$0xff] %vm52_vm1, %v8941_v1 }
   0xe   :  { %7728 = vmatmul.mubr.msk.bf16.vlgmr.msra.gmra.mrb[0].mxu0 %vm45_vm0, %v125_v26  ;;  %v104_v32 = vld [vmem:[#allocation2 + $0x48] sm:$0xff]  ;;  %v105_v33 = vld [vmem:[#allocation2 + $0x50] sm:$0xff]  ;;  %v127_v35 = vpack.c.bf16 %v103_v31, %v102_v30  ;;  %v8513_v36 = vld [vmem:[%s11181_s3 + $0x40] sm:$0xff]   ;;  %v114_v57 = vpack.c.bf16 %v102_v30, %v101_v28  ;;  %57 = vst.msk [vmem:[#allocation4 + $0x20] sm:$0xff] %vm52_vm1, %v8941_v1 }
   0xf   :  { %7744 = vmatpush3.bf16.msra.mxu0 %v8509_v7  ;;  %7731 = vmatprep.mubr.msk.bf16.mxu0 %vm45_vm0, %v126_v29  ;;  %v128_v37 = vpack.c.bf16 %v105_v33, %v104_v32  ;;  %v106_v39 = vld [vmem:[#allocation2 + $0x58] sm:$0xff]  ;;  %v107_v40 = vld [vmem:[#allocation2 + $0x60] sm:$0xff]  ;;  %v8515_v42 = vld [vmem:[%s11181_s3 + $0x50] sm:$0xff]   ;;  %v115_v58 = vpack.c.bf16 %v104_v32, %v103_v31  ;;  %58 = vst.msk [vmem:[#allocation4 + $0xa8] sm:$0xff] %vm52_vm1, %v8941_v1 }
  0x10   :  { %7745 = vmatprep.subr.bf16.mxu0 %v8510_v25  ;;  %7783 = vmatprep.subr.bf16.mxu1 %v8513_v36  ;;  %v108_v41 = vld [vmem:[#allocation2 + $0x68] sm:$0xff]  ;;  %v109_v43 = vld [vmem:[#allocation2 + $0x70] sm:$0xff]  ;;  %v8516_v44 = vld [vmem:[%s11181_s3 + $0x58] sm:$0xff]   ;;  %v129_v45 = vpack.c.bf16 %v107_v40, %v106_v39  ;;  %v116_v59 = vpack.c.bf16 %v106_v39, %v105_v33  ;;  %59 = vst.msk [vmem:[#allocation4 + $0xb0] sm:$0xff] %vm52_vm1, %v8941_v1 }
  0x11   :  { %7784 = vmatpush3.bf16.msra.mxu1 %v8513_v36  ;;  %v130_v46 = vpack.c.bf16 %v109_v43, %v108_v41  ;;  %v8517_v47 = vld [vmem:[%s11181_s3 + $0x60] sm:$0xff]   ;;  %v110_v48 = vld [vmem:[#allocation2 + $0x78] sm:$0xff]  ;;  %v8518_v51 = vld [vmem:[%s11181_s3 + $0x68] sm:$0xff]   ;;  %v117_v60 = vpack.c.bf16 %v108_v41, %v107_v40  ;;  %60 = vst.msk [vmem:[#allocation4 + $0xb8] sm:$0xff] %vm52_vm1, %v8941_v1 }
  0x12   :  { %7785 = vmatprep.subr.bf16.mxu1 %v8514_v38  ;;  %v123_v49 = vld [vmem:[#allocation2 + $0x80] sm:$0xff]  ;;  %v8512_v55 = vld [vmem:[%s11179_s1 + $0x28] sm:$0xff]   ;;  %v118_v61 = vpack.c.bf16 %v110_v48, %v109_v43  ;;  %v8519_v0 = vld [vmem:[%s11181_s3 + $0x70] sm:$0xff]   ;;  %61 = vst.msk [vmem:[#allocation4 + $0xc0] sm:$0xff] %vm52_vm1, %v8941_v1 }
  0x13   :  { %7746 = vmatpush3.bf16.msra.mxu0 %v8510_v25  ;;  %v95_v50 = vld [vmem:[#allocation2] sm:$0xff]  ;;  %v131_v52 = vpack.c.bf16 %v123_v49, %v110_v48  ;;  %v418_v62 = vld [vmem:[#allocation2 + $0x88] sm:$0xff]  ;;  %v8520_v2 = vld [vmem:[%s11181_s3 + $0x78] sm:$0xff]   ;;  %62 = vst.msk [vmem:[#allocation4 + $0xc8] sm:$0xff] %vm52_vm1, %v8941_v1 }
  0x14   :  { %7763 = vmatprep.subr.bf16.mxu0 %v8511_v34  ;;  %v111_v53 = vpack.c.bf16 %v96_v20, %v95_v50  ;;  %v426_v63 = vpack.c.bf16 %v418_v62, %v123_v49  ;;  %v8521_v3 = vld [vmem:[%s11181_s3] sm:$0xff]   ;;  %v8522_v22 = vld [vmem:[%s11181_s3 + $0x8] sm:$0xff]   ;;  %v8523_v31 = vld [vmem:[%s11181_s3 + $0x10] sm:$0xff]  }
  0x15   :  { %7786 = vmatpush3.bf16.msra.mxu1 %v8514_v38  ;;  %v9155_v4 = vld [vmem:[%s11182_s2] ss:$0 sm:$0xff]  ;;  %v8524_v40 = vld [vmem:[%s11181_s3 + $0x18] sm:$0xff]  }
  0x16   :  { %7732 = vmatmul.mubr.msk.bf16.gmra.mrb[4].mxu0 %vm45_vm0, %v127_v35  ;;  %7787 = vmatprep.subr.bf16.mxu1 %v8515_v42  ;;  %v8525_v49 = vld [vmem:[%s11181_s3 + $0x20] sm:$0xff]  }
  0x17   :  { %7735 = vmatprep.mubr.msk.bf16.mxu0 %vm45_vm0, %v128_v37 }
  0x19   :  { %7788 = vmatpush3.bf16.msra.mxu1 %v8515_v42 }
  0x1a   :  { %7789 = vmatprep.subr.bf16.mxu1 %v8516_v44 }
  0x1d   :  { %7790 = vmatpush3.bf16.msra.mxu1 %v8516_v44 }
  0x1e   :  { %7736 = vmatmul.mubr.msk.bf16.gmra.mrb[8].mxu0 %vm45_vm0, %v129_v45  ;;  %7791 = vmatprep.subr.bf16.mxu1 %v8517_v47 }
  0x1f   :  { %7739 = vmatprep.mubr.msk.bf16.mxu0 %vm45_vm0, %v130_v46 }
  0x21   :  { %7792 = vmatpush3.bf16.msra.mxu1 %v8517_v47 }
  0x22   :  { %7793 = vmatprep.subr.bf16.mxu1 %v8518_v51 }
  0x25   :  { %7794 = vmatpush3.bf16.msra.mxu1 %v8518_v51 }
  0x26   :  { %7740 = vmatmul.mubr.msk.bf16.gmra.mrb[12].mxu0 %vm45_vm0, %v131_v52  ;;  %7795 = vmatprep.subr.bf16.mxu1 %v8519_v0 }
  0x27   :  { %7747 = vmatprep.mubr.msk.bf16.mxu0 %vm45_vm0, %v111_v53 }
  0x29   :  { %7796 = vmatpush3.bf16.msra.mxu1 %v8519_v0 }
  0x2a   :  { %7797 = vmatprep.subr.bf16.mxu1 %v8520_v2 }
  0x2d   :  { %7798 = vmatpush3.bf16.msra.mxu1 %v8520_v2 }
  0x2e   :  { %7748 = vmatmul.mubr.msk.bf16.vlgmr.msra.gmra.mrb[0].mxu0 %vm45_vm0, %v112_v54  ;;  %7815 = vmatprep.subr.bf16.mxu1 %v8521_v3 }
  0x2f   :  { %7764 = vmatpush3.bf16.msra.mxu0 %v8511_v34  ;;  %7751 = vmatprep.mubr.msk.bf16.mxu0 %vm45_vm0, %v113_v56 }
  0x30   :  { %7765 = vmatprep.subr.bf16.mxu0 %v8512_v55 }
  0x33   :  { %7766 = vmatpush3.bf16.msra.mxu0 %v8512_v55 }
  0x36   :  { %7752 = vmatmul.mubr.msk.bf16.gmra.mrb[4].mxu0 %vm45_vm0, %v114_v57 }
  0x37   :  { %7755 = vmatprep.mubr.msk.bf16.mxu0 %vm45_vm0, %v115_v58 }
  0x3e   :  { %7756 = vmatmul.mubr.msk.bf16.gmra.mrb[8].mxu0 %vm45_vm0, %v116_v59 }
  0x3f   :  { %7759 = vmatprep.mubr.msk.bf16.mxu0 %vm45_vm0, %v117_v60 }
  0x46   :  { %7760 = vmatmul.mubr.msk.bf16.gmra.mrb[12].mxu0 %vm45_vm0, %v118_v61 }
  0x47   :  { %7767 = vmatprep.mubr.msk.bf16.mxu0 %vm45_vm0, %v112_v54 }
  0x4e   :  { %7768 = vmatmul.mubr.msk.bf16.vlgmr.msra.gmra.mrb[0].mxu0 %vm45_vm0, %v113_v56 }
  0x4f   :  { %7771 = vmatprep.mubr.msk.bf16.mxu0 %vm45_vm0, %v114_v57 }
  0x56   :  { %7772 = vmatmul.mubr.msk.bf16.gmra.mrb[4].mxu0 %vm45_vm0, %v115_v58  ;;  %v8526_v58 = vld [vmem:[%s11181_s3 + $0x28] sm:$0xff]  }
  0x57   :  { %7775 = vmatprep.mubr.msk.bf16.mxu0 %vm45_vm0, %v116_v59 }
  0x5e   :  { %7776 = vmatmul.mubr.msk.bf16.gmra.mrb[8].mxu0 %vm45_vm0, %v117_v60 }
  0x5f   :  { %7779 = vmatprep.mubr.msk.bf16.mxu0 %vm45_vm0, %v118_v61 }
  0x66   :  { %7780 = vmatmul.mubr.msk.bf16.gmra.mrb[12].mxu0 %vm45_vm0, %v426_v63 }
 0x121   :  { %v7769_v5 = vpop.f32.mrb[0].mxu0 }
 0x122   :  { %v590_v6 = vadd.f32 %v7769_v5, %v9155_v4  ;;  %v502_v7 = vpop.f32.mrb[1].mxu0  ;;  %v8527_v5 = vld [vmem:[%s11181_s3 + $0x30] sm:$0xff]  }
 0x123   :  { %v588_v8 = vadd.f32 %v9155_v4, %v502_v7  ;;  %v7770_v9 = vpop.f32.mrb[2].mxu0 }
 0x124   :  { %v591_v10 = vadd.f32 %v7770_v9, %v9155_v4  ;;  %v505_v11 = vpop.f32.mrb[3].mxu0  ;;  %v606_v14 = vmax.f32 %v590_v6, 0.0 }
 0x125   :  { %v604_v12 = vmax.f32 %v588_v8, 0.0  ;;  %v589_v13 = vadd.f32 %v9155_v4, %v505_v11 }
 0x126   :  { %v607_v15 = vmax.f32 %v591_v10, 0.0 }
 0x127   :  { %v605_v16 = vmax.f32 %v589_v13, 0.0  ;;  %v677_v17 = vpack.c.bf16 %v604_v12, %v8941_v1  ;;  %v8529_v13 = vld [vmem:[%s11181_s3 + $0x80] sm:$0xff]  }
 0x128   :  { %v9162_v18 = vpack.c.bf16 %v607_v15, %v606_v14 }
 0x129   :  { %v9164_v19 = vpack.c.bf16 %v605_v16, %v604_v12  ;;  %v9166_v20 = vpack.c.bf16 %v606_v14, %v605_v16  ;;  %v7773_v21 = vpop.f32.mrb[4].mxu0  ;;  %7799 = vmatprep.mubr.bf16.mxu1 %v677_v17  ;;  %v8942_v14 = vmov 0.0|0.0   ;;  %v8554_v16 = vld [vmem:[%s11183_s5 + $0x28] sm:$0xff]  }
 0x12a   :  { %v594_v23 = vadd.f32 %v7773_v21, %v9155_v4  ;;  %v518_v24 = vpop.f32.mrb[5].mxu0  ;;  %v8530_v17 = vld [vmem:[%s11181_s3 + $0x88] sm:$0xff]   ;;  %v8555_v21 = vld [vmem:[%s11183_s5 + $0x30] sm:$0xff]  }
 0x12b   :  { %v592_v25 = vadd.f32 %v9155_v4, %v518_v24  ;;  %v7774_v26 = vpop.f32.mrb[6].mxu0  ;;  %7800 = vmatmul.mubr.bf16.vlgmr.msra.gmra.mrb[0].mxu1 %v9166_v20  ;;  %v8533_v24 = vld [vmem:[%s11181_s3 + $0xa0] sm:$0xff]  }
 0x12c   :  { %v595_v27 = vadd.f32 %v7774_v26, %v9155_v4  ;;  %7816 = vmatpush3.bf16.msra.mxu1 %v8521_v3  ;;  %v521_v28 = vpop.f32.mrb[7].mxu0  ;;  %v610_v32 = vmax.f32 %v594_v23, 0.0  ;;  %v8532_v23 = vld [vmem:[%s11181_s3 + $0x98] sm:$0xff]   ;;  %v8535_v26 = vld [vmem:[%s11181_s3 + $0xb0] sm:$0xff]  }
 0x12d   :  { %v608_v29 = vmax.f32 %v592_v25, 0.0  ;;  %v593_v30 = vadd.f32 %v9155_v4, %v521_v28  ;;  %7817 = vmatprep.subr.bf16.mxu1 %v8522_v22  ;;  %v8534_v25 = vld [vmem:[%s11181_s3 + $0xa8] sm:$0xff]   ;;  %v8537_v28 = vld [vmem:[%s11181_s3 + $0xc0] sm:$0xff]  }
 0x12e   :  { %v611_v33 = vmax.f32 %v595_v27, 0.0  ;;  %v8536_v27 = vld [vmem:[%s11181_s3 + $0xb8] sm:$0xff]  }
 0x12f   :  { %v9179_v34 = vpack.c.bf16 %v608_v29, %v607_v15  ;;  %v609_v35 = vmax.f32 %v593_v30, 0.0  ;;  %v8553_v15 = vld [vmem:[%s11183_s5 + $0x20] sm:$0xff]   ;;  %v8540_v30 = vld [vmem:[%s11181_s3 + $0xd8] sm:$0xff]  }
 0x130   :  { %v9181_v36 = vpack.c.bf16 %v611_v33, %v610_v32  ;;  %7818 = vmatpush3.bf16.msra.mxu1 %v8522_v22  ;;  %7943 = vmatprep.subr.bf16.mxu0 %v8553_v15  ;;  %v8531_v22 = vld [vmem:[%s11181_s3 + $0x90] sm:$0xff]  }
 0x131   :  { %v9183_v37 = vpack.c.bf16 %v609_v35, %v608_v29  ;;  %v9185_v38 = vpack.c.bf16 %v610_v32, %v609_v35  ;;  %v7777_v39 = vpop.f32.mrb[8].mxu0  ;;  %7803 = vmatprep.mubr.bf16.mxu1 %v9179_v34  ;;  %7819 = vmatprep.subr.bf16.mxu1 %v8523_v31  ;;  %v8538_v29 = vld [vmem:[%s11181_s3 + $0xc8] sm:$0xff]   ;;  %v8544_v35 = vld [vmem:[%s11181_s3 + $0xf8] sm:$0xff]  }
 0x132   :  { %v598_v41 = vadd.f32 %v7777_v39, %v9155_v4  ;;  %v534_v42 = vpop.f32.mrb[9].mxu0  ;;  %7944 = vmatpush3.bf16.msra.mxu0 %v8553_v15  ;;  %v8542_v32 = vld [vmem:[%s11181_s3 + $0xe8] sm:$0xff]   ;;  %v8545_v39 = vld [vmem:[%s11181_s3 + $0x100] sm:$0xff]  }
 0x133   :  { %v596_v43 = vadd.f32 %v9155_v4, %v534_v42  ;;  %v7778_v44 = vpop.f32.mrb[10].mxu0  ;;  %7804 = vmatmul.mubr.bf16.gmra.mrb[4].mxu1 %v9185_v38  ;;  %7945 = vmatprep.subr.bf16.mxu0 %v8554_v16  ;;  %v8551_v42 = vld [vmem:[%s11181_s3 + $0x130] sm:$0xff]  }
 0x134   :  { %v599_v45 = vadd.f32 %v7778_v44, %v9155_v4  ;;  %7820 = vmatpush3.bf16.msra.mxu1 %v8523_v31  ;;  %v537_v46 = vpop.f32.mrb[11].mxu0  ;;  %v614_v50 = vmax.f32 %v598_v41, 0.0  ;;  %v8541_v31 = vld [vmem:[%s11181_s3 + $0xe0] sm:$0xff]   ;;  %v8548_v41 = vld [vmem:[%s11181_s3 + $0x118] sm:$0xff]  }
 0x135   :  { %v612_v47 = vmax.f32 %v596_v43, 0.0  ;;  %v597_v48 = vadd.f32 %v9155_v4, %v537_v46  ;;  %7821 = vmatprep.subr.bf16.mxu1 %v8524_v40  ;;  %v8552_v44 = vld [vmem:[%s11181_s3 + $0x138] sm:$0xff]  }
 0x136   :  { %v615_v51 = vmax.f32 %v599_v45, 0.0  ;;  %7946 = vmatpush3.bf16.msra.mxu0 %v8554_v16  ;;  %v9377_v45 = vld [vmem:[#allocation4 + $0x20] sm:$0xff] }
 0x137   :  { %v9199_v52 = vpack.c.bf16 %v612_v47, %v611_v33  ;;  %v613_v53 = vmax.f32 %v597_v48, 0.0  ;;  %7947 = vmatprep.subr.bf16.mxu0 %v8555_v21  ;;  %v8543_v33 = vld [vmem:[%s11181_s3 + $0xf0] sm:$0xff]  }
 0x138   :  { %v9201_v54 = vpack.c.bf16 %v615_v51, %v614_v50  ;;  %7822 = vmatpush3.bf16.msra.mxu1 %v8524_v40  ;;  %v8546_v40 = vld [vmem:[%s11181_s3 + $0x108] sm:$0xff]  }
 0x139   :  { %v9203_v55 = vpack.c.bf16 %v613_v53, %v612_v47  ;;  %v9205_v56 = vpack.c.bf16 %v614_v50, %v613_v53  ;;  %v7781_v57 = vpop.f32.mrb[12].mxu0  ;;  %7807 = vmatprep.mubr.bf16.mxu1 %v9199_v52  ;;  %7823 = vmatprep.subr.bf16.mxu1 %v8525_v49  ;;  %v8558_v50 = vld [vmem:[%s11183_s5 + $0x8] sm:$0xff]   ;;  %v9403_v53 = vld [vmem:[%s11183_s5 + $0x40] sm:$0xff]  }
 0x13a   :  { %v602_v59 = vadd.f32 %v7781_v57, %v9155_v4  ;;  %v550_v60 = vpop.f32.mrb[13].mxu0  ;;  %7948 = vmatpush3.bf16.msra.mxu0 %v8555_v21 }
 0x13b   :  { %v600_v61 = vadd.f32 %v9155_v4, %v550_v60  ;;  %v7782_v62 = vpop.f32.mrb[14].mxu0  ;;  %7808 = vmatmul.mubr.bf16.gmra.mrb[8].mxu1 %v9205_v56 }
 0x13c   :  { %v9215_v63 = vadd.f32 %v7782_v62, %v9155_v4  ;;  %7824 = vmatpush3.bf16.msra.mxu1 %v8525_v49  ;;  %v553_v0 = vpop.f32.mrb[15].mxu0  ;;  %v618_v6 = vmax.f32 %v602_v59, 0.0  ;;  %v8557_v49 = vld [vmem:[%s11183_s5] sm:$0xff]  }
 0x13d   :  { %v616_v2 = vmax.f32 %v600_v61, 0.0  ;;  %v601_v3 = vadd.f32 %v9155_v4, %v553_v0  ;;  %7825 = vmatprep.subr.bf16.mxu1 %v8526_v58  ;;  %v8528_v4 = vld [vmem:[%s11181_s3 + $0x38] sm:$0xff]  }
 0x13e   :  { %v619_v7 = vmax.f32 %v9215_v63, 0.0 }
 0x13f   :  { %v9222_v8 = vpack.c.bf16 %v616_v2, %v615_v51  ;;  %v617_v9 = vmax.f32 %v601_v3, 0.0  ;;  %v8559_v51 = vld [vmem:[%s11183_s5 + $0x10] sm:$0xff]  }
 0x140   :  { %v9226_v10 = vpack.c.bf16 %v619_v7, %v618_v6  ;;  %7826 = vmatpush3.bf16.msra.mxu1 %v8526_v58  ;;  %v1217_v43 = vpack.c.bf16 %v8941_v1, %v619_v7  ;;  %v8556_v1 = vld [vmem:[%s11183_s5 + $0x38] sm:$0xff]  }
 0x141   :  { %v9228_v11 = vpack.c.bf16 %v617_v9, %v616_v2  ;;  %v9230_v12 = vpack.c.bf16 %v618_v6, %v617_v9  ;;  %7811 = vmatprep.mubr.bf16.mxu1 %v9222_v8  ;;  %7827 = vmatprep.subr.bf16.mxu1 %v8527_v5 }
 0x142   :  { %7949 = vmatprep.subr.bf16.mxu0 %v8556_v1 }
 0x143   :  { %7812 = vmatmul.mubr.bf16.gmra.mrb[12].mxu1 %v9230_v12  ;;  %7950 = vmatpush3.bf16.msra.mxu0 %v8556_v1 }
 0x144   :  { %7828 = vmatpush3.bf16.msra.mxu1 %v8527_v5  ;;  %7831 = vmatprep.mubr.bf16.mxu1 %v8942_v14 }
 0x145   :  { %7829 = vmatprep.subr.bf16.mxu1 %v8528_v4  ;;  %7967 = vmatprep.subr.bf16.mxu0 %v8557_v49 }
 0x148   :  { %7830 = vmatpush3.bf16.msra.mxu1 %v8528_v4 }
 0x149   :  { %7847 = vmatprep.subr.bf16.mxu1 %v8529_v13 }
 0x14b   :  { %7832 = vmatmul.mubr.bf16.vlgmr.msra.gmra.mrb[0].mxu1 %v9164_v19 }
 0x14c   :  { %7848 = vmatpush3.bf16.msra.mxu1 %v8529_v13  ;;  %7835 = vmatprep.mubr.bf16.mxu1 %v9162_v18 }
 0x14d   :  { %7849 = vmatprep.subr.bf16.mxu1 %v8530_v17 }
 0x150   :  { %7850 = vmatpush3.bf16.msra.mxu1 %v8530_v17 }
 0x151   :  { %7851 = vmatprep.subr.bf16.mxu1 %v8531_v22 }
 0x153   :  { %7836 = vmatmul.mubr.bf16.gmra.mrb[4].mxu1 %v9183_v37 }
 0x154   :  { %7852 = vmatpush3.bf16.msra.mxu1 %v8531_v22  ;;  %7839 = vmatprep.mubr.bf16.mxu1 %v9181_v36 }
 0x155   :  { %7853 = vmatprep.subr.bf16.mxu1 %v8532_v23 }
 0x158   :  { %7854 = vmatpush3.bf16.msra.mxu1 %v8532_v23 }
 0x159   :  { %7855 = vmatprep.subr.bf16.mxu1 %v8533_v24 }
 0x15b   :  { %7840 = vmatmul.mubr.bf16.gmra.mrb[8].mxu1 %v9203_v55 }
 0x15c   :  { %7856 = vmatpush3.bf16.msra.mxu1 %v8533_v24  ;;  %7843 = vmatprep.mubr.bf16.mxu1 %v9201_v54 }
 0x15d   :  { %7857 = vmatprep.subr.bf16.mxu1 %v8534_v25 }
 0x160   :  { %7858 = vmatpush3.bf16.msra.mxu1 %v8534_v25 }
 0x161   :  { %7859 = vmatprep.subr.bf16.mxu1 %v8535_v26 }
 0x163   :  { %7844 = vmatmul.mubr.bf16.gmra.mrb[12].mxu1 %v9228_v11 }
 0x164   :  { %7860 = vmatpush3.bf16.msra.mxu1 %v8535_v26  ;;  %7863 = vmatprep.mubr.bf16.mxu1 %v9164_v19  ;;  %v8539_v19 = vld [vmem:[%s11181_s3 + $0xd0] sm:$0xff]  }
 0x165   :  { %7861 = vmatprep.subr.bf16.mxu1 %v8536_v27 }
 0x168   :  { %7862 = vmatpush3.bf16.msra.mxu1 %v8536_v27 }
 0x169   :  { %7879 = vmatprep.subr.bf16.mxu1 %v8537_v28 }
 0x16b   :  { %7864 = vmatmul.mubr.bf16.vlgmr.msra.gmra.mrb[0].mxu1 %v9162_v18 }
 0x16c   :  { %7880 = vmatpush3.bf16.msra.mxu1 %v8537_v28  ;;  %7867 = vmatprep.mubr.bf16.mxu1 %v9183_v37 }
 0x16d   :  { %7881 = vmatprep.subr.bf16.mxu1 %v8538_v29 }
 0x170   :  { %7882 = vmatpush3.bf16.msra.mxu1 %v8538_v29 }
 0x171   :  { %7883 = vmatprep.subr.bf16.mxu1 %v8539_v19 }
 0x173   :  { %7868 = vmatmul.mubr.bf16.gmra.mrb[4].mxu1 %v9181_v36 }
 0x174   :  { %7884 = vmatpush3.bf16.msra.mxu1 %v8539_v19  ;;  %7871 = vmatprep.mubr.bf16.mxu1 %v9203_v55 }
 0x175   :  { %7885 = vmatprep.subr.bf16.mxu1 %v8540_v30 }
 0x178   :  { %7886 = vmatpush3.bf16.msra.mxu1 %v8540_v30 }
 0x179   :  { %7887 = vmatprep.subr.bf16.mxu1 %v8541_v31 }
 0x17b   :  { %7872 = vmatmul.mubr.bf16.gmra.mrb[8].mxu1 %v9201_v54 }
 0x17c   :  { %7888 = vmatpush3.bf16.msra.mxu1 %v8541_v31  ;;  %7875 = vmatprep.mubr.bf16.mxu1 %v9228_v11 }
 0x17d   :  { %7889 = vmatprep.subr.bf16.mxu1 %v8542_v32 }
 0x180   :  { %7890 = vmatpush3.bf16.msra.mxu1 %v8542_v32 }
 0x181   :  { %7891 = vmatprep.subr.bf16.mxu1 %v8543_v33 }
 0x183   :  { %7876 = vmatmul.mubr.bf16.gmra.mrb[12].mxu1 %v9226_v10 }
 0x184   :  { %7892 = vmatpush3.bf16.msra.mxu1 %v8543_v33  ;;  %7895 = vmatprep.mubr.bf16.mxu1 %v9166_v20  ;;  %v8547_v20 = vld [vmem:[%s11181_s3 + $0x110] sm:$0xff]  }
 0x185   :  { %7893 = vmatprep.subr.bf16.mxu1 %v8544_v35 }
 0x188   :  { %7894 = vmatpush3.bf16.msra.mxu1 %v8544_v35 }
 0x189   :  { %7911 = vmatprep.subr.bf16.mxu1 %v8545_v39 }
 0x18b   :  { %7896 = vmatmul.mubr.bf16.vlgmr.msra.gmra.mrb[0].mxu1 %v9179_v34  ;;  %v8549_v34 = vld [vmem:[%s11181_s3 + $0x120] sm:$0xff]  }
 0x18c   :  { %7912 = vmatpush3.bf16.msra.mxu1 %v8545_v39  ;;  %7899 = vmatprep.mubr.bf16.mxu1 %v9185_v38  ;;  %v8550_v38 = vld [vmem:[%s11181_s3 + $0x128] sm:$0xff]  }
 0x18d   :  { %7913 = vmatprep.subr.bf16.mxu1 %v8546_v40 }
 0x190   :  { %7914 = vmatpush3.bf16.msra.mxu1 %v8546_v40 }
 0x191   :  { %7915 = vmatprep.subr.bf16.mxu1 %v8547_v20 }
 0x193   :  { %7900 = vmatmul.mubr.bf16.gmra.mrb[4].mxu1 %v9199_v52  ;;  %v8560_v52 = vld [vmem:[%s11183_s5 + $0x18] sm:$0xff]  }
 0x194   :  { %7916 = vmatpush3.bf16.msra.mxu1 %v8547_v20  ;;  %7903 = vmatprep.mubr.bf16.mxu1 %v9205_v56 }
 0x195   :  { %7917 = vmatprep.subr.bf16.mxu1 %v8548_v41 }
 0x198   :  { %7918 = vmatpush3.bf16.msra.mxu1 %v8548_v41 }
 0x199   :  { %7919 = vmatprep.subr.bf16.mxu1 %v8549_v34 }
 0x19b   :  { %7904 = vmatmul.mubr.bf16.gmra.mrb[8].mxu1 %v9222_v8 }
 0x19c   :  { %7920 = vmatpush3.bf16.msra.mxu1 %v8549_v34  ;;  %7907 = vmatprep.mubr.bf16.mxu1 %v9230_v12 }
 0x19d   :  { %7921 = vmatprep.subr.bf16.mxu1 %v8550_v38 }
 0x1a0   :  { %7922 = vmatpush3.bf16.msra.mxu1 %v8550_v38 }
 0x1a1   :  { %7923 = vmatprep.subr.bf16.mxu1 %v8551_v42 }
 0x1a3   :  { %7908 = vmatmul.mubr.bf16.gmra.mrb[12].mxu1 %v1217_v43 }
 0x1a4   :  { %7924 = vmatpush3.bf16.msra.mxu1 %v8551_v42  ;;  %7927 = vmatprep.mubr.bf16.mxu1 %v9162_v18  ;;  %v9375_v18 = vld [vmem:[#allocation4 + $0x8] sm:$0xff] }
 0x1a5   :  { %7925 = vmatprep.subr.bf16.mxu1 %v8552_v44 }
 0x1a8   :  { %7926 = vmatpush3.bf16.msra.mxu1 %v8552_v44 }
 0x1ab   :  { %7928 = vmatmul.mubr.bf16.vlgmr.msra.gmra.mrb[0].mxu1 %v9183_v37  ;;  %v1655_v37 = vld [vmem:[#allocation4 + $0x10] sm:$0xff] }
 0x1ac   :  { %7931 = vmatprep.mubr.bf16.mxu1 %v9181_v36  ;;  %v1656_v36 = vld [vmem:[#allocation4 + $0x18] sm:$0xff]  ;;  %v1686_v46 = vpack.c.bf16 %v1655_v37, %v9375_v18 }
 0x1ad   :  { %v9381_v47 = vpack.c.bf16 %v9377_v45, %v1656_v36  ;;  %v9386_v48 = vpack.c.bf16 %v1656_v36, %v1655_v37 }
 0x1ae   :  { %7951 = vmatprep.mubr.msk.bf16.mxu0 %vm52_vm1, %v1686_v46 }
 0x1af   :  { %7952 = vmatmul.mubr.msk.bf16.vlgmr.msra.gmra.mrb[16].mxu0 %vm52_vm1, %v9381_v47 }
 0x1b0   :  { %7968 = vmatpush3.bf16.msra.mxu0 %v8557_v49 }
 0x1b1   :  { %7969 = vmatprep.subr.bf16.mxu0 %v8558_v50 }
 0x1b3   :  { %7932 = vmatmul.mubr.bf16.gmra.mrb[4].mxu1 %v9203_v55 }
 0x1b4   :  { %7935 = vmatprep.mubr.bf16.mxu1 %v9201_v54  ;;  %7970 = vmatpush3.bf16.msra.mxu0 %v8558_v50  ;;  %v9409_v54 = vld [vmem:[%s11184_s4] ss:$0 sm:$0xff] }
 0x1b5   :  { %7971 = vmatprep.subr.bf16.mxu0 %v8559_v51 }
 0x1b8   :  { %7972 = vmatpush3.bf16.msra.mxu0 %v8559_v51 }
 0x1b9   :  { %7973 = vmatprep.subr.bf16.mxu0 %v8560_v52 }
 0x1bb   :  { %7936 = vmatmul.mubr.bf16.gmra.mrb[8].mxu1 %v9228_v11 }
 0x1bc   :  { %7939 = vmatprep.mubr.bf16.mxu1 %v9226_v10  ;;  %7974 = vmatpush3.bf16.msra.mxu0 %v8560_v52 }
 0x1bd   :  { %7991 = vmatprep.subr.bf16.mxu0 %v9403_v53 }
 0x1c3   :  { %7940 = vmatmul.mubr.bf16.gmra.mrb[12].mxu1 %v8942_v14 }
 0x27e   :  { %v7929_v55 = vpop.f32.mrb[0].mxu1 }
 0x27f   :  { %v1607_v56 = vadd.f32 %v7929_v55, %v9409_v54  ;;  %v1519_v57 = vpop.f32.mrb[1].mxu1 }
 0x280   :  { %v1605_v58 = vadd.f32 %v9409_v54, %v1519_v57  ;;  %v7930_v59 = vpop.f32.mrb[2].mxu1 }
 0x281   :  { %v1623_v60 = vmax.f32 %v1607_v56, 0.0  ;;  %v1608_v61 = vadd.f32 %v7930_v59, %v9409_v54  ;;  %v1522_v62 = vpop.f32.mrb[3].mxu1  ;;  %v1653_v56 = vld [vmem:[#allocation4] sm:$0xff] }
 0x282   :  { %v1621_v63 = vmax.f32 %v1605_v58, 0.0  ;;  %v1606_v0 = vadd.f32 %v9409_v54, %v1522_v62 }
 0x283   :  { %1639 = vst.msk [vmem:[#allocation4 + $0x38] sm:$0xff] %vm52_vm1, %v1623_v60  ;;  %v1624_v2 = vmax.f32 %v1608_v61, 0.0 }
 0x284   :  { %1637 = vst.msk [vmem:[#allocation4 + $0x28] sm:$0xff] %vm52_vm1, %v1621_v63  ;;  %v1622_v3 = vmax.f32 %v1606_v0, 0.0  ;;  %v1669_v63 = vpack.c.bf16 %v9375_v18, %v1653_v56  ;;  %v8562_v0 = vld [vmem:[%s11183_s5 + $0x48] sm:$0xff]   ;;  %v8563_v18 = vld [vmem:[%s11183_s5 + $0x50] sm:$0xff]   ;;  %v8593_v56 = vld [vmem:[%s11183_s5 + $0x140] sm:$0xff]  }
 0x285   :  { %1640 = vst.msk [vmem:[#allocation4 + $0x40] sm:$0xff] %vm52_vm1, %v1624_v2 }
 0x286   :  { %1638 = vst.msk [vmem:[#allocation4 + $0x30] sm:$0xff] %vm52_vm1, %v1622_v3  ;;  %v7933_v5 = vpop.f32.mrb[4].mxu1 }
 0x287   :  { %v1611_v6 = vadd.f32 %v7933_v5, %v9409_v54  ;;  %v1535_v7 = vpop.f32.mrb[5].mxu1 }
 0x288   :  { %v1609_v8 = vadd.f32 %v9409_v54, %v1535_v7  ;;  %v7934_v9 = vpop.f32.mrb[6].mxu1 }
 0x289   :  { %v1627_v10 = vmax.f32 %v1611_v6, 0.0  ;;  %v1612_v11 = vadd.f32 %v7934_v9, %v9409_v54  ;;  %v1538_v12 = vpop.f32.mrb[7].mxu1  ;;  %v8566_v9 = vld [vmem:[%s11183_s5 + $0x68] sm:$0xff]  }
 0x28a   :  { %v1625_v4 = vmax.f32 %v1609_v8, 0.0  ;;  %v1610_v13 = vadd.f32 %v9409_v54, %v1538_v12  ;;  %v1660_v24 = vld [vmem:[#allocation4 + $0x38] sm:$0xff] }
 0x28b   :  { %1643 = vst.msk [vmem:[#allocation4 + $0x58] sm:$0xff] %vm52_vm1, %v1627_v10  ;;  %v1628_v14 = vmax.f32 %v1612_v11, 0.0  ;;  %v1658_v17 = vld [vmem:[#allocation4 + $0x28] sm:$0xff]  ;;  %v8567_v10 = vld [vmem:[%s11183_s5 + $0x70] sm:$0xff]   ;;  %v8569_v11 = vld [vmem:[%s11183_s5 + $0x80] sm:$0xff]  }
 0x28c   :  { %1641 = vst.msk [vmem:[#allocation4 + $0x48] sm:$0xff] %vm52_vm1, %v1625_v4  ;;  %v1626_v15 = vmax.f32 %v1610_v13, 0.0  ;;  %v9425_v16 = vld [vmem:[#allocation4 + $0x40] sm:$0xff]  ;;  %v9479_v2 = vpack.c.bf16 %v1658_v17, %v9377_v45  ;;  %v8564_v45 = vld [vmem:[%s11183_s5 + $0x58] sm:$0xff]   ;;  %v8570_v13 = vld [vmem:[%s11183_s5 + $0x88] sm:$0xff]  }
 0x28d   :  { %1644 = vst.msk [vmem:[#allocation4 + $0x60] sm:$0xff] %vm52_vm1, %v1628_v14  ;;  %v9428_v21 = vld [vmem:[#allocation4 + $0x30] sm:$0xff]  ;;  %v9436_v27 = vpack.c.bf16 %v9425_v16, %v1660_v24  ;;  %v8571_v14 = vld [vmem:[%s11183_s5 + $0x90] sm:$0xff]  }
 0x28e   :  { %1642 = vst.msk [vmem:[#allocation4 + $0x50] sm:$0xff] %vm52_vm1, %v1626_v15  ;;  %v7937_v22 = vpop.f32.mrb[8].mxu1  ;;  %v9432_v23 = vpack.c.bf16 %v9428_v21, %v1658_v17  ;;  %v9490_v3 = vpack.c.bf16 %v1660_v24, %v9428_v21  ;;  %v8573_v15 = vld [vmem:[%s11183_s5 + $0xa0] sm:$0xff]   ;;  %v8574_v21 = vld [vmem:[%s11183_s5 + $0xa8] sm:$0xff]   ;;  %v8576_v24 = vld [vmem:[%s11183_s5 + $0xb8] sm:$0xff]  }
 0x28f   :  { %v1615_v25 = vadd.f32 %v7937_v22, %v9409_v54  ;;  %v1551_v26 = vpop.f32.mrb[9].mxu1  ;;  %v8575_v22 = vld [vmem:[%s11183_s5 + $0xb0] sm:$0xff]  }
 0x290   :  { %v1613_v28 = vadd.f32 %v9409_v54, %v1551_v26  ;;  %v7938_v29 = vpop.f32.mrb[10].mxu1  ;;  %7955 = vmatprep.mubr.msk.bf16.mxu0 %vm52_vm1, %v9432_v23 }
 0x291   :  { %v1631_v19 = vmax.f32 %v1615_v25, 0.0  ;;  %v1616_v30 = vadd.f32 %v7938_v29, %v9409_v54  ;;  %v1554_v31 = vpop.f32.mrb[11].mxu1  ;;  %7956 = vmatmul.mubr.msk.bf16.gmra.mrb[20].mxu0 %vm52_vm1, %v9436_v27  ;;  %v8577_v25 = vld [vmem:[%s11183_s5 + $0xc0] sm:$0xff]   ;;  %v8578_v29 = vld [vmem:[%s11183_s5 + $0xc8] sm:$0xff]  }
 0x292   :  { %v1629_v32 = vmax.f32 %v1613_v28, 0.0  ;;  %v1614_v33 = vadd.f32 %v9409_v54, %v1554_v31  ;;  %v1664_v42 = vld [vmem:[#allocation4 + $0x58] sm:$0xff] }
 0x293   :  { %1647 = vst.msk [vmem:[#allocation4 + $0x78] sm:$0xff] %vm52_vm1, %v1631_v19  ;;  %v1632_v35 = vmax.f32 %v1616_v30, 0.0  ;;  %v1662_v20 = vld [vmem:[#allocation4 + $0x48] sm:$0xff]  ;;  %v8579_v19 = vld [vmem:[%s11183_s5 + $0xd0] sm:$0xff]   ;;  %v8581_v30 = vld [vmem:[%s11183_s5 + $0xe0] sm:$0xff]  }
 0x294   :  { %1645 = vst.msk [vmem:[#allocation4 + $0x68] sm:$0xff] %vm52_vm1, %v1629_v32  ;;  %v1630_v39 = vmax.f32 %v1614_v33, 0.0  ;;  %v1665_v40 = vld [vmem:[#allocation4 + $0x60] sm:$0xff]  ;;  %v9496_v5 = vpack.c.bf16 %v1662_v20, %v9425_v16  ;;  %v8582_v33 = vld [vmem:[%s11183_s5 + $0xe8] sm:$0xff]  }
 0x295   :  { %1648 = vst.msk [vmem:[#allocation4 + $0x80] sm:$0xff] %vm52_vm1, %v1632_v35  ;;  %v1663_v41 = vld [vmem:[#allocation4 + $0x50] sm:$0xff]  ;;  %v9452_v1 = vpack.c.bf16 %v1665_v40, %v1664_v42  ;;  %v8583_v35 = vld [vmem:[%s11183_s5 + $0xf0] sm:$0xff]  }
 0x296   :  { %1646 = vst.msk [vmem:[#allocation4 + $0x70] sm:$0xff] %vm52_vm1, %v1630_v39  ;;  %v7941_v34 = vpop.f32.mrb[12].mxu1  ;;  %v9449_v38 = vpack.c.bf16 %v1663_v41, %v1662_v20  ;;  %v9505_v6 = vpack.c.bf16 %v1664_v42, %v1663_v41  ;;  %v8584_v39 = vld [vmem:[%s11183_s5 + $0xf8] sm:$0xff]   ;;  %v9677_v42 = vld [vmem:[%s11185_s7] ss:$16 sps:$4 sm:$0xff]  }
 0x297   :  { %v1619_v43 = vadd.f32 %v7941_v34, %v9409_v54  ;;  %v1567_v44 = vpop.f32.mrb[13].mxu1  ;;  %v2784_v20 = vld [vmem:[#allocation4 + $0xa8] sm:$0xff]  ;;  %v9672_v34 = vld [vmem:[%s11185_s7 + $0x4] ss:$16 sps:$4 sm:$0xff]  }
 0x298   :  { %v1617_v37 = vadd.f32 %v9409_v54, %v1567_v44  ;;  %v7942_v36 = vpop.f32.mrb[14].mxu1  ;;  %7959 = vmatprep.mubr.msk.bf16.mxu0 %vm52_vm1, %v9449_v38  ;;  %v8586_v44 = vld [vmem:[%s11183_s5 + $0x108] sm:$0xff]   ;;  %8239 = vmatprep.subr.bf16.mxu1 %v9672_v34 }
 0x299   :  { %v1635_v46 = vmax.f32 %v1619_v43, 0.0  ;;  %v1620_v49 = vadd.f32 %v7942_v36, %v9409_v54  ;;  %v1570_v50 = vpop.f32.mrb[15].mxu1  ;;  %7960 = vmatmul.mubr.msk.bf16.gmra.mrb[24].mxu0 %vm52_vm1, %v9452_v1  ;;  %v9682_v43 = vld [vmem:[%s11185_s7 + $0x24] ss:$16 sps:$4 sm:$0xff]   ;;  %8243 = vmatpush1.bf16.msra.mxu1 %v9677_v42  ;;  %v8588_v36 = vld [vmem:[%s11183_s5 + $0x118] sm:$0xff]  }
 0x29a   :  { %v1633_v51 = vmax.f32 %v1617_v37, 0.0  ;;  %v1618_v52 = vadd.f32 %v9409_v54, %v1570_v50  ;;  %v1668_v62 = vld [vmem:[#allocation4 + $0x78] sm:$0xff]  ;;  %8240 = vmatprep.subr.bf16.mxu1 %v9682_v43  ;;  %v8587_v37 = vld [vmem:[%s11183_s5 + $0x110] sm:$0xff]  }
 0x29b   :  { %1651 = vst.msk [vmem:[#allocation4 + $0x98] sm:$0xff] %vm52_vm1, %v1635_v46  ;;  %v1636_v55 = vmax.f32 %v1620_v49, 0.0  ;;  %v1666_v59 = vld [vmem:[#allocation4 + $0x68] sm:$0xff]  ;;  %v8589_v46 = vld [vmem:[%s11183_s5 + $0x120] sm:$0xff]  }
 0x29c   :  { %1649 = vst.msk [vmem:[#allocation4 + $0x88] sm:$0xff] %vm52_vm1, %v1633_v51  ;;  %v1634_v57 = vmax.f32 %v1618_v52, 0.0  ;;  %v1685_v58 = vld [vmem:[#allocation4 + $0x80] sm:$0xff]  ;;  %v9507_v7 = vpack.c.bf16 %v1666_v59, %v1665_v40  ;;  %v8585_v40 = vld [vmem:[%s11183_s5 + $0x100] sm:$0xff]   ;;  %v8590_v51 = vld [vmem:[%s11183_s5 + $0x128] sm:$0xff]  }
 0x29d   :  { %1652 = vst.msk [vmem:[#allocation4 + $0xa0] sm:$0xff] %vm52_vm1, %v1636_v55  ;;  %v1667_v60 = vld [vmem:[#allocation4 + $0x70] sm:$0xff]  ;;  %v9468_v54 = vpack.c.bf16 %v1685_v58, %v1668_v62  ;;  %v8591_v52 = vld [vmem:[%s11183_s5 + $0x130] sm:$0xff]   ;;  %v8592_v55 = vld [vmem:[%s11183_s5 + $0x138] sm:$0xff]  }
 0x29e   :  { %1650 = vst.msk [vmem:[#allocation4 + $0x90] sm:$0xff] %vm52_vm1, %v1634_v57  ;;  %v9465_v61 = vpack.c.bf16 %v1667_v60, %v1666_v59  ;;  %v9513_v8 = vpack.c.bf16 %v1668_v62, %v1667_v60  ;;  %v2978_v49 = vld [vmem:[#allocation4 + $0xb0] sm:$0xff]  ;;  %v3172_v57 = vld [vmem:[#allocation4 + $0xb8] sm:$0xff]  ;;  %v8595_v60 = vld [vmem:[%s11183_s5 + $0x150] sm:$0xff]  }
 0x29f   :  { %v2986_v50 = vpack.c.bf16 %v2978_v49, %v2784_v20  ;;  %v8594_v59 = vld [vmem:[%s11183_s5 + $0x148] sm:$0xff]   ;;  %v3560_v62 = vld [vmem:[#allocation4 + $0xc8] sm:$0xff] }
 0x2a0   :  { %7963 = vmatprep.mubr.msk.bf16.mxu0 %vm52_vm1, %v9465_v61 }
 0x2a1   :  { %7964 = vmatmul.mubr.msk.bf16.gmra.mrb[28].mxu0 %vm52_vm1, %v9468_v54 }
 0x2a2   :  { %7975 = vmatprep.mubr.msk.bf16.mxu0 %vm52_vm1, %v1669_v63  ;;  %v2396_v26 = vld [vmem:[#allocation4 + $0x98] sm:$0xff] }
 0x2a3   :  { %v2008_v12 = vld [vmem:[#allocation4 + $0x88] sm:$0xff] }
 0x2a4   :  { %v9543_v4 = vpack.c.bf16 %v2008_v12, %v1685_v58  ;;  %v2590_v31 = vld [vmem:[#allocation4 + $0xa0] sm:$0xff]  ;;  %v3180_v58 = vpack.c.bf16 %v3172_v57, %v2978_v49 }
 0x2a5   :  { %v2202_v16 = vld [vmem:[#allocation4 + $0x90] sm:$0xff]  ;;  %v9633_v32 = vpack.c.bf16 %v2590_v31, %v2396_v26  ;;  %v9663_v41 = vpack.c.bf16 %v2784_v20, %v2590_v31 }
 0x2a6   :  { %v9573_v17 = vpack.c.bf16 %v2202_v16, %v2008_v12  ;;  %v9603_v28 = vpack.c.bf16 %v2396_v26, %v2202_v16 }
 0x2a9   :  { %7976 = vmatmul.mubr.msk.bf16.vlgmr.msra.gmra.mrb[16].mxu0 %vm52_vm1, %v9386_v48 }
 0x2aa   :  { %7992 = vmatpush3.bf16.msra.mxu0 %v9403_v53  ;;  %7979 = vmatprep.mubr.msk.bf16.mxu0 %vm52_vm1, %v9479_v2  ;;  %v8565_v53 = vld [vmem:[%s11183_s5 + $0x60] sm:$0xff]  }
 0x2ab   :  { %7993 = vmatprep.subr.bf16.mxu0 %v8562_v0 }
 0x2ae   :  { %7994 = vmatpush3.bf16.msra.mxu0 %v8562_v0  ;;  %v8603_v0 = vld [vmem:[%s11185_s7 + $0x40] ss:$16 sps:$4 sm:$0xff]  }
 0x2af   :  { %7995 = vmatprep.subr.bf16.mxu0 %v8563_v18 }
 0x2b1   :  { %7980 = vmatmul.mubr.msk.bf16.gmra.mrb[20].mxu0 %vm52_vm1, %v9490_v3 }
 0x2b2   :  { %7983 = vmatprep.mubr.msk.bf16.mxu0 %vm52_vm1, %v9496_v5  ;;  %7996 = vmatpush3.bf16.msra.mxu0 %v8563_v18  ;;  %v8606_v18 = vld [vmem:[%s11185_s7 + $0x60] ss:$16 sps:$4 sm:$0xff]  }
 0x2b3   :  { %7997 = vmatprep.subr.bf16.mxu0 %v8564_v45 }
 0x2b6   :  { %7998 = vmatpush3.bf16.msra.mxu0 %v8564_v45  ;;  %v8611_v45 = vld [vmem:[%s11185_s7 + $0xc] ss:$16 sps:$4 sm:$0xff]  }
 0x2b7   :  { %8015 = vmatprep.subr.bf16.mxu0 %v8565_v53 }
 0x2b9   :  { %7984 = vmatmul.mubr.msk.bf16.gmra.mrb[24].mxu0 %vm52_vm1, %v9505_v6 }
 0x2ba   :  { %7987 = vmatprep.mubr.msk.bf16.mxu0 %vm52_vm1, %v9507_v7 }
 0x2c1   :  { %7988 = vmatmul.mubr.msk.bf16.gmra.mrb[28].mxu0 %vm52_vm1, %v9513_v8 }
 0x2c2   :  { %7999 = vmatprep.mubr.msk.bf16.mxu0 %vm52_vm1, %v9386_v48  ;;  %v8568_v48 = vld [vmem:[%s11183_s5 + $0x78] sm:$0xff]  }
 0x2c9   :  { %8000 = vmatmul.mubr.msk.bf16.vlgmr.msra.gmra.mrb[16].mxu0 %vm52_vm1, %v9479_v2 }
 0x2ca   :  { %8016 = vmatpush3.bf16.msra.mxu0 %v8565_v53  ;;  %8003 = vmatprep.mubr.msk.bf16.mxu0 %vm52_vm1, %v9490_v3  ;;  %v9812_v53 = vld [vmem:[%s11188_s6] ss:$0 sm:$0xff] }
 0x2cb   :  { %8017 = vmatprep.subr.bf16.mxu0 %v8566_v9 }
 0x2ce   :  { %8018 = vmatpush3.bf16.msra.mxu0 %v8566_v9 }
 0x2cf   :  { %8019 = vmatprep.subr.bf16.mxu0 %v8567_v10 }
 0x2d1   :  { %8004 = vmatmul.mubr.msk.bf16.gmra.mrb[20].mxu0 %vm52_vm1, %v9496_v5 }
 0x2d2   :  { %8007 = vmatprep.mubr.msk.bf16.mxu0 %vm52_vm1, %v9505_v6  ;;  %8020 = vmatpush3.bf16.msra.mxu0 %v8567_v10 }
 0x2d3   :  { %8021 = vmatprep.subr.bf16.mxu0 %v8568_v48 }
 0x2d6   :  { %8022 = vmatpush3.bf16.msra.mxu0 %v8568_v48 }
 0x2d7   :  { %8039 = vmatprep.subr.bf16.mxu0 %v8569_v11 }
 0x2d9   :  { %8008 = vmatmul.mubr.msk.bf16.gmra.mrb[24].mxu0 %vm52_vm1, %v9507_v7 }
 0x2da   :  { %8011 = vmatprep.mubr.msk.bf16.mxu0 %vm52_vm1, %v9513_v8 }
 0x2e1   :  { %8012 = vmatmul.mubr.msk.bf16.gmra.mrb[28].mxu0 %vm52_vm1, %v9543_v4 }
 0x2e2   :  { %8023 = vmatprep.mubr.msk.bf16.mxu0 %vm52_vm1, %v9381_v47  ;;  %v8572_v47 = vld [vmem:[%s11183_s5 + $0x98] sm:$0xff]  }
 0x2e9   :  { %8024 = vmatmul.mubr.msk.bf16.vlgmr.msra.gmra.mrb[16].mxu0 %vm52_vm1, %v9432_v23 }
 0x2ea   :  { %8040 = vmatpush3.bf16.msra.mxu0 %v8569_v11  ;;  %8027 = vmatprep.mubr.msk.bf16.mxu0 %vm52_vm1, %v9436_v27 }
 0x2eb   :  { %8041 = vmatprep.subr.bf16.mxu0 %v8570_v13 }
 0x2ee   :  { %8042 = vmatpush3.bf16.msra.mxu0 %v8570_v13 }
 0x2ef   :  { %8043 = vmatprep.subr.bf16.mxu0 %v8571_v14 }
 0x2f1   :  { %8028 = vmatmul.mubr.msk.bf16.gmra.mrb[20].mxu0 %vm52_vm1, %v9449_v38 }
 0x2f2   :  { %8031 = vmatprep.mubr.msk.bf16.mxu0 %vm52_vm1, %v9452_v1  ;;  %8044 = vmatpush3.bf16.msra.mxu0 %v8571_v14 }
 0x2f3   :  { %8045 = vmatprep.subr.bf16.mxu0 %v8572_v47 }
 0x2f6   :  { %8046 = vmatpush3.bf16.msra.mxu0 %v8572_v47 }
 0x2f7   :  { %8063 = vmatprep.subr.bf16.mxu0 %v8573_v15 }
 0x2f9   :  { %8032 = vmatmul.mubr.msk.bf16.gmra.mrb[24].mxu0 %vm52_vm1, %v9465_v61 }
 0x2fa   :  { %8035 = vmatprep.mubr.msk.bf16.mxu0 %vm52_vm1, %v9468_v54 }
 0x301   :  { %8036 = vmatmul.mubr.msk.bf16.gmra.mrb[28].mxu0 %vm52_vm1, %v9573_v17 }
 0x302   :  { %8047 = vmatprep.mubr.msk.bf16.mxu0 %vm52_vm1, %v9479_v2  ;;  %v8608_v2 = vld [vmem:[%s11185_s7 + $0x64] ss:$16 sps:$4 sm:$0xff]  }
 0x309   :  { %8048 = vmatmul.mubr.msk.bf16.vlgmr.msra.gmra.mrb[16].mxu0 %vm52_vm1, %v9490_v3 }
 0x30a   :  { %8064 = vmatpush3.bf16.msra.mxu0 %v8573_v15  ;;  %8051 = vmatprep.mubr.msk.bf16.mxu0 %vm52_vm1, %v9496_v5 }
 0x30b   :  { %8065 = vmatprep.subr.bf16.mxu0 %v8574_v21 }
 0x30e   :  { %8066 = vmatpush3.bf16.msra.mxu0 %v8574_v21 }
 0x30f   :  { %8067 = vmatprep.subr.bf16.mxu0 %v8575_v22 }
 0x311   :  { %8052 = vmatmul.mubr.msk.bf16.gmra.mrb[20].mxu0 %vm52_vm1, %v9505_v6 }
 0x312   :  { %8055 = vmatprep.mubr.msk.bf16.mxu0 %vm52_vm1, %v9507_v7  ;;  %8068 = vmatpush3.bf16.msra.mxu0 %v8575_v22 }
 0x313   :  { %8069 = vmatprep.subr.bf16.mxu0 %v8576_v24 }
 0x316   :  { %8070 = vmatpush3.bf16.msra.mxu0 %v8576_v24  ;;  %v9826_v24 = vld [vmem:[%s11187_s9] ss:$8 sps:$4 sm:$0xff]  }
 0x317   :  { %8087 = vmatprep.subr.bf16.mxu0 %v8577_v25 }
 0x319   :  { %8056 = vmatmul.mubr.msk.bf16.gmra.mrb[24].mxu0 %vm52_vm1, %v9513_v8 }
 0x31a   :  { %8059 = vmatprep.mubr.msk.bf16.mxu0 %vm52_vm1, %v9543_v4 }
 0x321   :  { %8060 = vmatmul.mubr.msk.bf16.gmra.mrb[28].mxu0 %vm52_vm1, %v9603_v28 }
 0x322   :  { %8071 = vmatprep.mubr.msk.bf16.mxu0 %vm52_vm1, %v9432_v23  ;;  %v8580_v23 = vld [vmem:[%s11183_s5 + $0xd8] sm:$0xff]  }
 0x329   :  { %8072 = vmatmul.mubr.msk.bf16.vlgmr.msra.gmra.mrb[16].mxu0 %vm52_vm1, %v9436_v27 }
 0x32a   :  { %8088 = vmatpush3.bf16.msra.mxu0 %v8577_v25  ;;  %8075 = vmatprep.mubr.msk.bf16.mxu0 %vm52_vm1, %v9449_v38 }
 0x32b   :  { %8089 = vmatprep.subr.bf16.mxu0 %v8578_v29 }
 0x32e   :  { %8090 = vmatpush3.bf16.msra.mxu0 %v8578_v29 }
 0x32f   :  { %8091 = vmatprep.subr.bf16.mxu0 %v8579_v19 }
 0x331   :  { %8076 = vmatmul.mubr.msk.bf16.gmra.mrb[20].mxu0 %vm52_vm1, %v9452_v1 }
 0x332   :  { %8079 = vmatprep.mubr.msk.bf16.mxu0 %vm52_vm1, %v9465_v61  ;;  %8092 = vmatpush3.bf16.msra.mxu0 %v8579_v19 }
 0x333   :  { %8093 = vmatprep.subr.bf16.mxu0 %v8580_v23 }
 0x336   :  { %8094 = vmatpush3.bf16.msra.mxu0 %v8580_v23 }
 0x337   :  { %8111 = vmatprep.subr.bf16.mxu0 %v8581_v30 }
 0x339   :  { %8080 = vmatmul.mubr.msk.bf16.gmra.mrb[24].mxu0 %vm52_vm1, %v9468_v54 }
 0x33a   :  { %8083 = vmatprep.mubr.msk.bf16.mxu0 %vm52_vm1, %v9573_v17 }
 0x341   :  { %8084 = vmatmul.mubr.msk.bf16.gmra.mrb[28].mxu0 %vm52_vm1, %v9633_v32 }
 0x342   :  { %8095 = vmatprep.mubr.msk.bf16.mxu0 %vm52_vm1, %v9490_v3  ;;  %v11193_v3 = vmov 0  }
 0x343   :  { %3990 = vmatprep.mubr.bf16.mxu1 %v11193_v3 }
 0x349   :  { %8096 = vmatmul.mubr.msk.bf16.vlgmr.msra.gmra.mrb[16].mxu0 %vm52_vm1, %v9496_v5 }
 0x34a   :  { %8112 = vmatpush3.bf16.msra.mxu0 %v8581_v30  ;;  %8099 = vmatprep.mubr.msk.bf16.mxu0 %vm52_vm1, %v9505_v6 }
 0x34b   :  { %8113 = vmatprep.subr.bf16.mxu0 %v8582_v33 }
 0x34e   :  { %8114 = vmatpush3.bf16.msra.mxu0 %v8582_v33 }
 0x34f   :  { %8115 = vmatprep.subr.bf16.mxu0 %v8583_v35 }
 0x351   :  { %8100 = vmatmul.mubr.msk.bf16.gmra.mrb[20].mxu0 %vm52_vm1, %v9507_v7 }
 0x352   :  { %8103 = vmatprep.mubr.msk.bf16.mxu0 %vm52_vm1, %v9513_v8  ;;  %8116 = vmatpush3.bf16.msra.mxu0 %v8583_v35 }
 0x353   :  { %8117 = vmatprep.subr.bf16.mxu0 %v8584_v39 }
 0x356   :  { %8118 = vmatpush3.bf16.msra.mxu0 %v8584_v39  ;;  %v8609_v39 = vld [vmem:[%s11185_s7 + $0x8] ss:$16 sps:$4 sm:$0xff]  }
 0x357   :  { %8135 = vmatprep.subr.bf16.mxu0 %v8585_v40 }
 0x359   :  { %8104 = vmatmul.mubr.msk.bf16.gmra.mrb[24].mxu0 %vm52_vm1, %v9543_v4 }
 0x35a   :  { %8107 = vmatprep.mubr.msk.bf16.mxu0 %vm52_vm1, %v9603_v28 }
 0x361   :  { %8108 = vmatmul.mubr.msk.bf16.gmra.mrb[28].mxu0 %vm52_vm1, %v9663_v41 }
 0x362   :  { %8119 = vmatprep.mubr.msk.bf16.mxu0 %vm52_vm1, %v9436_v27  ;;  %v9695_v27 = vld [vmem:[%s11185_s7 + $0x20] ss:$16 sps:$4 sm:$0xff]  }
 0x363   :  { %8244 = vmatpush1.bf16.msra.mxu1 %v9695_v27 }
 0x369   :  { %8120 = vmatmul.mubr.msk.bf16.vlgmr.msra.gmra.mrb[16].mxu0 %vm52_vm1, %v9449_v38 }
 0x36a   :  { %8136 = vmatpush3.bf16.msra.mxu0 %v8585_v40  ;;  %8123 = vmatprep.mubr.msk.bf16.mxu0 %vm52_vm1, %v9452_v1  ;;  %v9852_v40 = vld [vmem:[%s11187_s9 + $0x24] ss:$8 sps:$4 sm:$0xff]  }
 0x36b   :  { %8137 = vmatprep.subr.bf16.mxu0 %v8586_v44 }
 0x36e   :  { %8138 = vmatpush3.bf16.msra.mxu0 %v8586_v44 }
 0x36f   :  { %8139 = vmatprep.subr.bf16.mxu0 %v8587_v37 }
 0x371   :  { %8124 = vmatmul.mubr.msk.bf16.gmra.mrb[20].mxu0 %vm52_vm1, %v9465_v61 }
 0x372   :  { %8127 = vmatprep.mubr.msk.bf16.mxu0 %vm52_vm1, %v9468_v54  ;;  %8140 = vmatpush3.bf16.msra.mxu0 %v8587_v37 }
 0x373   :  { %8141 = vmatprep.subr.bf16.mxu0 %v8588_v36 }
 0x376   :  { %8142 = vmatpush3.bf16.msra.mxu0 %v8588_v36  ;;  %v8612_v36 = vld [vmem:[%s11185_s7 + $0x28] ss:$16 sps:$4 sm:$0xff]  }
 0x377   :  { %8159 = vmatprep.subr.bf16.mxu0 %v8589_v46 }
 0x379   :  { %8128 = vmatmul.mubr.msk.bf16.gmra.mrb[24].mxu0 %vm52_vm1, %v9573_v17 }
 0x37a   :  { %8131 = vmatprep.mubr.msk.bf16.mxu0 %vm52_vm1, %v9633_v32 }
 0x381   :  { %8132 = vmatmul.mubr.msk.bf16.gmra.mrb[28].mxu0 %vm52_vm1, %v2986_v50 }
 0x382   :  { %8143 = vmatprep.mubr.msk.bf16.mxu0 %vm52_vm1, %v9496_v5  ;;  %v9806_v5 = vld [vmem:[%s11187_s9 + $0x4] ss:$8 sps:$4 sm:$0xff]  }
 0x389   :  { %8144 = vmatmul.mubr.msk.bf16.vlgmr.msra.gmra.mrb[16].mxu0 %vm52_vm1, %v9505_v6 }
 0x38a   :  { %8160 = vmatpush3.bf16.msra.mxu0 %v8589_v46  ;;  %8147 = vmatprep.mubr.msk.bf16.mxu0 %vm52_vm1, %v9507_v7  ;;  %v9875_v46 = vld [vmem:[%s11187_s9 + $0x20] ss:$8 sps:$4 sm:$0xff]  }
 0x38b   :  { %8161 = vmatprep.subr.bf16.mxu0 %v8590_v51 }
 0x38e   :  { %8162 = vmatpush3.bf16.msra.mxu0 %v8590_v51  ;;  %v8617_v51 = vld [vmem:[%s11185_s7 + $0x4c] ss:$16 sps:$4 sm:$0xff]  }
 0x38f   :  { %8163 = vmatprep.subr.bf16.mxu0 %v8591_v52 }
 0x391   :  { %8148 = vmatmul.mubr.msk.bf16.gmra.mrb[20].mxu0 %vm52_vm1, %v9513_v8 }
 0x392   :  { %8151 = vmatprep.mubr.msk.bf16.mxu0 %vm52_vm1, %v9543_v4  ;;  %8164 = vmatpush3.bf16.msra.mxu0 %v8591_v52  ;;  %v9886_v52 = vld [vmem:[%s11187_s9 + $0x34] ss:$8 sps:$4 sm:$0xff]  }
 0x393   :  { %8165 = vmatprep.subr.bf16.mxu0 %v8592_v55 }
 0x396   :  { %8166 = vmatpush3.bf16.msra.mxu0 %v8592_v55 }
 0x397   :  { %8183 = vmatprep.subr.bf16.mxu0 %v8593_v56 }
 0x399   :  { %8152 = vmatmul.mubr.msk.bf16.gmra.mrb[24].mxu0 %vm52_vm1, %v9603_v28 }
 0x39a   :  { %8155 = vmatprep.mubr.msk.bf16.mxu0 %vm52_vm1, %v9663_v41 }
 0x3a1   :  { %8156 = vmatmul.mubr.msk.bf16.gmra.mrb[28].mxu0 %vm52_vm1, %v3180_v58 }
 0x3a2   :  { %8167 = vmatprep.mubr.msk.bf16.mxu0 %vm52_vm1, %v9449_v38  ;;  %v8596_v38 = vld [vmem:[%s11183_s5 + $0x158] sm:$0xff]  }
 0x3a9   :  { %8168 = vmatmul.mubr.msk.bf16.vlgmr.msra.gmra.mrb[16].mxu0 %vm52_vm1, %v9452_v1  ;;  %v3366_v1 = vld [vmem:[#allocation4 + $0xc0] sm:$0xff] }
 0x3aa   :  { %8184 = vmatpush3.bf16.msra.mxu0 %v8593_v56  ;;  %8171 = vmatprep.mubr.msk.bf16.mxu0 %vm52_vm1, %v9465_v61  ;;  %v3374_v61 = vpack.c.bf16 %v3366_v1, %v3172_v57  ;;  %v3568_v63 = vpack.c.bf16 %v3560_v62, %v3366_v1  ;;  %v8615_v1 = vld [vmem:[%s11185_s7 + $0x48] ss:$16 sps:$4 sm:$0xff]  }
 0x3ab   :  { %8185 = vmatprep.subr.bf16.mxu0 %v8594_v59 }
 0x3ae   :  { %8186 = vmatpush3.bf16.msra.mxu0 %v8594_v59 }
 0x3af   :  { %8187 = vmatprep.subr.bf16.mxu0 %v8595_v60 }
 0x3b1   :  { %8172 = vmatmul.mubr.msk.bf16.gmra.mrb[20].mxu0 %vm52_vm1, %v9468_v54  ;;  %v8605_v54 = vld [vmem:[%s11185_s7 + $0x44] ss:$16 sps:$4 sm:$0xff]  }
 0x3b2   :  { %8175 = vmatprep.mubr.msk.bf16.mxu0 %vm52_vm1, %v9573_v17  ;;  %8188 = vmatpush3.bf16.msra.mxu0 %v8595_v60  ;;  %v9894_v60 = vld [vmem:[%s11187_s9 + $0x30] ss:$8 sps:$4 sm:$0xff]  }
 0x3b3   :  { %8189 = vmatprep.subr.bf16.mxu0 %v8596_v38  ;;  %8241 = vmatprep.subr.bf16.mxu1 %v8605_v54 }
 0x3b4   :  { %8245 = vmatpush1.bf16.msra.mxu1 %v8603_v0 }
 0x3b5   :  { %8242 = vmatprep.subr.bf16.mxu1 %v8608_v2 }
 0x3b6   :  { %8190 = vmatpush3.bf16.msra.mxu0 %v8596_v38 }
 0x3b7   :  { %3928 = vmatprep.subr.bf16.mxu0 %v9672_v34 }
 0x3b8   :  { %8246 = vmatpush1.bf16.msra.mxu1 %v8606_v18 }
 0x3b9   :  { %8176 = vmatmul.mubr.msk.bf16.gmra.mrb[24].mxu0 %vm52_vm1, %v9633_v32  ;;  %4041 = vmatprep.subr.bf16.mxu1 %v8611_v45  ;;  %v9844_v32 = vld [vmem:[%s11187_s9 + $0x10] ss:$8 sps:$4 sm:$0xff]  }
 0x3ba   :  { %8179 = vmatprep.mubr.msk.bf16.mxu0 %vm52_vm1, %v2986_v50 }
 0x3c1   :  { %8180 = vmatmul.mubr.msk.bf16.gmra.mrb[28].mxu0 %vm52_vm1, %v3374_v61 }
 0x3c2   :  { %8191 = vmatprep.mubr.msk.bf16.mxu0 %vm52_vm1, %v9505_v6 }
 0x3c9   :  { %8192 = vmatmul.mubr.msk.bf16.vlgmr.msra.gmra.mrb[16].mxu0 %vm52_vm1, %v9507_v7 }
 0x3ca   :  { %8195 = vmatprep.mubr.msk.bf16.mxu0 %vm52_vm1, %v9513_v8  ;;  %3929 = vmatpush1.bf16.msra.mxu0 %v9677_v42  ;;  %v8614_v42 = vld [vmem:[%s11185_s7 + $0x2c] ss:$16 sps:$4 sm:$0xff]  }
 0x3cb   :  { %3930 = vmatprep.subr.bf16.mxu0 %v9682_v43 }
 0x3ce   :  { %3931 = vmatpush1.bf16.msra.mxu0 %v9695_v27 }
 0x3cf   :  { %3932 = vmatprep.subr.bf16.mxu0 %v8605_v54 }
 0x3d1   :  { %8196 = vmatmul.mubr.msk.bf16.gmra.mrb[20].mxu0 %vm52_vm1, %v9543_v4 }
 0x3d2   :  { %8199 = vmatprep.mubr.msk.bf16.mxu0 %vm52_vm1, %v9603_v28  ;;  %3933 = vmatpush1.bf16.msra.mxu0 %v8603_v0  ;;  %v9834_v28 = vld [vmem:[%s11187_s9 + $0x14] ss:$8 sps:$4 sm:$0xff]  }
 0x3d3   :  { %3934 = vmatprep.subr.bf16.mxu0 %v8608_v2 }
 0x3d6   :  { %3935 = vmatpush1.bf16.msra.mxu0 %v8606_v18 }
 0x3d7   :  { %4958 = vmatprep.subr.bf16.mxu0 %v9806_v5 }
 0x3d9   :  { %8200 = vmatmul.mubr.msk.bf16.gmra.mrb[24].mxu0 %vm52_vm1, %v9663_v41 }
 0x3da   :  { %8203 = vmatprep.mubr.msk.bf16.mxu0 %vm52_vm1, %v3180_v58 }
 0x3e1   :  { %8204 = vmatmul.mubr.msk.bf16.gmra.mrb[28].mxu0 %vm52_vm1, %v3568_v63  ;;  %v8620_v63 = vld [vmem:[%s11185_s7 + $0x6c] ss:$16 sps:$4 sm:$0xff]  }
 0x3e2   :  { %3960 = vmatprep.mubr.bf16.mxu0 %v11193_v3 }
 0x49c   :  { %v8193_v6 = vpop.f32.mrb[16].mxu0 }
 0x49d   :  { %v3748_v7 = vadd.f32 %v8193_v6, %v9812_v53  ;;  %v3660_v8 = vpop.f32.mrb[17].mxu0 }
 0x49e   :  { %v3746_v9 = vadd.f32 %v9812_v53, %v3660_v8  ;;  %v8194_v10 = vpop.f32.mrb[18].mxu0 }
 0x49f   :  { %v3749_v48 = vadd.f32 %v8194_v10, %v9812_v53  ;;  %v3663_v11 = vpop.f32.mrb[19].mxu0  ;;  %v3764_v4 = vmax.f32 %v3748_v7, 0.0  ;;  %v8618_v7 = vld [vmem:[%s11185_s7 + $0x68] ss:$16 sps:$4 sm:$0xff]  }
 0x4a0   :  { %v3747_v12 = vadd.f32 %v9812_v53, %v3663_v11  ;;  %v3762_v14 = vmax.f32 %v3746_v9, 0.0  ;;  %v9918_v9 = vld [vmem:[%s11186_s8 + $0x4] ss:$8 sps:$4 sm:$0xff]  }
 0x4a1   :  { %v3765_v13 = vmax.f32 %v3749_v48, 0.0 }
 0x4a2   :  { %v3763_v47 = vmax.f32 %v3747_v12, 0.0 }
 0x4a3   :  { %v9818_v15 = vpack.c.bf16 %v3765_v13, %v3764_v4 }
 0x4a4   :  { %v9820_v16 = vpack.c.bf16 %v3763_v47, %v3762_v14  ;;  %v8197_v17 = vpop.f32.mrb[20].mxu0  ;;  %v9936_v14 = vld [vmem:[%s11186_s8 + $0x14] ss:$8 sps:$4 sm:$0xff]   ;;  %v9945_v47 = vld [vmem:[%s11186_s8 + $0x10] ss:$8 sps:$4 sm:$0xff]  }
 0x4a5   :  { %v3752_v21 = vadd.f32 %v8197_v17, %v9812_v53  ;;  %v3676_v22 = vpop.f32.mrb[21].mxu0  ;;  %v9951_v17 = vld [vmem:[%s11186_s8 + $0x24] ss:$8 sps:$4 sm:$0xff]  }
 0x4a6   :  { %v3750_v25 = vadd.f32 %v9812_v53, %v3676_v22  ;;  %v8198_v26 = vpop.f32.mrb[22].mxu0  ;;  %7394 = vmatmul.mubr.msk.bf16.vlgmr.msra.gmra.mrb[32].mxu0 %vm52_vm1, %v9820_v16  ;;  %v9972_v22 = vld [vmem:[%s11186_s8 + $0x30] ss:$8 sps:$4 sm:$0xff]  }
 0x4a7   :  { %v3753_v29 = vadd.f32 %v8198_v26, %v9812_v53  ;;  %v3679_v19 = vpop.f32.mrb[23].mxu0  ;;  %3970 = vmatprep.mubr.bf16.mxu0 %v11193_v3  ;;  %4959 = vmatpush1.bf16.msra.mxu0 %v9826_v24  ;;  %v3768_v30 = vmax.f32 %v3752_v21, 0.0  ;;  %v9963_v21 = vld [vmem:[%s11186_s8 + $0x34] ss:$8 sps:$4 sm:$0xff]  }
 0x4a8   :  { %v3751_v23 = vadd.f32 %v9812_v53, %v3679_v19  ;;  %4960 = vmatprep.subr.bf16.mxu0 %v9834_v28  ;;  %v3766_v33 = vmax.f32 %v3750_v25, 0.0 }
 0x4a9   :  { %v3769_v31 = vmax.f32 %v3753_v29, 0.0  ;;  %v10017_v29 = vld [vmem:[%s11189_s10] sm:$0xf]  ;;  %s8944_s10 = smov 64  }
 0x4aa   :  { %v3767_v35 = vmax.f32 %v3751_v23, 0.0 }
 0x4ab   :  { %v9854_v20 = vpack.c.bf16 %v3769_v31, %v3768_v30  ;;  %4961 = vmatpush1.bf16.msra.mxu0 %v9844_v32 }
 0x4ac   :  { %v9857_v41 = vpack.c.bf16 %v3767_v35, %v3766_v33  ;;  %v8201_v34 = vpop.f32.mrb[24].mxu0  ;;  %4962 = vmatprep.subr.bf16.mxu0 %v9852_v40 }
 0x4ad   :  { %v3756_v43 = vadd.f32 %v8201_v34, %v9812_v53  ;;  %v3692_v44 = vpop.f32.mrb[25].mxu0  ;;  %7397 = vmatmul.mubr.msk.bf16.vlgmr.msra.gmra.mrb[16].mxu1 %vm52_vm1, %v9854_v20 }
 0x4ae   :  { %v3754_v27 = vadd.f32 %v9812_v53, %v3692_v44  ;;  %v8202_v37 = vpop.f32.mrb[26].mxu0  ;;  %7395 = vmatmul.mubr.msk.bf16.gmra.mrb[36].mxu0 %vm52_vm1, %v9818_v15  ;;  %4042 = vmatpush1.bf16.msra.mxu1 %v8609_v39 }
 0x4af   :  { %v3757_v49 = vadd.f32 %v8202_v37, %v9812_v53  ;;  %v3695_v50 = vpop.f32.mrb[27].mxu0  ;;  %3980 = vmatprep.mubr.bf16.mxu0 %v11193_v3  ;;  %4000 = vmatprep.mubr.bf16.mxu1 %v11193_v3  ;;  %v3772_v56 = vmax.f32 %v3756_v43, 0.0 }
 0x4b0   :  { %v3755_v55 = vadd.f32 %v9812_v53, %v3695_v50  ;;  %4043 = vmatprep.subr.bf16.mxu1 %v8614_v42  ;;  %4963 = vmatpush1.bf16.msra.mxu0 %v9875_v46  ;;  %v3770_v58 = vmax.f32 %v3754_v27, 0.0 }
 0x4b1   :  { %v3773_v57 = vmax.f32 %v3757_v49, 0.0  ;;  %4964 = vmatprep.subr.bf16.mxu0 %v9886_v52 }
 0x4b2   :  { %v3771_v59 = vmax.f32 %v3755_v55, 0.0  ;;  %4044 = vmatpush1.bf16.msra.mxu1 %v8612_v36 }
 0x4b3   :  { %v3783_v38 = vpack.c.bf16 %v3773_v57, %v3772_v56  ;;  %4045 = vmatprep.subr.bf16.mxu1 %v8617_v51 }
 0x4b4   :  { %v3782_v61 = vpack.c.bf16 %v3771_v59, %v3770_v58  ;;  %v8205_v62 = vpop.f32.mrb[28].mxu0  ;;  %4965 = vmatpush1.bf16.msra.mxu0 %v9894_v60 }
 0x4b5   :  { %v3760_v54 = vadd.f32 %v8205_v62, %v9812_v53  ;;  %v3708_v0 = vpop.f32.mrb[29].mxu0  ;;  %5108 = vmatprep.subr.bf16.mxu0 %v9806_v5 }
 0x4b6   :  { %v3758_v2 = vadd.f32 %v9812_v53, %v3708_v0  ;;  %v8206_v18 = vpop.f32.mrb[30].mxu0  ;;  %7396 = vmatmul.mubr.msk.bf16.gmra.mrb[40].mxu0 %vm52_vm1, %v9857_v41  ;;  %7398 = vmatmul.mubr.msk.bf16.gmra.mrb[20].mxu1 %vm52_vm1, %v3782_v61 }
 0x4b7   :  { %v3761_v45 = vadd.f32 %v8206_v18, %v9812_v53  ;;  %v3711_v6 = vpop.f32.mrb[31].mxu0  ;;  %4010 = vmatprep.mubr.bf16.mxu1 %v11193_v3  ;;  %4046 = vmatpush1.bf16.msra.mxu1 %v8615_v1  ;;  %v3776_v10 = vmax.f32 %v3760_v54, 0.0 }
 0x4b8   :  { %v3759_v8 = vadd.f32 %v9812_v53, %v3711_v6  ;;  %4047 = vmatprep.subr.bf16.mxu1 %v8620_v63  ;;  %4990 = vmatprep.mubr.bf16.mxu0 %v11193_v3  ;;  %v3774_v11 = vmax.f32 %v3758_v2, 0.0  ;;  %v9931_v53 = vld [vmem:[%s11186_s8] ss:$8 sps:$4 sm:$0xff]  }
 0x4b9   :  { %v3777_v48 = vmax.f32 %v3761_v45, 0.0 }
 0x4ba   :  { %v3775_v12 = vmax.f32 %v3759_v8, 0.0 }
 0x4bb   :  { %v3785_v4 = vpack.c.bf16 %v3777_v48, %v3776_v10  ;;  %4048 = vmatpush1.bf16.msra.mxu1 %v8618_v7 }
 0x4bc   :  { %v3784_v13 = vpack.c.bf16 %v3775_v12, %v3774_v11  ;;  %4269 = vmatprep.subr.bf16.mxu1 %v9918_v9 }
 0x4be   :  { %7399 = vmatmul.mubr.msk.bf16.gmra.mrb[24].mxu1 %vm52_vm1, %v3783_v38 }
 0x4bf   :  { %4020 = vmatprep.mubr.bf16.mxu1 %v11193_v3 }
 0x4c6   :  { %7400 = vmatmul.mubr.msk.bf16.gmra.mrb[28].mxu1 %vm52_vm1, %v3784_v13 }
 0x4c7   :  { %4030 = vmatprep.mubr.bf16.mxu1 %v11193_v3 }
 0x4ce   :  { %7401 = vmatmul.mubr.msk.bf16.gmra.mrb[32].mxu1 %vm52_vm1, %v3785_v4 }
 0x4cf   :  { %4073 = vmatprep.mubr.bf16.mxu1 %v11193_v3 }
 0x4d6   :  { %7402 = vmatmul.mubr.msk.bf16.vlgmr.msra.gmra.mrb[36].mxu1 %vm52_vm1, %v9820_v16  ;;  %v9957_v16 = vld [vmem:[%s11186_s8 + $0x20] ss:$8 sps:$4 sm:$0xff]  }
 0x4d7   :  { %4270 = vmatpush1.bf16.msra.mxu1 %v9931_v53  ;;  %4083 = vmatprep.mubr.bf16.mxu1 %v11193_v3 }
 0x4d8   :  { %4271 = vmatprep.subr.bf16.mxu1 %v9936_v14 }
 0x4db   :  { %4272 = vmatpush1.bf16.msra.mxu1 %v9945_v47 }
 0x4dc   :  { %4273 = vmatprep.subr.bf16.mxu1 %v9951_v17 }
 0x4de   :  { %7403 = vmatmul.mubr.msk.bf16.gmra.mrb[40].mxu1 %vm52_vm1, %v9818_v15  ;;  %v3804_v15 = vlaneseq }
 0x4df   :  { %4093 = vmatprep.mubr.bf16.mxu1 %v11193_v3  ;;  %4274 = vmatpush1.bf16.msra.mxu1 %v9957_v16 }
 0x4e0   :  { %4275 = vmatprep.subr.bf16.mxu1 %v9963_v21  ;;  %v10011_v25 = vshrl.u32 %v3804_v15, 7 }
 0x4e2   :  { %v3806_v26 = vsub.s32 0, %v10011_v25  ;;  %v3810_v19 = vsub.s32 1, %v10011_v25 }
 0x4e3   :  { %4276 = vmatpush1.bf16.msra.mxu1 %v9972_v22 }
 0x4e4   :  { %4358 = vmatprep.subr.bf16.mxu1 %v9806_v5  ;;  %v10023_v30 = vrot.slane %v10017_v29, %v3806_v26  ;;  %v10028_v33 = vrot.slane %v10017_v29, %v3810_v19 }
 0x4e6   :  { %7404 = vmatmul.mubr.msk.bf16.gmra.mrb[44].mxu1 %vm52_vm1, %v9857_v41 }
 0x4e7   :  { %4103 = vmatprep.mubr.bf16.mxu1 %v11193_v3 }
 0x4ee   :  { %7405 = vmatmul.mubr.msk.bf16.gmra.mrb[48].mxu1 %vm52_vm1, %v9854_v20 }
 0x4ef   :  { %4113 = vmatprep.mubr.bf16.mxu1 %v11193_v3 }
 0x4f6   :  { %7406 = vmatmul.mubr.msk.bf16.gmra.mrb[52].mxu1 %vm52_vm1, %v3782_v61 }
 0x4f7   :  { %4123 = vmatprep.mubr.bf16.mxu1 %v11193_v3 }
 0x4fe   :  { %7407 = vmatmul.mubr.msk.bf16.gmra.mrb[56].mxu1 %vm52_vm1, %v3783_v38 }
 0x4ff   :  { %4133 = vmatprep.mubr.bf16.mxu1 %v11193_v3 }
 0x506   :  { %7408 = vmatmul.mubr.msk.bf16.gmra.mrb[60].mxu1 %vm52_vm1, %v3784_v13 }
 0x507   :  { %4143 = vmatprep.mubr.bf16.mxu1 %v11193_v3 }
 0x50e   :  { %7409 = vmatmul.mubr.msk.bf16.gmra.mrb[64].mxu1 %vm52_vm1, %v3785_v4 }
 0x50f   :  { %4301 = vmatprep.mubr.bf16.mxu1 %v11193_v3 }
 0x516   :  { %4302 = vmatmul.mubr.bf16.vlgmr.msra.gmra.mrb[68].mxu1 %v11193_v3 }
 0x517   :  { %4359 = vmatpush1.bf16.msra.mxu1 %v9826_v24  ;;  %4390 = vmatprep.mubr.bf16.mxu1 %v11193_v3 }
 0x518   :  { %4360 = vmatprep.subr.bf16.mxu1 %v9834_v28 }
 0x51b   :  { %4361 = vmatpush1.bf16.msra.mxu1 %v9844_v32 }
 0x51c   :  { %4362 = vmatprep.subr.bf16.mxu1 %v9852_v40 }
 0x51f   :  { %4363 = vmatpush1.bf16.msra.mxu1 %v9875_v46 }
 0x520   :  { %4364 = vmatprep.subr.bf16.mxu1 %v9886_v52 }
 0x523   :  { %4365 = vmatpush1.bf16.msra.mxu1 %v9894_v60 }
 0x524   :  { %4464 = vmatprep.subr.bf16.mxu1 %v9918_v9 }
 0x526   :  { %4391 = vmatmul.mubr.bf16.vlgmr.msra.gmra.mrb[72].mxu1 %v11193_v3 }
 0x527   :  { %4465 = vmatpush1.bf16.msra.mxu1 %v9931_v53  ;;  %4496 = vmatprep.mubr.bf16.mxu1 %v11193_v3 }
 0x528   :  { %4466 = vmatprep.subr.bf16.mxu1 %v9936_v14 }
 0x52b   :  { %4467 = vmatpush1.bf16.msra.mxu1 %v9945_v47 }
 0x52c   :  { %4468 = vmatprep.subr.bf16.mxu1 %v9951_v17 }
 0x52f   :  { %4469 = vmatpush1.bf16.msra.mxu1 %v9957_v16 }
 0x530   :  { %4470 = vmatprep.subr.bf16.mxu1 %v9963_v21 }
 0x533   :  { %4471 = vmatpush1.bf16.msra.mxu1 %v9972_v22 }
 0x534   :  { %4508 = vmatprep.subr.bf16.mxu1 %v9806_v5 }
 0x579   :  { %v10020_v23 = vpop.f32.mrb[32].mxu0 }
 0x57a   :  { %v10025_v31 = vpop.f32.mrb[33].mxu0 }
 0x57b   :  { %v3966_v35 = vpop.f32.mrb[34].mxu0 }
 0x57c   :  { %v10031_v39 = vadd.f32 %v3966_v35, %v10023_v30  ;;  %v3968_v20 = vpop.f32.mrb[35].mxu0 }
 0x57d   :  { %v10034_v41 = vadd.f32 %v3968_v20, %v10028_v33 }
 0x580   :  { %v3992_v34 = vpop.f32.mrb[16].mxu1 }
 0x581   :  { %v10037_v42 = vadd.f32 %v3992_v34, %v10023_v30  ;;  %v3972_v43 = vpop.f32.mrb[36].mxu0  ;;  %v3994_v44 = vpop.f32.mrb[17].mxu1 }
 0x582   :  { %v10040_v27 = vadd.f32 %v3972_v43, %v10023_v30  ;;  %v10043_v37 = vadd.f32 %v3994_v44, %v10028_v33  ;;  %v3974_v36 = vpop.f32.mrb[37].mxu0  ;;  %v3996_v49 = vpop.f32.mrb[18].mxu1 }
 0x583   :  { %v10046_v50 = vadd.f32 %v3974_v36, %v10028_v33  ;;  %v10049_v51 = vadd.f32 %v3996_v49, %v10023_v30  ;;  %v3976_v55 = vpop.f32.mrb[38].mxu0  ;;  %v3998_v56 = vpop.f32.mrb[19].mxu1 }
 0x584   :  { %v10052_v57 = vadd.f32 %v3976_v55, %v10023_v30  ;;  %v10055_v58 = vadd.f32 %v3998_v56, %v10028_v33  ;;  %v3978_v59 = vpop.f32.mrb[39].mxu0 }
 0x585   :  { %v10058_v38 = vadd.f32 %v3978_v59, %v10028_v33 }
 0x586   :  { %11195 = vst [vmem:[#allocation6_spill] sm:$0xff] %v10055_v58 }
 0x589   :  { %v3982_v1 = vpop.f32.mrb[40].mxu0  ;;  %v4002_v61 = vpop.f32.mrb[20].mxu1 }
 0x58a   :  { %v10061_v62 = vadd.f32 %v3982_v1, %v10023_v30  ;;  %v10064_v63 = vadd.f32 %v4002_v61, %v10023_v30  ;;  %v3984_v54 = vpop.f32.mrb[41].mxu0  ;;  %v4004_v0 = vpop.f32.mrb[21].mxu1 }
 0x58b   :  { %v10067_v2 = vadd.f32 %v3984_v54, %v10028_v33  ;;  %v10070_v18 = vadd.f32 %v4004_v0, %v10028_v33  ;;  %v3986_v45 = vpop.f32.mrb[42].mxu0  ;;  %v4006_v6 = vpop.f32.mrb[22].mxu1 }
 0x58c   :  { %11196 = vst [vmem:[#allocation7_spill] sm:$0xff] %v10064_v63  ;;  %v10073_v7 = vadd.f32 %v3986_v45, %v10023_v30  ;;  %v10076_v8 = vadd.f32 %v4006_v6, %v10023_v30  ;;  %v3988_v10 = vpop.f32.mrb[43].mxu0  ;;  %v4008_v48 = vpop.f32.mrb[23].mxu1  ;;  %v3814_v45 = vsub.s32 2, %v10011_v25 }
 0x58d   :  { %11197 = vst [vmem:[#allocation8_spill] sm:$0xff] %v10070_v18  ;;  %v10079_v11 = vadd.f32 %v3988_v10, %v10028_v33  ;;  %v10082_v12 = vadd.f32 %v4008_v48, %v10028_v33  ;;  %v3818_v48 = vsub.s32 3, %v10011_v25 }
 0x58e   :  { %11198 = vst [vmem:[#allocation9_spill] sm:$0xff] %v10076_v8 }
 0x58f   :  { %11199 = vst [vmem:[#allocation10_spill] sm:$0xff] %v10082_v12 }
 0x591   :  { %v4012_v4 = vpop.f32.mrb[24].mxu1 }
 0x592   :  { %v10085_v13 = vadd.f32 %v4012_v4, %v10023_v30  ;;  %v4014_v15 = vpop.f32.mrb[25].mxu1 }
 0x593   :  { %v10088_v26 = vadd.f32 %v4014_v15, %v10028_v33  ;;  %v4016_v19 = vpop.f32.mrb[26].mxu1 }
 0x594   :  { %11200 = vst [vmem:[#allocation11_spill] sm:$0xff] %v10085_v13  ;;  %v10091_v35 = vadd.f32 %v4016_v19, %v10023_v30  ;;  %v4018_v20 = vpop.f32.mrb[27].mxu1 }
 0x595   :  { %11201 = vst [vmem:[#allocation12_spill] sm:$0xff] %v10088_v26  ;;  %v10094_v34 = vadd.f32 %v4018_v20, %v10028_v33  ;;  %v10123_v20 = vrot.slane %v10017_v29, %v3814_v45 }
 0x596   :  { %11202 = vst [vmem:[#allocation13_spill] sm:$0xff] %v10091_v35 }
 0x597   :  { %11203 = vst [vmem:[#allocation14_spill] sm:$0xff] %v10094_v34 }
 0x599   :  { %v4022_v43 = vpop.f32.mrb[28].mxu1 }
 0x59a   :  { %v10097_v44 = vadd.f32 %v4022_v43, %v10023_v30  ;;  %v4024_v36 = vpop.f32.mrb[29].mxu1  ;;  %v10126_v43 = vrot.slane %v10017_v29, %v3818_v48 }
 0x59b   :  { %v10100_v49 = vadd.f32 %v4024_v36, %v10028_v33  ;;  %v4026_v55 = vpop.f32.mrb[30].mxu1 }
 0x59c   :  { %11204 = vst [vmem:[#allocation15_spill] sm:$0xff] %v10097_v44  ;;  %v10103_v56 = vadd.f32 %v4026_v55, %v10023_v30  ;;  %v4028_v59 = vpop.f32.mrb[31].mxu1 }
 0x59d   :  { %11205 = vst [vmem:[#allocation16_spill] sm:$0xff] %v10100_v49  ;;  %v10106_v1 = vadd.f32 %v4028_v59, %v10028_v33 }
 0x59e   :  { %11206 = vst [vmem:[#allocation17_spill] sm:$0xff] %v10103_v56 }
 0x59f   :  { %11207 = vst [vmem:[#allocation18_spill] sm:$0xff] %v10106_v1 }
 0x5a1   :  { %v4032_v61 = vpop.f32.mrb[32].mxu1 }
 0x5a2   :  { %v10109_v54 = vadd.f32 %v4032_v61, %v10023_v30  ;;  %v4034_v0 = vpop.f32.mrb[33].mxu1 }
 0x5a3   :  { %v10113_v6 = vadd.f32 %v4034_v0, %v10028_v33  ;;  %v4036_v10 = vpop.f32.mrb[34].mxu1 }
 0x5a4   :  { %11208 = vst [vmem:[#allocation19_spill] sm:$0xff] %v10109_v54  ;;  %v10117_v4 = vadd.f32 %v4036_v10, %v10023_v30  ;;  %v4038_v15 = vpop.f32.mrb[35].mxu1 }
 0x5a5   :  { %11209 = vst [vmem:[#allocation20_spill] sm:$0xff] %v10113_v6  ;;  %v10120_v19 = vadd.f32 %v4038_v15, %v10028_v33 }
 0x5a6   :  { %11210 = vst [vmem:[#allocation21_spill] sm:$0xff] %v10117_v4 }
 0x5a7   :  { %11211 = vst [vmem:[#allocation22_spill] sm:$0xff] %v10120_v19 }
 0x5a9   :  { %v4075_v36 = vpop.f32.mrb[36].mxu1 }
 0x5aa   :  { %v10129_v55 = vadd.f32 %v4075_v36, %v10123_v20  ;;  %v4077_v59 = vpop.f32.mrb[37].mxu1 }
 0x5ab   :  { %v10132_v25 = vadd.f32 %v4077_v59, %v10126_v43  ;;  %v4079_v61 = vpop.f32.mrb[38].mxu1 }
 0x5ac   :  { %11212 = vst [vmem:[#allocation23_spill] sm:$0xff] %v10129_v55  ;;  %v10135_v0 = vadd.f32 %v4079_v61, %v10123_v20  ;;  %v4081_v10 = vpop.f32.mrb[39].mxu1 }
 0x5ad   :  { %11213 = vst [vmem:[#allocation24_spill] sm:$0xff] %v10132_v25  ;;  %v10138_v15 = vadd.f32 %v4081_v10, %v10126_v43 }
 0x5ae   :  { %11214 = vst [vmem:[#allocation25_spill] sm:$0xff] %v10135_v0 }
 0x5af   :  { %11215 = vst [vmem:[#allocation26_spill] sm:$0xff] %v10138_v15 }
 0x5b1   :  { %v4085_v45 = vpop.f32.mrb[40].mxu1 }
 0x5b2   :  { %v10141_v29 = vadd.f32 %v4085_v45, %v10123_v20  ;;  %v4087_v48 = vpop.f32.mrb[41].mxu1 }
 0x5b3   :  { %v10144_v36 = vadd.f32 %v4087_v48, %v10126_v43  ;;  %v4089_v3 = vpop.f32.mrb[42].mxu1 }
 0x5b4   :  { %11216 = vst [vmem:[#allocation27_spill] sm:$0xff] %v10141_v29  ;;  %v10147_v59 = vadd.f32 %v4089_v3, %v10123_v20  ;;  %v4091_v19 = vpop.f32.mrb[43].mxu1 }
 0x5b5   :  { %11217 = vst [vmem:[#allocation28_spill] sm:$0xff] %v10144_v36  ;;  %v10150_v61 = vadd.f32 %v4091_v19, %v10126_v43 }
 0x5b6   :  { %11218 = vst [vmem:[#allocation29_spill] sm:$0xff] %v10147_v59 }
 0x5b7   :  { %11219 = vst [vmem:[#allocation30_spill] sm:$0xff] %v10150_v61 }
 0x5b9   :  { %v4095_v4 = vpop.f32.mrb[44].mxu1 }
 0x5ba   :  { %v10153_v10 = vadd.f32 %v4095_v4, %v10123_v20  ;;  %v4097_v25 = vpop.f32.mrb[45].mxu1 }
 0x5bb   :  { %v10156_v45 = vadd.f32 %v4097_v25, %v10126_v43  ;;  %v4099_v55 = vpop.f32.mrb[46].mxu1 }
 0x5bc   :  { %11220 = vst [vmem:[#allocation31_spill] sm:$0xff] %v10153_v10  ;;  %v10159_v48 = vadd.f32 %v4099_v55, %v10123_v20  ;;  %v4101_v6 = vpop.f32.mrb[47].mxu1 }
 0x5bd   :  { %11221 = vst [vmem:[#allocation32_spill] sm:$0xff] %v10156_v45  ;;  %v10162_v3 = vadd.f32 %v4101_v6, %v10126_v43 }
 0x5be   :  { %11222 = vst [vmem:[#allocation33_spill] sm:$0xff] %v10159_v48 }
 0x5bf   :  { %11223 = vst [vmem:[#allocation34_spill] sm:$0xff] %v10162_v3 }
 0x5c1   :  { %v4105_v54 = vpop.f32.mrb[48].mxu1 }
 0x5c2   :  { %v10165_v19 = vadd.f32 %v4105_v54, %v10123_v20  ;;  %v4107_v15 = vpop.f32.mrb[49].mxu1 }
 0x5c3   :  { %v10168_v4 = vadd.f32 %v4107_v15, %v10126_v43  ;;  %v4109_v0 = vpop.f32.mrb[50].mxu1 }
 0x5c4   :  { %11224 = vst [vmem:[#allocation35_spill] sm:$0xff] %v10165_v19  ;;  %v10171_v25 = vadd.f32 %v4109_v0, %v10123_v20  ;;  %v4111_v1 = vpop.f32.mrb[51].mxu1 }
 0x5c5   :  { %11225 = vst [vmem:[#allocation36_spill] sm:$0xff] %v10168_v4  ;;  %v10174_v55 = vadd.f32 %v4111_v1, %v10126_v43 }
 0x5c6   :  { %11226 = vst [vmem:[#allocation37_spill] sm:$0xff] %v10171_v25 }
 0x5c7   :  { %11227 = vst [vmem:[#allocation38_spill] sm:$0xff] %v10174_v55 }
 0x5c9   :  { %v4115_v56 = vpop.f32.mrb[52].mxu1 }
 0x5ca   :  { %v10177_v6 = vadd.f32 %v4115_v56, %v10123_v20  ;;  %v4117_v36 = vpop.f32.mrb[53].mxu1 }
 0x5cb   :  { %v10180_v54 = vadd.f32 %v4117_v36, %v10126_v43  ;;  %v4119_v29 = vpop.f32.mrb[54].mxu1 }
 0x5cc   :  { %v10183_v15 = vadd.f32 %v4119_v29, %v10123_v20  ;;  %v4121_v49 = vpop.f32.mrb[55].mxu1 }
 0x5cd   :  { %v10186_v0 = vadd.f32 %v4121_v49, %v10126_v43 }
 0x5d1   :  { %v4125_v44 = vpop.f32.mrb[56].mxu1 }
 0x5d2   :  { %v10189_v1 = vadd.f32 %v4125_v44, %v10123_v20  ;;  %v4127_v61 = vpop.f32.mrb[57].mxu1 }
 0x5d3   :  { %v10192_v56 = vadd.f32 %v4127_v61, %v10126_v43  ;;  %v4129_v59 = vpop.f32.mrb[58].mxu1 }
 0x5d4   :  { %v10195_v36 = vadd.f32 %v4129_v59, %v10123_v20  ;;  %v4131_v34 = vpop.f32.mrb[59].mxu1 }
 0x5d5   :  { %v10198_v29 = vadd.f32 %v4131_v34, %v10126_v43 }
 0x5d9   :  { %v4135_v35 = vpop.f32.mrb[60].mxu1 }
 0x5da   :  { %v10201_v49 = vadd.f32 %v4135_v35, %v10123_v20  ;;  %v4137_v45 = vpop.f32.mrb[61].mxu1 }
 0x5db   :  { %v10204_v44 = vadd.f32 %v4137_v45, %v10126_v43  ;;  %v4139_v10 = vpop.f32.mrb[62].mxu1  ;;  %v3963_v45 = vadd.f32 %v10020_v23, %v10023_v30 }
 0x5dc   :  { %v10207_v61 = vadd.f32 %v4139_v10, %v10123_v20  ;;  %v4141_v26 = vpop.f32.mrb[63].mxu1  ;;  %v3965_v10 = vadd.f32 %v10025_v31, %v10028_v33 }
 0x5dd   :  { %v10210_v59 = vadd.f32 %v4141_v26, %v10126_v43 }
 0x5e1   :  { %v4145_v13 = vpop.f32.mrb[64].mxu1 }
 0x5e2   :  { %v10213_v34 = vadd.f32 %v4145_v13, %v10123_v20  ;;  %v4147_v3 = vpop.f32.mrb[65].mxu1 }
 0x5e3   :  { %v10216_v35 = vadd.f32 %v4147_v3, %v10126_v43  ;;  %v4149_v48 = vpop.f32.mrb[66].mxu1 }
 0x5e4   :  { %v4151_v12 = vpop.f32.mrb[67].mxu1  ;;  %v4150_v55 = vadd.f32 %v4149_v48, %v10123_v20 }
 0x5e5   :  { %v4152_v3 = vadd.f32 %v4151_v12, %v10126_v43 }
 0x5e9   :  { %v4303_v8 = vpop.f32.mrb[68].mxu1 }
 0x5ea   :  { %v4401_v4 = vadd.f32 %v4303_v8, %v3963_v45  ;;  %v4305_v26 = vpop.f32.mrb[69].mxu1 }
 0x5eb   :  { %v4402_v19 = vadd.f32 %v4305_v26, %v3965_v10  ;;  %v4307_v18 = vpop.f32.mrb[70].mxu1 }
 0x5ec   :  { %v4308_v63 = vpop.f32.mrb[71].mxu1 }
 0x5ed   :  { %8653 = vtanh.f32 %v4402_v19  ;;  %v4407_v63 = vmul.f32 0.5, %v4401_v4 }
 0x5f7   :  { %v8654_v13 = vpop.eup %8653 }
 0x5f8   :  { %4427 = vrot.lane.b32.xlu0 %v8654_v13, %s8944_s10 }
 0x5f9   :  { %v4392_v25 = vpop.f32.mrb[72].mxu1 }
 0x5fa   :  { %v4405_v23 = vadd.f32 %v4392_v25, %v4150_v55  ;;  %v4394_v30 = vpop.f32.mrb[73].mxu1 }
 0x5fb   :  { %v4406_v58 = vadd.f32 %v4394_v30, %v4152_v3  ;;  %v4396_v31 = vpop.f32.mrb[74].mxu1 }
 0x5fc   :  { %v4397_v33 = vpop.f32.mrb[75].mxu1  ;;  %v4415_v45 = vmul.f32 0.5, %v4405_v23 }
 0x5fd   :  { %8655 = vtanh.f32 %v4406_v58 }
 0x5fe   :  { %8657 = vtanh.f32 %v4407_v63 }
 0x5ff   :  { %8659 = vtanh.f32 %v4415_v45 }
 0x607   :  { %v8656_v8 = vpop.eup %8655 }
 0x608   :  { %4438 = vrot.lane.b32.xlu0 %v8656_v8, %s8944_s10  ;;  %v8658_v18 = vpop.eup %8657 }
 0x609   :  { %v4411_v20 = vmul.f32 0.5, %v8658_v18  ;;  %v8660_v12 = vpop.eup %8659  ;;  %v4408_v18 = vmul.f32 0.5, %v4402_v19 }
 0x60a   :  { %v4419_v43 = vmul.f32 0.5, %v8660_v12 }
 0x60b   :  { %v4413_v48 = vadd.f32 0.5, %v4411_v20  ;;  %v4416_v20 = vmul.f32 0.5, %v4406_v58 }
 0x60c   :  { %v4421_v25 = vadd.f32 0.5, %v4419_v43 }
 0x60d   :  { %v4425_v3 = vmul.f32 0.0, %v4413_v48 }
 0x60e   :  { %v4436_v31 = vmul.f32 0.0, %v4421_v25 }
 0x66a   :  { %v4428_v10 = vpop.permute.xlu0 %4427 }
 0x66b   :  { %v4430_v26 = vmul.f32 %v4428_v10, %v4413_v48 }
 0x66d   :  { %4432 = vrot.lane.b32.xlu1 %v4430_v26, %s8944_s10 }
 0x67a   :  { %v4439_v55 = vpop.permute.xlu0 %4438 }
 0x67b   :  { %v4441_v13 = vmul.f32 %v4439_v55, %v4421_v25  ;;  %v11228_v25 = vmov 0  }
 0x67d   :  { %4443 = vrot.lane.b32.xlu1 %v4441_v13, %s8944_s10 }
 0x6df   :  { %v4433_v30 = vpop.permute.xlu1 %4432 }
 0x6e0   :  { %v10228_v4 = vadd.f32 %v4433_v30, %v4425_v3 }
 0x6e2   :  { %8661 = vtanh.f32 %v10228_v4 }
 0x6ec   :  { %v8662_v23 = vpop.eup %8661 }
 0x6ed   :  { %4449 = vrot.lane.b32.xlu0 %v8662_v23, %s8944_s10 }
 0x6ef   :  { %v4444_v33 = vpop.permute.xlu1 %4443 }
 0x6f0   :  { %v10232_v8 = vadd.f32 %v4444_v33, %v4436_v31 }
 0x6f2   :  { %8663 = vtanh.f32 %v10232_v8 }
 0x6f3   :  { %8665 = vtanh.f32 %v4408_v18 }
 0x6f4   :  { %8667 = vtanh.f32 %v4416_v20 }
 0x6fc   :  { %v8664_v63 = vpop.eup %8663 }
 0x6fd   :  { %4456 = vrot.lane.b32.xlu1 %v8664_v63, %s8944_s10  ;;  %v8666_v45 = vpop.eup %8665 }
 0x6fe   :  { %v4412_v48 = vmul.f32 0.5, %v8666_v45  ;;  %v8668_v19 = vpop.eup %8667 }
 0x6ff   :  { %v4420_v58 = vmul.f32 0.5, %v8668_v19 }
 0x700   :  { %v4414_v10 = vadd.f32 0.5, %v4412_v48 }
 0x701   :  { %v4422_v55 = vadd.f32 0.5, %v4420_v58 }
 0x75f   :  { %v4450_v26 = vpop.permute.xlu0 %4449 }
 0x760   :  { %v4452_v12 = vmul.f32 %v4450_v26, %v4414_v10 }
 0x762   :  { %v10236_v43 = vpack.c.bf16 %v4452_v12, %v4452_v12 }
 0x764   :  { %7426 = vmatmul.mubr.msk.bf16.vlgmr.msra.gmra.mrb[76].mxu1 %vm52_vm1, %v10236_v43 }
 0x765   :  { %4509 = vmatpush1.bf16.msra.mxu1 %v9826_v24  ;;  %4540 = vmatprep.mubr.bf16.mxu1 %v11228_v25 }
 0x766   :  { %4510 = vmatprep.subr.bf16.mxu1 %v9834_v28 }
 0x769   :  { %4511 = vmatpush1.bf16.msra.mxu1 %v9844_v32 }
 0x76a   :  { %4512 = vmatprep.subr.bf16.mxu1 %v9852_v40 }
 0x76d   :  { %4513 = vmatpush1.bf16.msra.mxu1 %v9875_v46 }
 0x76e   :  { %4514 = vmatprep.subr.bf16.mxu1 %v9886_v52 }
 0x76f   :  { %v4457_v13 = vpop.permute.xlu1 %4456 }
 0x770   :  { %v4459_v3 = vmul.f32 %v4457_v13, %v4422_v55 }
 0x771   :  { %4515 = vmatpush1.bf16.msra.mxu1 %v9894_v60 }
 0x772   :  { %v10248_v30 = vpack.c.bf16 %v4459_v3, %v4459_v3  ;;  %4614 = vmatprep.subr.bf16.mxu1 %v9918_v9 }
 0x774   :  { %7427 = vmatmul.mubr.msk.bf16.vlgmr.msra.gmra.mrb[80].mxu1 %vm52_vm1, %v10248_v30 }
 0x775   :  { %4615 = vmatpush1.bf16.msra.mxu1 %v9931_v53  ;;  %4646 = vmatprep.mubr.bf16.mxu1 %v11228_v25 }
 0x776   :  { %4616 = vmatprep.subr.bf16.mxu1 %v9936_v14 }
 0x779   :  { %4617 = vmatpush1.bf16.msra.mxu1 %v9945_v47 }
 0x77a   :  { %4618 = vmatprep.subr.bf16.mxu1 %v9951_v17 }
 0x77d   :  { %4619 = vmatpush1.bf16.msra.mxu1 %v9957_v16 }
 0x77e   :  { %4620 = vmatprep.subr.bf16.mxu1 %v9963_v21 }
 0x781   :  { %4621 = vmatpush1.bf16.msra.mxu1 %v9972_v22 }
 0x782   :  { %4658 = vmatprep.subr.bf16.mxu1 %v9806_v5 }
 0x837   :  { %v4498_v23 = vpop.f32.mrb[76].mxu1 }
 0x838   :  { %v4551_v31 = vadd.f32 %v4498_v23, %v10031_v39  ;;  %v4500_v33 = vpop.f32.mrb[77].mxu1 }
 0x839   :  { %v4552_v63 = vadd.f32 %v4500_v33, %v10034_v41  ;;  %v4502_v18 = vpop.f32.mrb[78].mxu1 }
 0x83a   :  { %v4503_v45 = vpop.f32.mrb[79].mxu1  ;;  %v4557_v39 = vmul.f32 0.5, %v4551_v31 }
 0x83b   :  { %8669 = vtanh.f32 %v4552_v63 }
 0x845   :  { %v8670_v20 = vpop.eup %8669 }
 0x846   :  { %4577 = vrot.lane.b32.xlu0 %v8670_v20, %s8944_s10 }
 0x847   :  { %v4542_v48 = vpop.f32.mrb[80].mxu1 }
 0x848   :  { %v4555_v10 = vadd.f32 %v4542_v48, %v10213_v34  ;;  %v4544_v26 = vpop.f32.mrb[81].mxu1 }
 0x849   :  { %v4556_v12 = vadd.f32 %v4544_v26, %v10216_v35  ;;  %v4546_v19 = vpop.f32.mrb[82].mxu1 }
 0x84a   :  { %v4547_v58 = vpop.f32.mrb[83].mxu1  ;;  %v4565_v13 = vmul.f32 0.5, %v4555_v10 }
 0x84b   :  { %8671 = vtanh.f32 %v4556_v12 }
 0x84c   :  { %8673 = vtanh.f32 %v4557_v39 }
 0x84d   :  { %8675 = vtanh.f32 %v4565_v13  ;;  %v4558_v13 = vmul.f32 0.5, %v4552_v63 }
 0x855   :  { %v8672_v55 = vpop.eup %8671 }
 0x856   :  { %4588 = vrot.lane.b32.xlu1 %v8672_v55, %s8944_s10  ;;  %v8674_v41 = vpop.eup %8673 }
 0x857   :  { %v4561_v3 = vmul.f32 0.5, %v8674_v41  ;;  %v8676_v34 = vpop.eup %8675 }
 0x858   :  { %v4569_v45 = vmul.f32 0.5, %v8676_v34 }
 0x859   :  { %v4563_v23 = vadd.f32 0.5, %v4561_v3  ;;  %v4566_v3 = vmul.f32 0.5, %v4556_v12 }
 0x85a   :  { %v4571_v35 = vadd.f32 0.5, %v4569_v45 }
 0x85b   :  { %v4575_v26 = vmul.f32 %v4563_v23, %v10228_v4 }
 0x85c   :  { %v4586_v58 = vmul.f32 %v4571_v35, %v10232_v8 }
 0x8b8   :  { %v4578_v33 = vpop.permute.xlu0 %4577 }
 0x8b9   :  { %v4580_v18 = vmul.f32 %v4578_v33, %v4563_v23 }
 0x8bb   :  { %4582 = vrot.lane.b32.xlu0 %v4580_v18, %s8944_s10 }
 0x8c8   :  { %v4589_v20 = vpop.permute.xlu1 %4588 }
 0x8c9   :  { %v4591_v48 = vmul.f32 %v4589_v20, %v4571_v35 }
 0x8cb   :  { %4593 = vrot.lane.b32.xlu1 %v4591_v48, %s8944_s10 }
 0x92d   :  { %v4583_v31 = vpop.permute.xlu0 %4582 }
 0x92e   :  { %v10271_v19 = vadd.f32 %v4583_v31, %v4575_v26 }
 0x930   :  { %8677 = vtanh.f32 %v10271_v19 }
 0x93a   :  { %v8678_v10 = vpop.eup %8677 }
 0x93b   :  { %4599 = vrot.lane.b32.xlu0 %v8678_v10, %s8944_s10 }
 0x93d   :  { %v4594_v55 = vpop.permute.xlu1 %4593 }
 0x93e   :  { %v10276_v39 = vadd.f32 %v4594_v55, %v4586_v58 }
 0x940   :  { %8679 = vtanh.f32 %v10276_v39 }
 0x941   :  { %8681 = vtanh.f32 %v4558_v13 }
 0x942   :  { %8683 = vtanh.f32 %v4566_v3 }
 0x94a   :  { %v8680_v41 = vpop.eup %8679 }
 0x94b   :  { %4606 = vrot.lane.b32.xlu1 %v8680_v41, %s8944_s10  ;;  %v8682_v4 = vpop.eup %8681 }
 0x94c   :  { %v4562_v23 = vmul.f32 0.5, %v8682_v4  ;;  %v8684_v8 = vpop.eup %8683 }
 0x94d   :  { %v4570_v63 = vmul.f32 0.5, %v8684_v8 }
 0x94e   :  { %v4564_v33 = vadd.f32 0.5, %v4562_v23 }
 0x94f   :  { %v4572_v12 = vadd.f32 0.5, %v4570_v63 }
 0x9ad   :  { %v4600_v18 = vpop.permute.xlu0 %4599 }
 0x9ae   :  { %v4602_v34 = vmul.f32 %v4600_v18, %v4564_v33 }
 0x9b0   :  { %v10280_v45 = vpack.c.bf16 %v4602_v34, %v4602_v34 }
 0x9b2   :  { %7428 = vmatmul.mubr.msk.bf16.vlgmr.msra.gmra.mrb[84].mxu1 %vm52_vm1, %v10280_v45 }
 0x9b3   :  { %4659 = vmatpush1.bf16.msra.mxu1 %v9826_v24  ;;  %4690 = vmatprep.mubr.bf16.mxu1 %v11228_v25 }
 0x9b4   :  { %4660 = vmatprep.subr.bf16.mxu1 %v9834_v28 }
 0x9b7   :  { %4661 = vmatpush1.bf16.msra.mxu1 %v9844_v32 }
 0x9b8   :  { %4662 = vmatprep.subr.bf16.mxu1 %v9852_v40 }
 0x9bb   :  { %4663 = vmatpush1.bf16.msra.mxu1 %v9875_v46 }
 0x9bc   :  { %4664 = vmatprep.subr.bf16.mxu1 %v9886_v52 }
 0x9bd   :  { %v4607_v35 = vpop.permute.xlu1 %4606 }
 0x9be   :  { %v4609_v20 = vmul.f32 %v4607_v35, %v4572_v12 }
 0x9bf   :  { %4665 = vmatpush1.bf16.msra.mxu1 %v9894_v60 }
 0x9c0   :  { %v10292_v48 = vpack.c.bf16 %v4609_v20, %v4609_v20  ;;  %4764 = vmatprep.subr.bf16.mxu1 %v9918_v9 }
 0x9c2   :  { %7429 = vmatmul.mubr.msk.bf16.vlgmr.msra.gmra.mrb[88].mxu1 %vm52_vm1, %v10292_v48 }
 0x9c3   :  { %4765 = vmatpush1.bf16.msra.mxu1 %v9931_v53  ;;  %4796 = vmatprep.mubr.bf16.mxu1 %v11228_v25 }
 0x9c4   :  { %4766 = vmatprep.subr.bf16.mxu1 %v9936_v14 }
 0x9c7   :  { %4767 = vmatpush1.bf16.msra.mxu1 %v9945_v47 }
 0x9c8   :  { %4768 = vmatprep.subr.bf16.mxu1 %v9951_v17 }
 0x9cb   :  { %4769 = vmatpush1.bf16.msra.mxu1 %v9957_v16 }
 0x9cc   :  { %4770 = vmatprep.subr.bf16.mxu1 %v9963_v21 }
 0x9cf   :  { %4771 = vmatpush1.bf16.msra.mxu1 %v9972_v22 }
 0x9d0   :  { %4808 = vmatprep.subr.bf16.mxu1 %v9806_v5 }
 0xa85   :  { %v4648_v26 = vpop.f32.mrb[84].mxu1 }
 0xa86   :  { %v4701_v31 = vadd.f32 %v4648_v26, %v10040_v27  ;;  %v4650_v10 = vpop.f32.mrb[85].mxu1 }
 0xa87   :  { %v4702_v58 = vadd.f32 %v4650_v10, %v10046_v50  ;;  %v4652_v55 = vpop.f32.mrb[86].mxu1 }
 0xa88   :  { %v4653_v41 = vpop.f32.mrb[87].mxu1  ;;  %v4707_v27 = vmul.f32 0.5, %v4701_v31 }
 0xa89   :  { %8685 = vtanh.f32 %v4702_v58 }
 0xa93   :  { %v8686_v13 = vpop.eup %8685 }
 0xa94   :  { %4727 = vrot.lane.b32.xlu0 %v8686_v13, %s8944_s10 }
 0xa95   :  { %v4692_v4 = vpop.f32.mrb[88].mxu1 }
 0xa96   :  { %v4705_v3 = vadd.f32 %v4692_v4, %v10207_v61  ;;  %v4694_v23 = vpop.f32.mrb[89].mxu1 }
 0xa97   :  { %v4706_v33 = vadd.f32 %v4694_v23, %v10210_v59  ;;  %v4696_v18 = vpop.f32.mrb[90].mxu1 }
 0xa98   :  { %v4697_v5 = vpop.f32.mrb[91].mxu1  ;;  %v4715_v8 = vmul.f32 0.5, %v4705_v3 }
 0xa99   :  { %8687 = vtanh.f32 %v4706_v33 }
 0xa9a   :  { %8689 = vtanh.f32 %v4707_v27  ;;  %v4716_v27 = vmul.f32 0.5, %v4706_v33 }
 0xa9b   :  { %8691 = vtanh.f32 %v4715_v8 }
 0xaa3   :  { %v8688_v34 = vpop.eup %8687 }
 0xaa4   :  { %4738 = vrot.lane.b32.xlu1 %v8688_v34, %s8944_s10  ;;  %v8690_v50 = vpop.eup %8689  ;;  %v4708_v34 = vmul.f32 0.5, %v4702_v58 }
 0xaa5   :  { %v4711_v63 = vmul.f32 0.5, %v8690_v50  ;;  %v8692_v61 = vpop.eup %8691 }
 0xaa6   :  { %v4719_v26 = vmul.f32 0.5, %v8692_v61 }
 0xaa7   :  { %v4713_v12 = vadd.f32 0.5, %v4711_v63 }
 0xaa8   :  { %v4721_v59 = vadd.f32 0.5, %v4719_v26 }
 0xaa9   :  { %v4725_v41 = vmul.f32 %v4713_v12, %v10271_v19 }
 0xaaa   :  { %v4736_v3 = vmul.f32 %v4721_v59, %v10276_v39 }
 0xb06   :  { %v4728_v35 = vpop.permute.xlu0 %4727 }
 0xb07   :  { %v4730_v20 = vmul.f32 %v4728_v35, %v4713_v12 }
 0xb09   :  { %4732 = vrot.lane.b32.xlu0 %v4730_v20, %s8944_s10 }
 0xb16   :  { %v4739_v10 = vpop.permute.xlu1 %4738 }
 0xb17   :  { %v4741_v55 = vmul.f32 %v4739_v10, %v4721_v59 }
 0xb19   :  { %4743 = vrot.lane.b32.xlu1 %v4741_v55, %s8944_s10 }
 0xb7b   :  { %v4733_v31 = vpop.permute.xlu0 %4732 }
 0xb7c   :  { %v10315_v13 = vadd.f32 %v4733_v31, %v4725_v41 }
 0xb7e   :  { %8693 = vtanh.f32 %v10315_v13 }
 0xb88   :  { %v8694_v4 = vpop.eup %8693 }
 0xb89   :  { %4749 = vrot.lane.b32.xlu0 %v8694_v4, %s8944_s10 }
 0xb8b   :  { %v4744_v23 = vpop.permute.xlu1 %4743 }
 0xb8c   :  { %v10320_v18 = vadd.f32 %v4744_v23, %v4736_v3 }
 0xb8e   :  { %8695 = vtanh.f32 %v10320_v18 }
 0xb8f   :  { %8697 = vtanh.f32 %v4708_v34 }
 0xb90   :  { %8699 = vtanh.f32 %v4716_v27 }
 0xb98   :  { %v8696_v5 = vpop.eup %8695 }
 0xb99   :  { %4756 = vrot.lane.b32.xlu1 %v8696_v5, %s8944_s10  ;;  %v8698_v19 = vpop.eup %8697 }
 0xb9a   :  { %v4712_v50 = vmul.f32 0.5, %v8698_v19  ;;  %v8700_v39 = vpop.eup %8699 }
 0xb9b   :  { %v4720_v58 = vmul.f32 0.5, %v8700_v39 }
 0xb9c   :  { %v4714_v8 = vadd.f32 0.5, %v4712_v50 }
 0xb9d   :  { %v4722_v33 = vadd.f32 0.5, %v4720_v58 }
 0xbfb   :  { %v4750_v63 = vpop.permute.xlu0 %4749 }
 0xbfc   :  { %v4752_v12 = vmul.f32 %v4750_v63, %v4714_v8 }
 0xbfe   :  { %v10324_v35 = vpack.c.bf16 %v4752_v12, %v4752_v12 }
 0xc00   :  { %7430 = vmatmul.mubr.msk.bf16.vlgmr.msra.gmra.mrb[92].mxu1 %vm52_vm1, %v10324_v35 }
 0xc01   :  { %4809 = vmatpush1.bf16.msra.mxu1 %v9826_v24  ;;  %4840 = vmatprep.mubr.bf16.mxu1 %v11228_v25 }
 0xc02   :  { %4810 = vmatprep.subr.bf16.mxu1 %v9834_v28 }
 0xc05   :  { %4811 = vmatpush1.bf16.msra.mxu1 %v9844_v32 }
 0xc06   :  { %4812 = vmatprep.subr.bf16.mxu1 %v9852_v40 }
 0xc09   :  { %4813 = vmatpush1.bf16.msra.mxu1 %v9875_v46 }
 0xc0a   :  { %4814 = vmatprep.subr.bf16.mxu1 %v9886_v52 }
 0xc0b   :  { %v4757_v20 = vpop.permute.xlu1 %4756 }
 0xc0c   :  { %v4759_v61 = vmul.f32 %v4757_v20, %v4722_v33 }
 0xc0d   :  { %4815 = vmatpush1.bf16.msra.mxu1 %v9894_v60 }
 0xc0e   :  { %v10336_v24 = vpack.c.bf16 %v4759_v61, %v4759_v61  ;;  %4914 = vmatprep.subr.bf16.mxu1 %v9918_v9 }
 0xc10   :  { %7431 = vmatmul.mubr.msk.bf16.vlgmr.msra.gmra.mrb[96].mxu1 %vm52_vm1, %v10336_v24 }
 0xc11   :  { %4915 = vmatpush1.bf16.msra.mxu1 %v9931_v53  ;;  %4946 = vmatprep.mubr.bf16.mxu1 %v11228_v25 }
 0xc12   :  { %4916 = vmatprep.subr.bf16.mxu1 %v9936_v14 }
 0xc15   :  { %4917 = vmatpush1.bf16.msra.mxu1 %v9945_v47 }
 0xc16   :  { %4918 = vmatprep.subr.bf16.mxu1 %v9951_v17 }
 0xc19   :  { %4919 = vmatpush1.bf16.msra.mxu1 %v9957_v16 }
 0xc1a   :  { %4920 = vmatprep.subr.bf16.mxu1 %v9963_v21 }
 0xc1d   :  { %4921 = vmatpush1.bf16.msra.mxu1 %v9972_v22 }
 0xc1e   :  { %5064 = vmatprep.subr.bf16.mxu1 %v9918_v9 }
 0xcd3   :  { %v4798_v28 = vpop.f32.mrb[92].mxu1 }
 0xcd4   :  { %v4851_v32 = vadd.f32 %v4798_v28, %v10052_v57  ;;  %v4800_v40 = vpop.f32.mrb[93].mxu1 }
 0xcd5   :  { %v4852_v46 = vadd.f32 %v4800_v40, %v10058_v38  ;;  %v4802_v52 = vpop.f32.mrb[94].mxu1 }
 0xcd6   :  { %v4803_v60 = vpop.f32.mrb[95].mxu1  ;;  %v4857_v38 = vmul.f32 0.5, %v4851_v32 }
 0xce3   :  { %v4842_v26 = vpop.f32.mrb[96].mxu1 }
 0xce4   :  { %v4855_v59 = vadd.f32 %v4842_v26, %v10201_v49  ;;  %v4844_v10 = vpop.f32.mrb[97].mxu1 }
 0xce5   :  { %v4856_v55 = vadd.f32 %v4844_v10, %v10204_v44  ;;  %v4846_v41 = vpop.f32.mrb[98].mxu1 }
 0xce6   :  { %v4847_v31 = vpop.f32.mrb[99].mxu1  ;;  %v4865_v57 = vmul.f32 0.5, %v4855_v59 }
 0xce7   :  { %8701 = vtanh.f32 %v4856_v55  ;;  %v4866_v32 = vmul.f32 0.5, %v4856_v55 }
 0xce8   :  { %8703 = vtanh.f32 %v4852_v46 }
 0xce9   :  { %8705 = vtanh.f32 %v4865_v57  ;;  %v10384_v57 = vld [vmem:[%s11187_s9 + $0x14] ss:$8 sps:$4 sm:$0xff]  }
 0xcea   :  { %8707 = vtanh.f32 %v4857_v38  ;;  %v10393_v38 = vld [vmem:[%s11187_s9 + $0x10] ss:$8 sps:$4 sm:$0xff]  }
 0xcf1   :  { %v8702_v4 = vpop.eup %8701 }
 0xcf2   :  { %4888 = vrot.lane.b32.xlu0 %v8702_v4, %s8944_s10  ;;  %v8704_v9 = vpop.eup %8703 }
 0xcf3   :  { %v8706_v3 = vpop.eup %8705 }
 0xcf4   :  { %v4869_v23 = vmul.f32 0.5, %v8706_v3  ;;  %v8708_v49 = vpop.eup %8707  ;;  %v10400_v3 = vld [vmem:[%s11187_s9 + $0x24] ss:$8 sps:$4 sm:$0xff]  }
 0xcf5   :  { %v4861_v34 = vmul.f32 0.5, %v8708_v49 }
 0xcf6   :  { %4877 = vrot.lane.b32.xlu0 %v8704_v9, %s8944_s10  ;;  %v4871_v5 = vadd.f32 0.5, %v4869_v23 }
 0xcf7   :  { %v4863_v27 = vadd.f32 0.5, %v4861_v34 }
 0xcf8   :  { %v4886_v63 = vmul.f32 %v4871_v5, %v10320_v18  ;;  %v4858_v18 = vmul.f32 0.5, %v4852_v46  ;;  %v10375_v46 = vld [vmem:[%s11187_s9] ss:$8 sps:$4 sm:$0xff]  }
 0xcf9   :  { %v4875_v58 = vmul.f32 %v4863_v27, %v10315_v13 }
 0xd64   :  { %v4889_v44 = vpop.permute.xlu0 %4888 }
 0xd65   :  { %v4891_v19 = vmul.f32 %v4889_v44, %v4871_v5 }
 0xd67   :  { %4893 = vrot.lane.b32.xlu1 %v4891_v19, %s8944_s10 }
 0xd68   :  { %v4878_v50 = vpop.permute.xlu0 %4877 }
 0xd69   :  { %v4880_v8 = vmul.f32 %v4878_v50, %v4863_v27 }
 0xd6b   :  { %4882 = vrot.lane.b32.xlu0 %v4880_v8, %s8944_s10 }
 0xdd9   :  { %v4894_v12 = vpop.permute.xlu1 %4893 }
 0xdda   :  { %v10359_v39 = vadd.f32 %v4894_v12, %v4886_v63 }
 0xddc   :  { %8709 = vtanh.f32 %v10359_v39 }
 0xddd   :  { %v4883_v33 = vpop.permute.xlu0 %4882 }
 0xdde   :  { %v10363_v20 = vadd.f32 %v4883_v33, %v4875_v58 }
 0xde0   :  { %8711 = vtanh.f32 %v10363_v20 }
 0xde1   :  { %8713 = vtanh.f32 %v4866_v32 }
 0xde2   :  { %8715 = vtanh.f32 %v4858_v18 }
 0xde6   :  { %v8710_v61 = vpop.eup %8709 }
 0xde7   :  { %4906 = vrot.lane.b32.xlu1 %v8710_v61, %s8944_s10 }
 0xdea   :  { %v8712_v28 = vpop.eup %8711 }
 0xdeb   :  { %4899 = vrot.lane.b32.xlu1 %v8712_v28, %s8944_s10  ;;  %v8714_v40 = vpop.eup %8713 }
 0xdec   :  { %v4870_v52 = vmul.f32 0.5, %v8714_v40  ;;  %v8716_v60 = vpop.eup %8715 }
 0xded   :  { %v4862_v13 = vmul.f32 0.5, %v8716_v60 }
 0xdee   :  { %v4872_v26 = vadd.f32 0.5, %v4870_v52 }
 0xdef   :  { %v4864_v31 = vadd.f32 0.5, %v4862_v13 }
 0xe59   :  { %v4907_v59 = vpop.permute.xlu1 %4906 }
 0xe5a   :  { %v4909_v10 = vmul.f32 %v4907_v59, %v4872_v26 }
 0xe5c   :  { %v10368_v41 = vpack.c.bf16 %v4909_v10, %v4909_v10 }
 0xe5d   :  { %v4900_v4 = vpop.permute.xlu1 %4899 }
 0xe5e   :  { %v4902_v9 = vmul.f32 %v4900_v4, %v4864_v31  ;;  %7433 = vmatmul.mubr.msk.bf16.vlgmr.msra.gmra.mrb[44].mxu0 %vm52_vm1, %v10368_v41 }
 0xe5f   :  { %5109 = vmatpush1.bf16.msra.mxu0 %v10375_v46  ;;  %5140 = vmatprep.mubr.bf16.mxu0 %v11228_v25 }
 0xe60   :  { %v10379_v55 = vpack.c.bf16 %v4902_v9, %v4902_v9  ;;  %5110 = vmatprep.subr.bf16.mxu0 %v10384_v57 }
 0xe62   :  { %7432 = vmatmul.mubr.msk.bf16.vlgmr.msra.gmra.mrb[100].mxu1 %vm52_vm1, %v10379_v55 }
 0xe63   :  { %5065 = vmatpush1.bf16.msra.mxu1 %v9931_v53  ;;  %5111 = vmatpush1.bf16.msra.mxu0 %v10393_v38  ;;  %v10408_v53 = vld [vmem:[%s11187_s9 + $0x20] ss:$8 sps:$4 sm:$0xff]  }
 0xe64   :  { %5066 = vmatprep.subr.bf16.mxu1 %v9936_v14  ;;  %5112 = vmatprep.subr.bf16.mxu0 %v10400_v3  ;;  %v10415_v14 = vld [vmem:[%s11187_s9 + $0x34] ss:$8 sps:$4 sm:$0xff]  }
 0xe65   :  { %5096 = vmatprep.mubr.bf16.mxu1 %v11228_v25 }
 0xe67   :  { %5067 = vmatpush1.bf16.msra.mxu1 %v9945_v47  ;;  %5113 = vmatpush1.bf16.msra.mxu0 %v10408_v53  ;;  %v10422_v47 = vld [vmem:[%s11187_s9 + $0x30] ss:$8 sps:$4 sm:$0xff]  }
 0xe68   :  { %5068 = vmatprep.subr.bf16.mxu1 %v9951_v17  ;;  %5114 = vmatprep.subr.bf16.mxu0 %v10415_v14  ;;  %v10429_v17 = vld [vmem:[%s11187_s9 + $0x4] ss:$8 sps:$4 sm:$0xff]  }
 0xe6b   :  { %5069 = vmatpush1.bf16.msra.mxu1 %v9957_v16  ;;  %5115 = vmatpush1.bf16.msra.mxu0 %v10422_v47  ;;  %v10436_v16 = vld [vmem:[%s11186_s8 + $0x4] ss:$8 sps:$4 sm:$0xff]  }
 0xe6c   :  { %5070 = vmatprep.subr.bf16.mxu1 %v9963_v21  ;;  %5258 = vmatprep.subr.bf16.mxu0 %v10429_v17 }
 0xe6f   :  { %5071 = vmatpush1.bf16.msra.mxu1 %v9972_v22 }
 0xe70   :  { %5214 = vmatprep.subr.bf16.mxu1 %v10436_v16 }
 0xf31   :  { %v4992_v23 = vpop.f32.mrb[44].mxu0 }
 0xf32   :  { %v5005_v49 = vadd.f32 %v4992_v23, %v10195_v36  ;;  %v4994_v21 = vpop.f32.mrb[45].mxu0 }
 0xf33   :  { %v5006_v5 = vadd.f32 %v4994_v21, %v10198_v29  ;;  %v4996_v34 = vpop.f32.mrb[46].mxu0 }
 0xf34   :  { %v4997_v44 = vpop.f32.mrb[47].mxu0  ;;  %v5015_v36 = vmul.f32 0.5, %v5005_v49 }
 0xf35   :  { %8717 = vtanh.f32 %v5006_v5  ;;  %v4948_v19 = vpop.f32.mrb[100].mxu1  ;;  %v5016_v49 = vmul.f32 0.5, %v5006_v5 }
 0xf36   :  { %v5001_v27 = vadd.f32 %v4948_v19, %v10061_v62  ;;  %v4950_v22 = vpop.f32.mrb[101].mxu1 }
 0xf37   :  { %v5002_v50 = vadd.f32 %v4950_v22, %v10067_v2  ;;  %v4952_v8 = vpop.f32.mrb[102].mxu1 }
 0xf38   :  { %v4953_v63 = vpop.f32.mrb[103].mxu1  ;;  %v5007_v29 = vmul.f32 0.5, %v5001_v27 }
 0xf39   :  { %8719 = vtanh.f32 %v5002_v50 }
 0xf3a   :  { %8721 = vtanh.f32 %v5015_v36  ;;  %v10478_v36 = vld [vmem:[%s11186_s8 + $0x14] ss:$8 sps:$4 sm:$0xff]  }
 0xf3b   :  { %8723 = vtanh.f32 %v5007_v29  ;;  %v10486_v29 = vld [vmem:[%s11186_s8 + $0x10] ss:$8 sps:$4 sm:$0xff]  }
 0xf3f   :  { %v8718_v12 = vpop.eup %8717 }
 0xf40   :  { %5038 = vrot.lane.b32.xlu0 %v8718_v12, %s8944_s10 }
 0xf43   :  { %v8720_v58 = vpop.eup %8719 }
 0xf44   :  { %5027 = vrot.lane.b32.xlu0 %v8720_v58, %s8944_s10  ;;  %v8722_v33 = vpop.eup %8721 }
 0xf45   :  { %v5019_v61 = vmul.f32 0.5, %v8722_v33  ;;  %v8724_v28 = vpop.eup %8723  ;;  %v10493_v33 = vld [vmem:[%s11186_s8 + $0x24] ss:$8 sps:$4 sm:$0xff]  }
 0xf46   :  { %v5011_v32 = vmul.f32 0.5, %v8724_v28  ;;  %v10507_v28 = vld [vmem:[%s11186_s8 + $0x34] ss:$8 sps:$4 sm:$0xff]  }
 0xf47   :  { %v5021_v62 = vadd.f32 0.5, %v5019_v61  ;;  %v10500_v61 = vld [vmem:[%s11186_s8 + $0x20] ss:$8 sps:$4 sm:$0xff]  }
 0xf48   :  { %v5013_v40 = vadd.f32 0.5, %v5011_v32 }
 0xf49   :  { %v5036_v26 = vmul.f32 %v5021_v62, %v10359_v39  ;;  %v5008_v39 = vmul.f32 0.5, %v5002_v50  ;;  %v10471_v50 = vld [vmem:[%s11186_s8] ss:$8 sps:$4 sm:$0xff]  }
 0xf4a   :  { %v5025_v10 = vmul.f32 %v5013_v40, %v10363_v20 }
 0xfb2   :  { %v5039_v18 = vpop.permute.xlu0 %5038 }
 0xfb3   :  { %v5041_v2 = vmul.f32 %v5039_v18, %v5021_v62  ;;  %v10514_v62 = vld [vmem:[%s11186_s8 + $0x30] ss:$8 sps:$4 sm:$0xff]  }
 0xfb5   :  { %5043 = vrot.lane.b32.xlu1 %v5041_v2, %s8944_s10 }
 0xfb6   :  { %v5028_v52 = vpop.permute.xlu0 %5027 }
 0xfb7   :  { %v5030_v60 = vmul.f32 %v5028_v52, %v5013_v40 }
 0xfb9   :  { %5032 = vrot.lane.b32.xlu0 %v5030_v60, %s8944_s10 }
0x1027   :  { %v5044_v13 = vpop.permute.xlu1 %5043 }
0x1028   :  { %v10448_v59 = vadd.f32 %v5044_v13, %v5036_v26 }
0x102a   :  { %8725 = vtanh.f32 %v10448_v59 }
0x102b   :  { %v5033_v31 = vpop.permute.xlu0 %5032 }
0x102c   :  { %v10452_v4 = vadd.f32 %v5033_v31, %v5025_v10 }
0x102e   :  { %8727 = vtanh.f32 %v10452_v4 }
0x102f   :  { %8729 = vtanh.f32 %v5016_v49 }
0x1030   :  { %8731 = vtanh.f32 %v5008_v39 }
0x1034   :  { %v8726_v9 = vpop.eup %8725 }
0x1035   :  { %5056 = vrot.lane.b32.xlu1 %v8726_v9, %s8944_s10 }
0x1038   :  { %v8728_v23 = vpop.eup %8727 }
0x1039   :  { %5049 = vrot.lane.b32.xlu1 %v8728_v23, %s8944_s10  ;;  %v8730_v21 = vpop.eup %8729 }
0x103a   :  { %v5020_v34 = vmul.f32 0.5, %v8730_v21  ;;  %v8732_v44 = vpop.eup %8731 }
0x103b   :  { %v5012_v20 = vmul.f32 0.5, %v8732_v44 }
0x103c   :  { %v5022_v19 = vadd.f32 0.5, %v5020_v34 }
0x103d   :  { %v5014_v63 = vadd.f32 0.5, %v5012_v20 }
0x10a7   :  { %v5057_v27 = vpop.permute.xlu1 %5056 }
0x10a8   :  { %v5059_v22 = vmul.f32 %v5057_v27, %v5022_v19 }
0x10aa   :  { %v10457_v8 = vpack.c.bf16 %v5059_v22, %v5059_v22 }
0x10ab   :  { %v5050_v12 = vpop.permute.xlu1 %5049 }
0x10ac   :  { %v5052_v58 = vmul.f32 %v5050_v12, %v5014_v63  ;;  %7435 = vmatmul.mubr.msk.bf16.vlgmr.msra.gmra.mrb[48].mxu0 %vm52_vm1, %v10457_v8 }
0x10ad   :  { %5259 = vmatpush1.bf16.msra.mxu0 %v10375_v46  ;;  %5290 = vmatprep.mubr.bf16.mxu0 %v11228_v25 }
0x10ae   :  { %v10463_v5 = vpack.c.bf16 %v5052_v58, %v5052_v58  ;;  %5260 = vmatprep.subr.bf16.mxu0 %v10384_v57 }
0x10b0   :  { %7434 = vmatmul.mubr.msk.bf16.vlgmr.msra.gmra.mrb[104].mxu1 %vm52_vm1, %v10463_v5 }
0x10b1   :  { %5215 = vmatpush1.bf16.msra.mxu1 %v10471_v50  ;;  %5261 = vmatpush1.bf16.msra.mxu0 %v10393_v38 }
0x10b2   :  { %5216 = vmatprep.subr.bf16.mxu1 %v10478_v36  ;;  %5262 = vmatprep.subr.bf16.mxu0 %v10400_v3 }
0x10b3   :  { %5246 = vmatprep.mubr.bf16.mxu1 %v11228_v25 }
0x10b5   :  { %5217 = vmatpush1.bf16.msra.mxu1 %v10486_v29  ;;  %5263 = vmatpush1.bf16.msra.mxu0 %v10408_v53 }
0x10b6   :  { %5218 = vmatprep.subr.bf16.mxu1 %v10493_v33  ;;  %5264 = vmatprep.subr.bf16.mxu0 %v10415_v14 }
0x10b9   :  { %5219 = vmatpush1.bf16.msra.mxu1 %v10500_v61  ;;  %5265 = vmatpush1.bf16.msra.mxu0 %v10422_v47 }
0x10ba   :  { %5220 = vmatprep.subr.bf16.mxu1 %v10507_v28  ;;  %5408 = vmatprep.subr.bf16.mxu0 %v10429_v17 }
0x10bd   :  { %5221 = vmatpush1.bf16.msra.mxu1 %v10514_v62 }
0x10be   :  { %5364 = vmatprep.subr.bf16.mxu1 %v10436_v16 }
0x117f   :  { %v5142_v32 = vpop.f32.mrb[48].mxu0 }
0x1180   :  { %v5155_v18 = vadd.f32 %v5142_v32, %v10189_v1  ;;  %v5144_v2 = vpop.f32.mrb[49].mxu0 }
0x1181   :  { %v5156_v40 = vadd.f32 %v5144_v2, %v10192_v56  ;;  %v5146_v52 = vpop.f32.mrb[50].mxu0 }
0x1182   :  { %v5147_v60 = vpop.f32.mrb[51].mxu0  ;;  %v5165_v1 = vmul.f32 0.5, %v5155_v18 }
0x1183   :  { %8733 = vtanh.f32 %v5156_v40  ;;  %v5098_v26 = vpop.f32.mrb[104].mxu1 }
0x1184   :  { %v5151_v13 = vadd.f32 %v5098_v26, %v10073_v7  ;;  %v5100_v10 = vpop.f32.mrb[105].mxu1 }
0x1185   :  { %v5152_v31 = vadd.f32 %v5100_v10, %v10079_v11  ;;  %v5102_v9 = vpop.f32.mrb[106].mxu1 }
0x1186   :  { %v5103_v23 = vpop.f32.mrb[107].mxu1  ;;  %v5157_v56 = vmul.f32 0.5, %v5151_v13  ;;  %v5166_v13 = vmul.f32 0.5, %v5156_v40 }
0x1187   :  { %8735 = vtanh.f32 %v5152_v31 }
0x1188   :  { %8737 = vtanh.f32 %v5165_v1 }
0x1189   :  { %8739 = vtanh.f32 %v5157_v56 }
0x118d   :  { %v8734_v49 = vpop.eup %8733 }
0x118e   :  { %5188 = vrot.lane.b32.xlu0 %v8734_v49, %s8944_s10 }
0x1191   :  { %v8736_v39 = vpop.eup %8735 }
0x1192   :  { %5177 = vrot.lane.b32.xlu0 %v8736_v39, %s8944_s10  ;;  %v8738_v21 = vpop.eup %8737 }
0x1193   :  { %v5169_v34 = vmul.f32 0.5, %v8738_v21  ;;  %v8740_v44 = vpop.eup %8739 }
0x1194   :  { %v5161_v19 = vmul.f32 0.5, %v8740_v44 }
0x1195   :  { %v5171_v7 = vadd.f32 0.5, %v5169_v34 }
0x1196   :  { %v5163_v27 = vadd.f32 0.5, %v5161_v19 }
0x1197   :  { %v5186_v12 = vmul.f32 %v5171_v7, %v10448_v59  ;;  %v5158_v59 = vmul.f32 0.5, %v5152_v31 }
0x1198   :  { %v5175_v18 = vmul.f32 %v5163_v27, %v10452_v4 }
0x1200   :  { %v5189_v20 = vpop.permute.xlu0 %5188 }
0x1201   :  { %v5191_v11 = vmul.f32 %v5189_v20, %v5171_v7 }
0x1203   :  { %5193 = vrot.lane.b32.xlu1 %v5191_v11, %s8944_s10 }
0x1204   :  { %v5178_v22 = vpop.permute.xlu0 %5177 }
0x1205   :  { %v5180_v63 = vmul.f32 %v5178_v22, %v5163_v27 }
0x1207   :  { %5182 = vrot.lane.b32.xlu0 %v5180_v63, %s8944_s10 }
0x1275   :  { %v5194_v58 = vpop.permute.xlu1 %5193 }
0x1276   :  { %v10527_v32 = vadd.f32 %v5194_v58, %v5186_v12 }
0x1278   :  { %8741 = vtanh.f32 %v10527_v32 }
0x1279   :  { %v5183_v2 = vpop.permute.xlu0 %5182 }
0x127a   :  { %v10531_v52 = vadd.f32 %v5183_v2, %v5175_v18 }
0x127c   :  { %8743 = vtanh.f32 %v10531_v52 }
0x127d   :  { %8745 = vtanh.f32 %v5166_v13 }
0x127e   :  { %8747 = vtanh.f32 %v5158_v59 }
0x1282   :  { %v8742_v60 = vpop.eup %8741 }
0x1283   :  { %5206 = vrot.lane.b32.xlu1 %v8742_v60, %s8944_s10 }
0x1286   :  { %v8744_v26 = vpop.eup %8743 }
0x1287   :  { %5199 = vrot.lane.b32.xlu1 %v8744_v26, %s8944_s10  ;;  %v8746_v10 = vpop.eup %8745 }
0x1288   :  { %v5170_v9 = vmul.f32 0.5, %v8746_v10  ;;  %v8748_v23 = vpop.eup %8747 }
0x1289   :  { %v5162_v4 = vmul.f32 0.5, %v8748_v23 }
0x128a   :  { %v5172_v49 = vadd.f32 0.5, %v5170_v9 }
0x128b   :  { %v5164_v21 = vadd.f32 0.5, %v5162_v4 }
0x12f5   :  { %v5207_v39 = vpop.permute.xlu1 %5206 }
0x12f6   :  { %v5209_v1 = vmul.f32 %v5207_v39, %v5172_v49 }
0x12f8   :  { %v10536_v56 = vpack.c.bf16 %v5209_v1, %v5209_v1 }
0x12f9   :  { %v5200_v34 = vpop.permute.xlu1 %5199 }
0x12fa   :  { %v5202_v44 = vmul.f32 %v5200_v34, %v5164_v21  ;;  %7437 = vmatmul.mubr.msk.bf16.vlgmr.msra.gmra.mrb[52].mxu0 %vm52_vm1, %v10536_v56 }
0x12fb   :  { %5409 = vmatpush1.bf16.msra.mxu0 %v10375_v46  ;;  %5440 = vmatprep.mubr.bf16.mxu0 %v11228_v25 }
0x12fc   :  { %v10542_v40 = vpack.c.bf16 %v5202_v44, %v5202_v44  ;;  %5410 = vmatprep.subr.bf16.mxu0 %v10384_v57 }
0x12fe   :  { %7436 = vmatmul.mubr.msk.bf16.vlgmr.msra.gmra.mrb[108].mxu1 %vm52_vm1, %v10542_v40 }
0x12ff   :  { %5365 = vmatpush1.bf16.msra.mxu1 %v10471_v50  ;;  %5411 = vmatpush1.bf16.msra.mxu0 %v10393_v38 }
0x1300   :  { %5366 = vmatprep.subr.bf16.mxu1 %v10478_v36  ;;  %5412 = vmatprep.subr.bf16.mxu0 %v10400_v3 }
0x1301   :  { %5396 = vmatprep.mubr.bf16.mxu1 %v11228_v25 }
0x1303   :  { %5367 = vmatpush1.bf16.msra.mxu1 %v10486_v29  ;;  %5413 = vmatpush1.bf16.msra.mxu0 %v10408_v53 }
0x1304   :  { %5368 = vmatprep.subr.bf16.mxu1 %v10493_v33  ;;  %5414 = vmatprep.subr.bf16.mxu0 %v10415_v14 }
0x1307   :  { %5369 = vmatpush1.bf16.msra.mxu1 %v10500_v61  ;;  %5415 = vmatpush1.bf16.msra.mxu0 %v10422_v47 }
0x1308   :  { %5370 = vmatprep.subr.bf16.mxu1 %v10507_v28  ;;  %5558 = vmatprep.subr.bf16.mxu0 %v10429_v17 }
0x130b   :  { %5371 = vmatpush1.bf16.msra.mxu1 %v10514_v62 }
0x130c   :  { %5514 = vmatprep.subr.bf16.mxu1 %v10436_v16 }
0x13cd   :  { %v5292_v31 = vpop.f32.mrb[52].mxu0 }
0x13ce   :  { %v5305_v7 = vadd.f32 %v5292_v31, %v10183_v15  ;;  %v5294_v19 = vpop.f32.mrb[53].mxu0 }
0x13cf   :  { %v5306_v20 = vadd.f32 %v5294_v19, %v10186_v0  ;;  %v5296_v11 = vpop.f32.mrb[54].mxu0 }
0x13d0   :  { %v5297_v27 = vpop.f32.mrb[55].mxu0  ;;  %v5315_v15 = vmul.f32 0.5, %v5305_v7 }
0x13d1   :  { %8749 = vtanh.f32 %v5306_v20  ;;  %v5248_v22 = vpop.f32.mrb[108].mxu1  ;;  %v5316_v27 = vmul.f32 0.5, %v5306_v20 }
0x13d2   :  { %v5301_v63 = vadd.f32 %v5248_v22, %v10037_v42  ;;  %v5250_v12 = vpop.f32.mrb[109].mxu1 }
0x13d3   :  { %v5302_v58 = vadd.f32 %v5250_v12, %v10043_v37  ;;  %v5252_v18 = vpop.f32.mrb[110].mxu1 }
0x13d4   :  { %v5253_v2 = vpop.f32.mrb[111].mxu1  ;;  %v5307_v0 = vmul.f32 0.5, %v5301_v63 }
0x13d5   :  { %8751 = vtanh.f32 %v5302_v58 }
0x13d6   :  { %8753 = vtanh.f32 %v5315_v15 }
0x13d7   :  { %8755 = vtanh.f32 %v5307_v0 }
0x13db   :  { %v8750_v60 = vpop.eup %8749 }
0x13dc   :  { %5338 = vrot.lane.b32.xlu0 %v8750_v60, %s8944_s10 }
0x13df   :  { %v8752_v26 = vpop.eup %8751 }
0x13e0   :  { %5327 = vrot.lane.b32.xlu0 %v8752_v26, %s8944_s10  ;;  %v8754_v13 = vpop.eup %8753 }
0x13e1   :  { %v5319_v59 = vmul.f32 0.5, %v8754_v13  ;;  %v8756_v10 = vpop.eup %8755 }
0x13e2   :  { %v5311_v9 = vmul.f32 0.5, %v8756_v10 }
0x13e3   :  { %v5321_v42 = vadd.f32 0.5, %v5319_v59 }
0x13e4   :  { %v5313_v49 = vadd.f32 0.5, %v5311_v9 }
0x13e5   :  { %v5336_v1 = vmul.f32 %v5321_v42, %v10527_v32  ;;  %v5308_v32 = vmul.f32 0.5, %v5302_v58 }
0x13e6   :  { %v5325_v44 = vmul.f32 %v5313_v49, %v10531_v52 }
0x144e   :  { %v5339_v23 = vpop.permute.xlu0 %5338 }
0x144f   :  { %v5341_v37 = vmul.f32 %v5339_v23, %v5321_v42 }
0x1451   :  { %5343 = vrot.lane.b32.xlu1 %v5341_v37, %s8944_s10 }
0x1452   :  { %v5328_v4 = vpop.permute.xlu0 %5327 }
0x1453   :  { %v5330_v39 = vmul.f32 %v5328_v4, %v5313_v49 }
0x1455   :  { %5332 = vrot.lane.b32.xlu0 %v5330_v39, %s8944_s10  ;;  %v11229_v39 = vld [vmem:[#allocation6_spill] sm:$0xff] }
0x14c3   :  { %v5344_v21 = vpop.permute.xlu1 %5343 }
0x14c4   :  { %v10571_v34 = vadd.f32 %v5344_v21, %v5336_v1 }
0x14c6   :  { %8757 = vtanh.f32 %v10571_v34 }
0x14c7   :  { %v5333_v31 = vpop.permute.xlu0 %5332 }
0x14c8   :  { %v10575_v7 = vadd.f32 %v5333_v31, %v5325_v44 }
0x14ca   :  { %8759 = vtanh.f32 %v10575_v7 }
0x14cb   :  { %8761 = vtanh.f32 %v5316_v27 }
0x14cc   :  { %8763 = vtanh.f32 %v5308_v32 }
0x14d0   :  { %v8758_v19 = vpop.eup %8757 }
0x14d1   :  { %5356 = vrot.lane.b32.xlu1 %v8758_v19, %s8944_s10 }
0x14d4   :  { %v8760_v11 = vpop.eup %8759 }
0x14d5   :  { %5349 = vrot.lane.b32.xlu1 %v8760_v11, %s8944_s10  ;;  %v8762_v22 = vpop.eup %8761 }
0x14d6   :  { %v5320_v63 = vmul.f32 0.5, %v8762_v22  ;;  %v8764_v12 = vpop.eup %8763 }
0x14d7   :  { %v5312_v52 = vmul.f32 0.5, %v8764_v12 }
0x14d8   :  { %v5322_v18 = vadd.f32 0.5, %v5320_v63 }
0x14d9   :  { %v5314_v15 = vadd.f32 0.5, %v5312_v52 }
0x1543   :  { %v5357_v2 = vpop.permute.xlu1 %5356 }
0x1544   :  { %v5359_v60 = vmul.f32 %v5357_v2, %v5322_v18 }
0x1546   :  { %v10580_v26 = vpack.c.bf16 %v5359_v60, %v5359_v60 }
0x1547   :  { %v5350_v0 = vpop.permute.xlu1 %5349 }
0x1548   :  { %v5352_v13 = vmul.f32 %v5350_v0, %v5314_v15  ;;  %7439 = vmatmul.mubr.msk.bf16.vlgmr.msra.gmra.mrb[56].mxu0 %vm52_vm1, %v10580_v26 }
0x1549   :  { %5559 = vmatpush1.bf16.msra.mxu0 %v10375_v46  ;;  %5590 = vmatprep.mubr.bf16.mxu0 %v11228_v25 }
0x154a   :  { %v10586_v20 = vpack.c.bf16 %v5352_v13, %v5352_v13  ;;  %5560 = vmatprep.subr.bf16.mxu0 %v10384_v57 }
0x154c   :  { %7438 = vmatmul.mubr.msk.bf16.vlgmr.msra.gmra.mrb[112].mxu1 %vm52_vm1, %v10586_v20 }
0x154d   :  { %5515 = vmatpush1.bf16.msra.mxu1 %v10471_v50  ;;  %5561 = vmatpush1.bf16.msra.mxu0 %v10393_v38 }
0x154e   :  { %5516 = vmatprep.subr.bf16.mxu1 %v10478_v36  ;;  %5562 = vmatprep.subr.bf16.mxu0 %v10400_v3 }
0x154f   :  { %5546 = vmatprep.mubr.bf16.mxu1 %v11228_v25 }
0x1551   :  { %5517 = vmatpush1.bf16.msra.mxu1 %v10486_v29  ;;  %5563 = vmatpush1.bf16.msra.mxu0 %v10408_v53 }
0x1552   :  { %5518 = vmatprep.subr.bf16.mxu1 %v10493_v33  ;;  %5564 = vmatprep.subr.bf16.mxu0 %v10415_v14 }
0x1555   :  { %5519 = vmatpush1.bf16.msra.mxu1 %v10500_v61  ;;  %5565 = vmatpush1.bf16.msra.mxu0 %v10422_v47 }
0x1556   :  { %5520 = vmatprep.subr.bf16.mxu1 %v10507_v28  ;;  %5708 = vmatprep.subr.bf16.mxu0 %v10429_v17 }
0x1559   :  { %5521 = vmatpush1.bf16.msra.mxu1 %v10514_v62 }
0x155a   :  { %5664 = vmatprep.subr.bf16.mxu1 %v10436_v16 }
0x161b   :  { %v5442_v58 = vpop.f32.mrb[56].mxu0 }
0x161c   :  { %v5455_v59 = vadd.f32 %v5442_v58, %v10177_v6  ;;  %v5444_v10 = vpop.f32.mrb[57].mxu0 }
0x161d   :  { %v5456_v42 = vadd.f32 %v5444_v10, %v10180_v54  ;;  %v5446_v9 = vpop.f32.mrb[58].mxu0 }
0x161e   :  { %v5447_v23 = vpop.f32.mrb[59].mxu0  ;;  %v5465_v6 = vmul.f32 0.5, %v5455_v59 }
0x161f   :  { %8765 = vtanh.f32 %v5456_v42  ;;  %v5398_v37 = vpop.f32.mrb[112].mxu1  ;;  %v5466_v23 = vmul.f32 0.5, %v5456_v42 }
0x1620   :  { %v5451_v49 = vadd.f32 %v5398_v37, %v10049_v51  ;;  %v5400_v4 = vpop.f32.mrb[113].mxu1 }
0x1621   :  { %v5452_v1 = vadd.f32 %v5400_v4, %v11229_v39  ;;  %v5402_v21 = vpop.f32.mrb[114].mxu1 }
0x1622   :  { %v5403_v44 = vpop.f32.mrb[115].mxu1  ;;  %v5457_v54 = vmul.f32 0.5, %v5451_v49 }
0x1623   :  { %8767 = vtanh.f32 %v5452_v1 }
0x1624   :  { %8769 = vtanh.f32 %v5465_v6 }
0x1625   :  { %8771 = vtanh.f32 %v5457_v54 }
0x1629   :  { %v8766_v31 = vpop.eup %8765 }
0x162a   :  { %5488 = vrot.lane.b32.xlu0 %v8766_v31, %s8944_s10 }
0x162d   :  { %v8768_v19 = vpop.eup %8767 }
0x162e   :  { %5477 = vrot.lane.b32.xlu0 %v8768_v19, %s8944_s10  ;;  %v8770_v11 = vpop.eup %8769 }
0x162f   :  { %v5469_v27 = vmul.f32 0.5, %v8770_v11  ;;  %v8772_v32 = vpop.eup %8771  ;;  %v11230_v11 = vld [vmem:[#allocation37_spill] sm:$0xff] }
0x1630   :  { %v5461_v22 = vmul.f32 0.5, %v8772_v32 }
0x1631   :  { %v5471_v51 = vadd.f32 0.5, %v5469_v27 }
0x1632   :  { %v5463_v18 = vadd.f32 0.5, %v5461_v22 }
0x1633   :  { %v5486_v60 = vmul.f32 %v5471_v51, %v10571_v34  ;;  %v5458_v34 = vmul.f32 0.5, %v5452_v1 }
0x1634   :  { %v5475_v13 = vmul.f32 %v5463_v18, %v10575_v7 }
0x169c   :  { %v5489_v63 = vpop.permute.xlu0 %5488 }
0x169d   :  { %v5491_v12 = vmul.f32 %v5489_v63, %v5471_v51  ;;  %v11231_v51 = vld [vmem:[#allocation38_spill] sm:$0xff] }
0x169f   :  { %5493 = vrot.lane.b32.xlu1 %v5491_v12, %s8944_s10 }
0x16a0   :  { %v5478_v52 = vpop.permute.xlu0 %5477 }
0x16a1   :  { %v5480_v2 = vmul.f32 %v5478_v52, %v5463_v18  ;;  %v11232_v52 = vld [vmem:[#allocation7_spill] sm:$0xff] }
0x16a3   :  { %5482 = vrot.lane.b32.xlu0 %v5480_v2, %s8944_s10 }
0x1711   :  { %v5494_v15 = vpop.permute.xlu1 %5493 }
0x1712   :  { %v10615_v0 = vadd.f32 %v5494_v15, %v5486_v60  ;;  %v11233_v15 = vld [vmem:[#allocation8_spill] sm:$0xff] }
0x1714   :  { %8773 = vtanh.f32 %v10615_v0 }
0x1715   :  { %v5483_v58 = vpop.permute.xlu0 %5482 }
0x1716   :  { %v10619_v59 = vadd.f32 %v5483_v58, %v5475_v13 }
0x1718   :  { %8775 = vtanh.f32 %v10619_v59 }
0x1719   :  { %8777 = vtanh.f32 %v5466_v23 }
0x171a   :  { %8779 = vtanh.f32 %v5458_v34 }
0x171e   :  { %v8774_v10 = vpop.eup %8773 }
0x171f   :  { %5506 = vrot.lane.b32.xlu1 %v8774_v10, %s8944_s10 }
0x1722   :  { %v8776_v9 = vpop.eup %8775 }
0x1723   :  { %5499 = vrot.lane.b32.xlu1 %v8776_v9, %s8944_s10  ;;  %v8778_v37 = vpop.eup %8777 }
0x1724   :  { %v5470_v49 = vmul.f32 0.5, %v8778_v37  ;;  %v8780_v4 = vpop.eup %8779 }
0x1725   :  { %v5462_v7 = vmul.f32 0.5, %v8780_v4 }
0x1726   :  { %v5472_v39 = vadd.f32 0.5, %v5470_v49 }
0x1727   :  { %v5464_v19 = vadd.f32 0.5, %v5462_v7 }
0x1791   :  { %v5507_v21 = vpop.permute.xlu1 %5506 }
0x1792   :  { %v5509_v44 = vmul.f32 %v5507_v21, %v5472_v39 }
0x1794   :  { %v10624_v31 = vpack.c.bf16 %v5509_v44, %v5509_v44 }
0x1795   :  { %v5500_v6 = vpop.permute.xlu1 %5499 }
0x1796   :  { %v5502_v54 = vmul.f32 %v5500_v6, %v5464_v19  ;;  %7441 = vmatmul.mubr.msk.bf16.vlgmr.msra.gmra.mrb[60].mxu0 %vm52_vm1, %v10624_v31 }
0x1797   :  { %5709 = vmatpush1.bf16.msra.mxu0 %v10375_v46  ;;  %5740 = vmatprep.mubr.bf16.mxu0 %v11228_v25 }
0x1798   :  { %v10630_v42 = vpack.c.bf16 %v5502_v54, %v5502_v54  ;;  %5710 = vmatprep.subr.bf16.mxu0 %v10384_v57 }
0x179a   :  { %7440 = vmatmul.mubr.msk.bf16.vlgmr.msra.gmra.mrb[116].mxu1 %vm52_vm1, %v10630_v42 }
0x179b   :  { %5665 = vmatpush1.bf16.msra.mxu1 %v10471_v50  ;;  %5711 = vmatpush1.bf16.msra.mxu0 %v10393_v38 }
0x179c   :  { %5666 = vmatprep.subr.bf16.mxu1 %v10478_v36  ;;  %5712 = vmatprep.subr.bf16.mxu0 %v10400_v3 }
0x179d   :  { %5696 = vmatprep.mubr.bf16.mxu1 %v11228_v25 }
0x179f   :  { %5667 = vmatpush1.bf16.msra.mxu1 %v10486_v29  ;;  %5713 = vmatpush1.bf16.msra.mxu0 %v10408_v53 }
0x17a0   :  { %5668 = vmatprep.subr.bf16.mxu1 %v10493_v33  ;;  %5714 = vmatprep.subr.bf16.mxu0 %v10415_v14 }
0x17a3   :  { %5669 = vmatpush1.bf16.msra.mxu1 %v10500_v61  ;;  %5715 = vmatpush1.bf16.msra.mxu0 %v10422_v47 }
0x17a4   :  { %5670 = vmatprep.subr.bf16.mxu1 %v10507_v28  ;;  %5858 = vmatprep.subr.bf16.mxu0 %v10429_v17 }
0x17a7   :  { %5671 = vmatpush1.bf16.msra.mxu1 %v10514_v62 }
0x17a8   :  { %5814 = vmatprep.subr.bf16.mxu1 %v10436_v16 }
0x1869   :  { %v5592_v1 = vpop.f32.mrb[60].mxu0 }
0x186a   :  { %v5605_v27 = vadd.f32 %v5592_v1, %v11230_v11  ;;  %v5594_v32 = vpop.f32.mrb[61].mxu0 }
0x186b   :  { %v5606_v22 = vadd.f32 %v5594_v32, %v11231_v51  ;;  %v5596_v63 = vpop.f32.mrb[62].mxu0 }
0x186c   :  { %v5597_v12 = vpop.f32.mrb[63].mxu0  ;;  %v5615_v34 = vmul.f32 0.5, %v5605_v27 }
0x186d   :  { %8781 = vtanh.f32 %v5606_v22  ;;  %v5548_v18 = vpop.f32.mrb[116].mxu1 }
0x186e   :  { %v5601_v2 = vadd.f32 %v5548_v18, %v11232_v52  ;;  %v5550_v60 = vpop.f32.mrb[117].mxu1 }
0x186f   :  { %v5602_v13 = vadd.f32 %v5550_v60, %v11233_v15  ;;  %v5552_v58 = vpop.f32.mrb[118].mxu1 }
0x1870   :  { %v5553_v10 = vpop.f32.mrb[119].mxu1  ;;  %v5607_v37 = vmul.f32 0.5, %v5601_v2  ;;  %v5616_v2 = vmul.f32 0.5, %v5606_v22 }
0x1871   :  { %8783 = vtanh.f32 %v5602_v13 }
0x1872   :  { %8785 = vtanh.f32 %v5615_v34 }
0x1873   :  { %8787 = vtanh.f32 %v5607_v37 }
0x1877   :  { %v8782_v9 = vpop.eup %8781 }
0x1878   :  { %5638 = vrot.lane.b32.xlu0 %v8782_v9, %s8944_s10 }
0x187b   :  { %v8784_v23 = vpop.eup %8783 }
0x187c   :  { %5627 = vrot.lane.b32.xlu0 %v8784_v23, %s8944_s10  ;;  %v8786_v49 = vpop.eup %8785 }
0x187d   :  { %v5619_v4 = vmul.f32 0.5, %v8786_v49  ;;  %v8788_v39 = vpop.eup %8787 }
0x187e   :  { %v5611_v21 = vmul.f32 0.5, %v8788_v39  ;;  %v11234_v39 = vld [vmem:[#allocation35_spill] sm:$0xff] }
0x187f   :  { %v5621_v7 = vadd.f32 0.5, %v5619_v4 }
0x1880   :  { %v5613_v6 = vadd.f32 0.5, %v5611_v21 }
0x1881   :  { %v5636_v11 = vmul.f32 %v5621_v7, %v10615_v0  ;;  %v5608_v0 = vmul.f32 0.5, %v5602_v13 }
0x1882   :  { %v5625_v51 = vmul.f32 %v5613_v6, %v10619_v59 }
0x18ea   :  { %v5639_v44 = vpop.permute.xlu0 %5638 }
0x18eb   :  { %v5641_v19 = vmul.f32 %v5639_v44, %v5621_v7  ;;  %v11235_v44 = vld [vmem:[#allocation36_spill] sm:$0xff] }
0x18ed   :  { %5643 = vrot.lane.b32.xlu1 %v5641_v19, %s8944_s10 }
0x18ee   :  { %v5628_v54 = vpop.permute.xlu0 %5627 }
0x18ef   :  { %v5630_v1 = vmul.f32 %v5628_v54, %v5613_v6 }
0x18f1   :  { %5632 = vrot.lane.b32.xlu0 %v5630_v1, %s8944_s10 }
0x195f   :  { %v5644_v27 = vpop.permute.xlu1 %5643 }
0x1960   :  { %v10659_v32 = vadd.f32 %v5644_v27, %v5636_v11  ;;  %v11236_v11 = vld [vmem:[#allocation9_spill] sm:$0xff] }
0x1962   :  { %8789 = vtanh.f32 %v10659_v32 }
0x1963   :  { %v5633_v63 = vpop.permute.xlu0 %5632 }
0x1964   :  { %v10663_v12 = vadd.f32 %v5633_v63, %v5625_v51  ;;  %v11237_v63 = vld [vmem:[#allocation10_spill] sm:$0xff] }
0x1966   :  { %8791 = vtanh.f32 %v10663_v12 }
0x1967   :  { %8793 = vtanh.f32 %v5616_v2 }
0x1968   :  { %8795 = vtanh.f32 %v5608_v0 }
0x196c   :  { %v8790_v18 = vpop.eup %8789 }
0x196d   :  { %5656 = vrot.lane.b32.xlu1 %v8790_v18, %s8944_s10 }
0x1970   :  { %v8792_v52 = vpop.eup %8791 }
0x1971   :  { %5649 = vrot.lane.b32.xlu1 %v8792_v52, %s8944_s10  ;;  %v8794_v60 = vpop.eup %8793 }
0x1972   :  { %v5620_v15 = vmul.f32 0.5, %v8794_v60  ;;  %v8796_v58 = vpop.eup %8795 }
0x1973   :  { %v5612_v59 = vmul.f32 0.5, %v8796_v58 }
0x1974   :  { %v5622_v10 = vadd.f32 0.5, %v5620_v15 }
0x1975   :  { %v5614_v37 = vadd.f32 0.5, %v5612_v59 }
0x19df   :  { %v5657_v9 = vpop.permute.xlu1 %5656 }
0x19e0   :  { %v5659_v23 = vmul.f32 %v5657_v9, %v5622_v10 }
0x19e2   :  { %v10668_v34 = vpack.c.bf16 %v5659_v23, %v5659_v23 }
0x19e3   :  { %v5650_v49 = vpop.permute.xlu1 %5649 }
0x19e4   :  { %v5652_v4 = vmul.f32 %v5650_v49, %v5614_v37  ;;  %7443 = vmatmul.mubr.msk.bf16.vlgmr.msra.gmra.mrb[64].mxu0 %vm52_vm1, %v10668_v34 }
0x19e5   :  { %5859 = vmatpush1.bf16.msra.mxu0 %v10375_v46  ;;  %5890 = vmatprep.mubr.bf16.mxu0 %v11228_v25 }
0x19e6   :  { %v10674_v22 = vpack.c.bf16 %v5652_v4, %v5652_v4  ;;  %5860 = vmatprep.subr.bf16.mxu0 %v10384_v57 }
0x19e8   :  { %7442 = vmatmul.mubr.msk.bf16.vlgmr.msra.gmra.mrb[120].mxu1 %vm52_vm1, %v10674_v22 }
0x19e9   :  { %5815 = vmatpush1.bf16.msra.mxu1 %v10471_v50  ;;  %5861 = vmatpush1.bf16.msra.mxu0 %v10393_v38 }
0x19ea   :  { %5816 = vmatprep.subr.bf16.mxu1 %v10478_v36  ;;  %5862 = vmatprep.subr.bf16.mxu0 %v10400_v3 }
0x19eb   :  { %5846 = vmatprep.mubr.bf16.mxu1 %v11228_v25 }
0x19ed   :  { %5817 = vmatpush1.bf16.msra.mxu1 %v10486_v29  ;;  %5863 = vmatpush1.bf16.msra.mxu0 %v10408_v53 }
0x19ee   :  { %5818 = vmatprep.subr.bf16.mxu1 %v10493_v33  ;;  %5864 = vmatprep.subr.bf16.mxu0 %v10415_v14 }
0x19f1   :  { %5819 = vmatpush1.bf16.msra.mxu1 %v10500_v61  ;;  %5865 = vmatpush1.bf16.msra.mxu0 %v10422_v47 }
0x19f2   :  { %5820 = vmatprep.subr.bf16.mxu1 %v10507_v28  ;;  %6008 = vmatprep.subr.bf16.mxu0 %v10429_v17 }
0x19f5   :  { %5821 = vmatpush1.bf16.msra.mxu1 %v10514_v62 }
0x19f6   :  { %5964 = vmatprep.subr.bf16.mxu1 %v10436_v16 }
0x1ab7   :  { %v5742_v13 = vpop.f32.mrb[64].mxu0 }
0x1ab8   :  { %v5755_v7 = vadd.f32 %v5742_v13, %v11234_v39  ;;  %v5744_v21 = vpop.f32.mrb[65].mxu0 }
0x1ab9   :  { %v5756_v19 = vadd.f32 %v5744_v21, %v11235_v44  ;;  %v5746_v6 = vpop.f32.mrb[66].mxu0 }
0x1aba   :  { %v5747_v54 = vpop.f32.mrb[67].mxu0  ;;  %v5765_v15 = vmul.f32 0.5, %v5755_v7 }
0x1abb   :  { %8797 = vtanh.f32 %v5756_v19  ;;  %v5698_v1 = vpop.f32.mrb[120].mxu1 }
0x1abc   :  { %v5751_v27 = vadd.f32 %v5698_v1, %v11236_v11  ;;  %v5700_v51 = vpop.f32.mrb[121].mxu1 }
0x1abd   :  { %v5752_v18 = vadd.f32 %v5700_v51, %v11237_v63  ;;  %v5702_v52 = vpop.f32.mrb[122].mxu1  ;;  %v5766_v63 = vmul.f32 0.5, %v5756_v19 }
0x1abe   :  { %v5703_v2 = vpop.f32.mrb[123].mxu1  ;;  %v5757_v58 = vmul.f32 0.5, %v5751_v27 }
0x1abf   :  { %8799 = vtanh.f32 %v5752_v18 }
0x1ac0   :  { %8801 = vtanh.f32 %v5765_v15 }
0x1ac1   :  { %8803 = vtanh.f32 %v5757_v58 }
0x1ac5   :  { %v8798_v0 = vpop.eup %8797 }
0x1ac6   :  { %5788 = vrot.lane.b32.xlu0 %v8798_v0, %s8944_s10 }
0x1ac9   :  { %v8800_v60 = vpop.eup %8799 }
0x1aca   :  { %5777 = vrot.lane.b32.xlu0 %v8800_v60, %s8944_s10  ;;  %v8802_v10 = vpop.eup %8801 }
0x1acb   :  { %v5769_v59 = vmul.f32 0.5, %v8802_v10  ;;  %v8804_v9 = vpop.eup %8803 }
0x1acc   :  { %v5761_v37 = vmul.f32 0.5, %v8804_v9 }
0x1acd   :  { %v5771_v23 = vadd.f32 0.5, %v5769_v59 }
0x1ace   :  { %v5763_v13 = vadd.f32 0.5, %v5761_v37 }
0x1acf   :  { %v5786_v44 = vmul.f32 %v5771_v23, %v10659_v32  ;;  %v5758_v32 = vmul.f32 0.5, %v5752_v18 }
0x1ad0   :  { %v5775_v54 = vmul.f32 %v5763_v13, %v10663_v12 }
0x1b38   :  { %v5789_v49 = vpop.permute.xlu0 %5788 }
0x1b39   :  { %v5791_v4 = vmul.f32 %v5789_v49, %v5771_v23 }
0x1b3b   :  { %5793 = vrot.lane.b32.xlu1 %v5791_v4, %s8944_s10  ;;  %v11240_v4 = vld [vmem:[#allocation11_spill] sm:$0xff] }
0x1b3c   :  { %v5778_v39 = vpop.permute.xlu0 %5777 }
0x1b3d   :  { %v5780_v21 = vmul.f32 %v5778_v39, %v5763_v13  ;;  %v11241_v39 = vld [vmem:[#allocation12_spill] sm:$0xff] }
0x1b3f   :  { %5782 = vrot.lane.b32.xlu0 %v5780_v21, %s8944_s10 }
0x1bad   :  { %v5794_v7 = vpop.permute.xlu1 %5793 }
0x1bae   :  { %v10703_v6 = vadd.f32 %v5794_v7, %v5786_v44 }
0x1bb0   :  { %8805 = vtanh.f32 %v10703_v6 }
0x1bb1   :  { %v5783_v1 = vpop.permute.xlu0 %5782 }
0x1bb2   :  { %v10707_v11 = vadd.f32 %v5783_v1, %v5775_v54 }
0x1bb4   :  { %8807 = vtanh.f32 %v10707_v11 }
0x1bb5   :  { %8809 = vtanh.f32 %v5766_v63 }
0x1bb6   :  { %8811 = vtanh.f32 %v5758_v32 }
0x1bba   :  { %v8806_v27 = vpop.eup %8805 }
0x1bbb   :  { %5806 = vrot.lane.b32.xlu1 %v8806_v27, %s8944_s10 }
0x1bbe   :  { %v8808_v51 = vpop.eup %8807 }
0x1bbf   :  { %5799 = vrot.lane.b32.xlu1 %v8808_v51, %s8944_s10  ;;  %v8810_v52 = vpop.eup %8809 }
0x1bc0   :  { %v5770_v2 = vmul.f32 0.5, %v8810_v52  ;;  %v8812_v0 = vpop.eup %8811 }
0x1bc1   :  { %v5762_v12 = vmul.f32 0.5, %v8812_v0 }
0x1bc2   :  { %v5772_v60 = vadd.f32 0.5, %v5770_v2 }
0x1bc3   :  { %v5764_v59 = vadd.f32 0.5, %v5762_v12 }
0x1c2d   :  { %v5807_v15 = vpop.permute.xlu1 %5806 }
0x1c2e   :  { %v5809_v58 = vmul.f32 %v5807_v15, %v5772_v60 }
0x1c30   :  { %v10712_v10 = vpack.c.bf16 %v5809_v58, %v5809_v58 }
0x1c31   :  { %v5800_v9 = vpop.permute.xlu1 %5799 }
0x1c32   :  { %v5802_v23 = vmul.f32 %v5800_v9, %v5764_v59  ;;  %7445 = vmatmul.mubr.msk.bf16.vlgmr.msra.gmra.mrb[68].mxu0 %vm52_vm1, %v10712_v10 }
0x1c33   :  { %6009 = vmatpush1.bf16.msra.mxu0 %v10375_v46  ;;  %6040 = vmatprep.mubr.bf16.mxu0 %v11228_v25 }
0x1c34   :  { %v10718_v19 = vpack.c.bf16 %v5802_v23, %v5802_v23  ;;  %6010 = vmatprep.subr.bf16.mxu0 %v10384_v57  ;;  %v11238_v57 = vld [vmem:[#allocation33_spill] sm:$0xff] }
0x1c36   :  { %7444 = vmatmul.mubr.msk.bf16.vlgmr.msra.gmra.mrb[124].mxu1 %vm52_vm1, %v10718_v19 }
0x1c37   :  { %5965 = vmatpush1.bf16.msra.mxu1 %v10471_v50  ;;  %6011 = vmatpush1.bf16.msra.mxu0 %v10393_v38 }
0x1c38   :  { %5966 = vmatprep.subr.bf16.mxu1 %v10478_v36  ;;  %6012 = vmatprep.subr.bf16.mxu0 %v10400_v3 }
0x1c39   :  { %5996 = vmatprep.mubr.bf16.mxu1 %v11228_v25 }
0x1c3b   :  { %5967 = vmatpush1.bf16.msra.mxu1 %v10486_v29  ;;  %6013 = vmatpush1.bf16.msra.mxu0 %v10408_v53  ;;  %v11239_v53 = vld [vmem:[#allocation34_spill] sm:$0xff] }
0x1c3c   :  { %5968 = vmatprep.subr.bf16.mxu1 %v10493_v33  ;;  %6014 = vmatprep.subr.bf16.mxu0 %v10415_v14 }
0x1c3f   :  { %5969 = vmatpush1.bf16.msra.mxu1 %v10500_v61  ;;  %6015 = vmatpush1.bf16.msra.mxu0 %v10422_v47 }
0x1c40   :  { %5970 = vmatprep.subr.bf16.mxu1 %v10507_v28  ;;  %6158 = vmatprep.subr.bf16.mxu0 %v10429_v17 }
0x1c43   :  { %5971 = vmatpush1.bf16.msra.mxu1 %v10514_v62 }
0x1c44   :  { %6114 = vmatprep.subr.bf16.mxu1 %v10436_v16 }
0x1d05   :  { %v5892_v46 = vpop.f32.mrb[68].mxu0 }
0x1d06   :  { %v5905_v38 = vadd.f32 %v5892_v46, %v11238_v57  ;;  %v5894_v3 = vpop.f32.mrb[69].mxu0 }
0x1d07   :  { %v5906_v18 = vadd.f32 %v5894_v3, %v11239_v53  ;;  %v5896_v37 = vpop.f32.mrb[70].mxu0 }
0x1d08   :  { %v5897_v14 = vpop.f32.mrb[71].mxu0  ;;  %v5915_v54 = vmul.f32 0.5, %v5905_v38 }
0x1d09   :  { %8813 = vtanh.f32 %v5906_v18  ;;  %v5848_v49 = vpop.f32.mrb[124].mxu1  ;;  %v5916_v53 = vmul.f32 0.5, %v5906_v18  ;;  %v10763_v18 = vld [vmem:[%s11187_s9] ss:$8 sps:$4 sm:$0xff]  }
0x1d0a   :  { %v5901_v47 = vadd.f32 %v5848_v49, %v11240_v4  ;;  %v5850_v13 = vpop.f32.mrb[125].mxu1 }
0x1d0b   :  { %v5902_v21 = vadd.f32 %v5850_v13, %v11241_v39  ;;  %v5852_v17 = vpop.f32.mrb[126].mxu1 }
0x1d0c   :  { %v5853_v44 = vpop.f32.mrb[127].mxu1  ;;  %v5907_v1 = vmul.f32 0.5, %v5901_v47 }
0x1d0d   :  { %8815 = vtanh.f32 %v5902_v21 }
0x1d0e   :  { %8817 = vtanh.f32 %v5915_v54  ;;  %v10781_v54 = vld [vmem:[%s11187_s9 + $0x10] ss:$8 sps:$4 sm:$0xff]  }
0x1d0f   :  { %8819 = vtanh.f32 %v5907_v1  ;;  %v10788_v1 = vld [vmem:[%s11187_s9 + $0x24] ss:$8 sps:$4 sm:$0xff]  }
0x1d13   :  { %v8814_v7 = vpop.eup %8813 }
0x1d14   :  { %5938 = vrot.lane.b32.xlu0 %v8814_v7, %s8944_s10 }
0x1d17   :  { %v8816_v16 = vpop.eup %8815 }
0x1d18   :  { %5927 = vrot.lane.b32.xlu0 %v8816_v16, %s8944_s10  ;;  %v8818_v27 = vpop.eup %8817  ;;  %v10772_v16 = vld [vmem:[%s11187_s9 + $0x14] ss:$8 sps:$4 sm:$0xff]  }
0x1d19   :  { %v5919_v51 = vmul.f32 0.5, %v8818_v27  ;;  %v8820_v63 = vpop.eup %8819 }
0x1d1a   :  { %v5911_v52 = vmul.f32 0.5, %v8820_v63 }
0x1d1b   :  { %v5921_v32 = vadd.f32 0.5, %v5919_v51  ;;  %v11242_v51 = vld [vmem:[#allocation31_spill] sm:$0xff] }
0x1d1c   :  { %v5913_v60 = vadd.f32 0.5, %v5911_v52 }
0x1d1d   :  { %v5936_v58 = vmul.f32 %v5921_v32, %v10703_v6  ;;  %v5908_v6 = vmul.f32 0.5, %v5902_v21 }
0x1d1e   :  { %v5925_v23 = vmul.f32 %v5913_v60, %v10707_v11 }
0x1d86   :  { %v5939_v2 = vpop.permute.xlu0 %5938 }
0x1d87   :  { %v5941_v0 = vmul.f32 %v5939_v2, %v5921_v32  ;;  %v11243_v32 = vld [vmem:[#allocation32_spill] sm:$0xff] }
0x1d89   :  { %5943 = vrot.lane.b32.xlu1 %v5941_v0, %s8944_s10 }
0x1d8a   :  { %v5928_v12 = vpop.permute.xlu0 %5927 }
0x1d8b   :  { %v5930_v15 = vmul.f32 %v5928_v12, %v5913_v60  ;;  %v11244_v12 = vld [vmem:[#allocation13_spill] sm:$0xff] }
0x1d8d   :  { %5932 = vrot.lane.b32.xlu0 %v5930_v15, %s8944_s10 }
0x1dfb   :  { %v5944_v59 = vpop.permute.xlu1 %5943 }
0x1dfc   :  { %v10747_v9 = vadd.f32 %v5944_v59, %v5936_v58  ;;  %v11245_v58 = vld [vmem:[#allocation14_spill] sm:$0xff] }
0x1dfe   :  { %8821 = vtanh.f32 %v10747_v9 }
0x1dff   :  { %v5933_v46 = vpop.permute.xlu0 %5932 }
0x1e00   :  { %v10751_v57 = vadd.f32 %v5933_v46, %v5925_v23 }
0x1e02   :  { %8823 = vtanh.f32 %v10751_v57 }
0x1e03   :  { %8825 = vtanh.f32 %v5916_v53 }
0x1e04   :  { %8827 = vtanh.f32 %v5908_v6 }
0x1e08   :  { %v8822_v38 = vpop.eup %8821 }
0x1e09   :  { %5956 = vrot.lane.b32.xlu1 %v8822_v38, %s8944_s10 }
0x1e0c   :  { %v8824_v3 = vpop.eup %8823 }
0x1e0d   :  { %5949 = vrot.lane.b32.xlu1 %v8824_v3, %s8944_s10  ;;  %v8826_v37 = vpop.eup %8825 }
0x1e0e   :  { %v5920_v14 = vmul.f32 0.5, %v8826_v37  ;;  %v8828_v49 = vpop.eup %8827 }
0x1e0f   :  { %v5912_v11 = vmul.f32 0.5, %v8828_v49 }
0x1e10   :  { %v5922_v4 = vadd.f32 0.5, %v5920_v14 }
0x1e11   :  { %v5914_v17 = vadd.f32 0.5, %v5912_v11 }
0x1e7b   :  { %v5957_v47 = vpop.permute.xlu1 %5956 }
0x1e7c   :  { %v5959_v13 = vmul.f32 %v5957_v47, %v5922_v4 }
0x1e7e   :  { %v10756_v39 = vpack.c.bf16 %v5959_v13, %v5959_v13 }
0x1e7f   :  { %v5950_v44 = vpop.permute.xlu1 %5949 }
0x1e80   :  { %v5952_v7 = vmul.f32 %v5950_v44, %v5914_v17  ;;  %7447 = vmatmul.mubr.msk.bf16.vlgmr.msra.gmra.mrb[72].mxu0 %vm52_vm1, %v10756_v39 }
0x1e81   :  { %6159 = vmatpush1.bf16.msra.mxu0 %v10763_v18  ;;  %6190 = vmatprep.mubr.bf16.mxu0 %v11228_v25 }
0x1e82   :  { %v10767_v21 = vpack.c.bf16 %v5952_v7, %v5952_v7  ;;  %6160 = vmatprep.subr.bf16.mxu0 %v10772_v16 }
0x1e84   :  { %7446 = vmatmul.mubr.msk.bf16.vlgmr.msra.gmra.mrb[128].mxu1 %vm52_vm1, %v10767_v21 }
0x1e85   :  { %6115 = vmatpush1.bf16.msra.mxu1 %v10471_v50  ;;  %6161 = vmatpush1.bf16.msra.mxu0 %v10781_v54  ;;  %v10796_v50 = vld [vmem:[%s11187_s9 + $0x20] ss:$8 sps:$4 sm:$0xff]  }
0x1e86   :  { %6116 = vmatprep.subr.bf16.mxu1 %v10478_v36  ;;  %6162 = vmatprep.subr.bf16.mxu0 %v10788_v1  ;;  %v10803_v36 = vld [vmem:[%s11187_s9 + $0x34] ss:$8 sps:$4 sm:$0xff]  }
0x1e87   :  { %6146 = vmatprep.mubr.bf16.mxu1 %v11228_v25 }
0x1e89   :  { %6117 = vmatpush1.bf16.msra.mxu1 %v10486_v29  ;;  %6163 = vmatpush1.bf16.msra.mxu0 %v10796_v50  ;;  %v10810_v29 = vld [vmem:[%s11187_s9 + $0x30] ss:$8 sps:$4 sm:$0xff]  }
0x1e8a   :  { %6118 = vmatprep.subr.bf16.mxu1 %v10493_v33  ;;  %6164 = vmatprep.subr.bf16.mxu0 %v10803_v36  ;;  %v10817_v33 = vld [vmem:[%s11187_s9 + $0x4] ss:$8 sps:$4 sm:$0xff]  }
0x1e8d   :  { %6119 = vmatpush1.bf16.msra.mxu1 %v10500_v61  ;;  %6165 = vmatpush1.bf16.msra.mxu0 %v10810_v29  ;;  %v10824_v61 = vld [vmem:[%s11186_s8 + $0x4] ss:$8 sps:$4 sm:$0xff]  }
0x1e8e   :  { %6120 = vmatprep.subr.bf16.mxu1 %v10507_v28  ;;  %6308 = vmatprep.subr.bf16.mxu0 %v10817_v33 }
0x1e91   :  { %6121 = vmatpush1.bf16.msra.mxu1 %v10514_v62 }
0x1e92   :  { %6264 = vmatprep.subr.bf16.mxu1 %v10824_v61 }
0x1f53   :  { %v6042_v27 = vpop.f32.mrb[72].mxu0 }
0x1f54   :  { %v6055_v63 = vadd.f32 %v6042_v27, %v11242_v51  ;;  %v6044_v28 = vpop.f32.mrb[73].mxu0 }
0x1f55   :  { %v6056_v52 = vadd.f32 %v6044_v28, %v11243_v32  ;;  %v6046_v2 = vpop.f32.mrb[74].mxu0 }
0x1f56   :  { %v6047_v0 = vpop.f32.mrb[75].mxu0  ;;  %v6065_v53 = vmul.f32 0.5, %v6055_v63 }
0x1f57   :  { %8829 = vtanh.f32 %v6056_v52  ;;  %v5998_v60 = vpop.f32.mrb[128].mxu1 }
0x1f58   :  { %v6051_v15 = vadd.f32 %v5998_v60, %v11244_v12  ;;  %v6000_v62 = vpop.f32.mrb[129].mxu1  ;;  %v6066_v12 = vmul.f32 0.5, %v6056_v52 }
0x1f59   :  { %v6052_v59 = vadd.f32 %v6000_v62, %v11245_v58  ;;  %v6002_v23 = vpop.f32.mrb[130].mxu1 }
0x1f5a   :  { %v6003_v46 = vpop.f32.mrb[131].mxu1  ;;  %v6057_v6 = vmul.f32 0.5, %v6051_v15 }
0x1f5b   :  { %8831 = vtanh.f32 %v6052_v59 }
0x1f5c   :  { %8833 = vtanh.f32 %v6065_v53 }
0x1f5d   :  { %8835 = vtanh.f32 %v6057_v6 }
0x1f61   :  { %v8830_v38 = vpop.eup %8829 }
0x1f62   :  { %6088 = vrot.lane.b32.xlu0 %v8830_v38, %s8944_s10 }
0x1f65   :  { %v8832_v3 = vpop.eup %8831 }
0x1f66   :  { %6077 = vrot.lane.b32.xlu0 %v8832_v3, %s8944_s10  ;;  %v8834_v37 = vpop.eup %8833 }
0x1f67   :  { %v6069_v14 = vmul.f32 0.5, %v8834_v37  ;;  %v8836_v49 = vpop.eup %8835 }
0x1f68   :  { %v6061_v11 = vmul.f32 0.5, %v8836_v49  ;;  %v10874_v49 = vld [vmem:[%s11186_s8 + $0x10] ss:$8 sps:$4 sm:$0xff]  }
0x1f69   :  { %v6071_v4 = vadd.f32 0.5, %v6069_v14  ;;  %v10866_v14 = vld [vmem:[%s11186_s8 + $0x14] ss:$8 sps:$4 sm:$0xff]  }
0x1f6a   :  { %v6063_v17 = vadd.f32 0.5, %v6061_v11  ;;  %v10888_v11 = vld [vmem:[%s11186_s8 + $0x20] ss:$8 sps:$4 sm:$0xff]  }
0x1f6b   :  { %v6086_v27 = vmul.f32 %v6071_v4, %v10747_v9  ;;  %v6058_v9 = vmul.f32 0.5, %v6052_v59  ;;  %v10859_v59 = vld [vmem:[%s11186_s8] ss:$8 sps:$4 sm:$0xff]  }
0x1f6c   :  { %v6075_v28 = vmul.f32 %v6063_v17, %v10751_v57 }
0x1fd4   :  { %v6089_v47 = vpop.permute.xlu0 %6088 }
0x1fd5   :  { %v6091_v13 = vmul.f32 %v6089_v47, %v6071_v4  ;;  %v10881_v4 = vld [vmem:[%s11186_s8 + $0x24] ss:$8 sps:$4 sm:$0xff]   ;;  %v10895_v47 = vld [vmem:[%s11186_s8 + $0x34] ss:$8 sps:$4 sm:$0xff]  }
0x1fd7   :  { %6093 = vrot.lane.b32.xlu1 %v6091_v13, %s8944_s10  ;;  %v10902_v13 = vld [vmem:[%s11186_s8 + $0x30] ss:$8 sps:$4 sm:$0xff]  }
0x1fd8   :  { %v6078_v44 = vpop.permute.xlu0 %6077 }
0x1fd9   :  { %v6080_v7 = vmul.f32 %v6078_v44, %v6063_v17  ;;  %v11246_v44 = vld [vmem:[#allocation29_spill] sm:$0xff] }
0x1fdb   :  { %6082 = vrot.lane.b32.xlu0 %v6080_v7, %s8944_s10 }
0x2049   :  { %v6094_v51 = vpop.permute.xlu1 %6093 }
0x204a   :  { %v10836_v63 = vadd.f32 %v6094_v51, %v6086_v27  ;;  %v11247_v51 = vld [vmem:[#allocation30_spill] sm:$0xff] }
0x204c   :  { %8837 = vtanh.f32 %v10836_v63 }
0x204d   :  { %v6083_v32 = vpop.permute.xlu0 %6082 }
0x204e   :  { %v10840_v2 = vadd.f32 %v6083_v32, %v6075_v28 }
0x2050   :  { %8839 = vtanh.f32 %v10840_v2 }
0x2051   :  { %8841 = vtanh.f32 %v6066_v12  ;;  %v11248_v12 = vld [vmem:[#allocation15_spill] sm:$0xff] }
0x2052   :  { %8843 = vtanh.f32 %v6058_v9 }
0x2056   :  { %v8838_v0 = vpop.eup %8837 }
0x2057   :  { %6106 = vrot.lane.b32.xlu1 %v8838_v0, %s8944_s10 }
0x205a   :  { %v8840_v60 = vpop.eup %8839 }
0x205b   :  { %6099 = vrot.lane.b32.xlu1 %v8840_v60, %s8944_s10  ;;  %v8842_v15 = vpop.eup %8841 }
0x205c   :  { %v6070_v62 = vmul.f32 0.5, %v8842_v15  ;;  %v8844_v58 = vpop.eup %8843 }
0x205d   :  { %v6062_v57 = vmul.f32 0.5, %v8844_v58 }
0x205e   :  { %v6072_v23 = vadd.f32 0.5, %v6070_v62  ;;  %v11249_v62 = vld [vmem:[#allocation16_spill] sm:$0xff] }
0x205f   :  { %v6064_v53 = vadd.f32 0.5, %v6062_v57 }
0x20c9   :  { %v6107_v46 = vpop.permute.xlu1 %6106 }
0x20ca   :  { %v6109_v38 = vmul.f32 %v6107_v46, %v6072_v23 }
0x20cc   :  { %v10845_v3 = vpack.c.bf16 %v6109_v38, %v6109_v38 }
0x20cd   :  { %v6100_v6 = vpop.permute.xlu1 %6099 }
0x20ce   :  { %v6102_v37 = vmul.f32 %v6100_v6, %v6064_v53  ;;  %7449 = vmatmul.mubr.msk.bf16.vlgmr.msra.gmra.mrb[76].mxu0 %vm52_vm1, %v10845_v3 }
0x20cf   :  { %6309 = vmatpush1.bf16.msra.mxu0 %v10763_v18  ;;  %6340 = vmatprep.mubr.bf16.mxu0 %v11228_v25 }
0x20d0   :  { %v10851_v52 = vpack.c.bf16 %v6102_v37, %v6102_v37  ;;  %6310 = vmatprep.subr.bf16.mxu0 %v10772_v16 }
0x20d2   :  { %7448 = vmatmul.mubr.msk.bf16.vlgmr.msra.gmra.mrb[132].mxu1 %vm52_vm1, %v10851_v52 }
0x20d3   :  { %6265 = vmatpush1.bf16.msra.mxu1 %v10859_v59  ;;  %6311 = vmatpush1.bf16.msra.mxu0 %v10781_v54 }
0x20d4   :  { %6266 = vmatprep.subr.bf16.mxu1 %v10866_v14  ;;  %6312 = vmatprep.subr.bf16.mxu0 %v10788_v1 }
0x20d5   :  { %6296 = vmatprep.mubr.bf16.mxu1 %v11228_v25 }
0x20d7   :  { %6267 = vmatpush1.bf16.msra.mxu1 %v10874_v49  ;;  %6313 = vmatpush1.bf16.msra.mxu0 %v10796_v50 }
0x20d8   :  { %6268 = vmatprep.subr.bf16.mxu1 %v10881_v4  ;;  %6314 = vmatprep.subr.bf16.mxu0 %v10803_v36 }
0x20db   :  { %6269 = vmatpush1.bf16.msra.mxu1 %v10888_v11  ;;  %6315 = vmatpush1.bf16.msra.mxu0 %v10810_v29 }
0x20dc   :  { %6270 = vmatprep.subr.bf16.mxu1 %v10895_v47  ;;  %6458 = vmatprep.subr.bf16.mxu0 %v10817_v33 }
0x20df   :  { %6271 = vmatpush1.bf16.msra.mxu1 %v10902_v13 }
0x20e0   :  { %6414 = vmatprep.subr.bf16.mxu1 %v10824_v61 }
0x21a1   :  { %v6192_v17 = vpop.f32.mrb[76].mxu0 }
0x21a2   :  { %v6205_v7 = vadd.f32 %v6192_v17, %v11246_v44  ;;  %v6194_v27 = vpop.f32.mrb[77].mxu0 }
0x21a3   :  { %v6206_v28 = vadd.f32 %v6194_v27, %v11247_v51  ;;  %v6196_v32 = vpop.f32.mrb[78].mxu0 }
0x21a4   :  { %v6197_v0 = vpop.f32.mrb[79].mxu0  ;;  %v6215_v53 = vmul.f32 0.5, %v6205_v7 }
0x21a5   :  { %8845 = vtanh.f32 %v6206_v28  ;;  %v6148_v60 = vpop.f32.mrb[132].mxu1 }
0x21a6   :  { %v6201_v9 = vadd.f32 %v6148_v60, %v11248_v12  ;;  %v6150_v15 = vpop.f32.mrb[133].mxu1 }
0x21a7   :  { %v6202_v58 = vadd.f32 %v6150_v15, %v11249_v62  ;;  %v6152_v23 = vpop.f32.mrb[134].mxu1 }
0x21a8   :  { %v6153_v57 = vpop.f32.mrb[135].mxu1  ;;  %v6207_v6 = vmul.f32 0.5, %v6201_v9 }
0x21a9   :  { %8847 = vtanh.f32 %v6202_v58 }
0x21aa   :  { %8849 = vtanh.f32 %v6215_v53 }
0x21ab   :  { %8851 = vtanh.f32 %v6207_v6  ;;  %v6216_v6 = vmul.f32 0.5, %v6206_v28 }
0x21af   :  { %v8846_v46 = vpop.eup %8845 }
0x21b0   :  { %6238 = vrot.lane.b32.xlu0 %v8846_v46, %s8944_s10 }
0x21b3   :  { %v8848_v38 = vpop.eup %8847 }
0x21b4   :  { %6227 = vrot.lane.b32.xlu0 %v8848_v38, %s8944_s10  ;;  %v8850_v37 = vpop.eup %8849 }
0x21b5   :  { %v6219_v17 = vmul.f32 0.5, %v8850_v37  ;;  %v8852_v44 = vpop.eup %8851 }
0x21b6   :  { %v6211_v51 = vmul.f32 0.5, %v8852_v44 }
0x21b7   :  { %v6221_v27 = vadd.f32 0.5, %v6219_v17 }
0x21b8   :  { %v6213_v60 = vadd.f32 0.5, %v6211_v51 }
0x21b9   :  { %v6236_v62 = vmul.f32 %v6221_v27, %v10836_v63  ;;  %v6208_v63 = vmul.f32 0.5, %v6202_v58 }
0x21ba   :  { %v6225_v9 = vmul.f32 %v6213_v60, %v10840_v2 }
0x2222   :  { %v6239_v32 = vpop.permute.xlu0 %6238 }
0x2223   :  { %v6241_v0 = vmul.f32 %v6239_v32, %v6221_v27 }
0x2225   :  { %6243 = vrot.lane.b32.xlu1 %v6241_v0, %s8944_s10 }
0x2226   :  { %v6228_v12 = vpop.permute.xlu0 %6227 }
0x2227   :  { %v6230_v15 = vmul.f32 %v6228_v12, %v6213_v60 }
0x2229   :  { %6232 = vrot.lane.b32.xlu0 %v6230_v15, %s8944_s10 }
0x2297   :  { %v6244_v7 = vpop.permute.xlu1 %6243 }
0x2298   :  { %v10915_v23 = vadd.f32 %v6244_v7, %v6236_v62  ;;  %v11250_v62 = vld [vmem:[#allocation27_spill] sm:$0xff] }
0x229a   :  { %8853 = vtanh.f32 %v10915_v23 }
0x229b   :  { %v6233_v57 = vpop.permute.xlu0 %6232 }
0x229c   :  { %v10919_v46 = vadd.f32 %v6233_v57, %v6225_v9  ;;  %v11251_v57 = vld [vmem:[#allocation28_spill] sm:$0xff] }
0x229e   :  { %8855 = vtanh.f32 %v10919_v46 }
0x229f   :  { %8857 = vtanh.f32 %v6216_v6 }
0x22a0   :  { %8859 = vtanh.f32 %v6208_v63 }
0x22a4   :  { %v8854_v38 = vpop.eup %8853 }
0x22a5   :  { %6256 = vrot.lane.b32.xlu1 %v8854_v38, %s8944_s10 }
0x22a8   :  { %v8856_v53 = vpop.eup %8855 }
0x22a9   :  { %6249 = vrot.lane.b32.xlu1 %v8856_v53, %s8944_s10  ;;  %v8858_v37 = vpop.eup %8857 }
0x22aa   :  { %v6220_v17 = vmul.f32 0.5, %v8858_v37  ;;  %v8860_v44 = vpop.eup %8859  ;;  %v11252_v37 = vld [vmem:[#allocation17_spill] sm:$0xff] }
0x22ab   :  { %v6212_v2 = vmul.f32 0.5, %v8860_v44 }
0x22ac   :  { %v6222_v27 = vadd.f32 0.5, %v6220_v17 }
0x22ad   :  { %v6214_v60 = vadd.f32 0.5, %v6212_v2 }
0x2317   :  { %v6257_v51 = vpop.permute.xlu1 %6256 }
0x2318   :  { %v6259_v32 = vmul.f32 %v6257_v51, %v6222_v27  ;;  %v11253_v27 = vld [vmem:[#allocation18_spill] sm:$0xff] }
0x231a   :  { %v10924_v0 = vpack.c.bf16 %v6259_v32, %v6259_v32 }
0x231b   :  { %v6250_v12 = vpop.permute.xlu1 %6249 }
0x231c   :  { %v6252_v15 = vmul.f32 %v6250_v12, %v6214_v60  ;;  %7451 = vmatmul.mubr.msk.bf16.vlgmr.msra.gmra.mrb[80].mxu0 %vm52_vm1, %v10924_v0 }
0x231d   :  { %6459 = vmatpush1.bf16.msra.mxu0 %v10763_v18  ;;  %6490 = vmatprep.mubr.bf16.mxu0 %v11228_v25 }
0x231e   :  { %v10930_v28 = vpack.c.bf16 %v6252_v15, %v6252_v15  ;;  %6460 = vmatprep.subr.bf16.mxu0 %v10772_v16 }
0x2320   :  { %7450 = vmatmul.mubr.msk.bf16.vlgmr.msra.gmra.mrb[136].mxu1 %vm52_vm1, %v10930_v28 }
0x2321   :  { %6415 = vmatpush1.bf16.msra.mxu1 %v10859_v59  ;;  %6461 = vmatpush1.bf16.msra.mxu0 %v10781_v54 }
0x2322   :  { %6416 = vmatprep.subr.bf16.mxu1 %v10866_v14  ;;  %6462 = vmatprep.subr.bf16.mxu0 %v10788_v1 }
0x2323   :  { %6446 = vmatprep.mubr.bf16.mxu1 %v11228_v25 }
0x2325   :  { %6417 = vmatpush1.bf16.msra.mxu1 %v10874_v49  ;;  %6463 = vmatpush1.bf16.msra.mxu0 %v10796_v50 }
0x2326   :  { %6418 = vmatprep.subr.bf16.mxu1 %v10881_v4  ;;  %6464 = vmatprep.subr.bf16.mxu0 %v10803_v36 }
0x2329   :  { %6419 = vmatpush1.bf16.msra.mxu1 %v10888_v11  ;;  %6465 = vmatpush1.bf16.msra.mxu0 %v10810_v29 }
0x232a   :  { %6420 = vmatprep.subr.bf16.mxu1 %v10895_v47  ;;  %6608 = vmatprep.subr.bf16.mxu0 %v10817_v33 }
0x232d   :  { %6421 = vmatpush1.bf16.msra.mxu1 %v10902_v13 }
0x232e   :  { %6564 = vmatprep.subr.bf16.mxu1 %v10824_v61 }
0x23ef   :  { %v6342_v58 = vpop.f32.mrb[80].mxu0 }
0x23f0   :  { %v6355_v7 = vadd.f32 %v6342_v58, %v11250_v62  ;;  %v6344_v9 = vpop.f32.mrb[81].mxu0 }
0x23f1   :  { %v6356_v38 = vadd.f32 %v6344_v9, %v11251_v57  ;;  %v6346_v53 = vpop.f32.mrb[82].mxu0 }
0x23f2   :  { %v6347_v6 = vpop.f32.mrb[83].mxu0  ;;  %v6365_v60 = vmul.f32 0.5, %v6355_v7 }
0x23f3   :  { %8861 = vtanh.f32 %v6356_v38  ;;  %v6298_v63 = vpop.f32.mrb[136].mxu1 }
0x23f4   :  { %v6351_v17 = vadd.f32 %v6298_v63, %v11252_v37  ;;  %v6300_v44 = vpop.f32.mrb[137].mxu1 }
0x23f5   :  { %v6352_v2 = vadd.f32 %v6300_v44, %v11253_v27  ;;  %v6302_v33 = vpop.f32.mrb[138].mxu1 }
0x23f6   :  { %v6303_v51 = vpop.f32.mrb[139].mxu1  ;;  %v6357_v12 = vmul.f32 0.5, %v6351_v17 }
0x23f7   :  { %8863 = vtanh.f32 %v6352_v2 }
0x23f8   :  { %8865 = vtanh.f32 %v6365_v60 }
0x23f9   :  { %8867 = vtanh.f32 %v6357_v12  ;;  %v6366_v12 = vmul.f32 0.5, %v6356_v38 }
0x23fd   :  { %v8862_v32 = vpop.eup %8861 }
0x23fe   :  { %6388 = vrot.lane.b32.xlu0 %v8862_v32, %s8944_s10 }
0x2401   :  { %v8864_v61 = vpop.eup %8863 }
0x2402   :  { %6377 = vrot.lane.b32.xlu0 %v8864_v61, %s8944_s10  ;;  %v8866_v15 = vpop.eup %8865 }
0x2403   :  { %v6369_v58 = vmul.f32 0.5, %v8866_v15  ;;  %v8868_v62 = vpop.eup %8867 }
0x2404   :  { %v6361_v57 = vmul.f32 0.5, %v8868_v62 }
0x2405   :  { %v6371_v9 = vadd.f32 0.5, %v6369_v58 }
0x2406   :  { %v6363_v63 = vadd.f32 0.5, %v6361_v57 }
0x2407   :  { %v6386_v27 = vmul.f32 %v6371_v9, %v10915_v23  ;;  %v6358_v23 = vmul.f32 0.5, %v6352_v2 }
0x2408   :  { %v6375_v17 = vmul.f32 %v6363_v63, %v10919_v46 }
0x2470   :  { %v6389_v53 = vpop.permute.xlu0 %6388 }
0x2471   :  { %v6391_v6 = vmul.f32 %v6389_v53, %v6371_v9 }
0x2473   :  { %6393 = vrot.lane.b32.xlu1 %v6391_v6, %s8944_s10 }
0x2474   :  { %v6378_v37 = vpop.permute.xlu0 %6377 }
0x2475   :  { %v6380_v44 = vmul.f32 %v6378_v37, %v6363_v63 }
0x2477   :  { %6382 = vrot.lane.b32.xlu0 %v6380_v44, %s8944_s10 }
0x24e5   :  { %v6394_v7 = vpop.permute.xlu1 %6393 }
0x24e6   :  { %v10959_v33 = vadd.f32 %v6394_v7, %v6386_v27 }
0x24e8   :  { %8869 = vtanh.f32 %v10959_v33 }
0x24e9   :  { %v6383_v51 = vpop.permute.xlu0 %6382 }
0x24ea   :  { %v10963_v32 = vadd.f32 %v6383_v51, %v6375_v17 }
0x24ec   :  { %8871 = vtanh.f32 %v10963_v32 }
0x24ed   :  { %8873 = vtanh.f32 %v6366_v12 }
0x24ee   :  { %8875 = vtanh.f32 %v6358_v23 }
0x24f2   :  { %v8870_v61 = vpop.eup %8869 }
0x24f3   :  { %6406 = vrot.lane.b32.xlu1 %v8870_v61, %s8944_s10 }
0x24f6   :  { %v8872_v60 = vpop.eup %8871 }
0x24f7   :  { %6399 = vrot.lane.b32.xlu1 %v8872_v60, %s8944_s10  ;;  %v8874_v15 = vpop.eup %8873 }
0x24f8   :  { %v6370_v58 = vmul.f32 0.5, %v8874_v15  ;;  %v8876_v62 = vpop.eup %8875 }
0x24f9   :  { %v6362_v46 = vmul.f32 0.5, %v8876_v62 }
0x24fa   :  { %v6372_v9 = vadd.f32 0.5, %v6370_v58 }
0x24fb   :  { %v6364_v63 = vadd.f32 0.5, %v6362_v46 }
0x2565   :  { %v6407_v57 = vpop.permute.xlu1 %6406 }
0x2566   :  { %v6409_v53 = vmul.f32 %v6407_v57, %v6372_v9 }
0x2568   :  { %v10968_v6 = vpack.c.bf16 %v6409_v53, %v6409_v53 }
0x2569   :  { %v6400_v37 = vpop.permute.xlu1 %6399 }
0x256a   :  { %v6402_v44 = vmul.f32 %v6400_v37, %v6364_v63  ;;  %7453 = vmatmul.mubr.msk.bf16.vlgmr.msra.gmra.mrb[84].mxu0 %vm52_vm1, %v10968_v6 }
0x256b   :  { %6609 = vmatpush1.bf16.msra.mxu0 %v10763_v18  ;;  %6640 = vmatprep.mubr.bf16.mxu0 %v11228_v25 }
0x256c   :  { %v10974_v38 = vpack.c.bf16 %v6402_v44, %v6402_v44  ;;  %6610 = vmatprep.subr.bf16.mxu0 %v10772_v16  ;;  %v11254_v16 = vld [vmem:[#allocation25_spill] sm:$0xff] }
0x256e   :  { %7452 = vmatmul.mubr.msk.bf16.vlgmr.msra.gmra.mrb[140].mxu1 %vm52_vm1, %v10974_v38 }
0x256f   :  { %6565 = vmatpush1.bf16.msra.mxu1 %v10859_v59  ;;  %6611 = vmatpush1.bf16.msra.mxu0 %v10781_v54 }
0x2570   :  { %6566 = vmatprep.subr.bf16.mxu1 %v10866_v14  ;;  %6612 = vmatprep.subr.bf16.mxu0 %v10788_v1  ;;  %v11255_v1 = vld [vmem:[#allocation26_spill] sm:$0xff] }
0x2571   :  { %6596 = vmatprep.mubr.bf16.mxu1 %v11228_v25 }
0x2573   :  { %6567 = vmatpush1.bf16.msra.mxu1 %v10874_v49  ;;  %6613 = vmatpush1.bf16.msra.mxu0 %v10796_v50 }
0x2574   :  { %6568 = vmatprep.subr.bf16.mxu1 %v10881_v4  ;;  %6614 = vmatprep.subr.bf16.mxu0 %v10803_v36  ;;  %v11256_v4 = vld [vmem:[#allocation19_spill] sm:$0xff] }
0x2577   :  { %6569 = vmatpush1.bf16.msra.mxu1 %v10888_v11  ;;  %6615 = vmatpush1.bf16.msra.mxu0 %v10810_v29  ;;  %v11257_v11 = vld [vmem:[#allocation20_spill] sm:$0xff] }
0x2578   :  { %6570 = vmatprep.subr.bf16.mxu1 %v10895_v47 }
0x257b   :  { %6571 = vmatpush1.bf16.msra.mxu1 %v10902_v13 }
0x263d   :  { %v6492_v18 = vpop.f32.mrb[84].mxu0 }
0x263e   :  { %v6505_v54 = vadd.f32 %v6492_v18, %v11254_v16  ;;  %v6494_v25 = vpop.f32.mrb[85].mxu0 }
0x263f   :  { %v6506_v59 = vadd.f32 %v6494_v25, %v11255_v1  ;;  %v6496_v14 = vpop.f32.mrb[86].mxu0 }
0x2640   :  { %v6497_v50 = vpop.f32.mrb[87].mxu0  ;;  %v6515_v17 = vmul.f32 0.5, %v6505_v54 }
0x2641   :  { %8877 = vtanh.f32 %v6506_v59  ;;  %v6448_v49 = vpop.f32.mrb[140].mxu1  ;;  %v6516_v1 = vmul.f32 0.5, %v6506_v59 }
0x2642   :  { %v6501_v36 = vadd.f32 %v6448_v49, %v11256_v4  ;;  %v6450_v2 = vpop.f32.mrb[141].mxu1 }
0x2643   :  { %v6502_v27 = vadd.f32 %v6450_v2, %v11257_v11  ;;  %v6452_v29 = vpop.f32.mrb[142].mxu1 }
0x2644   :  { %v6453_v7 = vpop.f32.mrb[143].mxu1  ;;  %v6507_v51 = vmul.f32 0.5, %v6501_v36 }
0x2645   :  { %8879 = vtanh.f32 %v6502_v27 }
0x2646   :  { %8881 = vtanh.f32 %v6515_v17 }
0x2647   :  { %8883 = vtanh.f32 %v6507_v51 }
0x264b   :  { %v8878_v47 = vpop.eup %8877 }
0x264c   :  { %6538 = vrot.lane.b32.xlu0 %v8878_v47, %s8944_s10 }
0x264f   :  { %v8880_v13 = vpop.eup %8879 }
0x2650   :  { %6527 = vrot.lane.b32.xlu0 %v8880_v13, %s8944_s10  ;;  %v8882_v61 = vpop.eup %8881 }
0x2651   :  { %v6519_v60 = vmul.f32 0.5, %v8882_v61  ;;  %v8884_v12 = vpop.eup %8883  ;;  %v11259_v61 = vld [vmem:[#allocation24_spill] sm:$0xff] }
0x2652   :  { %v6511_v15 = vmul.f32 0.5, %v8884_v12 }
0x2653   :  { %v6521_v23 = vadd.f32 0.5, %v6519_v60 }
0x2654   :  { %v6513_v9 = vadd.f32 0.5, %v6511_v15 }
0x2655   :  { %v6536_v53 = vmul.f32 %v6521_v23, %v10959_v33  ;;  %v6508_v33 = vmul.f32 0.5, %v6502_v27  ;;  %v11258_v27 = vld [vmem:[#allocation23_spill] sm:$0xff] }
0x2656   :  { %v6525_v44 = vmul.f32 %v6513_v9, %v10963_v32 }
0x26be   :  { %v6539_v58 = vpop.permute.xlu0 %6538 }
0x26bf   :  { %v6541_v62 = vmul.f32 %v6539_v58, %v6521_v23  ;;  %v11260_v58 = vld [vmem:[#allocation21_spill] sm:$0xff] }
0x26c1   :  { %6543 = vrot.lane.b32.xlu1 %v6541_v62, %s8944_s10 }
0x26c2   :  { %v6528_v46 = vpop.permute.xlu0 %6527 }
0x26c3   :  { %v6530_v57 = vmul.f32 %v6528_v46, %v6513_v9  ;;  %v11261_v46 = vld [vmem:[#allocation22_spill] sm:$0xff] }
0x26c5   :  { %6532 = vrot.lane.b32.xlu0 %v6530_v57, %s8944_s10 }
0x2733   :  { %v6544_v63 = vpop.permute.xlu1 %6543 }
0x2734   :  { %v11001_v37 = vadd.f32 %v6544_v63, %v6536_v53 }
0x2736   :  { %8885 = vtanh.f32 %v11001_v37 }
0x2737   :  { %v6533_v18 = vpop.permute.xlu0 %6532 }
0x2738   :  { %v11005_v16 = vadd.f32 %v6533_v18, %v6525_v44 }
0x273a   :  { %8887 = vtanh.f32 %v11005_v16 }
0x273b   :  { %8889 = vtanh.f32 %v6516_v1 }
0x273c   :  { %8891 = vtanh.f32 %v6508_v33 }
0x2740   :  { %v8886_v54 = vpop.eup %8885 }
0x2741   :  { %6556 = vrot.lane.b32.xlu1 %v8886_v54, %s8944_s10 }
0x2744   :  { %v8888_v25 = vpop.eup %8887 }
0x2745   :  { %6549 = vrot.lane.b32.xlu1 %v8888_v25, %s8944_s10  ;;  %v8890_v14 = vpop.eup %8889 }
0x2746   :  { %v6520_v50 = vmul.f32 0.5, %v8890_v14  ;;  %v8892_v49 = vpop.eup %8891 }
0x2747   :  { %v6512_v32 = vmul.f32 0.5, %v8892_v49 }
0x2748   :  { %v6522_v4 = vadd.f32 0.5, %v6520_v50 }
0x2749   :  { %v6514_v29 = vadd.f32 0.5, %v6512_v32 }
0x27b3   :  { %v6557_v36 = vpop.permute.xlu1 %6556 }
0x27b4   :  { %v6559_v2 = vmul.f32 %v6557_v36, %v6522_v4 }
0x27b6   :  { %v6560_v11 = vpack.c.bf16 %v6559_v2, %v6559_v2 }
0x27b7   :  { %v6550_v7 = vpop.permute.xlu1 %6549 }
0x27b8   :  { %v6552_v47 = vmul.f32 %v6550_v7, %v6514_v29  ;;  %7455 = vmatmul.mubr.msk.bf16.vlgmr.msra.gmra.mrb[88].mxu0 %vm52_vm1, %v6560_v11 }
0x27ba   :  { %v11011_v13 = vpack.c.bf16 %v6552_v47, %v6552_v47  ;;  %v8652_v47 = vld [vmem:[%s11190_s11 + $0x38] sm:$0xff]  }
0x27bc   :  { %7454 = vmatmul.mubr.msk.bf16.vlgmr.msra.gmra.mrb[144].mxu1 %vm52_vm1, %v11011_v13 }
0x288b   :  { %v6642_v59 = vpop.f32.mrb[88].mxu0 }
0x288c   :  { %v6655_v17 = vadd.f32 %v6642_v59, %v11258_v27  ;;  %v6644_v51 = vpop.f32.mrb[89].mxu0 }
0x288d   :  { %v11017_v60 = vadd.f32 %v6644_v51, %v11259_v61  ;;  %v6646_v12 = vpop.f32.mrb[90].mxu0 }
0x288e   :  { %v6647_v23 = vpop.f32.mrb[91].mxu0  ;;  %v6665_v54 = vmul.f32 0.5, %v6655_v17 }
0x288f   :  { %8893 = vtanh.f32 %v11017_v60  ;;  %v6598_v15 = vpop.f32.mrb[144].mxu1  ;;  %v6666_v59 = vmul.f32 0.5, %v11017_v60 }
0x2890   :  { %v6651_v62 = vadd.f32 %v6598_v15, %v11260_v58  ;;  %v6600_v9 = vpop.f32.mrb[145].mxu1 }
0x2891   :  { %v11022_v57 = vadd.f32 %v6600_v9, %v11261_v46  ;;  %v6602_v53 = vpop.f32.mrb[146].mxu1 }
0x2892   :  { %v6603_v63 = vpop.f32.mrb[147].mxu1  ;;  %v6657_v25 = vmul.f32 0.5, %v6651_v62 }
0x2893   :  { %8895 = vtanh.f32 %v11022_v57 }
0x2894   :  { %8897 = vtanh.f32 %v6665_v54 }
0x2895   :  { %8899 = vtanh.f32 %v6657_v25 }
0x2899   :  { %v8894_v44 = vpop.eup %8893 }
0x289a   :  { %6688 = vrot.lane.b32.xlu0 %v8894_v44, %s8944_s10 }
0x289d   :  { %v8896_v18 = vpop.eup %8895 }
0x289e   :  { %6677 = vrot.lane.b32.xlu0 %v8896_v18, %s8944_s10  ;;  %v8898_v1 = vpop.eup %8897 }
0x289f   :  { %v6669_v33 = vmul.f32 0.5, %v8898_v1  ;;  %v8900_v14 = vpop.eup %8899 }
0x28a0   :  { %v6661_v49 = vmul.f32 0.5, %v8900_v14 }
0x28a1   :  { %v6671_v50 = vadd.f32 0.5, %v6669_v33 }
0x28a2   :  { %v6663_v36 = vadd.f32 0.5, %v6661_v49 }
0x28a4   :  { %v6675_v58 = vmul.f32 %v6663_v36, %v11005_v16 }
0x290c   :  { %v6689_v4 = vpop.permute.xlu0 %6688 }
0x290d   :  { %v6691_v32 = vmul.f32 %v6689_v4, %v6671_v50 }
0x290f   :  { %6693 = vrot.lane.b32.xlu1 %v6691_v32, %s8944_s10 }
0x2910   :  { %v6678_v2 = vpop.permute.xlu0 %6677 }
0x2911   :  { %v6680_v29 = vmul.f32 %v6678_v2, %v6663_v36 }
0x2913   :  { %6682 = vrot.lane.b32.xlu0 %v6680_v29, %s8944_s10 }
0x2917   :  { %6727 = vrot.lane.b32.xlu0 %v10924_v0, %s8944_s10  ;;  %v6686_v0 = vmul.f32 %v6671_v50, %v11001_v37  ;;  %v8650_v37 = vld [vmem:[%s11190_s11 + $0x28] sm:$0xff]  }
0x291b   :  { %6722 = vrot.lane.b32.xlu0 %v10968_v6, %s8944_s10 }
0x291f   :  { %6747 = vrot.lane.b32.xlu0 %v10668_v34, %s8944_s10 }
0x2923   :  { %6742 = vrot.lane.b32.xlu0 %v10712_v10, %s8944_s10  ;;  %v8649_v10 = vld [vmem:[%s11190_s11 + $0x20] sm:$0xff]  }
0x2927   :  { %6767 = vrot.lane.b32.xlu0 %v10457_v8, %s8944_s10  ;;  %v8645_v8 = vld [vmem:[%s11190_s11] sm:$0xff]  }
0x2928   :  { %8207 = vmatprep.subr.bf16.mxu1 %v8645_v8 }
0x2929   :  { %8208 = vmatpush3.bf16.msra.mxu1 %v8645_v8 }
0x292b   :  { %6762 = vrot.lane.b32.xlu0 %v10536_v56, %s8944_s10  ;;  %v8648_v56 = vld [vmem:[%s11190_s11 + $0x18] sm:$0xff]  }
0x292f   :  { %6777 = vrot.lane.b32.xlu0 %v10336_v24, %s8944_s10  ;;  %v8646_v24 = vld [vmem:[%s11190_s11 + $0x8] sm:$0xff]  }
0x2930   :  { %8209 = vmatprep.subr.bf16.mxu1 %v8646_v24 }
0x2931   :  { %8210 = vmatpush3.bf16.msra.mxu1 %v8646_v24 }
0x2933   :  { %6772 = vrot.lane.b32.xlu0 %v10368_v41, %s8944_s10  ;;  %v8647_v41 = vld [vmem:[%s11190_s11 + $0x10] sm:$0xff]  }
0x2934   :  { %8211 = vmatprep.subr.bf16.mxu1 %v8647_v41 }
0x2935   :  { %8212 = vmatpush3.bf16.msra.mxu1 %v8647_v41 }
0x2936   :  { %8213 = vmatprep.subr.bf16.mxu1 %v8648_v56 }
0x2939   :  { %8214 = vmatpush3.bf16.msra.mxu1 %v8648_v56 }
0x293a   :  { %8215 = vmatprep.subr.bf16.mxu1 %v8649_v10 }
0x293d   :  { %8216 = vmatpush3.bf16.msra.mxu1 %v8649_v10 }
0x293e   :  { %8217 = vmatprep.subr.bf16.mxu1 %v8650_v37 }
0x2941   :  { %8218 = vmatpush3.bf16.msra.mxu1 %v8650_v37 }
0x2981   :  { %v6694_v6 = vpop.permute.xlu1 %6693 }
0x2982   :  { %v6696_v7 = vadd.f32 %v6694_v6, %v6686_v0 }
0x2984   :  { %8901 = vtanh.f32 %v6696_v7 }
0x2985   :  { %8903 = vtanh.f32 %v6666_v59  ;;  %v6683_v15 = vpop.permute.xlu0 %6682 }
0x2986   :  { %v6685_v62 = vadd.f32 %v6683_v15, %v6675_v58 }
0x2988   :  { %8905 = vtanh.f32 %v6685_v62 }
0x298e   :  { %v8902_v34 = vpop.eup %8901 }
0x298f   :  { %6706 = vrot.lane.b32.xlu1 %v8902_v34, %s8944_s10  ;;  %v8904_v27 = vpop.eup %8903 }
0x2990   :  { %v6670_v17 = vmul.f32 0.5, %v8904_v27 }
0x2992   :  { %v6672_v51 = vadd.f32 0.5, %v6670_v17  ;;  %v8906_v60 = vpop.eup %8905 }
0x2993   :  { %6717 = vrot.lane.b32.xlu1 %v6560_v11, %s8944_s10  ;;  %v8651_v11 = vld [vmem:[%s11190_s11 + $0x30] sm:$0xff]  }
0x2994   :  { %8219 = vmatprep.subr.bf16.mxu1 %v8651_v11 }
0x2995   :  { %8220 = vmatpush3.bf16.msra.mxu1 %v8651_v11 }
0x2996   :  { %8221 = vmatprep.subr.bf16.mxu1 %v8652_v47 }
0x2999   :  { %8222 = vmatpush3.bf16.msra.mxu1 %v8652_v47 }
0x2a01   :  { %v6707_v61 = vpop.permute.xlu1 %6706 }
0x2a02   :  { %v6709_v12 = vmul.f32 %v6707_v61, %v6672_v51  ;;  %v7456_v51 = vld [vmem:[%s11191_s12] ss:$0 sm:$0xff] }
0x2a04   :  { %v6710_v23 = vpack.c.bf16 %v6709_v12, %v6709_v12 }
0x2a05   :  { %v6718_v46 = vpop.permute.xlu1 %6717 }
0x2a06   :  { %6712 = vrot.lane.b32.xlu1 %v6710_v23, %s8944_s10 }
0x2a0a   :  { %6737 = vrot.lane.b32.xlu1 %v10756_v39, %s8944_s10  ;;  %v6728_v39 = vpop.permute.xlu0 %6727 }
0x2a0b   :  { %v6730_v63 = vsel %vm52_vm1, %v10379_v55, %v6728_v39 }
0x2a0e   :  { %6732 = vrot.lane.b32.xlu1 %v10845_v3, %s8944_s10  ;;  %v6723_v16 = vpop.permute.xlu0 %6722 }
0x2a12   :  { %6757 = vrot.lane.b32.xlu1 %v10580_v26, %s8944_s10  ;;  %v6748_v9 = vpop.permute.xlu0 %6747  ;;  %v6720_v26 = vsel %vm52_vm1, %v10280_v45, %v6718_v46 }
0x2a13   :  { %v6793_v44 = vrot.slane %v6720_v26, 4 }
0x2a16   :  { %6752 = vrot.lane.b32.xlu1 %v10624_v31, %s8944_s10  ;;  %v6743_v3 = vpop.permute.xlu0 %6742  ;;  %v6658_v31 = vmul.f32 0.5, %v11022_v57 }
0x2a17   :  { %v6745_v33 = vsel %vm52_vm1, %v10586_v20, %v6743_v3 }
0x2a18   :  { %8907 = vtanh.f32 %v6658_v31 }
0x2a1a   :  { %6699 = vrot.lane.b32.xlu1 %v8906_v60, %s8944_s10  ;;  %v6768_v53 = vpop.permute.xlu0 %6767 }
0x2a1b   :  { %v6770_v20 = vsel %vm52_vm1, %v10851_v52, %v6768_v53 }
0x2a1c   :  { %v6803_v8 = vrot.slane %v6770_v20, 4 }
0x2a1e   :  { %6787 = vrot.lane.b32.xlu1 %v10248_v30, %s8944_s10  ;;  %v6725_v30 = vsel %vm52_vm1, %v10324_v35, %v6723_v16  ;;  %v6763_v25 = vpop.permute.xlu0 %6762  ;;  %v6750_v35 = vsel %vm52_vm1, %v10630_v42, %v6748_v9 }
0x2a1f   :  { %v6799_v49 = vrot.slane %v6750_v35, 4 }
0x2a21   :  { %v6819_v36 = vsel %vm6808_vm2, %v6745_v33, %v6799_v49 }
0x2a22   :  { %6782 = vrot.lane.b32.xlu1 %v10292_v48, %s8944_s10  ;;  %v6795_v48 = vrot.slane %v6730_v63, 4  ;;  %v6778_v14 = vpop.permute.xlu0 %6777  ;;  %v8908_v2 = vpop.eup %8907 }
0x2a23   :  { %v6780_v0 = vsel %vm52_vm1, %v10974_v38, %v6778_v14  ;;  %v6662_v6 = vmul.f32 0.5, %v8908_v2 }
0x2a24   :  { %v6813_v45 = vsel %vm6808_vm2, %v6725_v30, %v6795_v48  ;;  %v6805_v41 = vrot.slane %v6780_v0, 4 }
0x2a25   :  { %v6664_v38 = vadd.f32 0.5, %v6662_v6 }
0x2a26   :  { %v6773_v29 = vpop.permute.xlu0 %6772 }
0x2a27   :  { %v6775_v24 = vsel %vm52_vm1, %v10930_v28, %v6773_v29 }
0x2a78   :  { %v6713_v18 = vpop.permute.xlu1 %6712 }
0x2a79   :  { %v6715_v54 = vsel %vm52_vm1, %v10236_v43, %v6713_v18 }
0x2a7a   :  { %v6810_v1 = vsel %vm6808_vm2, %v6715_v54, %v6793_v44 }
0x2a7b   :  { %8223 = vmatprep.mubr.bf16.mxu1 %v6810_v1 }
0x2a7c   :  { %8224 = vmatmul.mubr.bf16.vlgmr.msra.gmra.mrb[148].mxu1 %v6813_v45  ;;  %v6738_v57 = vpop.permute.xlu1 %6737 }
0x2a7d   :  { %v6740_v55 = vsel %vm52_vm1, %v10542_v40, %v6738_v57 }
0x2a7e   :  { %v6797_v43 = vrot.slane %v6740_v55, 4 }
0x2a80   :  { %v6733_v50 = vpop.permute.xlu1 %6732 }
0x2a81   :  { %v6735_v4 = vsel %vm52_vm1, %v10463_v5, %v6733_v50  ;;  %v6765_v5 = vsel %vm52_vm1, %v10767_v21, %v6763_v25  ;;  %v6828_v21 = vsel %vm6808_vm2, %v6775_v24, %v6805_v41 }
0x2a82   :  { %v6816_v32 = vsel %vm6808_vm2, %v6735_v4, %v6797_v43  ;;  %v6825_v56 = vsel %vm6808_vm2, %v6765_v5, %v6803_v8 }
0x2a83   :  { %8227 = vmatprep.mubr.bf16.mxu1 %v6816_v32 }
0x2a84   :  { %8228 = vmatmul.mubr.bf16.gmra.mrb[152].mxu1 %v6819_v36  ;;  %v6758_v40 = vpop.permute.xlu1 %6757 }
0x2a85   :  { %v6760_v42 = vsel %vm52_vm1, %v10718_v19, %v6758_v40 }
0x2a86   :  { %v6801_v7 = vrot.slane %v6760_v42, 4 }
0x2a88   :  { %v6753_v34 = vpop.permute.xlu1 %6752 }
0x2a89   :  { %v6755_v19 = vsel %vm52_vm1, %v10674_v22, %v6753_v34 }
0x2a8a   :  { %v6822_v52 = vsel %vm6808_vm2, %v6755_v19, %v6801_v7 }
0x2a8b   :  { %8231 = vmatprep.mubr.bf16.mxu1 %v6822_v52 }
0x2a8c   :  { %8232 = vmatmul.mubr.bf16.gmra.mrb[156].mxu1 %v6825_v56  ;;  %v6700_v10 = vpop.permute.xlu1 %6699 }
0x2a8d   :  { %v6702_v37 = vmul.f32 %v6700_v10, %v6664_v38  ;;  %8235 = vmatprep.mubr.bf16.mxu1 %v6828_v21 }
0x2a8f   :  { %v6703_v11 = vpack.c.bf16 %v6702_v37, %v6702_v37 }
0x2a90   :  { %v6788_v47 = vpop.permute.xlu1 %6787 }
0x2a91   :  { %v6791_v28 = vsel %vm52_vm1, %v6703_v11, %v6788_v47 }
0x2a92   :  { %v6807_v59 = vrot.slane %v6791_v28, 4 }
0x2a94   :  { %v6783_v27 = vpop.permute.xlu1 %6782 }
0x2a95   :  { %v6785_v22 = vsel %vm52_vm1, %v11011_v13, %v6783_v27 }
0x2a96   :  { %v6831_v17 = vsel %vm6808_vm2, %v6785_v22, %v6807_v59 }
0x2a97   :  { %8236 = vmatmul.mubr.bf16.gmra.mrb[160].mxu1 %v6831_v17 }
0x2b4f   :  { %v8225_v61 = vpop.f32.mrb[148].mxu1 }
0x2b50   :  { %v6947_v12 = vadd.f32 %v8225_v61, %v7456_v51  ;;  %v6938_v23 = vpop.f32.mrb[149].mxu1 }
0x2b51   :  { %v6939_v15 = vadd.f32 %v7456_v51, %v6938_v23  ;;  %v8226_v58 = vpop.f32.mrb[150].mxu1 }
0x2b52   :  { %7003 = vst [vmem:[%s11192_s13 + $0x10] sm:$0xff] %v6947_v12  ;;  %v6950_v62 = vadd.f32 %v8226_v58, %v7456_v51  ;;  %v6941_v60 = vpop.f32.mrb[151].mxu1 }
0x2b53   :  { %7001 = vst [vmem:[%s11192_s13] sm:$0xff] %v6939_v15  ;;  %v6942_v13 = vadd.f32 %v7456_v51, %v6941_v60 }
0x2b54   :  { %7004 = vst [vmem:[%s11192_s13 + $0x18] sm:$0xff] %v6950_v62 }
0x2b55   :  { %7002 = vst [vmem:[%s11192_s13 + $0x8] sm:$0xff] %v6942_v13 }
0x2b57   :  { %v8229_v39 = vpop.f32.mrb[152].mxu1 }
0x2b58   :  { %v6963_v16 = vadd.f32 %v8229_v39, %v7456_v51  ;;  %v6954_v9 = vpop.f32.mrb[153].mxu1 }
0x2b59   :  { %v6955_v3 = vadd.f32 %v7456_v51, %v6954_v9  ;;  %v8230_v46 = vpop.f32.mrb[154].mxu1 }
0x2b5a   :  { %7007 = vst [vmem:[%s11192_s13 + $0x30] sm:$0xff] %v6963_v16  ;;  %v6966_v53 = vadd.f32 %v8230_v46, %v7456_v51  ;;  %v6957_v26 = vpop.f32.mrb[155].mxu1 }
0x2b5b   :  { %7005 = vst [vmem:[%s11192_s13 + $0x20] sm:$0xff] %v6955_v3  ;;  %v6958_v31 = vadd.f32 %v7456_v51, %v6957_v26 }
0x2b5c   :  { %7008 = vst [vmem:[%s11192_s13 + $0x38] sm:$0xff] %v6966_v53 }
0x2b5d   :  { %7006 = vst [vmem:[%s11192_s13 + $0x28] sm:$0xff] %v6958_v31 }
0x2b5f   :  { %v8233_v63 = vpop.f32.mrb[156].mxu1 }
0x2b60   :  { %v6979_v30 = vadd.f32 %v8233_v63, %v7456_v51  ;;  %v6970_v44 = vpop.f32.mrb[157].mxu1 }
0x2b61   :  { %v6971_v18 = vadd.f32 %v7456_v51, %v6970_v44  ;;  %v8234_v48 = vpop.f32.mrb[158].mxu1 }
0x2b62   :  { %7011 = vst [vmem:[%s11192_s13 + $0x50] sm:$0xff] %v6979_v30  ;;  %v6982_v54 = vadd.f32 %v8234_v48, %v7456_v51  ;;  %v6973_v25 = vpop.f32.mrb[159].mxu1 }
0x2b63   :  { %7009 = vst [vmem:[%s11192_s13 + $0x40] sm:$0xff] %v6971_v18  ;;  %v6974_v1 = vadd.f32 %v7456_v51, %v6973_v25 }
0x2b64   :  { %7012 = vst [vmem:[%s11192_s13 + $0x58] sm:$0xff] %v6982_v54 }
0x2b65   :  { %7010 = vst [vmem:[%s11192_s13 + $0x48] sm:$0xff] %v6974_v1 }
0x2b6a   :  { %v8237_v45 = vpop.f32.mrb[160].mxu1 }
0x2b6b   :  { %v6995_v57 = vadd.f32 %v8237_v45, %v7456_v51  ;;  %v6986_v55 = vpop.f32.mrb[161].mxu1 }
0x2b6c   :  { %v6987_v35 = vadd.f32 %v7456_v51, %v6986_v55  ;;  %v8238_v33 = vpop.f32.mrb[162].mxu1 }
0x2b6d   :  { %7015 = vst [vmem:[%s11192_s13 + $0x70] sm:$0xff] %v6995_v57  ;;  %v6998_v14 = vadd.f32 %v8238_v33, %v7456_v51  ;;  %v6989_v43 = vpop.f32.mrb[163].mxu1 }
0x2b6e   :  { %7013 = vst [vmem:[%s11192_s13 + $0x60] sm:$0xff] %v6987_v35  ;;  %v6990_v50 = vadd.f32 %v7456_v51, %v6989_v43 }
0x2b6f   :  { %7016 = vst [vmem:[%s11192_s13 + $0x78] sm:$0xff] %v6998_v14 }
0x2b70   :  { %7014 = vst [vmem:[%s11192_s13 + $0x68] sm:$0xff] %v6990_v50 }

</bundles_post_ra>
